<compile_context>
chip_gen: v6e
topology: v6e:2x2x1
jax: 0.10.0
libtpu: 0.0.40
codegen_flags: <defaults>
</compile_context>

<pallas_src>
import functools

import jax
import jax.numpy as jnp
from jax.experimental import pallas as pl
from jax.experimental.pallas import tpu as pltpu


def _round_up(x, m):
    return ((x + m - 1) // m) * m


def _gaussian_denoiser_kernel(xt_ref,    # (TB, Dp) VMEM  xt rows for this tile
                              sig_ref,   # (TB, 1)  VMEM  sigma_t per row
                              mu_ref,    # (1, Dp)  VMEM  mu_x (resident)
                              lam_ref,   # (1, Dp)  VMEM  eigenvalues (resident)
                              q_ref,     # (Dp, Dp) VMEM  Q   (resident)
                              qt_ref,    # (Dp, Dp) VMEM  Q^T (resident)
                              out_ref,   # (TB, Dp) VMEM  output rows
                              *, mxu_dtype):
    xt = xt_ref[...]                                    # (TB, Dp)
    sig2 = sig_ref[...] * sig_ref[...]                  # (TB, 1)  = cov_t

    # b = xt - mu_x
    resid = xt - mu_ref[...]                            # (TB, Dp)

    # Project onto the eigenbasis of cov_x:  y = b @ Q          (MXU)
    y = jnp.dot(resid.astype(mxu_dtype), q_ref[...],
                preferred_element_type=jnp.float32)     # (TB, Dp) f32

    # Diagonal solve in eigen-space:  y / (lam + sigma^2)       (EUP + VPU)
    ys = y * pl.reciprocal(lam_ref[...] + sig2, approx=True)    # (TB, Dp)

    # Back-project with the pre-transposed matrix:  x_sol = ys @ Q^T   (MXU)
    x_sol = jnp.dot(ys.astype(mxu_dtype), qt_ref[...],
                    preferred_element_type=jnp.float32)  # (TB, Dp) f32

    # out = xt - cov_t * x_sol
    out_ref[...] = xt - sig2 * x_sol


@functools.partial(jax.jit, static_argnames=("use_bf16_mxu",))
def gaussian_denoiser(xt, sigma_t, mu_x, cov_x, use_bf16_mxu=False):
    B, D = xt.shape
    xt_f = xt.astype(jnp.float32)
    sigma = sigma_t.reshape(B, 1).astype(jnp.float32)
    mu = mu_x.reshape(1, D).astype(jnp.float32)
    cov = cov_x.astype(jnp.float32)

    # One-time (per call, batch-amortized) eigendecomposition of the prior
    # covariance:  cov_x = Q diag(lam) Q^T.
    lam, q = jnp.linalg.eigh(cov)                       # (D,), (D, D)
    lam = jnp.maximum(lam, 0.0)   # guard tiny negative eigenvalues from eigh

    # --- lane-pad D to a multiple of 128 (mathematically inert) -------------
    Dp = _round_up(D, 128)
    if Dp != D:
        pd = Dp - D
        xt_f = jnp.pad(xt_f, ((0, 0), (0, pd)))          # zero resid cols
        mu = jnp.pad(mu, ((0, 0), (0, pd)))
        q = jnp.pad(q, ((0, pd), (0, pd)))               # zero rows & cols
        lam = jnp.pad(lam, (0, pd), constant_values=1.0)  # unit padded eigvals
    lam_row = lam.reshape(1, Dp).astype(jnp.float32)

    mxu_dtype = jnp.bfloat16 if use_bf16_mxu else jnp.float32
    q_mm = q.astype(mxu_dtype)
    qt_mm = q_mm.T            # transposed ONCE here, not per grid step

    # --- batch tiling: large MXU-friendly tiles, padded batch ---------------
    TB = min(128, _round_up(B, 8))          # cap for small batches
    Bp = _round_up(B, TB)
    if Bp != B:
        pad = Bp - B
        xt_f = jnp.pad(xt_f, ((0, pad), (0, 0)))
        sigma = jnp.pad(sigma, ((0, pad), (0, 0)), constant_values=1.0)

    grid_spec = pltpu.PrefetchScalarGridSpec(
        num_scalar_prefetch=0,
        grid=(Bp // TB,),
        in_specs=[
            pl.BlockSpec((TB, Dp), lambda i: (i, 0)),    # xt tile
            pl.BlockSpec((TB, 1), lambda i: (i, 0)),     # sigma tile
            pl.BlockSpec((1, Dp), lambda i: (0, 0)),     # mu_x   (constant)
            pl.BlockSpec((1, Dp), lambda i: (0, 0)),     # lam    (constant)
            pl.BlockSpec((Dp, Dp), lambda i: (0, 0)),    # Q      (constant)
            pl.BlockSpec((Dp, Dp), lambda i: (0, 0)),    # Q^T    (constant)
        ],
        out_specs=pl.BlockSpec((TB, Dp), lambda i: (i, 0)),
    )

    out = pl.pallas_call(
        functools.partial(_gaussian_denoiser_kernel, mxu_dtype=mxu_dtype),
        out_shape=jax.ShapeDtypeStruct((Bp, Dp), jnp.float32),
        grid_spec=grid_spec,
        compiler_params=pltpu.CompilerParams(
            # Batch tiles are fully independent -> megacore-shardable.
            dimension_semantics=("parallel",),
            # Headroom above v5e's 16 MiB default scoped VMEM once Q and Q^T
            # (double-buffered) plus large batch tiles are resident; well
            # under physical VMEM on v5e/v6e/v7x.
            vmem_limit_bytes=48 * 1024 * 1024),
    )(xt_f, sigma, mu, lam_row, q_mm, qt_mm)

    return out[:B, :D]


def reference(xt, sigma_t, mu_x, cov_x):
    B, D = xt.shape
    cov_t = (sigma_t.reshape(-1, 1)) ** 2               # (B, 1)
    I = jnp.eye(D, dtype=jnp.float32)
    A = cov_x[None] + cov_t[:, :, None] * I[None]       # (B, D, D)
    b = xt - mu_x
    x_sol = jnp.linalg.solve(A, b[..., None])[..., 0]
    return xt - cov_t * x_sol


if __name__ == "__main__":
    # Original module uses D=784; kernel is shape-generic.  D=200 exercises
    # the D->256 lane-padding path; B=10 exercises batch padding (-> 16).
    B, D = 10, 200

    key = jax.random.PRNGKey(0)
    k1, k2, k3, k4 = jax.random.split(key, 4)

    # Deterministic "parameters": mu_x and an SPD covariance cov_x.
    mu_x = jax.random.normal(k1, (D,), dtype=jnp.float32)
    M = jax.random.normal(k2, (D, D), dtype=jnp.float32)
    cov_x = (M @ M.T) / D + 0.5 * jnp.eye(D, dtype=jnp.float32)

    # Inputs.
    xt = jax.random.normal(k3, (B, D), dtype=jnp.float32)
    sigma_t = 0.5 + jax.random.uniform(k4, (B,), dtype=jnp.float32)

    out = gaussian_denoiser(xt, sigma_t, mu_x, cov_x)
    out = jax.block_until_ready(out)

    ref = reference(xt, sigma_t, mu_x, cov_x)
    if not jnp.allclose(out, ref, rtol=5e-3, atol=5e-3):
        raise AssertionError(
            f"mismatch: max abs err = {jnp.max(jnp.abs(out - ref))}")

    print("KERNEL_OK")
</pallas_src>

<mosaic_0001>
module attributes {stable_mosaic.version = 11 : i64} {
  func.func @_gaussian_denoiser_kernel(%arg0: i32, %arg1: memref<16x256xf32, #tpu.memory_space<vmem>>, %arg2: memref<16x1xf32, #tpu.memory_space<vmem>>, %arg3: memref<1x256xf32, #tpu.memory_space<vmem>>, %arg4: memref<1x256xf32, #tpu.memory_space<vmem>>, %arg5: memref<256x256xf32, #tpu.memory_space<vmem>>, %arg6: memref<256x256xf32, #tpu.memory_space<vmem>>, %arg7: memref<16x256xf32, #tpu.memory_space<vmem>>) attributes {dimension_semantics = [#tpu.dimension_semantics<parallel>], iteration_bounds = array<i64: 1>, scalar_prefetch = 0 : i64, scratch_operands = 0 : i64, tpu.core_type = #tpu.core_type<tc>, window_params = [{transform_indices = @transform_0, window_bounds = array<i64: 16, 256>}, {transform_indices = @transform_1, window_bounds = array<i64: 16, 1>}, {pipeline_mode = #tpu.pipeline_mode<synchronous>, transform_indices = @transform_2, window_bounds = array<i64: 1, 256>}, {pipeline_mode = #tpu.pipeline_mode<synchronous>, transform_indices = @transform_3, window_bounds = array<i64: 1, 256>}, {pipeline_mode = #tpu.pipeline_mode<synchronous>, transform_indices = @transform_4, window_bounds = array<i64: 256, 256>}, {pipeline_mode = #tpu.pipeline_mode<synchronous>, transform_indices = @transform_5, window_bounds = array<i64: 256, 256>}, {transform_indices = @transform_6, window_bounds = array<i64: 16, 256>}]} {
    %c0 = arith.constant 0 : index
    %c0_0 = arith.constant 0 : index
    %0 = vector.load %arg1[%c0, %c0_0] : memref<16x256xf32, #tpu.memory_space<vmem>>, vector<16x256xf32>
    %c0_1 = arith.constant 0 : index
    %c0_2 = arith.constant 0 : index
    %1 = vector.load %arg2[%c0_1, %c0_2] : memref<16x1xf32, #tpu.memory_space<vmem>>, vector<16x1xf32>
    %c0_3 = arith.constant 0 : index
    %c0_4 = arith.constant 0 : index
    %2 = vector.load %arg2[%c0_3, %c0_4] : memref<16x1xf32, #tpu.memory_space<vmem>>, vector<16x1xf32>
    %3 = arith.mulf %1, %2 : vector<16x1xf32>
    %c0_5 = arith.constant 0 : index
    %c0_6 = arith.constant 0 : index
    %4 = vector.load %arg3[%c0_5, %c0_6] : memref<1x256xf32, #tpu.memory_space<vmem>>, vector<1x256xf32>
    %5 = vector.broadcast %4 : vector<1x256xf32> to vector<16x256xf32>
    %6 = arith.subf %0, %5 : vector<16x256xf32>
    %c0_7 = arith.constant 0 : index
    %c0_8 = arith.constant 0 : index
    %7 = vector.load %arg5[%c0_7, %c0_8] : memref<256x256xf32, #tpu.memory_space<vmem>>, vector<256x256xf32>
    %cst = arith.constant dense<0.000000e+00> : vector<16x256xf32>
    %8 = tpu.matmul %6, %7, %cst {dimension_numbers = #tpu.dot_dimension_numbers<[1], [0], [0], [1], [0, 0, 1, 1], [], []>} : vector<16x256xf32>, vector<256x256xf32>, vector<16x256xf32> -> vector<16x256xf32>
    %c0_9 = arith.constant 0 : index
    %c0_10 = arith.constant 0 : index
    %9 = vector.load %arg4[%c0_9, %c0_10] : memref<1x256xf32, #tpu.memory_space<vmem>>, vector<1x256xf32>
    %10 = vector.broadcast %9 : vector<1x256xf32> to vector<16x256xf32>
    %11 = vector.broadcast %3 : vector<16x1xf32> to vector<16x256xf32>
    %12 = arith.addf %10, %11 : vector<16x256xf32>
    %13 = tpu.reciprocal %12 {approx = true} : vector<16x256xf32> -> vector<16x256xf32>
    %14 = arith.mulf %8, %13 : vector<16x256xf32>
    %c0_11 = arith.constant 0 : index
    %c0_12 = arith.constant 0 : index
    %15 = vector.load %arg6[%c0_11, %c0_12] : memref<256x256xf32, #tpu.memory_space<vmem>>, vector<256x256xf32>
    %cst_13 = arith.constant dense<0.000000e+00> : vector<16x256xf32>
    %16 = tpu.matmul %14, %15, %cst_13 {dimension_numbers = #tpu.dot_dimension_numbers<[1], [0], [0], [1], [0, 0, 1, 1], [], []>} : vector<16x256xf32>, vector<256x256xf32>, vector<16x256xf32> -> vector<16x256xf32>
    %17 = vector.broadcast %3 : vector<16x1xf32> to vector<16x256xf32>
    %18 = arith.mulf %17, %16 : vector<16x256xf32>
    %19 = arith.subf %0, %18 : vector<16x256xf32>
    %c0_14 = arith.constant 0 : index
    %c0_15 = arith.constant 0 : index
    %20 = vector.load %arg7[%c0_14, %c0_15] : memref<16x256xf32, #tpu.memory_space<vmem>>, vector<16x256xf32>
    tpu.vector_store %arg7[%c0_14, %c0_15], %19 {strides = array<i32>} : memref<16x256xf32, #tpu.memory_space<vmem>>, vector<16x256xf32>,
    return
  }
  func.func @transform_0(%arg0: i32) -> (i32, i32) {
    %c0_i32 = arith.constant 0 : i32
    %c0_i32_0 = arith.constant 0 : i32
    return %arg0, %c0_i32 : i32, i32
  }
  func.func @transform_1(%arg0: i32) -> (i32, i32) {
    %c0_i32 = arith.constant 0 : i32
    %c0_i32_0 = arith.constant 0 : i32
    return %arg0, %c0_i32 : i32, i32
  }
  func.func @transform_2(%arg0: i32) -> (i32, i32) {
    %c0_i32 = arith.constant 0 : i32
    %c0_i32_0 = arith.constant 0 : i32
    %c0_i32_1 = arith.constant 0 : i32
    return %c0_i32, %c0_i32_0 : i32, i32
  }
  func.func @transform_3(%arg0: i32) -> (i32, i32) {
    %c0_i32 = arith.constant 0 : i32
    %c0_i32_0 = arith.constant 0 : i32
    %c0_i32_1 = arith.constant 0 : i32
    return %c0_i32, %c0_i32_0 : i32, i32
  }
  func.func @transform_4(%arg0: i32) -> (i32, i32) {
    %c0_i32 = arith.constant 0 : i32
    %c0_i32_0 = arith.constant 0 : i32
    %c0_i32_1 = arith.constant 0 : i32
    return %c0_i32, %c0_i32_0 : i32, i32
  }
  func.func @transform_5(%arg0: i32) -> (i32, i32) {
    %c0_i32 = arith.constant 0 : i32
    %c0_i32_0 = arith.constant 0 : i32
    %c0_i32_1 = arith.constant 0 : i32
    return %c0_i32, %c0_i32_0 : i32, i32
  }
  func.func @transform_6(%arg0: i32) -> (i32, i32) {
    %c0_i32 = arith.constant 0 : i32
    %c0_i32_0 = arith.constant 0 : i32
    return %arg0, %c0_i32 : i32, i32
  }
}

</mosaic_0001>

<bundles_post_ra>
// kernel: custom-call.2
= control target key start
LH: loop header
LB: loop body
LE: loop exit
PB: predicated region body
PF: predicated region fallthrough
CT: control target
= control target key end

     0   :  { %s12908_s0 = inlined_call_operand.vmem [shape: f32[100,100], index: 0, kind: input, shape index: {}]   ;;  %s12909_s1 = inlined_call_operand.vmem [shape: f32[100,100], index: 1, kind: input, shape index: {}]   ;;  %s12910_s2 = inlined_call_operand.vmem [shape: f32[100,100], index: 2, kind: input, shape index: {}]   ;;  %s12911_s3 = inlined_call_operand.vmem [shape: f32[100,100], index: 3, kind: input, shape index: {}]   ;;  %s12912_s4 = inlined_call_operand.vmem [shape: f32[100], index: 4, kind: output, shape index: {0}]   ;;  %s12913_s5 = inlined_call_operand.vmem [shape: f32[100], index: 5, kind: output, shape index: {1}]   ;;  %s12914_s6 = inlined_call_operand.vmem [shape: f32[100,100], index: 6, kind: output, shape index: {2}]   ;;  %s12915_s7 = inlined_call_operand.vmem [shape: f32[100,100], index: 7, kind: output, shape index: {3}]   ;;  %s12916_s8 = inlined_call_operand.vmem [shape: f32[100,100], index: 8, kind: output, shape index: {4}]   ;;  %s12917_s9 = inlined_call_operand.vmem [shape: f32[100,100], index: 9, kind: output, shape index: {5}]  }
   0x1   :  { %12941 = sst [smem:[#allocation43_spill]] %s12912_s4 }
   0x2   :  { %12942 = sst [smem:[#allocation44_spill]] %s12913_s5 }
   0x3   :  { %12943 = sst [smem:[#allocation45_spill]] %s12914_s6 }
   0x4   :  { %12944 = sst [smem:[#allocation46_spill]] %s12915_s7 }
   0x5   :  { %12945 = sst [smem:[#allocation47_spill]] %s12916_s8 }
   0x6   :  { %12946 = sst [smem:[#allocation48_spill]] %s12917_s9 }
   0x7   :  { %s9143_s11 = scalar_lea.vmem %s12908_s0, 96  ;;  %v25_v0 = vld [vmem:[%s12908_s0] sm:$0xff]   ;;  %s8919_s15 = smov [#allocation0]  }
   0x8   :  { %s7000_s14 = sadd.s32 4294967232, %s9143_s11  ;;  %v8915_v1 = vmov %v25_v0   ;;  %s8923_s18 = smov %s12908_s0  }
   0x9 LB: > { %33 = vst [vmem:[%s8921_s15] sm:$0xff] %v8917_v1  ;;  %v34_v2 = vld [vmem:[%s8925_s18 + $0x8] sm:$0xff]  ;;  %v36_v3 = vld [vmem:[%s8925_s18 + $0x10] sm:$0xff]  ;;  %v38_v4 = vld [vmem:[%s8925_s18 + $0x18] sm:$0xff]  ;;  %s48_s0 = scalar_lea.vmem %s8925_s18, 64   ;;  %s49_s19 = scalar_lea.vmem %s8921_s15, 64   ;;  %s8925_s18 = sphi %s8923_s18, %s8924_s18   ;;  %s8921_s15 = sphi %s8919_s15, %s8920_s15   ;;  %v8917_v1 = vphi %v8915_v1, %v50_v1  }
   0xa   : > { %35 = vst [vmem:[%s8921_s15 + $0x8] sm:$0xff] %v34_v2  ;;  %37 = vst [vmem:[%s8921_s15 + $0x10] sm:$0xff] %v36_v3  ;;  %v40_v5 = vld [vmem:[%s8925_s18 + $0x20] sm:$0xff]  ;;  %v42_v6 = vld [vmem:[%s8925_s18 + $0x28] sm:$0xff]  ;;  %p30_p0 = scmp.gt.s32.totalorder %s48_s0, %s7000_s14 }
   0xb   : > { %39 = vst [vmem:[%s8921_s15 + $0x18] sm:$0xff] %v38_v4  ;;  %v44_v7 = vld [vmem:[%s8925_s18 + $0x30] sm:$0xff]  ;;  %41 = vst [vmem:[%s8921_s15 + $0x20] sm:$0xff] %v40_v5  ;;  %v46_v8 = vld [vmem:[%s8925_s18 + $0x38] sm:$0xff]  ;;  %p6353_p1 = scmp.gt.s32.totalorder (%p30_p0), %s48_s0, %s9143_s11 }
   0xc   : > { %43 = vst [vmem:[%s8921_s15 + $0x28] sm:$0xff] %v42_v6  ;;  %45 = vst [vmem:[%s8921_s15 + $0x30] sm:$0xff] %v44_v7  ;;  %v50_v1 = vld [vmem:[%s8925_s18 + $0x40] sm:$0xff]   ;;  %s8924_s18 = smov %s48_s0   ;;  %32 = sbr.rel (!%p30_p0) target bundleno = 9 (0x9), region = 1175 }
   0xd   : > { %47 = vst [vmem:[%s8921_s15 + $0x38] sm:$0xff] %v46_v8  ;;  %s8920_s15 = smov %s49_s19  }
  0x11   :  { %6354 = sbr.rel (%p6353_p1) target bundleno = 30 (0x1e), region = 1180  ;;  %s8927_s20 = smov (!%p6353_p1), %s49_s19  }
  0x12   :  { %s8931_s21 = smov (!%p6353_p1), %s48_s0  }
  0x16 LB: > { %v58_v9 = vld [vmem:[%s8933_s21] sm:$0xff]  ;;  %s60_s21 = scalar_lea.vmem %s8933_s21, 8   ;;  %s8933_s21 = sphi %s8931_s21, %s60_s21   ;;  %s8929_s20 = sphi %s8927_s20, %s61_s20  }
  0x17   : > { %59 = vst [vmem:[%s8929_s20] sm:$0xff] %v58_v9  ;;  %s61_s20 = scalar_lea.vmem %s8929_s20, 8   ;;  %p55_p2 = scmp.gt.s32.totalorder %s60_s21, %s9143_s11 }
  0x19   :  { %57 = sbr.rel (!%p55_p2) target bundleno = 22 (0x16), region = 1186 }
  0x1e PF:  { %s9159_s24 = scalar_lea.vmem %s12909_s1, 96  ;;  %v88_v10 = vld [vmem:[%s12909_s1] sm:$0xff]   ;;  %s8939_s28 = smov [#allocation1]  }
  0x1f   :  { %s7002_s27 = sadd.s32 4294967232, %s9159_s24  ;;  %v8935_v11 = vmov %v88_v10   ;;  %s8943_s10 = smov %s12909_s1  }
  0x20 LB: > { %96 = vst [vmem:[%s8941_s28] sm:$0xff] %v8937_v11  ;;  %v97_v12 = vld [vmem:[%s8945_s10 + $0x8] sm:$0xff]  ;;  %v99_v13 = vld [vmem:[%s8945_s10 + $0x10] sm:$0xff]  ;;  %v101_v14 = vld [vmem:[%s8945_s10 + $0x18] sm:$0xff]  ;;  %s111_s1 = scalar_lea.vmem %s8945_s10, 64   ;;  %s112_s11 = scalar_lea.vmem %s8941_s28, 64   ;;  %s8945_s10 = sphi %s8943_s10, %s8944_s10   ;;  %s8941_s28 = sphi %s8939_s28, %s8940_s28   ;;  %v8937_v11 = vphi %v8935_v11, %v113_v11  }
  0x21   : > { %98 = vst [vmem:[%s8941_s28 + $0x8] sm:$0xff] %v97_v12  ;;  %100 = vst [vmem:[%s8941_s28 + $0x10] sm:$0xff] %v99_v13  ;;  %v103_v15 = vld [vmem:[%s8945_s10 + $0x20] sm:$0xff]  ;;  %v105_v16 = vld [vmem:[%s8945_s10 + $0x28] sm:$0xff]  ;;  %p93_p3 = scmp.gt.s32.totalorder %s111_s1, %s7002_s27 }
  0x22   : > { %102 = vst [vmem:[%s8941_s28 + $0x18] sm:$0xff] %v101_v14  ;;  %v107_v17 = vld [vmem:[%s8945_s10 + $0x30] sm:$0xff]  ;;  %104 = vst [vmem:[%s8941_s28 + $0x20] sm:$0xff] %v103_v15  ;;  %v109_v18 = vld [vmem:[%s8945_s10 + $0x38] sm:$0xff]  ;;  %p6373_p4 = scmp.gt.s32.totalorder (%p93_p3), %s111_s1, %s9159_s24 }
  0x23   : > { %106 = vst [vmem:[%s8941_s28 + $0x28] sm:$0xff] %v105_v16  ;;  %108 = vst [vmem:[%s8941_s28 + $0x30] sm:$0xff] %v107_v17  ;;  %v113_v11 = vld [vmem:[%s8945_s10 + $0x40] sm:$0xff]   ;;  %s8944_s10 = smov %s111_s1   ;;  %95 = sbr.rel (!%p93_p3) target bundleno = 32 (0x20), region = 1197 }
  0x24   : > { %110 = vst [vmem:[%s8941_s28 + $0x38] sm:$0xff] %v109_v18  ;;  %s8940_s28 = smov %s112_s11  }
  0x28   :  { %6374 = sbr.rel (%p6373_p4) target bundleno = 53 (0x35), region = 1202  ;;  %s8947_s12 = smov (!%p6373_p4), %s112_s11  }
  0x29   :  { %s8951_s13 = smov (!%p6373_p4), %s111_s1  }
  0x2d LB: > { %v121_v19 = vld [vmem:[%s8953_s13] sm:$0xff]  ;;  %s123_s13 = scalar_lea.vmem %s8953_s13, 8   ;;  %s8953_s13 = sphi %s8951_s13, %s123_s13   ;;  %s8949_s12 = sphi %s8947_s12, %s124_s12  }
  0x2e   : > { %122 = vst [vmem:[%s8949_s12] sm:$0xff] %v121_v19  ;;  %s124_s12 = scalar_lea.vmem %s8949_s12, 8   ;;  %p118_p5 = scmp.gt.s32.totalorder %s123_s13, %s9159_s24 }
  0x30   :  { %120 = sbr.rel (!%p118_p5) target bundleno = 45 (0x2d), region = 1208 }
  0x35 PF:  { %s9175_s16 = scalar_lea.vmem %s12910_s2, 96  ;;  %v151_v20 = vld [vmem:[%s12910_s2] sm:$0xff]   ;;  %s8959_s19 = smov [#allocation2]  }
  0x36   :  { %s7004_s0 = sadd.s32 4294967232, %s9175_s16  ;;  %v8955_v21 = vmov %v151_v20   ;;  %s8963_s22 = smov %s12910_s2  }
  0x37 LB: > { %159 = vst [vmem:[%s8961_s19] sm:$0xff] %v8957_v21  ;;  %v160_v22 = vld [vmem:[%s8965_s22 + $0x8] sm:$0xff]  ;;  %v162_v23 = vld [vmem:[%s8965_s22 + $0x10] sm:$0xff]  ;;  %v164_v24 = vld [vmem:[%s8965_s22 + $0x18] sm:$0xff]  ;;  %s174_s2 = scalar_lea.vmem %s8965_s22, 64   ;;  %s175_s23 = scalar_lea.vmem %s8961_s19, 64   ;;  %s8965_s22 = sphi %s8963_s22, %s8964_s22   ;;  %s8961_s19 = sphi %s8959_s19, %s8960_s19   ;;  %v8957_v21 = vphi %v8955_v21, %v176_v21  }
  0x38   : > { %161 = vst [vmem:[%s8961_s19 + $0x8] sm:$0xff] %v160_v22  ;;  %163 = vst [vmem:[%s8961_s19 + $0x10] sm:$0xff] %v162_v23  ;;  %v166_v25 = vld [vmem:[%s8965_s22 + $0x20] sm:$0xff]  ;;  %v168_v26 = vld [vmem:[%s8965_s22 + $0x28] sm:$0xff]  ;;  %p156_p6 = scmp.gt.s32.totalorder %s174_s2, %s7004_s0 }
  0x39   : > { %165 = vst [vmem:[%s8961_s19 + $0x18] sm:$0xff] %v164_v24  ;;  %v170_v27 = vld [vmem:[%s8965_s22 + $0x30] sm:$0xff]  ;;  %167 = vst [vmem:[%s8961_s19 + $0x20] sm:$0xff] %v166_v25  ;;  %v172_v28 = vld [vmem:[%s8965_s22 + $0x38] sm:$0xff]  ;;  %p6393_p7 = scmp.gt.s32.totalorder (%p156_p6), %s174_s2, %s9175_s16 }
  0x3a   : > { %169 = vst [vmem:[%s8961_s19 + $0x28] sm:$0xff] %v168_v26  ;;  %171 = vst [vmem:[%s8961_s19 + $0x30] sm:$0xff] %v170_v27  ;;  %v176_v21 = vld [vmem:[%s8965_s22 + $0x40] sm:$0xff]   ;;  %s8964_s22 = smov %s174_s2   ;;  %158 = sbr.rel (!%p156_p6) target bundleno = 55 (0x37), region = 1219 }
  0x3b   : > { %173 = vst [vmem:[%s8961_s19 + $0x38] sm:$0xff] %v172_v28  ;;  %s8960_s19 = smov %s175_s23  }
  0x3f   :  { %6394 = sbr.rel (%p6393_p7) target bundleno = 76 (0x4c), region = 1224  ;;  %s8967_s24 = smov (!%p6393_p7), %s175_s23  }
  0x40   :  { %s8971_s25 = smov (!%p6393_p7), %s174_s2  }
  0x44 LB: > { %v184_v29 = vld [vmem:[%s8973_s25] sm:$0xff]  ;;  %s186_s25 = scalar_lea.vmem %s8973_s25, 8   ;;  %s8973_s25 = sphi %s8971_s25, %s186_s25   ;;  %s8969_s24 = sphi %s8967_s24, %s187_s24  }
  0x45   : > { %185 = vst [vmem:[%s8969_s24] sm:$0xff] %v184_v29  ;;  %s187_s24 = scalar_lea.vmem %s8969_s24, 8   ;;  %p181_p8 = scmp.gt.s32.totalorder %s186_s25, %s9175_s16 }
  0x47   :  { %183 = sbr.rel (!%p181_p8) target bundleno = 68 (0x44), region = 1230 }
  0x4c PF:  { %s9191_s28 = scalar_lea.vmem %s12911_s3, 96  ;;  %v214_v30 = vld [vmem:[%s12911_s3] sm:$0xff]   ;;  %s8979_s1 = smov [#allocation3]  }
  0x4d   :  { %s7006_s10 = sadd.s32 4294967232, %s9191_s28  ;;  %v8975_v31 = vmov %v214_v30   ;;  %s8983_s13 = smov %s12911_s3  }
  0x4e LB: > { %222 = vst [vmem:[%s8981_s1] sm:$0xff] %v8977_v31  ;;  %v223_v32 = vld [vmem:[%s8985_s13 + $0x8] sm:$0xff]  ;;  %v225_v33 = vld [vmem:[%s8985_s13 + $0x10] sm:$0xff]  ;;  %v227_v34 = vld [vmem:[%s8985_s13 + $0x18] sm:$0xff]  ;;  %s237_s3 = scalar_lea.vmem %s8985_s13, 64   ;;  %s238_s14 = scalar_lea.vmem %s8981_s1, 64   ;;  %s8985_s13 = sphi %s8983_s13, %s8984_s13   ;;  %s8981_s1 = sphi %s8979_s1, %s8980_s1   ;;  %v8977_v31 = vphi %v8975_v31, %v239_v31  }
  0x4f   : > { %224 = vst [vmem:[%s8981_s1 + $0x8] sm:$0xff] %v223_v32  ;;  %226 = vst [vmem:[%s8981_s1 + $0x10] sm:$0xff] %v225_v33  ;;  %v229_v35 = vld [vmem:[%s8985_s13 + $0x20] sm:$0xff]  ;;  %v231_v36 = vld [vmem:[%s8985_s13 + $0x28] sm:$0xff]  ;;  %p219_p9 = scmp.gt.s32.totalorder %s237_s3, %s7006_s10 }
  0x50   : > { %228 = vst [vmem:[%s8981_s1 + $0x18] sm:$0xff] %v227_v34  ;;  %v233_v37 = vld [vmem:[%s8985_s13 + $0x30] sm:$0xff]  ;;  %230 = vst [vmem:[%s8981_s1 + $0x20] sm:$0xff] %v229_v35  ;;  %v235_v38 = vld [vmem:[%s8985_s13 + $0x38] sm:$0xff]  ;;  %p6413_p10 = scmp.gt.s32.totalorder (%p219_p9), %s237_s3, %s9191_s28 }
  0x51   : > { %232 = vst [vmem:[%s8981_s1 + $0x28] sm:$0xff] %v231_v36  ;;  %234 = vst [vmem:[%s8981_s1 + $0x30] sm:$0xff] %v233_v37  ;;  %v239_v31 = vld [vmem:[%s8985_s13 + $0x40] sm:$0xff]   ;;  %s8984_s13 = smov %s237_s3   ;;  %221 = sbr.rel (!%p219_p9) target bundleno = 78 (0x4e), region = 1241 }
  0x52   : > { %236 = vst [vmem:[%s8981_s1 + $0x38] sm:$0xff] %v235_v38  ;;  %s8980_s1 = smov %s238_s14  }
  0x56   :  { %6414 = sbr.rel (%p6413_p10) target bundleno = 99 (0x63), region = 1246  ;;  %s8987_s15 = smov (!%p6413_p10), %s238_s14  }
  0x57   :  { %s8991_s16 = smov (!%p6413_p10), %s237_s3  }
  0x5b LB: > { %v247_v39 = vld [vmem:[%s8993_s16] sm:$0xff]  ;;  %s249_s16 = scalar_lea.vmem %s8993_s16, 8   ;;  %s8993_s16 = sphi %s8991_s16, %s249_s16   ;;  %s8989_s15 = sphi %s8987_s15, %s250_s15  }
  0x5c   : > { %248 = vst [vmem:[%s8989_s15] sm:$0xff] %v247_v39  ;;  %s250_s15 = scalar_lea.vmem %s8989_s15, 8   ;;  %p244_p11 = scmp.gt.s32.totalorder %s249_s16, %s9191_s28 }
  0x5e   :  { %246 = sbr.rel (!%p244_p11) target bundleno = 91 (0x5b), region = 1252 }
  0x63 PF:  { %s9204_s17 = smov [#allocation12]  ;;  %v264_v40 = vld [vmem:[#allocation0] sm:$0xff]  ;;  %v268_v41 = vld [vmem:[#allocation0 + $0x8] sm:$0xff]  ;;  %v272_v42 = vld [vmem:[#allocation0 + $0x10] sm:$0xff]  ;;  %v568_v43 = vlaneseq  ;;  %v9083_v47 = vmov 0.0   ;;  %s9212_s18 = smov [#allocation13] }
  0x64   :  { %265 = vst [vmem:[%s9204_s17] sm:$0xff] %v264_v40  ;;  %7008 = vst [vmem:[%s9204_s17 + $0x8] sm:$0xff] %v268_v41  ;;  %v276_v44 = vld [vmem:[#allocation0 + $0x18] sm:$0xff]  ;;  %v280_v45 = vld [vmem:[#allocation0 + $0x20] sm:$0xff]  ;;  %s9235_s0 = smov [#allocation14]  ;;  %s9252_s19 = smov [#allocation15] }
  0x65   :  { %7009 = vst [vmem:[%s9204_s17 + $0x10] sm:$0xff] %v272_v42  ;;  %v284_v46 = vld [vmem:[#allocation0 + $0x28] sm:$0xff]  ;;  %467 = vst [vmem:[#allocation8] sm:$0xff] %v9083_v47  ;;  %v288_v48 = vld [vmem:[#allocation0 + $0x30] sm:$0xff]  ;;  %v9215_v51 = vand.u32 127, %v568_v43  ;;  %v9218_v52 = vshrl.u32 %v568_v43, 7 }
  0x66   :  { %469 = vst [vmem:[#allocation8 + $0x8] sm:$0xff] %v9083_v47  ;;  %471 = vst [vmem:[#allocation8 + $0x10] sm:$0xff] %v9083_v47  ;;  %v292_v49 = vld [vmem:[#allocation0 + $0x38] sm:$0xff]  ;;  %v296_v50 = vld [vmem:[#allocation0 + $0x40] sm:$0xff]  ;;  %s9338_s20 = smov [#allocation8]  ;;  %s9364_s21 = smov [#allocation11] }
  0x67   :  { %473 = vst [vmem:[#allocation8 + $0x18] sm:$0xff] %v9083_v47  ;;  %475 = vst [vmem:[#allocation8 + $0x20] sm:$0xff] %v9083_v47  ;;  %v300_v53 = vld [vmem:[#allocation0 + $0x48] sm:$0xff]  ;;  %v304_v54 = vld [vmem:[#allocation0 + $0x50] sm:$0xff]  ;;  %v9227_v52 = vmov %v9218_v52  ;;  %v9238_v51 = vmov %v9215_v51  ;;  %s9540_s22 = smov [#allocation12]  ;;  %s9603_s2 = smov [#allocation13] }
  0x68   :  { %477 = vst [vmem:[#allocation8 + $0x28] sm:$0xff] %v9083_v47  ;;  %479 = vst [vmem:[#allocation8 + $0x30] sm:$0xff] %v9083_v47  ;;  %v308_v55 = vld [vmem:[#allocation0 + $0x58] sm:$0xff]  ;;  %v312_v56 = vld [vmem:[#allocation0 + $0x60] sm:$0xff]  ;;  %v9241_v1 = vadd.s32 8, %v9227_v52  ;;  %v9247_v5 = vadd.s32 16, %v9227_v52  ;;  %v9261_v51 = vmov %v9215_v51  ;;  %vm577_vm0 = vcmp.eq.s32.totalorder %v9227_v52, %v9238_v51 }
  0x69   :  { %481 = vst [vmem:[#allocation8 + $0x38] sm:$0xff] %v9083_v47  ;;  %483 = vst [vmem:[#allocation8 + $0x40] sm:$0xff] %v9083_v47  ;;  %v315_v57 = vld [vmem:[#allocation1] sm:$0xff]  ;;  %v319_v58 = vld [vmem:[#allocation1 + $0x8] sm:$0xff]  ;;  %v9255_v9 = vadd.s32 24, %v9227_v52  ;;  %v9258_v10 = vadd.s32 32, %v9227_v52  ;;  %v9264_v52 = vmov %v9218_v52 }
  0x6a   :  { %485 = vst [vmem:[#allocation8 + $0x48] sm:$0xff] %v9083_v47  ;;  %487 = vst [vmem:[#allocation8 + $0x50] sm:$0xff] %v9083_v47  ;;  %v323_v59 = vld [vmem:[#allocation1 + $0x10] sm:$0xff]  ;;  %v327_v60 = vld [vmem:[#allocation1 + $0x18] sm:$0xff]  ;;  %v9272_v14 = vadd.s32 40, %v9227_v52  ;;  %v9275_v15 = vadd.s32 48, %v9227_v52  ;;  %vm584_vm1 = vcmp.eq.s32.totalorder %v9241_v1, %v9238_v51  ;;  %vm591_vm2 = vcmp.eq.s32.totalorder %v9247_v5, %v9238_v51 }
  0x6b   :  { %489 = vst [vmem:[#allocation8 + $0x58] sm:$0xff] %v9083_v47  ;;  %491 = vst [vmem:[#allocation8 + $0x60] sm:$0xff] %v9083_v47  ;;  %v331_v61 = vld [vmem:[#allocation1 + $0x20] sm:$0xff]  ;;  %v335_v62 = vld [vmem:[#allocation1 + $0x28] sm:$0xff]  ;;  %v9278_v16 = vadd.s32 56, %v9227_v52  ;;  %v9286_v20 = vadd.s32 64, %v9227_v52  ;;  %vm598_vm3 = vcmp.eq.s32.totalorder %v9255_v9, %v9238_v51  ;;  %vm605_vm4 = vcmp.eq.s32.totalorder %v9258_v10, %v9238_v51 }
  0x6c   :  { %492 = vst [vmem:[#allocation9] sm:$0xff] %v9083_v47  ;;  %494 = vst [vmem:[#allocation9 + $0x8] sm:$0xff] %v9083_v47  ;;  %v339_v63 = vld [vmem:[#allocation1 + $0x30] sm:$0xff]  ;;  %v343_v0 = vld [vmem:[#allocation1 + $0x38] sm:$0xff]  ;;  %v9289_v21 = vadd.s32 72, %v9227_v52  ;;  %v9292_v22 = vadd.s32 80, %v9227_v52  ;;  %vm674_vm5 = vcmp.eq.s32.totalorder %v9264_v52, %v9261_v51  ;;  %vm612_vm6 = vcmp.eq.s32.totalorder %v9272_v14, %v9238_v51 }
  0x6d   :  { %496 = vst [vmem:[#allocation9 + $0x10] sm:$0xff] %v9083_v47  ;;  %498 = vst [vmem:[#allocation9 + $0x18] sm:$0xff] %v9083_v47  ;;  %v347_v2 = vld [vmem:[#allocation1 + $0x40] sm:$0xff]  ;;  %v351_v3 = vld [vmem:[#allocation1 + $0x48] sm:$0xff]  ;;  %v9300_v26 = vadd.s32 88, %v9227_v52  ;;  %v9303_v27 = vadd.s32 96, %v9227_v52  ;;  %vm619_vm7 = vcmp.eq.s32.totalorder %v9275_v15, %v9238_v51  ;;  %vm626_vm8 = vcmp.eq.s32.totalorder %v9278_v16, %v9238_v51 }
  0x6e   :  { %500 = vst [vmem:[#allocation9 + $0x20] sm:$0xff] %v9083_v47  ;;  %502 = vst [vmem:[#allocation9 + $0x28] sm:$0xff] %v9083_v47  ;;  %v355_v4 = vld [vmem:[#allocation1 + $0x50] sm:$0xff]  ;;  %v359_v6 = vld [vmem:[#allocation1 + $0x58] sm:$0xff]  ;;  %v9306_v28 = vadd.s32 8, %v9264_v52  ;;  %v9318_v32 = vadd.s32 16, %v9264_v52  ;;  %vm633_vm9 = vcmp.eq.s32.totalorder %v9286_v20, %v9238_v51  ;;  %vm640_vm10 = vcmp.eq.s32.totalorder %v9289_v21, %v9238_v51 }
  0x6f   :  { %504 = vst [vmem:[#allocation9 + $0x30] sm:$0xff] %v9083_v47  ;;  %506 = vst [vmem:[#allocation9 + $0x38] sm:$0xff] %v9083_v47  ;;  %v363_v7 = vld [vmem:[#allocation1 + $0x60] sm:$0xff]  ;;  %v366_v8 = vld [vmem:[#allocation2] sm:$0xff]  ;;  %v9321_v33 = vadd.s32 24, %v9264_v52  ;;  %v9333_v37 = vadd.s32 32, %v9264_v52  ;;  %vm647_vm11 = vcmp.eq.s32.totalorder %v9292_v22, %v9238_v51  ;;  %vm654_vm12 = vcmp.eq.s32.totalorder %v9300_v26, %v9238_v51 }
  0x70   :  { %508 = vst [vmem:[#allocation9 + $0x40] sm:$0xff] %v9083_v47  ;;  %510 = vst [vmem:[#allocation9 + $0x48] sm:$0xff] %v9083_v47  ;;  %v370_v11 = vld [vmem:[#allocation2 + $0x8] sm:$0xff]  ;;  %v374_v12 = vld [vmem:[#allocation2 + $0x10] sm:$0xff]  ;;  %v9347_v41 = vadd.s32 40, %v9264_v52  ;;  %vm661_vm13 = vcmp.eq.s32.totalorder %v9303_v27, %v9238_v51  ;;  %vm688_vm15 = vcmp.eq.s32.totalorder %v9318_v32, %v9261_v51  ;;  %s9714_s23 = smov [#allocation14] }
  0x71   :  { %512 = vst [vmem:[#allocation9 + $0x50] sm:$0xff] %v9083_v47  ;;  %514 = vst [vmem:[#allocation9 + $0x58] sm:$0xff] %v9083_v47  ;;  %v378_v13 = vld [vmem:[#allocation2 + $0x18] sm:$0xff]  ;;  %v382_v17 = vld [vmem:[#allocation2 + $0x20] sm:$0xff]  ;;  %s9816_s24 = smov [#allocation15] }
  0x72   :  { %516 = vst [vmem:[#allocation9 + $0x60] sm:$0xff] %v9083_v47  ;;  %517 = vst [vmem:[#allocation10] sm:$0xff] %v9083_v47  ;;  %v386_v18 = vld [vmem:[#allocation2 + $0x28] sm:$0xff]  ;;  %v390_v19 = vld [vmem:[#allocation2 + $0x30] sm:$0xff]  ;;  %vm709_vm14 = vcmp.eq.s32.totalorder %v9347_v41, %v9261_v51 }
  0x73   :  { %519 = vst [vmem:[#allocation10 + $0x8] sm:$0xff] %v9083_v47  ;;  %521 = vst [vmem:[#allocation10 + $0x10] sm:$0xff] %v9083_v47  ;;  %v394_v23 = vld [vmem:[#allocation2 + $0x38] sm:$0xff]  ;;  %v398_v24 = vld [vmem:[#allocation2 + $0x40] sm:$0xff] }
  0x74   :  { %523 = vst [vmem:[#allocation10 + $0x18] sm:$0xff] %v9083_v47  ;;  %525 = vst [vmem:[#allocation10 + $0x20] sm:$0xff] %v9083_v47  ;;  %v402_v25 = vld [vmem:[#allocation2 + $0x48] sm:$0xff]  ;;  %v406_v29 = vld [vmem:[#allocation2 + $0x50] sm:$0xff] }
  0x75   :  { %527 = vst [vmem:[#allocation10 + $0x28] sm:$0xff] %v9083_v47  ;;  %529 = vst [vmem:[#allocation10 + $0x30] sm:$0xff] %v9083_v47  ;;  %v410_v30 = vld [vmem:[#allocation2 + $0x58] sm:$0xff]  ;;  %v414_v31 = vld [vmem:[#allocation2 + $0x60] sm:$0xff] }
  0x76   :  { %531 = vst [vmem:[#allocation10 + $0x38] sm:$0xff] %v9083_v47  ;;  %533 = vst [vmem:[#allocation10 + $0x40] sm:$0xff] %v9083_v47  ;;  %v417_v34 = vld [vmem:[#allocation3] sm:$0xff]  ;;  %v421_v35 = vld [vmem:[#allocation3 + $0x8] sm:$0xff] }
  0x77   :  { %535 = vst [vmem:[#allocation10 + $0x48] sm:$0xff] %v9083_v47  ;;  %537 = vst [vmem:[#allocation10 + $0x50] sm:$0xff] %v9083_v47  ;;  %v425_v36 = vld [vmem:[#allocation3 + $0x10] sm:$0xff]  ;;  %v429_v38 = vld [vmem:[#allocation3 + $0x18] sm:$0xff] }
  0x78   :  { %539 = vst [vmem:[#allocation10 + $0x58] sm:$0xff] %v9083_v47  ;;  %541 = vst [vmem:[#allocation10 + $0x60] sm:$0xff] %v9083_v47  ;;  %v433_v39 = vld [vmem:[#allocation3 + $0x20] sm:$0xff]  ;;  %v437_v40 = vld [vmem:[#allocation3 + $0x28] sm:$0xff] }
  0x79   :  { %542 = vst [vmem:[#allocation11] sm:$0xff] %v9083_v47  ;;  %544 = vst [vmem:[#allocation11 + $0x8] sm:$0xff] %v9083_v47  ;;  %v441_v42 = vld [vmem:[#allocation3 + $0x30] sm:$0xff]  ;;  %v445_v43 = vld [vmem:[#allocation3 + $0x38] sm:$0xff] }
  0x7a   :  { %546 = vst [vmem:[#allocation11 + $0x10] sm:$0xff] %v9083_v47  ;;  %548 = vst [vmem:[#allocation11 + $0x18] sm:$0xff] %v9083_v47  ;;  %v7070_v10 = vld [vmem:[%s9338_s20 + $0x40] sm:$0xff]  ;;  %v7076_v16 = vld [vmem:[%s9338_s20 + $0x58] sm:$0xff] }
  0x7b   :  { %550 = vst [vmem:[#allocation11 + $0x20] sm:$0xff] %v9083_v47  ;;  %552 = vst [vmem:[#allocation11 + $0x28] sm:$0xff] %v9083_v47 }
  0x7c   :  { %554 = vst [vmem:[#allocation11 + $0x30] sm:$0xff] %v9083_v47  ;;  %556 = vst [vmem:[#allocation11 + $0x38] sm:$0xff] %v9083_v47 }
  0x7d   :  { %558 = vst [vmem:[#allocation11 + $0x40] sm:$0xff] %v9083_v47  ;;  %560 = vst [vmem:[#allocation11 + $0x48] sm:$0xff] %v9083_v47 }
  0x7e   :  { %562 = vst [vmem:[#allocation11 + $0x50] sm:$0xff] %v9083_v47  ;;  %564 = vst [vmem:[#allocation11 + $0x58] sm:$0xff] %v9083_v47 }
  0x7f   :  { %566 = vst [vmem:[#allocation11 + $0x60] sm:$0xff] %v9083_v47  ;;  %7010 = vst [vmem:[%s9204_s17 + $0x18] sm:$0xff] %v276_v44  ;;  %v449_v44 = vld [vmem:[#allocation3 + $0x40] sm:$0xff]  ;;  %v457_v47 = vld [vmem:[#allocation3 + $0x50] sm:$0xff] }
  0x80   :  { %7011 = vst [vmem:[%s9204_s17 + $0x20] sm:$0xff] %v280_v45  ;;  %7012 = vst [vmem:[%s9204_s17 + $0x28] sm:$0xff] %v284_v46  ;;  %v9359_v45 = vadd.s32 48, %v9264_v52  ;;  %v453_v46 = vld [vmem:[#allocation3 + $0x48] sm:$0xff] }
  0x81   :  { %7013 = vst [vmem:[%s9204_s17 + $0x30] sm:$0xff] %v288_v48  ;;  %7014 = vst [vmem:[%s9204_s17 + $0x38] sm:$0xff] %v292_v49  ;;  %v461_v48 = vld [vmem:[#allocation3 + $0x58] sm:$0xff]  ;;  %v9371_v49 = vadd.s32 56, %v9264_v52 }
  0x82   :  { %7015 = vst [vmem:[%s9204_s17 + $0x40] sm:$0xff] %v296_v50  ;;  %7016 = vst [vmem:[%s9204_s17 + $0x48] sm:$0xff] %v300_v53  ;;  %v9374_v50 = vadd.s32 64, %v9264_v52  ;;  %v465_v53 = vld [vmem:[#allocation3 + $0x60] sm:$0xff] }
  0x83   :  { %7017 = vst [vmem:[%s9204_s17 + $0x50] sm:$0xff] %v304_v54  ;;  %7018 = vst [vmem:[%s9204_s17 + $0x58] sm:$0xff] %v308_v55  ;;  %v574_v54 = vld [vmem:[%s9338_s20] sm:$0xff]  ;;  %v7056_v55 = vld [vmem:[%s9338_s20 + $0x8] sm:$0xff] }
  0x84   :  { %7019 = vst [vmem:[%s9204_s17 + $0x60] sm:$0xff] %v312_v56  ;;  %316 = vst [vmem:[%s9212_s18] sm:$0xff] %v315_v57  ;;  %v9384_v56 = vadd.s32 72, %v9264_v52  ;;  %v9387_v57 = vadd.s32 80, %v9264_v52 }
  0x85   :  { %7020 = vst [vmem:[%s9212_s18 + $0x8] sm:$0xff] %v319_v58  ;;  %7021 = vst [vmem:[%s9212_s18 + $0x10] sm:$0xff] %v323_v59  ;;  %v9390_v58 = vadd.s32 88, %v9264_v52  ;;  %v578_v59 = vsel %vm577_vm0, 1.0, %v574_v54  ;;  %vm716_vm0 = vcmp.eq.s32.totalorder %v9359_v45, %v9261_v51 }
  0x86   :  { %7022 = vst [vmem:[%s9212_s18 + $0x18] sm:$0xff] %v327_v60  ;;  %7023 = vst [vmem:[%s9212_s18 + $0x20] sm:$0xff] %v331_v61  ;;  %v585_v60 = vsel %vm584_vm1, 1.0, %v7056_v55  ;;  %v7058_v61 = vld [vmem:[%s9338_s20 + $0x10] sm:$0xff]  ;;  %vm723_vm1 = vcmp.eq.s32.totalorder %v9371_v49, %v9261_v51  ;;  %v671_v20 = vld [vmem:[%s9364_s21] sm:$0xff] }
  0x87   :  { %7024 = vst [vmem:[%s9212_s18 + $0x28] sm:$0xff] %v335_v62  ;;  %7025 = vst [vmem:[%s9212_s18 + $0x30] sm:$0xff] %v339_v63  ;;  %v7060_v62 = vld [vmem:[%s9338_s20 + $0x18] sm:$0xff]  ;;  %v7062_v63 = vld [vmem:[%s9338_s20 + $0x20] sm:$0xff]  ;;  %v592_v1 = vsel %vm591_vm2, 1.0, %v7058_v61  ;;  %vm730_vm2 = vcmp.eq.s32.totalorder %v9374_v50, %v9261_v51 }
  0x88   :  { %7026 = vst [vmem:[%s9212_s18 + $0x38] sm:$0xff] %v343_v0  ;;  %7027 = vst [vmem:[%s9212_s18 + $0x40] sm:$0xff] %v347_v2  ;;  %v9405_v0 = vadd.s32 96, %v9264_v52  ;;  %v599_v2 = vsel %vm598_vm3, 1.0, %v7060_v62  ;;  %v7080_v21 = vld [vmem:[%s9364_s21 + $0x8] sm:$0xff]  ;;  %v7082_v22 = vld [vmem:[%s9364_s21 + $0x10] sm:$0xff]  ;;  %vm737_vm3 = vcmp.eq.s32.totalorder %v9384_v56, %v9261_v51  ;;  %v9638_v52 = vmov %v9218_v52 }
  0x89   :  { %7028 = vst [vmem:[%s9212_s18 + $0x48] sm:$0xff] %v351_v3  ;;  %7029 = vst [vmem:[%s9212_s18 + $0x50] sm:$0xff] %v355_v4  ;;  %v606_v3 = vsel %vm605_vm4, 1.0, %v7062_v63  ;;  %v7064_v4 = vld [vmem:[%s9338_s20 + $0x28] sm:$0xff]  ;;  %vm744_vm4 = vcmp.eq.s32.totalorder %v9387_v57, %v9261_v51  ;;  %v7084_v26 = vld [vmem:[%s9364_s21 + $0x18] sm:$0xff] }
  0x8a   :  { %7030 = vst [vmem:[%s9212_s18 + $0x58] sm:$0xff] %v359_v6  ;;  %7031 = vst [vmem:[%s9212_s18 + $0x60] sm:$0xff] %v363_v7  ;;  %v7066_v6 = vld [vmem:[%s9338_s20 + $0x30] sm:$0xff]  ;;  %v7068_v7 = vld [vmem:[%s9338_s20 + $0x38] sm:$0xff]  ;;  %v613_v5 = vsel %vm612_vm6, 1.0, %v7064_v4  ;;  %vm12947_vm6 = vcmp.eq.s32.totalorder %v9306_v28, %v9261_v51 }
  0x8b   :  { %367 = vst [vmem:[%s9235_s0] sm:$0xff] %v366_v8  ;;  %7032 = vst [vmem:[%s9235_s0 + $0x8] sm:$0xff] %v370_v11  ;;  %v620_v8 = vsel %vm619_vm7, 1.0, %v7066_v6  ;;  %v627_v9 = vsel %vm626_vm8, 1.0, %v7068_v7  ;;  %v7072_v11 = vld [vmem:[%s9338_s20 + $0x48] sm:$0xff]  ;;  %v7086_v27 = vld [vmem:[%s9364_s21 + $0x20] sm:$0xff]  ;;  %vm751_vm7 = vcmp.eq.s32.totalorder %v9390_v58, %v9261_v51  ;;  %vm12949_vm8 = vcmp.eq.s32.totalorder %v9333_v37, %v9261_v51 }
  0x8c   :  { %7033 = vst [vmem:[%s9235_s0 + $0x10] sm:$0xff] %v374_v12  ;;  %7034 = vst [vmem:[%s9235_s0 + $0x18] sm:$0xff] %v378_v13  ;;  %v7074_v12 = vld [vmem:[%s9338_s20 + $0x50] sm:$0xff]  ;;  %v634_v13 = vsel %vm633_vm9, 1.0, %v7070_v10  ;;  %v641_v14 = vsel %vm640_vm10, 1.0, %v7072_v11  ;;  %vm758_vm9 = vcmp.eq.s32.totalorder %v9405_v0, %v9261_v51  ;;  %vm12921_vm10 = vcmp.lt.s32.totalorder %v9215_v51, 100 }
  0x8d   :  { %7035 = vst [vmem:[%s9235_s0 + $0x20] sm:$0xff] %v382_v17  ;;  %7036 = vst [vmem:[%s9235_s0 + $0x28] sm:$0xff] %v386_v18  ;;  %v648_v15 = vsel %vm647_vm11, 1.0, %v7074_v12  ;;  %v7078_v17 = vld [vmem:[%s9338_s20 + $0x60] sm:$0xf]  ;;  %v655_v18 = vsel %vm654_vm12, 1.0, %v7076_v16 }
  0x8e   :  { %7037 = vst [vmem:[%s9235_s0 + $0x30] sm:$0xff] %v390_v19  ;;  %7038 = vst [vmem:[%s9235_s0 + $0x38] sm:$0xff] %v394_v23  ;;  %v662_v19 = vsel %vm661_vm13, 1.0, %v7078_v17  ;;  %v675_v23 = vsel %vm674_vm5, 1.0, %v671_v20  ;;  %vm12948_vm5 = vcmp.eq.s32.totalorder %v9321_v33, %v9261_v51  ;;  %v7090_v32 = vld [vmem:[%s9364_s21 + $0x30] sm:$0xff]  ;;  %v6552_v51 = vmov %v9215_v51  ;;  %v7106_v54 = vld [vmem:[%s9540_s22 + $0x18] sm:$0xff] }
  0x8f   :  { %7039 = vst [vmem:[%s9235_s0 + $0x40] sm:$0xff] %v398_v24  ;;  %7040 = vst [vmem:[%s9235_s0 + $0x48] sm:$0xff] %v402_v25  ;;  %v682_v24 = vsel %vm12947_vm6, 1.0, %v7080_v21  ;;  %v689_v25 = vsel %vm688_vm15, 1.0, %v7082_v22  ;;  %v696_v28 = vsel %vm12948_vm5, 1.0, %v7084_v26  ;;  %v717_v33 = vsel %vm716_vm0, 1.0, %v7090_v32 }
  0x90   :  { %7041 = vst [vmem:[%s9235_s0 + $0x50] sm:$0xff] %v406_v29  ;;  %7042 = vst [vmem:[%s9235_s0 + $0x58] sm:$0xff] %v410_v30  ;;  %v7088_v29 = vld [vmem:[%s9364_s21 + $0x28] sm:$0xff]  ;;  %v703_v30 = vsel %vm12949_vm8, 1.0, %v7086_v27  ;;  %v7107_v55 = vld [vmem:[%s9540_s22 + $0x20] sm:$0xff]  ;;  %v9635_v51 = vmov %v9215_v51 }
  0x91   :  { %7043 = vst [vmem:[%s9235_s0 + $0x60] sm:$0xff] %v414_v31  ;;  %418 = vst [vmem:[%s9252_s19] sm:$0xff] %v417_v34  ;;  %v710_v31 = vsel %vm709_vm14, 1.0, %v7088_v29  ;;  %v7092_v34 = vld [vmem:[%s9364_s21 + $0x38] sm:$0xff]  ;;  %v6471_v61 = vsel %vm12921_vm10, %v7107_v55, 0.0  ;;  %v7109_v0 = vld [vmem:[%s9540_s22 + $0x30] sm:$0xff]  ;;  %vm6440_vm11 = vcmp.eq.s32.totalorder %v9638_v52, %v9635_v51 }
  0x92   :  { %7044 = vst [vmem:[%s9252_s19 + $0x8] sm:$0xff] %v421_v35  ;;  %7045 = vst [vmem:[%s9252_s19 + $0x10] sm:$0xff] %v425_v36  ;;  %v7094_v35 = vld [vmem:[%s9364_s21 + $0x40] sm:$0xff]  ;;  %v724_v36 = vsel %vm723_vm1, 1.0, %v7092_v34  ;;  %v7110_v4 = vld [vmem:[%s9540_s22 + $0x38] sm:$0xff]  ;;  %v6489_v6 = vsel %vm12921_vm10, %v7109_v0, 0.0 }
  0x93   :  { %7046 = vst [vmem:[%s9252_s19 + $0x18] sm:$0xff] %v429_v38  ;;  %7047 = vst [vmem:[%s9252_s19 + $0x20] sm:$0xff] %v433_v39  ;;  %v731_v37 = vsel %vm730_vm2, 1.0, %v7094_v35  ;;  %v7096_v38 = vld [vmem:[%s9364_s21 + $0x48] sm:$0xff]  ;;  %v7098_v39 = vld [vmem:[%s9364_s21 + $0x50] sm:$0xff]  ;;  %v9586_v11 = vmul.f32 %v6489_v6, %v6489_v6  ;;  %v6455_v0 = vadd.s32 16, %v9638_v52 }
  0x94   :  { %7048 = vst [vmem:[%s9252_s19 + $0x28] sm:$0xff] %v437_v40  ;;  %7049 = vst [vmem:[%s9252_s19 + $0x30] sm:$0xff] %v441_v42  ;;  %v7100_v40 = vld [vmem:[%s9364_s21 + $0x58] sm:$0xff]  ;;  %v738_v41 = vsel %vm737_vm3, 1.0, %v7096_v38  ;;  %v745_v42 = vsel %vm744_vm4, 1.0, %v7098_v39  ;;  %v7112_v12 = vld [vmem:[%s9540_s22 + $0x48] sm:$0xff] }
  0x95   :  { %7050 = vst [vmem:[%s9252_s19 + $0x38] sm:$0xff] %v445_v43  ;;  %7051 = vst [vmem:[%s9252_s19 + $0x40] sm:$0xff] %v449_v44  ;;  %v752_v43 = vsel %vm751_vm7, 1.0, %v7100_v40  ;;  %v7102_v44 = vld [vmem:[%s9364_s21 + $0x60] sm:$0xf]  ;;  %v7113_v16 = vld [vmem:[%s9540_s22 + $0x50] sm:$0xff]  ;;  %vm6456_vm13 = vcmp.eq.s32.totalorder %v6455_v0, %v9635_v51 }
  0x96   :  { %7052 = vst [vmem:[%s9252_s19 + $0x48] sm:$0xff] %v453_v46  ;;  %7053 = vst [vmem:[%s9252_s19 + $0x50] sm:$0xff] %v457_v47  ;;  %v759_v45 = vsel %vm758_vm9, 1.0, %v7102_v44  ;;  %v6437_v46 = vld [vmem:[%s9540_s22] sm:$0xff]  ;;  %v7104_v47 = vld [vmem:[%s9540_s22 + $0x8] sm:$0xff]  ;;  %v6516_v17 = vsel %vm12921_vm10, %v7112_v12, 0.0 }
  0x97   :  { %7054 = vst [vmem:[%s9252_s19 + $0x58] sm:$0xff] %v461_v48  ;;  %7055 = vst [vmem:[%s9252_s19 + $0x60] sm:$0xff] %v465_v53  ;;  %v7105_v48 = vld [vmem:[%s9540_s22 + $0x10] sm:$0xff]  ;;  %v6438_v49 = vsel %vm12921_vm10, %v6437_v46, 0.0  ;;  %v6444_v50 = vsel %vm12921_vm10, %v7104_v47, 0.0  ;;  %v7114_v20 = vld [vmem:[%s9540_s22 + $0x58] sm:$0xff] }
  0x98   :  { %579 = vst [vmem:[%s9338_s20] sm:$0xff] %v578_v59  ;;  %7057 = vst [vmem:[%s9338_s20 + $0x8] sm:$0xff] %v585_v60  ;;  %v6453_v53 = vsel %vm12921_vm10, %v7105_v48, 0.0  ;;  %v9555_v56 = vmul.f32 %v6438_v49, %v6438_v49  ;;  %v9557_v57 = vmul.f32 %v6444_v50, %v6444_v50  ;;  %v6462_v59 = vsel %vm12921_vm10, %v7106_v54, 0.0  ;;  %v7108_v60 = vld [vmem:[%s9540_s22 + $0x28] sm:$0xff]  ;;  %v6562_v29 = vld [vmem:[%s9603_s2] sm:$0xff] }
  0x99   :  { %7059 = vst [vmem:[%s9338_s20 + $0x10] sm:$0xff] %v592_v1  ;;  %7061 = vst [vmem:[%s9338_s20 + $0x18] sm:$0xff] %v599_v2  ;;  %v9559_v58 = vmul.f32 %v6453_v53, %v6453_v53  ;;  %v9568_v63 = vmul.f32 %v6462_v59, %v6462_v59  ;;  %v6480_v1 = vsel %vm12921_vm10, %v7108_v60, 0.0  ;;  %v6525_v21 = vsel %vm12921_vm10, %v7113_v16, 0.0  ;;  %v7116_v32 = vld [vmem:[%s9603_s2 + $0x8] sm:$0xff]  ;;  %v7118_v38 = vld [vmem:[%s9603_s2 + $0x18] sm:$0xff] }
  0x9a   :  { %7063 = vst [vmem:[%s9338_s20 + $0x20] sm:$0xff] %v606_v3  ;;  %7065 = vst [vmem:[%s9338_s20 + $0x28] sm:$0xff] %v613_v5  ;;  %v6450_v62 = vadd.f32 %v9557_v57, %v9555_v56  ;;  %v9574_v3 = vmul.f32 %v6471_v61, %v6471_v61  ;;  %v9580_v5 = vmul.f32 %v6480_v1, %v6480_v1  ;;  %v6563_v34 = vsel %vm12921_vm10, %v6562_v29, 0.0  ;;  %v7119_v39 = vld [vmem:[%s9603_s2 + $0x20] sm:$0xff]  ;;  %v7120_v47 = vld [vmem:[%s9603_s2 + $0x28] sm:$0xff] }
  0x9b   :  { %7067 = vst [vmem:[%s9338_s20 + $0x30] sm:$0xff] %v620_v8  ;;  %7069 = vst [vmem:[%s9338_s20 + $0x38] sm:$0xff] %v627_v9  ;;  %v7111_v8 = vld [vmem:[%s9540_s22 + $0x40] sm:$0xff]  ;;  %v6498_v9 = vsel %vm12921_vm10, %v7110_v4, 0.0  ;;  %v9612_v27 = vmul.f32 %v6525_v21, %v6525_v21  ;;  %v6587_v46 = vsel %vm12921_vm10, %v7119_v39, 0.0  ;;  %v7121_v48 = vld [vmem:[%s9603_s2 + $0x30] sm:$0xff] }
  0x9c   :  { %7071 = vst [vmem:[%s9338_s20 + $0x40] sm:$0xff] %v634_v13  ;;  %7073 = vst [vmem:[%s9338_s20 + $0x48] sm:$0xff] %v641_v14  ;;  %v6459_v2 = vadd.f32 %v9559_v58, %v6450_v62  ;;  %v6507_v13 = vsel %vm12921_vm10, %v7111_v8, 0.0  ;;  %v6446_v49 = vadd.s32 8, %v9638_v52  ;;  %v9659_v55 = vmul.f32 %v6587_v46, %v6587_v46  ;;  %v7122_v6 = vld [vmem:[%s9603_s2 + $0x38] sm:$0xff] }
  0x9d   :  { %7075 = vst [vmem:[%s9338_s20 + $0x50] sm:$0xff] %v648_v15  ;;  %7077 = vst [vmem:[%s9338_s20 + $0x58] sm:$0xff] %v655_v18  ;;  %v9592_v15 = vmul.f32 %v6498_v9, %v6498_v9  ;;  %v6593_v60 = vsel %vm12921_vm10, %v7120_v47, 0.0  ;;  %v6599_v61 = vsel %vm12921_vm10, %v7121_v48, 0.0  ;;  %v6441_v62 = vsel %vm6440_vm11, 0.0, %v9555_v56 }
  0x9e   :  { %7079 = vst [vmem:[%s9338_s20 + $0x60] sm:$0xf] %v662_v19  ;;  %676 = vst [vmem:[%s9364_s21] sm:$0xff] %v675_v23  ;;  %v6468_v7 = vadd.f32 %v9568_v63, %v6459_v2  ;;  %v9598_v19 = vmul.f32 %v6507_v13, %v6507_v13  ;;  %v9606_v23 = vmul.f32 %v6516_v17, %v6516_v17  ;;  %v6464_v1 = vadd.s32 24, %v9638_v52  ;;  %v7123_v13 = vld [vmem:[%s9603_s2 + $0x40] sm:$0xff] }
  0x9f   :  { %7081 = vst [vmem:[%s9364_s21 + $0x8] sm:$0xff] %v682_v24  ;;  %7083 = vst [vmem:[%s9364_s21 + $0x10] sm:$0xff] %v689_v25  ;;  %v7115_v24 = vld [vmem:[%s9540_s22 + $0x60] sm:$0xf]  ;;  %v6534_v25 = vsel %vm12921_vm10, %v7114_v20, 0.0  ;;  %vm6447_vm12 = vcmp.eq.s32.totalorder %v6446_v49, %v9635_v51  ;;  %v6473_v2 = vadd.s32 32, %v9638_v52  ;;  %v9680_v12 = vmul.f32 %v6593_v60, %v6593_v60 }
  0xa0   :  { %7085 = vst [vmem:[%s9364_s21 + $0x18] sm:$0xff] %v696_v28  ;;  %7087 = vst [vmem:[%s9364_s21 + $0x20] sm:$0xff] %v703_v30  ;;  %v6477_v10 = vadd.f32 %v9574_v3, %v6468_v7  ;;  %v6543_v28 = vsel %vm12921_vm10, %v7115_v24, 0.0  ;;  %v6448_v7 = vsel %vm6447_vm12, 0.0, %v9557_v57  ;;  %v6482_v8 = vadd.s32 40, %v9638_v52 }
  0xa1   :  { %7089 = vst [vmem:[%s9364_s21 + $0x28] sm:$0xff] %v710_v31  ;;  %7091 = vst [vmem:[%s9364_s21 + $0x30] sm:$0xff] %v717_v33  ;;  %v9618_v31 = vmul.f32 %v6534_v25, %v6534_v25  ;;  %v9624_v33 = vmul.f32 %v6543_v28, %v6543_v28  ;;  %v6491_v9 = vadd.s32 48, %v9638_v52  ;;  %v6449_v56 = vadd.f32 %v6448_v7, %v6441_v62  ;;  %v7125_v28 = vld [vmem:[%s9603_s2 + $0x50] sm:$0xff] }
  0xa2   :  { %7093 = vst [vmem:[%s9364_s21 + $0x38] sm:$0xff] %v724_v36  ;;  %7095 = vst [vmem:[%s9364_s21 + $0x40] sm:$0xff] %v731_v37  ;;  %v6486_v14 = vadd.f32 %v9580_v5, %v6477_v10  ;;  %v7117_v36 = vld [vmem:[%s9603_s2 + $0x10] sm:$0xff]  ;;  %v6569_v37 = vsel %vm12921_vm10, %v7116_v32, 0.0  ;;  %vm6465_vm14 = vcmp.eq.s32.totalorder %v6464_v1, %v9635_v51  ;;  %vm6474_vm15 = vcmp.eq.s32.totalorder %v6473_v2, %v9635_v51  ;;  %v7128_v2 = vld [vmem:[%s9714_s23 + $0x8] sm:$0xff] }
  0xa3   :  { %7097 = vst [vmem:[%s9364_s21 + $0x48] sm:$0xff] %v738_v41  ;;  %7099 = vst [vmem:[%s9364_s21 + $0x50] sm:$0xff] %v745_v42  ;;  %v9632_v41 = vmul.f32 %v6563_v34, %v6563_v34  ;;  %v6575_v42 = vsel %vm12921_vm10, %v7117_v36, 0.0  ;;  %v9643_v44 = vmul.f32 %v6569_v37, %v6569_v37  ;;  %v6466_v57 = vsel %vm6465_vm14, 0.0, %v9568_v63  ;;  %v7126_v37 = vld [vmem:[%s9603_s2 + $0x58] sm:$0xff] }
  0xa4   :  { %7101 = vst [vmem:[%s9364_s21 + $0x58] sm:$0xff] %v752_v43  ;;  %7103 = vst [vmem:[%s9364_s21 + $0x60] sm:$0xf] %v759_v45  ;;  %v6495_v18 = vadd.f32 %v9586_v11, %v6486_v14  ;;  %v6581_v45 = vsel %vm12921_vm10, %v7118_v38, 0.0  ;;  %v9655_v53 = vmul.f32 %v6575_v42, %v6575_v42  ;;  %v6457_v14 = vsel %vm6456_vm13, 0.0, %v9559_v58 }
  0xa5   :  { %v9657_v54 = vmul.f32 %v6581_v45, %v6581_v45  ;;  %v6605_v16 = vsel %vm12921_vm10, %v7122_v6, 0.0  ;;  %v6458_v17 = vadd.f32 %v6457_v14, %v6449_v56  ;;  %vm6483_vm0 = vcmp.eq.s32.totalorder %v6482_v8, %v9635_v51  ;;  %v7127_v45 = vld [vmem:[%s9603_s2 + $0x60] sm:$0xf] }
  0xa6   :  { %v6504_v22 = vadd.f32 %v9592_v15, %v6495_v18  ;;  %v6500_v18 = vadd.s32 56, %v9638_v52  ;;  %v9690_v21 = vmul.f32 %v6599_v61, %v6599_v61  ;;  %v6475_v24 = vsel %vm6474_vm15, 0.0, %v9574_v3 }
  0xa7   :  { %v6611_v58 = vsel %vm12921_vm10, %v7123_v13, 0.0  ;;  %v6467_v63 = vadd.f32 %v6466_v57, %v6458_v17  ;;  %vm6492_vm1 = vcmp.eq.s32.totalorder %v6491_v9, %v9635_v51  ;;  %v6509_v25 = vadd.s32 64, %v9638_v52 }
  0xa8   :  { %v6513_v26 = vadd.f32 %v9598_v19, %v6504_v22  ;;  %v7124_v22 = vld [vmem:[%s9603_s2 + $0x48] sm:$0xff]  ;;  %v9699_v29 = vmul.f32 %v6605_v16, %v6605_v16  ;;  %vm6501_vm2 = vcmp.eq.s32.totalorder %v6500_v18, %v9635_v51  ;;  %v6518_v34 = vadd.s32 72, %v9638_v52  ;;  %v7130_v16 = vld [vmem:[%s9714_s23 + $0x18] sm:$0xff] }
  0xa9   :  { %v6617_v32 = vsel %vm12921_vm10, %v7124_v22, 0.0  ;;  %v6476_v3 = vadd.f32 %v6475_v24, %v6467_v63  ;;  %v9708_v36 = vmul.f32 %v6611_v58, %v6611_v58  ;;  %v6493_v38 = vsel %vm6492_vm1, 0.0, %v9586_v11  ;;  %v7131_v22 = vld [vmem:[%s9714_s23 + $0x20] sm:$0xff] }
  0xaa   :  { %v6522_v30 = vadd.f32 %v9606_v23, %v6513_v26  ;;  %v6623_v39 = vsel %vm12921_vm10, %v7125_v28, 0.0  ;;  %vm6510_vm3 = vcmp.eq.s32.totalorder %v6509_v25, %v9635_v51  ;;  %v6502_v46 = vsel %vm6501_vm2, 0.0, %v9592_v15  ;;  %v7132_v28 = vld [vmem:[%s9714_s23 + $0x28] sm:$0xff] }
  0xab   :  { %v6629_v11 = vsel %vm12921_vm10, %v7126_v37, 0.0  ;;  %vm6519_vm4 = vcmp.eq.s32.totalorder %v6518_v34, %v9635_v51  ;;  %v6536_v48 = vadd.s32 88, %v9638_v52  ;;  %v6511_v60 = vsel %vm6510_vm3, 0.0, %v9598_v19  ;;  %v7129_v19 = vld [vmem:[%s9714_s23 + $0x10] sm:$0xff] }
  0xac   :  { %v6531_v35 = vadd.f32 %v9612_v27, %v6522_v30  ;;  %v6484_v30 = vsel %vm6483_vm0, 0.0, %v9580_v5  ;;  %v6635_v61 = vsel %vm12921_vm10, %v7127_v45, 0.0  ;;  %v6545_v62 = vadd.s32 96, %v9638_v52 }
  0xad   :  { %v6485_v5 = vadd.f32 %v6484_v30, %v6476_v3  ;;  %v9737_v1 = vmul.f32 %v6629_v11, %v6629_v11  ;;  %vm6537_vm7 = vcmp.eq.s32.totalorder %v6536_v48, %v9635_v51  ;;  %v9746_v9 = vmul.f32 %v6635_v61, %v6635_v61  ;;  %v7133_v3 = vld [vmem:[%s9714_s23 + $0x30] sm:$0xff] }
  0xae   :  { %v6540_v40 = vadd.f32 %v9618_v31, %v6531_v35  ;;  %vm6546_vm5 = vcmp.eq.s32.totalorder %v6545_v62, %v9635_v51  ;;  %v6664_v57 = vsel %vm12921_vm10, %v7129_v19, 0.0  ;;  %v6538_v17 = vsel %vm6537_vm7, 0.0, %v9618_v31 }
  0xaf   :  { %v6494_v47 = vadd.f32 %v6493_v38, %v6485_v5  ;;  %v6547_v24 = vsel %vm6546_vm5, 0.0, %v9624_v33  ;;  %v9764_v58 = vmul.f32 %v6664_v57, %v6664_v57  ;;  %v6670_v63 = vsel %vm12921_vm10, %v7130_v16, 0.0 }
  0xb0   :  { %v6549_v43 = vadd.f32 %v9624_v33, %v6540_v40  ;;  %v6527_v40 = vadd.s32 80, %v9638_v52  ;;  %v6555_v52 = vmov %v9218_v52  ;;  %v6676_v31 = vsel %vm12921_vm10, %v7131_v22, 0.0 }
  0xb1   :  { %v6503_v15 = vadd.f32 %v6502_v46, %v6494_v47  ;;  %v6644_v52 = vmov %v9218_v52  ;;  %v6682_v34 = vsel %vm12921_vm10, %v7132_v28, 0.0  ;;  %v9783_v38 = vmul.f32 %v6676_v31, %v6676_v31  ;;  %v7135_v46 = vld [vmem:[%s9714_s23 + $0x40] sm:$0xff]  ;;  %v7142_v31 = vld [vmem:[%s9816_s24 + $0x18] sm:$0xff] }
  0xb2   :  { %v6566_v50 = vadd.f32 %v9632_v41, %v6549_v43  ;;  %v9719_v43 = vmul.f32 %v6617_v32, %v6617_v32  ;;  %vm6528_vm6 = vcmp.eq.s32.totalorder %v6527_v40, %v9635_v51  ;;  %v6641_v51 = vmov %v9215_v51 }
  0xb3   :  { %v6512_v7 = vadd.f32 %v6511_v60, %v6503_v15  ;;  %v6529_v56 = vsel %vm6528_vm6, 0.0, %v9612_v27  ;;  %v9776_v32 = vmul.f32 %v6670_v63, %v6670_v63  ;;  %v6688_v5 = vsel %vm12921_vm10, %v7133_v3, 0.0  ;;  %v7137_v15 = vld [vmem:[%s9714_s23 + $0x50] sm:$0xff] }
  0xb4   :  { %v6572_v59 = vadd.f32 %v9643_v44, %v6566_v50  ;;  %v9728_v50 = vmul.f32 %v6623_v39, %v6623_v39  ;;  %v7134_v39 = vld [vmem:[%s9714_s23 + $0x38] sm:$0xff]  ;;  %v9790_v45 = vmul.f32 %v6682_v34, %v6682_v34  ;;  %v9797_v48 = vmul.f32 %v6688_v5, %v6688_v5  ;;  %v7141_v63 = vld [vmem:[%s9816_s24 + $0x10] sm:$0xff]  ;;  %v7143_v34 = vld [vmem:[%s9816_s24 + $0x20] sm:$0xff] }
  0xb5   :  { %v7144_v5 = vld [vmem:[%s9816_s24 + $0x28] sm:$0xff]  ;;  %v6733_v52 = vmov %v9218_v52  ;;  %v6730_v51 = vmov %v9215_v51 }
  0xb6   :  { %v6578_v4 = vadd.f32 %v9655_v53, %v6572_v59  ;;  %v6651_v59 = vld [vmem:[%s9714_s23] sm:$0xff]  ;;  %vm6743_vm8 = vcmp.eq.s32.totalorder %v6733_v52, %v6730_v51 }
  0xb7   :  { %v6652_v6 = vsel %vm12921_vm10, %v6651_v59, 0.0 }
  0xb8   :  { %v6584_v10 = vadd.f32 %v9657_v54, %v6578_v4  ;;  %v6520_v4 = vsel %vm6519_vm4, 0.0, %v9606_v23  ;;  %v9753_v14 = vmul.f32 %v6652_v6, %v6652_v6  ;;  %v6712_v6 = vsel %vm12921_vm10, %v7137_v15, 0.0 }
  0xb9   :  { %v6521_v13 = vadd.f32 %v6520_v4, %v6512_v7  ;;  %v7138_v4 = vld [vmem:[%s9714_s23 + $0x58] sm:$0xff] }
  0xba   :  { %v6590_v20 = vadd.f32 %v9659_v55, %v6584_v10  ;;  %v6658_v10 = vsel %vm12921_vm10, %v7128_v2, 0.0 }
  0xbb   :  { %v6530_v18 = vadd.f32 %v6529_v56, %v6521_v13  ;;  %v9827_v13 = vmul.f32 %v6712_v6, %v6712_v6  ;;  %v7148_v6 = vld [vmem:[%s9816_s24 + $0x48] sm:$0xff] }
  0xbc   :  { %v6596_v26 = vadd.f32 %v9680_v12, %v6590_v20  ;;  %v9760_v20 = vmul.f32 %v6658_v10, %v6658_v10 }
  0xbd   :  { %v6539_v25 = vadd.f32 %v6538_v17, %v6530_v18  ;;  %v7140_v18 = vld [vmem:[%s9816_s24 + $0x8] sm:$0xff] }
  0xbe   :  { %v6602_v35 = vadd.f32 %v9690_v21, %v6596_v26 }
  0xbf   :  { %v6548_v33 = vadd.f32 %v6547_v24, %v6539_v25 }
  0xc0   :  { %v6608_v42 = vadd.f32 %v9699_v29, %v6602_v35 }
  0xc1   :  { %v6565_v35 = vadd.f32 %v9632_v41, %v6548_v33  ;;  %v6694_v41 = vsel %vm12921_vm10, %v7134_v39, 0.0 }
  0xc2   :  { %v6614_v49 = vadd.f32 %v9708_v36, %v6608_v42  ;;  %v9804_v61 = vmul.f32 %v6694_v41, %v6694_v41  ;;  %v7145_v41 = vld [vmem:[%s9816_s24 + $0x30] sm:$0xff] }
  0xc3   :  { %v6571_v40 = vadd.f32 %v9643_v44, %v6565_v35  ;;  %v6700_v44 = vsel %vm12921_vm10, %v7135_v46, 0.0 }
  0xc4   :  { %v6620_v0 = vadd.f32 %v9719_v43, %v6614_v49  ;;  %v7136_v49 = vld [vmem:[%s9714_s23 + $0x48] sm:$0xff]  ;;  %v9811_v2 = vmul.f32 %v6700_v44, %v6700_v44  ;;  %v7146_v44 = vld [vmem:[%s9816_s24 + $0x38] sm:$0xff] }
  0xc5   :  { %v6577_v11 = vadd.f32 %v9655_v53, %v6571_v40  ;;  %v6706_v62 = vsel %vm12921_vm10, %v7136_v49, 0.0 }
  0xc6   :  { %v6626_v8 = vadd.f32 %v9728_v50, %v6620_v0  ;;  %v9820_v7 = vmul.f32 %v6706_v62, %v6706_v62  ;;  %v7147_v62 = vld [vmem:[%s9816_s24 + $0x40] sm:$0xff] }
  0xc7   :  { %v6583_v59 = vadd.f32 %v9657_v54, %v6577_v11 }
  0xc8   :  { %v6632_v23 = vadd.f32 %v9737_v1, %v6626_v8  ;;  %v6718_v8 = vsel %vm12921_vm10, %v7138_v4, 0.0 }
  0xc9   :  { %v6589_v53 = vadd.f32 %v9659_v55, %v6583_v59  ;;  %v7139_v55 = vld [vmem:[%s9714_s23 + $0x60] sm:$0xf]  ;;  %v9834_v17 = vmul.f32 %v6718_v8, %v6718_v8  ;;  %v7149_v8 = vld [vmem:[%s9816_s24 + $0x50] sm:$0xff] }
  0xca   :  { %v6638_v27 = vadd.f32 %v9746_v9, %v6632_v23  ;;  %v6740_v23 = vld [vmem:[%s9816_s24] sm:$0xff] }
  0xcb   :  { %v6595_v54 = vadd.f32 %v9680_v12, %v6589_v53  ;;  %v6724_v12 = vsel %vm12921_vm10, %v7139_v55, 0.0 }
  0xcc   :  { %v6655_v26 = vadd.f32 %v9753_v14, %v6638_v27  ;;  %v9841_v24 = vmul.f32 %v6724_v12, %v6724_v12  ;;  %v7150_v12 = vld [vmem:[%s9816_s24 + $0x58] sm:$0xff] }
  0xcd   :  { %v6601_v56 = vadd.f32 %v9690_v21, %v6595_v54  ;;  %v6741_v21 = vsel %vm12921_vm10, %v6740_v23, 0.0 }
  0xce   :  { %v6661_v30 = vadd.f32 %v9760_v20, %v6655_v26  ;;  %v9848_v28 = vmul.f32 %v6741_v21, %v6741_v21  ;;  %v7151_v21 = vld [vmem:[%s9816_s24 + $0x60] sm:$0xf] }
  0xcf   :  { %v6607_v57 = vadd.f32 %v9699_v29, %v6601_v56  ;;  %v6749_v29 = vsel %vm12921_vm10, %v7140_v18, 0.0  ;;  %v6821_v56 = vsel %vm12921_vm10, %v7148_v6, 0.0 }
  0xd0   :  { %v6667_v37 = vadd.f32 %v9764_v58, %v6661_v30  ;;  %v9855_v3 = vmul.f32 %v6749_v29, %v6749_v29  ;;  %v6822_v18 = vmul.f32 %v6821_v56, %v6821_v56  ;;  %v6848_v29 = vsel %vm12921_vm10, %v7151_v21, 0.0 }
  0xd1   :  { %v6613_v27 = vadd.f32 %v9708_v36, %v6607_v57  ;;  %v6758_v36 = vsel %vm12921_vm10, %v7141_v63, 0.0  ;;  %v6830_v57 = vsel %vm12921_vm10, %v7149_v8, 0.0 }
  0xd2   :  { %v6673_v42 = vadd.f32 %v9776_v32, %v6667_v37  ;;  %v9862_v39 = vmul.f32 %v6758_v36, %v6758_v36  ;;  %v6831_v63 = vmul.f32 %v6830_v57, %v6830_v57 }
  0xd3   :  { %v6619_v25 = vadd.f32 %v9719_v43, %v6613_v27  ;;  %v6767_v43 = vsel %vm12921_vm10, %v7142_v31, 0.0  ;;  %v6839_v27 = vsel %vm12921_vm10, %v7150_v12, 0.0 }
  0xd4   :  { %v6679_v47 = vadd.f32 %v9783_v38, %v6673_v42  ;;  %v9869_v46 = vmul.f32 %v6767_v43, %v6767_v43  ;;  %v6840_v31 = vmul.f32 %v6839_v27, %v6839_v27 }
  0xd5   :  { %v6625_v33 = vadd.f32 %v9728_v50, %v6619_v25  ;;  %v6776_v50 = vsel %vm12921_vm10, %v7143_v34, 0.0 }
  0xd6   :  { %v6685_v60 = vadd.f32 %v9790_v45, %v6679_v47  ;;  %v9876_v49 = vmul.f32 %v6776_v50, %v6776_v50 }
  0xd7   :  { %v6631_v35 = vadd.f32 %v9737_v1, %v6625_v33  ;;  %v6785_v1 = vsel %vm12921_vm10, %v7144_v5, 0.0  ;;  %v6849_v33 = vmul.f32 %v6848_v29, %v6848_v29  ;;  %v6769_v5 = vadd.s32 24, %v6733_v52 }
  0xd8   :  { %v6691_v0 = vadd.f32 %v9797_v48, %v6685_v60  ;;  %v9883_v15 = vmul.f32 %v6785_v1, %v6785_v1 }
  0xd9   :  { %v6637_v40 = vadd.f32 %v9746_v9, %v6631_v35  ;;  %v6794_v9 = vsel %vm12921_vm10, %v7145_v41, 0.0  ;;  %v6760_v35 = vadd.s32 16, %v6733_v52  ;;  %vm6770_vm12 = vcmp.eq.s32.totalorder %v6769_v5, %v6730_v51 }
  0xda   :  { %v6697_v19 = vadd.f32 %v9804_v61, %v6691_v0  ;;  %v9890_v4 = vmul.f32 %v6794_v9, %v6794_v9  ;;  %v6787_v41 = vadd.s32 40, %v6733_v52  ;;  %v6814_v9 = vadd.s32 64, %v6733_v52 }
  0xdb   :  { %v6654_v11 = vadd.f32 %v9753_v14, %v6637_v40  ;;  %v6803_v14 = vsel %vm12921_vm10, %v7146_v44, 0.0  ;;  %vm6761_vm11 = vcmp.eq.s32.totalorder %v6760_v35, %v6730_v51  ;;  %v6778_v40 = vadd.s32 32, %v6733_v52 }
  0xdc   :  { %v6703_v10 = vadd.f32 %v9811_v2, %v6697_v19  ;;  %v9897_v55 = vmul.f32 %v6803_v14, %v6803_v14  ;;  %vm6788_vm14 = vcmp.eq.s32.totalorder %v6787_v41, %v6730_v51  ;;  %v6805_v44 = vadd.s32 56, %v6733_v52 }
  0xdd   :  { %v6660_v59 = vadd.f32 %v9760_v20, %v6654_v11  ;;  %v6812_v20 = vsel %vm12921_vm10, %v7147_v62, 0.0  ;;  %vm6779_vm13 = vcmp.eq.s32.totalorder %v6778_v40, %v6730_v51  ;;  %v6796_v11 = vadd.s32 48, %v6733_v52 }
  0xde   :  { %v6709_v16 = vadd.f32 %v9820_v7, %v6703_v10  ;;  %v9904_v23 = vmul.f32 %v6812_v20, %v6812_v20  ;;  %vm6806_vm0 = vcmp.eq.s32.totalorder %v6805_v44, %v6730_v51  ;;  %vm6815_vm1 = vcmp.eq.s32.totalorder %v6814_v9, %v6730_v51 }
  0xdf   :  { %v6666_v53 = vadd.f32 %v9764_v58, %v6660_v59  ;;  %vm6797_vm15 = vcmp.eq.s32.totalorder %v6796_v11, %v6730_v51  ;;  %v6832_v14 = vadd.s32 80, %v6733_v52  ;;  %v6850_v20 = vadd.s32 96, %v6733_v52 }
  0xe0   :  { %v6715_v22 = vadd.f32 %v9827_v13, %v6709_v16 }
  0xe1   :  { %v6672_v54 = vadd.f32 %v9776_v32, %v6666_v53  ;;  %vm6833_vm3 = vcmp.eq.s32.totalorder %v6832_v14, %v6730_v51  ;;  %vm6851_vm6 = vcmp.eq.s32.totalorder %v6850_v20, %v6730_v51 }
  0xe2   :  { %v6721_v26 = vadd.f32 %v9834_v17, %v6715_v22 }
  0xe3   :  { %v6678_v58 = vadd.f32 %v9783_v38, %v6672_v54 }
  0xe4   :  { %v6727_v30 = vadd.f32 %v9841_v24, %v6721_v26 }
  0xe5   :  { %v6684_v32 = vadd.f32 %v9790_v45, %v6678_v58  ;;  %v6852_v58 = vsel %vm6851_vm6, 0.0, %v6849_v33 }
  0xe6   :  { %v6746_v37 = vadd.f32 %v9848_v28, %v6727_v30  ;;  %v6751_v30 = vadd.s32 8, %v6733_v52 }
  0xe7   :  { %v6690_v22 = vadd.f32 %v9797_v48, %v6684_v32 }
  0xe8   :  { %v6755_v42 = vadd.f32 %v9855_v3, %v6746_v37  ;;  %vm6752_vm9 = vcmp.eq.s32.totalorder %v6751_v30, %v6730_v51 }
  0xe9   :  { %v6696_v25 = vadd.f32 %v9804_v61, %v6690_v22 }
  0xea   :  { %v6764_v47 = vadd.f32 %v9862_v39, %v6755_v42 }
  0xeb   :  { %v6702_v45 = vadd.f32 %v9811_v2, %v6696_v25  ;;  %v6744_v2 = vsel %vm6743_vm8, 0.0, %v9848_v28  ;;  %v6780_v28 = vsel %vm6779_vm13, 0.0, %v9876_v49 }
  0xec   :  { %v6773_v60 = vadd.f32 %v9869_v46, %v6764_v47 }
  0xed   :  { %v6708_v48 = vadd.f32 %v9820_v7, %v6702_v45  ;;  %v6753_v7 = vsel %vm6752_vm9, 0.0, %v9855_v3  ;;  %v6789_v3 = vsel %vm6788_vm14, 0.0, %v9883_v15 }
  0xee   :  { %v6782_v0 = vadd.f32 %v9876_v49, %v6773_v60  ;;  %v6823_v60 = vadd.s32 72, %v6733_v52  ;;  %v6816_v49 = vsel %vm6815_vm1, 0.0, %v9904_v23 }
  0xef   :  { %v6714_v43 = vadd.f32 %v9827_v13, %v6708_v48  ;;  %v6762_v13 = vsel %vm6761_vm11, 0.0, %v9862_v39  ;;  %v6798_v39 = vsel %vm6797_vm15, 0.0, %v9890_v4 }
  0xf0   :  { %v6791_v19 = vadd.f32 %v9883_v15, %v6782_v0  ;;  %vm6824_vm2 = vcmp.eq.s32.totalorder %v6823_v60, %v6730_v51  ;;  %v6841_v0 = vadd.s32 88, %v6733_v52 }
  0xf1   :  { %v6720_v61 = vadd.f32 %v9834_v17, %v6714_v43  ;;  %v6771_v17 = vsel %vm6770_vm12, 0.0, %v9869_v46  ;;  %v6807_v46 = vsel %vm6806_vm0, 0.0, %v9897_v55  ;;  %v6825_v54 = vsel %vm6824_vm2, 0.0, %v6822_v18 }
  0xf2   :  { %v6800_v10 = vadd.f32 %v9890_v4, %v6791_v19  ;;  %vm6842_vm4 = vcmp.eq.s32.totalorder %v6841_v0, %v6730_v51  ;;  %v6834_v19 = vsel %vm6833_vm3, 0.0, %v6831_v63 }
  0xf3   :  { %v6726_v50 = vadd.f32 %v9841_v24, %v6720_v61  ;;  %v6843_v4 = vsel %vm6842_vm4, 0.0, %v6840_v31 }
  0xf4   :  { %v6809_v16 = vadd.f32 %v9897_v55, %v6800_v10 }
  0xf5   :  { %v6745_v42 = vadd.f32 %v6744_v2, %v6726_v50 }
  0xf6   :  { %v6818_v38 = vadd.f32 %v9904_v23, %v6809_v16 }
  0xf7   :  { %v6754_v1 = vadd.f32 %v6753_v7, %v6745_v42 }
  0xf8   :  { %v6827_v26 = vadd.f32 %v6822_v18, %v6818_v38 }
  0xf9   :  { %v6763_v47 = vadd.f32 %v6762_v13, %v6754_v1 }
  0xfa   :  { %v6836_v36 = vadd.f32 %v6831_v63, %v6827_v26 }
  0xfb   :  { %v6772_v24 = vadd.f32 %v6771_v17, %v6763_v47 }
  0xfc   :  { %v6845_v34 = vadd.f32 %v6840_v31, %v6836_v36 }
  0xfd   :  { %v6781_v59 = vadd.f32 %v6780_v28, %v6772_v24 }
  0xfe   :  { %v6854_v37 = vadd.f32 %v6849_v33, %v6845_v34 }
  0xff   :  { %v6790_v62 = vadd.f32 %v6789_v3, %v6781_v59 }
 0x100   :  { %6855 = vadd.xlane.f32.xlu0 %v6854_v37 }
 0x101   :  { %v6799_v53 = vadd.f32 %v6798_v39, %v6790_v62 }
 0x103   :  { %v6808_v6 = vadd.f32 %v6807_v46, %v6799_v53 }
 0x105   :  { %v6817_v15 = vadd.f32 %v6816_v49, %v6808_v6 }
 0x107   :  { %v6826_v8 = vadd.f32 %v6825_v54, %v6817_v15 }
 0x109   :  { %v6835_v56 = vadd.f32 %v6834_v19, %v6826_v8 }
 0x10b   :  { %v6844_v10 = vadd.f32 %v6843_v4, %v6835_v56 }
 0x10d   :  { %v6853_v12 = vadd.f32 %v6852_v58, %v6844_v10 }
 0x10f   :  { %6863 = vadd.xlane.f32.xlu0 %v6853_v12 }
 0x189   :  { %v6856_v55 = vpop.xlane.xlu0 %6855 }
 0x18a   :  { %v6857_v57 = vrot.slane %v6856_v55, 4 }
 0x18c   :  { %v6858_v32 = vadd.f32 %v6857_v57, %v6856_v55 }
 0x18e   :  { %v6859_v16 = vrot.slane %v6858_v32, 2 }
 0x190   :  { %v6860_v22 = vadd.f32 %v6859_v16, %v6858_v32 }
 0x192   :  { %v6861_v29 = vrot.slane %v6860_v22, 1 }
 0x194   :  { %v6862_v26 = vadd.f32 %v6861_v29, %v6860_v22 }
 0x198   :  { %v6864_v23 = vpop.xlane.xlu0 %6863 }
 0x199   :  { %v6865_v21 = vrot.slane %v6864_v23, 4 }
 0x19b   :  { %v6866_v27 = vadd.f32 %v6865_v21, %v6864_v23 }
 0x19d   :  { %v6867_v18 = vrot.slane %v6866_v27, 2 }
 0x19f   :  { %v6868_v38 = vadd.f32 %v6867_v18, %v6866_v27 }
 0x1a1   :  { %v6869_v63 = vrot.slane %v6868_v38, 1 }
 0x1a3   :  { %v6870_v25 = vadd.f32 %v6869_v63, %v6868_v38 }
 0x1a5   :  { %8186 = vpush %v6870_v25 }
 0x1a6   :  { %8188 = vpush %v6862_v26 }
 0x1d6   :  { %s8187_s25 = spop %8186 }
 0x1d7   :  { %s8189_s26 = spop %8188 }
 0x1d8   :  { %s6873_s27 = smul.f32 1e-10, %s8189_s26 }
 0x1da   :  { %p6874_p12 = scmp.le.f32.partialorder %s8187_s25, %s6873_s27 }
 0x1db   :  { %s9935_s28 = smov (!%p6874_p12), 0  }
 0x1dc   :  { %6877 = sbr.rel (%p6874_p12) target bundleno = 1857 (0x741), region = 1268 }
 0x1e1 LB: > { %12950 = sst [smem:[#allocation25_spill]] %s8997_s28  ;;  %s9940_s29 = smov 0   ;;  %s8997_s28 = sphi %s9935_s28, %s13124_s28  }
 0x1e2 LB: >> { %12951 = sst [smem:[#allocation26_spill]] %s9001_s29  ;;  %s9001_s29 = sphi %s9940_s29, %s1248_s29  }
 0x1e3   : >> { %s9945_s30 = smov [#allocation12]  ;;  %v9948_v51 = vmov %v9215_v51  ;;  %v1256_v52 = vmov %v9218_v52  ;;  %s9967_s10 = smov [#allocation13] }
 0x1e4   : >> { %v9952_v51 = vmov %v9215_v51  ;;  %v9955_v52 = vmov %v9218_v52  ;;  %v1257_v31 = vld [vmem:[%s9945_s30] sm:$0xff]  ;;  %vm1260_vm7 = vcmp.eq.s32.totalorder %v1256_v52, %v9948_v51  ;;  %v7152_v45 = vld [vmem:[%s9945_s30 + $0x8] sm:$0xff]  ;;  %v1265_v36 = vadd.s32 8, %v1256_v52  ;;  %v7153_v34 = vld [vmem:[%s9945_s30 + $0x10] sm:$0xff]  ;;  %s10030_s1 = smov [#allocation15]  ;;  %s1250_s11 = smov [#allocation16] }
 0x1e5   : >> { %v1271_v33 = vadd.s32 16, %v1256_v52  ;;  %v1277_v48 = vadd.s32 24, %v1256_v52  ;;  %v1261_v30 = vsel %vm1260_vm7, %v1257_v31, 0.0  ;;  %v1283_v43 = vadd.s32 32, %v1256_v52  ;;  %v7154_v37 = vld [vmem:[%s9945_s30 + $0x18] sm:$0xff]  ;;  %v7155_v2 = vld [vmem:[%s9945_s30 + $0x20] sm:$0xff] }
 0x1e6   : >> { %v1289_v35 = vadd.s32 40, %v1256_v52  ;;  %vm1352_vm5 = vcmp.eq.s32.totalorder %v9955_v52, %v9952_v51  ;;  %vm1266_vm8 = vcmp.eq.s32.totalorder %v1265_v36, %v9948_v51  ;;  %v1295_v61 = vadd.s32 48, %v1256_v52  ;;  %v7156_v7 = vld [vmem:[%s9945_s30 + $0x28] sm:$0xff]  ;;  %v1349_v13 = vld [vmem:[%s9967_s10] sm:$0xff]  ;;  %v7157_v11 = vld [vmem:[%s9945_s30 + $0x30] sm:$0xff]  ;;  %s1342_s12 = smov [#allocation17] }
 0x1e7   : >> { %vm1272_vm9 = vcmp.eq.s32.totalorder %v1271_v33, %v9948_v51  ;;  %vm1278_vm11 = vcmp.eq.s32.totalorder %v1277_v48, %v9948_v51  ;;  %v1267_v5 = vsel %vm1266_vm8, %v7152_v45, %v1261_v30  ;;  %vm1284_vm12 = vcmp.eq.s32.totalorder %v1283_v43, %v9948_v51  ;;  %v7158_v28 = vld [vmem:[%s9945_s30 + $0x38] sm:$0xff]  ;;  %v7159_v3 = vld [vmem:[%s9945_s30 + $0x40] sm:$0xff]  ;;  %v7160_v39 = vld [vmem:[%s9945_s30 + $0x48] sm:$0xff]  ;;  %s1529_s13 = smov [#allocation17]  ;;  %s1434_s3 = smov [#allocation18] }
 0x1e8   : >> { %vm1290_vm13 = vcmp.eq.s32.totalorder %v1289_v35, %v9948_v51  ;;  %v1301_v50 = vadd.s32 56, %v1256_v52  ;;  %v1273_v40 = vsel %vm1272_vm9, %v7153_v34, %v1267_v5  ;;  %vm1296_vm14 = vcmp.eq.s32.totalorder %v1295_v61, %v9948_v51  ;;  %v7164_v62 = vld [vmem:[%s9967_s10 + $0x8] sm:$0xff]  ;;  %v7161_v0 = vld [vmem:[%s9945_s30 + $0x50] sm:$0xff]  ;;  %v7162_v19 = vld [vmem:[%s9945_s30 + $0x58] sm:$0xff]  ;;  %s1527_s14 = smov [#allocation16]  ;;  %s1531_s15 = smov [#allocation18] }
 0x1e9   : >> { %v1307_v42 = vadd.s32 64, %v1256_v52  ;;  %v1313_v41 = vadd.s32 72, %v1256_v52  ;;  %v1279_v1 = vsel %vm1278_vm11, %v7154_v37, %v1273_v40  ;;  %v1319_v17 = vadd.s32 80, %v1256_v52  ;;  %v7165_v49 = vld [vmem:[%s9967_s10 + $0x10] sm:$0xff]  ;;  %v7166_v8 = vld [vmem:[%s9967_s10 + $0x18] sm:$0xff]  ;;  %v7167_v12 = vld [vmem:[%s9967_s10 + $0x20] sm:$0xff] }
 0x1ea   : >> { %vm1302_vm15 = vcmp.eq.s32.totalorder %v1301_v50, %v9948_v51  ;;  %v1325_v47 = vadd.s32 88, %v1256_v52  ;;  %v1285_v44 = vsel %vm1284_vm12, %v7155_v2, %v1279_v1  ;;  %v1331_v24 = vadd.s32 96, %v1256_v52  ;;  %v7163_v58 = vld [vmem:[%s9945_s30 + $0x60] sm:$0xf]  ;;  %v7168_v32 = vld [vmem:[%s9967_s10 + $0x28] sm:$0xff]  ;;  %v7169_v21 = vld [vmem:[%s9967_s10 + $0x30] sm:$0xff] }
 0x1eb   : >> { %vm1308_vm0 = vcmp.eq.s32.totalorder %v1307_v42, %v9948_v51  ;;  %vm1314_vm1 = vcmp.eq.s32.totalorder %v1313_v41, %v9948_v51  ;;  %v1291_v9 = vsel %vm1290_vm13, %v7156_v7, %v1285_v44  ;;  %vm1320_vm2 = vcmp.eq.s32.totalorder %v1319_v17, %v9948_v51  ;;  %v7170_v29 = vld [vmem:[%s9967_s10 + $0x38] sm:$0xff]  ;;  %v7171_v45 = vld [vmem:[%s9967_s10 + $0x40] sm:$0xff]  ;;  %v7172_v33 = vld [vmem:[%s9967_s10 + $0x48] sm:$0xff]  ;;  %s1566_s16 = smov [#allocation19]  ;;  %s1568_s17 = smov [#allocation20] }
 0x1ec   : >> { %vm1326_vm3 = vcmp.eq.s32.totalorder %v1325_v47, %v9948_v51  ;;  %v1353_v59 = vsel %vm1352_vm5, %v1349_v13, 0.0  ;;  %v1297_v60 = vsel %vm1296_vm14, %v7157_v11, %v1291_v9  ;;  %vm1332_vm4 = vcmp.eq.s32.totalorder %v1331_v24, %v9948_v51  ;;  %v7173_v43 = vld [vmem:[%s9967_s10 + $0x50] sm:$0xff]  ;;  %v1441_v37 = vld [vmem:[%s10030_s1] sm:$0xff]  ;;  %v7174_v5 = vld [vmem:[%s9967_s10 + $0x58] sm:$0xff]  ;;  %s1525_s18 = smov [#allocation21]  ;;  %s1526_s0 = smov [#allocation22] }
 0x1ed   : >> { %v1357_v14 = vadd.s32 8, %v9955_v52  ;;  %v1363_v46 = vadd.s32 16, %v9955_v52  ;;  %v1303_v53 = vsel %vm1302_vm15, %v7158_v28, %v1297_v60  ;;  %v1369_v6 = vadd.s32 24, %v9955_v52  ;;  %v7175_v40 = vld [vmem:[%s9967_s10 + $0x60] sm:$0xf]  ;;  %v7176_v41 = vld [vmem:[%s10030_s1 + $0x8] sm:$0xff]  ;;  %s1570_s18 = smov %s1525_s18  ;;  %s1572_s0 = smov %s1526_s0 }
 0x1ee   : >> { %v1375_v20 = vadd.s32 32, %v9955_v52  ;;  %v1381_v54 = vadd.s32 40, %v9955_v52  ;;  %v1309_v15 = vsel %vm1308_vm0, %v7159_v3, %v1303_v53  ;;  %v1387_v4 = vadd.s32 48, %v9955_v52  ;;  %v7177_v47 = vld [vmem:[%s10030_s1 + $0x10] sm:$0xff]  ;;  %v7178_v9 = vld [vmem:[%s10030_s1 + $0x18] sm:$0xff]  ;;  %s1589_s19 = smov [#allocation21] }
 0x1ef   : >> { %vm1358_vm6 = vcmp.eq.s32.totalorder %v1357_v14, %v9952_v51  ;;  %vm1364_vm7 = vcmp.eq.s32.totalorder %v1363_v46, %v9952_v51  ;;  %v1315_v56 = vsel %vm1314_vm1, %v7160_v39, %v1309_v15  ;;  %vm1370_vm5 = vcmp.eq.s32.totalorder %v1369_v6, %v9952_v51  ;;  %v7180_v46 = vld [vmem:[%s10030_s1 + $0x28] sm:$0xff]  ;;  %s1574_s20 = smov [#allocation21]  ;;  %s1605_s21 = smov [#allocation21] }
 0x1f0   : >> { %v1359_v10 = vsel %vm1358_vm6, %v7164_v62, %v1353_v59  ;;  %vm1376_vm8 = vcmp.eq.s32.totalorder %v1375_v20, %v9952_v51  ;;  %v1321_v55 = vsel %vm1320_vm2, %v7161_v0, %v1315_v56  ;;  %vm1382_vm9 = vcmp.eq.s32.totalorder %v1381_v54, %v9952_v51  ;;  %v7179_v62 = vld [vmem:[%s10030_s1 + $0x20] sm:$0xff]  ;;  %v7181_v20 = vld [vmem:[%s10030_s1 + $0x30] sm:$0xff]  ;;  %s1796_s22 = smov [#allocation22]  ;;  %s1621_s2 = smov [#allocation21] }
 0x1f1   : >> { %v1365_v57 = vsel %vm1364_vm7, %v7165_v49, %v1359_v10  ;;  %vm1388_vm11 = vcmp.eq.s32.totalorder %v1387_v4, %v9952_v51  ;;  %v1327_v16 = vsel %vm1326_vm3, %v7162_v19, %v1321_v55  ;;  %v1393_v27 = vadd.s32 56, %v9955_v52  ;;  %v7182_v19 = vld [vmem:[%s10030_s1 + $0x38] sm:$0xff]  ;;  %v7183_v10 = vld [vmem:[%s10030_s1 + $0x40] sm:$0xff]  ;;  %s1812_s23 = smov [#allocation22]  ;;  %s1637_s24 = smov [#allocation21] }
 0x1f2   : >> { %v1371_v23 = vsel %vm1370_vm5, %v7166_v8, %v1365_v57  ;;  %v1399_v22 = vadd.s32 64, %v9955_v52  ;;  %v1333_v18 = vsel %vm1332_vm4, %v7163_v58, %v1327_v16  ;;  %v1405_v63 = vadd.s32 72, %v9955_v52  ;;  %v7184_v57 = vld [vmem:[%s10030_s1 + $0x48] sm:$0xff]  ;;  %s1828_s25 = smov [#allocation22]  ;;  %s1653_s26 = smov [#allocation21] }
 0x1f3   : >> { %v1377_v38 = vsel %vm1376_vm8, %v7167_v12, %v1371_v23  ;;  %v1411_v25 = vadd.s32 80, %v9955_v52  ;;  %v1334_v26 = vrot.slane %v1333_v18, 4  ;;  %vm1394_vm12 = vcmp.eq.s32.totalorder %v1393_v27, %v9952_v51  ;;  %s1844_s27 = smov [#allocation22]  ;;  %s1669_s30 = smov [#allocation21] }
 0x1f4   : >> { %v1383_v31 = vsel %vm1382_vm9, %v7168_v32, %v1377_v38  ;;  %vm1400_vm13 = vcmp.eq.s32.totalorder %v1399_v22, %v9952_v51  ;;  %vm1406_vm14 = vcmp.eq.s32.totalorder %v1405_v63, %v9952_v51  ;;  %v1417_v48 = vadd.s32 88, %v9955_v52  ;;  %v7187_v63 = vld [vmem:[%s10030_s1 + $0x60] sm:$0xf]  ;;  %s1860_s10 = smov [#allocation22]  ;;  %s11579_s9 = smov [#allocation12] }
 0x1f5   : >> { %v1389_v36 = vsel %vm1388_vm11, %v7169_v21, %v1383_v31  ;;  %vm1412_vm15 = vcmp.eq.s32.totalorder %v1411_v25, %v9952_v51  ;;  %v1335_v30 = vadd.f32 %v1334_v26, %v1333_v18  ;;  %v1423_v35 = vadd.s32 96, %v9955_v52  ;;  %v7185_v21 = vld [vmem:[%s10030_s1 + $0x50] sm:$0xff]  ;;  %v7186_v18 = vld [vmem:[%s10030_s1 + $0x58] sm:$0xff]  ;;  %s1685_s1 = smov [#allocation21]  ;;  %s11585_s8 = smov [#allocation12] }
 0x1f6   : >> { %v1395_v34 = vsel %vm1394_vm12, %v7170_v29, %v1389_v36  ;;  %v10044_v51 = vmov %v9215_v51  ;;  %vm1418_vm0 = vcmp.eq.s32.totalorder %v1417_v48, %v9952_v51  ;;  %v1440_v52 = vmov %v9218_v52  ;;  %s11587_s7 = smov [#allocation13]  ;;  %s11597_s6 = smov [#allocation13] }
 0x1f7   : >> { %v1401_v61 = vsel %vm1400_vm13, %v7171_v45, %v1395_v34  ;;  %v1336_v2 = vrot.slane %v1335_v30, 2  ;;  %vm1424_vm1 = vcmp.eq.s32.totalorder %v1423_v35, %v9952_v51  ;;  %vm1444_vm2 = vcmp.eq.s32.totalorder %v1440_v52, %v10044_v51  ;;  %s12966_s5 = smov 127   ;;  %s11607_s4 = smov [#allocation14] }
 0x1f8   : >> { %v1407_v50 = vsel %vm1406_vm14, %v7172_v33, %v1401_v61  ;;  %v1445_v42 = vsel %vm1444_vm2, %v1441_v37, 0.0  ;;  %v1449_v13 = vadd.s32 8, %v1440_v52  ;;  %v1455_v1 = vadd.s32 16, %v1440_v52  ;;  %12967 = sst [smem:[#allocation28_spill]] %s11607_s4  ;;  %s11610_s28 = smov [#allocation14] }
 0x1f9   : >> { %v1413_v7 = vsel %vm1412_vm15, %v7173_v43, %v1407_v50  ;;  %v1337_v11 = vadd.f32 %v1336_v2, %v1335_v30  ;;  %v1461_v44 = vadd.s32 24, %v1440_v52  ;;  %v1467_v28 = vadd.s32 32, %v1440_v52  ;;  %12968 = sst [smem:[#allocation29_spill]] %s11610_s28  ;;  %s11620_s29 = smov [#allocation14] }
 0x1fa   : >> { %v1419_v17 = vsel %vm1418_vm0, %v7174_v5, %v1413_v7  ;;  %vm1450_vm3 = vcmp.eq.s32.totalorder %v1449_v13, %v10044_v51  ;;  %vm1456_vm4 = vcmp.eq.s32.totalorder %v1455_v1, %v10044_v51  ;;  %v1473_v3 = vadd.s32 40, %v1440_v52  ;;  %12969 = sst [smem:[#allocation30_spill]] %s11620_s29 }
 0x1fb   : >> { %v1425_v24 = vsel %vm1424_vm1, %v7175_v40, %v1419_v17  ;;  %v1338_v59 = vrot.slane %v1337_v11, 1  ;;  %v1451_v39 = vsel %vm1450_vm3, %v7176_v41, %v1445_v42  ;;  %vm1462_vm6 = vcmp.eq.s32.totalorder %v1461_v44, %v10044_v51 }
 0x1fc   : >> { %v1426_v60 = vrot.slane %v1425_v24, 4  ;;  %v1457_v14 = vsel %vm1456_vm4, %v7177_v47, %v1451_v39  ;;  %vm1468_vm7 = vcmp.eq.s32.totalorder %v1467_v28, %v10044_v51  ;;  %vm1474_vm5 = vcmp.eq.s32.totalorder %v1473_v3, %v10044_v51 }
 0x1fd   : >> { %v1479_v53 = vadd.s32 48, %v1440_v52  ;;  %v1339_v0 = vadd.f32 %v1338_v59, %v1337_v11  ;;  %v1463_v6 = vsel %vm1462_vm6, %v7178_v9, %v1457_v14  ;;  %v1485_v54 = vadd.s32 56, %v1440_v52 }
 0x1fe   : >> { %v1427_v49 = vadd.f32 %v1426_v60, %v1425_v24  ;;  %v1469_v15 = vsel %vm1468_vm7, %v7179_v62, %v1463_v6  ;;  %v1491_v8 = vadd.s32 64, %v1440_v52  ;;  %v1497_v4 = vadd.s32 72, %v1440_v52 }
 0x1ff   : >> { %vm1480_vm8 = vcmp.eq.s32.totalorder %v1479_v53, %v10044_v51  ;;  %1340 = vst [vmem:[%s1250_s11] sm:$0x1] %v1339_v0  ;;  %v1475_v58 = vsel %vm1474_vm5, %v7180_v46, %v1469_v15  ;;  %vm1486_vm9 = vcmp.eq.s32.totalorder %v1485_v54, %v10044_v51  ;;  %v1503_v12 = vadd.s32 80, %v1440_v52  ;;  %s1876_s11 = smov [#allocation22] }
 0x200   : >> { %v1428_v56 = vrot.slane %v1427_v49, 2  ;;  %v1481_v55 = vsel %vm1480_vm8, %v7181_v20, %v1475_v58  ;;  %vm1492_vm11 = vcmp.eq.s32.totalorder %v1491_v8, %v10044_v51  ;;  %vm1498_vm12 = vcmp.eq.s32.totalorder %v1497_v4, %v10044_v51 }
 0x201   : >> { %v1509_v32 = vadd.s32 88, %v1440_v52  ;;  %v1487_v23 = vsel %vm1486_vm9, %v7182_v19, %v1481_v55  ;;  %vm1504_vm13 = vcmp.eq.s32.totalorder %v1503_v12, %v10044_v51  ;;  %v1515_v27 = vadd.s32 96, %v1440_v52 }
 0x202   : >> { %v1429_v16 = vadd.f32 %v1428_v56, %v1427_v49  ;;  %v1493_v22 = vsel %vm1492_vm11, %v7183_v10, %v1487_v23  ;;  %v1596_v52 = vmov %v9218_v52 }
 0x203   : >> { %vm1510_vm14 = vcmp.eq.s32.totalorder %v1509_v32, %v10044_v51  ;;  %v1499_v29 = vsel %vm1498_vm12, %v7184_v57, %v1493_v22  ;;  %vm1516_vm15 = vcmp.eq.s32.totalorder %v1515_v27, %v10044_v51  ;;  %v1612_v52 = vmov %v9218_v52 }
 0x204   : >> { %v1430_v38 = vrot.slane %v1429_v16, 1  ;;  %v1505_v25 = vsel %vm1504_vm13, %v7185_v21, %v1499_v29  ;;  %v1803_v52 = vmov %v9218_v52  ;;  %v1597_v54 = vadd.s32 8, %v1596_v52 }
 0x205   : >> { %v1511_v31 = vsel %vm1510_vm14, %v7186_v18, %v1505_v25  ;;  %v1593_v51 = vmov %v9215_v51  ;;  %v1581_v52 = vmov %v9218_v52  ;;  %v1613_v15 = vadd.s32 16, %v1612_v52 }
 0x206   : >> { %v1431_v26 = vadd.f32 %v1430_v38, %v1429_v16  ;;  %v1517_v45 = vsel %vm1516_vm15, %v7187_v63, %v1511_v31  ;;  %v1528_v61 = vld [vmem:[%s1527_s14] sm:$0xff]  ;;  %v1578_v51 = vmov %v9215_v51  ;;  %v1804_v19 = vadd.s32 8, %v1803_v52  ;;  %s1908_s14 = smov [#allocation22] }
 0x207   : >> { %v1518_v36 = vrot.slane %v1517_v45, 4  ;;  %v1551_v24 = vand.u32 2147483647, %v1528_v61  ;;  %v1609_v51 = vmov %v9215_v51  ;;  %v1628_v52 = vmov %v9218_v52 }
 0x208   : >> { %1432 = vst [vmem:[%s1342_s12] sm:$0x1] %v1431_v26  ;;  %v1800_v51 = vmov %v9215_v51  ;;  %v1819_v52 = vmov %v9218_v52  ;;  %vm1598_vm4 = vcmp.eq.s32.totalorder %v1597_v54, %v1593_v51  ;;  %vm1583_vm6 = vcmp.eq.s32.totalorder %v1581_v52, %v1578_v51  ;;  %s1701_s12 = smov [#allocation21] }
 0x209   : >> { %v1519_v33 = vadd.f32 %v1518_v36, %v1517_v45  ;;  %v1625_v51 = vmov %v9215_v51  ;;  %vm1614_vm7 = vcmp.eq.s32.totalorder %v1613_v15, %v1609_v51  ;;  %vm1805_vm5 = vcmp.eq.s32.totalorder %v1804_v19, %v1800_v51 }
 0x20a   : >> { %v1816_v51 = vmov %v9215_v51  ;;  %v1629_v56 = vadd.s32 24, %v1628_v52  ;;  %v1820_v58 = vadd.s32 16, %v1819_v52  ;;  %v1644_v52 = vmov %v9218_v52 }
 0x20b   : >> { %v1520_v48 = vrot.slane %v1519_v33, 2  ;;  %v1835_v52 = vmov %v9218_v52  ;;  %v1645_v27 = vadd.s32 32, %v1644_v52 }
 0x20c   : >> { %vm1630_vm8 = vcmp.eq.s32.totalorder %v1629_v56, %v1625_v51  ;;  %vm1821_vm9 = vcmp.eq.s32.totalorder %v1820_v58, %v1816_v51  ;;  %v1836_v22 = vadd.s32 24, %v1835_v52  ;;  %v1641_v51 = vmov %v9215_v51 }
 0x20d   : >> { %v1521_v30 = vadd.f32 %v1520_v48, %v1519_v33  ;;  %v1832_v51 = vmov %v9215_v51  ;;  %v1660_v52 = vmov %v9218_v52  ;;  %vm1646_vm11 = vcmp.eq.s32.totalorder %v1645_v27, %v1641_v51 }
 0x20e   : >> { %v1851_v52 = vmov %v9218_v52  ;;  %vm1837_vm12 = vcmp.eq.s32.totalorder %v1836_v22, %v1832_v51  ;;  %v1661_v25 = vadd.s32 40, %v1660_v52  ;;  %v1657_v51 = vmov %v9215_v51 }
 0x20f   : >> { %v1530_v34 = vld [vmem:[%s1529_s13] sm:$0xff]  ;;  %v1522_v43 = vrot.slane %v1521_v30, 1  ;;  %v1852_v26 = vadd.s32 32, %v1851_v52  ;;  %v1848_v51 = vmov %v9215_v51  ;;  %v1676_v52 = vmov %v9218_v52  ;;  %s1892_s13 = smov [#allocation22] }
 0x210   : >> { %v1534_v35 = vmul.f32 2.0, %v1530_v34  ;;  %v1552_v59 = vand.u32 2147483647, %v1530_v34  ;;  %v1867_v52 = vmov %v9218_v52  ;;  %vm1662_vm13 = vcmp.eq.s32.totalorder %v1661_v25, %v1657_v51 }
 0x211   : >> { %v1523_v37 = vadd.f32 %v1522_v43, %v1521_v30  ;;  %vm1853_vm14 = vcmp.eq.s32.totalorder %v1852_v26, %v1848_v51  ;;  %v1677_v48 = vadd.s32 48, %v1676_v52  ;;  %v1868_v30 = vadd.s32 40, %v1867_v52 }
 0x212   : >> { %8665 = vrcp.f32 %v1534_v35  ;;  %v1673_v51 = vmov %v9215_v51  ;;  %v1692_v52 = vmov %v9218_v52 }
 0x213   : >> { %1524 = vst [vmem:[%s1434_s3] sm:$0x1] %v1523_v37  ;;  %v1864_v51 = vmov %v9215_v51  ;;  %v1883_v52 = vmov %v9218_v52  ;;  %vm1678_vm15 = vcmp.eq.s32.totalorder %v1677_v48, %v1673_v51  ;;  %s1717_s3 = smov [#allocation21] }
 0x21a   : >> { %v1532_v5 = vld [vmem:[%s1531_s15] sm:$0xff]  ;;  %s1924_s15 = smov [#allocation22] }
 0x21b   : >> { %v1533_v2 = vsub.f32 %v1532_v5, %v1528_v61  ;;  %v1553_v9 = vand.u32 2147483647, %v1532_v5 }
 0x21d   : >> { %v1554_v3 = vmin.f32 %v1551_v24, %v1553_v9 }
 0x21f   : >> { %v8666_v50 = vpop.eup %8665  ;;  %v1555_v60 = vmul.f32 1.1920929e-08, %v1554_v3 }
 0x220   : >> { %v1536_v40 = vmul.f32 %v8666_v50, %v1533_v2 }
 0x221   : >> { %vm1556_vm3 = vcmp.le.f32.partialorder %v1552_v59, %v1555_v60 }
 0x222   : >> { %v1538_v7 = vmul.f32 %v1536_v40, %v1536_v40  ;;  %vm1537_vm2 = vcmp.ge.f32.partialorder %v1536_v40, 0.0 }
 0x224   : >> { %v1539_v42 = vadd.f32 1.0, %v1538_v7 }
 0x226   : >> { %8667 = vrsqrt.f32 %v1539_v42  ;;  %vm1542_vm0 = vcmp.eq.f32.partialorder %v1539_v42, inf  ;;  %v1545_v13 = vand.u32 2147483648, %v1539_v42  ;;  %vm1544_vm1 = vcmp.eq.f32.partialorder %v1539_v42, 0.0 }
 0x233   : >> { %v8668_v41 = vpop.eup %8667 }
 0x234   : >> { %v1541_v1 = vmul.f32 %v8668_v41, %v1539_v42 }
 0x236   : >> { %v1543_v11 = vsel %vm1542_vm0, %v1539_v42, %v1541_v1  ;;  %vm1869_vm0 = vcmp.eq.s32.totalorder %v1868_v30, %v1864_v51  ;;  %v1689_v51 = vmov %v9215_v51 }
 0x237   : >> { %v1546_v17 = vsel %vm1544_vm1, %v1545_v13, %v1543_v11  ;;  %v1880_v51 = vmov %v9215_v51 }
 0x238   : >> { %v1547_v47 = vxor.u32 2147483648, %v1546_v17 }
 0x23a   : >> { %v1548_v44 = vsel %vm1537_vm2, %v1546_v17, %v1547_v47 }
 0x23b   : >> { %v1549_v28 = vadd.f32 %v1548_v44, %v1536_v40 }
 0x23d   : >> { %8669 = vrcp.f32 %v1549_v28 }
 0x24a   : >> { %v8670_v39 = vpop.eup %8669 }
 0x24b   : >> { %v1557_v62 = vsel %vm1556_vm3, 0.0, %v8670_v39 }
 0x24c   : >> { %v1558_v14 = vmul.f32 %v1557_v62, %v1557_v62  ;;  %v1562_v46 = vmul.f32 %v1557_v62, %v1530_v34 }
 0x24e   : >> { %v1559_v53 = vadd.f32 1.0, %v1558_v14  ;;  %v1563_v0 = vsub.f32 %v1528_v61, %v1562_v46  ;;  %v1565_v49 = vadd.f32 %v1562_v46, %v1532_v5  ;;  %v1693_v61 = vadd.s32 56, %v1692_v52 }
 0x24f   : >> { %v1884_v5 = vadd.s32 48, %v1883_v52  ;;  %v1708_v52 = vmov %v9218_v52 }
 0x250   : >> { %8671 = vrsqrt.f32 %v1559_v53  ;;  %1567 = vst [vmem:[%s1566_s16] sm:$0xff] %v1563_v0  ;;  %1569 = vst [vmem:[%s1568_s17] sm:$0xff] %v1565_v49  ;;  %v1899_v52 = vmov %v9218_v52  ;;  %vm1694_vm1 = vcmp.eq.s32.totalorder %v1693_v61, %v1689_v51  ;;  %v1709_v42 = vadd.s32 64, %v1708_v52  ;;  %s1781_s16 = smov [#allocation22]  ;;  %s1940_s17 = smov [#allocation22] }
 0x251   : >> { %vm1885_vm2 = vcmp.eq.s32.totalorder %v1884_v5, %v1880_v51  ;;  %v1900_v41 = vadd.s32 56, %v1899_v52  ;;  %v1705_v51 = vmov %v9215_v51  ;;  %v1724_v52 = vmov %v9218_v52 }
 0x252   : >> { %v1896_v51 = vmov %v9215_v51  ;;  %v1915_v52 = vmov %v9218_v52  ;;  %vm1710_vm3 = vcmp.eq.s32.totalorder %v1709_v42, %v1705_v51  ;;  %v1725_v47 = vadd.s32 72, %v1724_v52 }
 0x253   : >> { %v1916_v44 = vadd.s32 64, %v1915_v52  ;;  %v1931_v52 = vmov %v9218_v52 }
 0x254   : >> { %v1932_v59 = vadd.s32 72, %v1931_v52  ;;  %v1788_v52 = vmov %v9218_v52 }
 0x255   : >> { %v1947_v52 = vmov %v9218_v52 }
 0x256   : >> { %v1740_v52 = vmov %v9218_v52  ;;  %v1948_v46 = vadd.s32 80, %v1947_v52 }
 0x257   : >> { %v1741_v53 = vadd.s32 80, %v1740_v52 }
 0x25d   : >> { %v8672_v6 = vpop.eup %8671 }
 0x25e   : >> { %1571 = vst [vmem:[%s1570_s18] sm:$0xff] %v8672_v6  ;;  %v1561_v20 = vmul.f32 %v8672_v6, %v1557_v62  ;;  %s1733_s18 = smov [#allocation21] }
 0x260   : >> { %1573 = vst [vmem:[%s1572_s0] sm:$0xff] %v1561_v20  ;;  %s1956_s0 = smov [#allocation22] }
 0x265   : >> { %v1590_v8 = vld [vmem:[%s1589_s19] ss:$0 sm:$0xff]  ;;  %s1749_s19 = smov [#allocation21] }
 0x266   : >> { %v1575_v4 = vld [vmem:[%s1574_s20] ss:$0 sm:$0xff]  ;;  %v1599_v10 = vsel %vm1598_vm4, %v1590_v8, 0.0  ;;  %vm1901_vm4 = vcmp.eq.s32.totalorder %v1900_v41, %v1896_v51  ;;  %v1721_v51 = vmov %v9215_v51  ;;  %s1972_s20 = smov [#allocation22] }
 0x267   : >> { %v1584_v12 = vsel %vm1583_vm6, %v1575_v4, 0.0  ;;  %v1606_v55 = vld [vmem:[%s1605_s21] ss:$0 sm:$0xff]  ;;  %1600 = vadd.xlane.f32.xlu1 %v1599_v10  ;;  %v1912_v51 = vmov %v9215_v51  ;;  %vm1726_vm6 = vcmp.eq.s32.totalorder %v1725_v47, %v1721_v51  ;;  %s1765_s21 = smov [#allocation21] }
 0x268   : >> { %1585 = vadd.xlane.f32.xlu0 %v1584_v12  ;;  %v1797_v57 = vld [vmem:[%s1796_s22] ss:$0 sm:$0xff]  ;;  %v1615_v32 = vsel %vm1614_vm7, %v1606_v55, 0.0  ;;  %vm1917_vm7 = vcmp.eq.s32.totalorder %v1916_v44, %v1912_v51  ;;  %v1928_v51 = vmov %v9215_v51  ;;  %s1587_s22 = smov [#allocation23] }
 0x269   : >> { %v1806_v16 = vsel %vm1805_vm5, %v1797_v57, 0.0  ;;  %v1622_v23 = vld [vmem:[%s1621_s2] ss:$0 sm:$0xff]  ;;  %v1785_v51 = vmov %v9215_v51  ;;  %vm1933_vm5 = vcmp.eq.s32.totalorder %v1932_v59, %v1928_v51  ;;  %s1602_s2 = smov [#allocation23] }
 0x26a   : >> { %v1813_v21 = vld [vmem:[%s1812_s23] ss:$0 sm:$0xff]  ;;  %v1631_v18 = vsel %vm1630_vm8, %v1622_v23, 0.0  ;;  %vm1790_vm8 = vcmp.eq.s32.totalorder %v1788_v52, %v1785_v51  ;;  %v1944_v51 = vmov %v9215_v51  ;;  %v1963_v52 = vmov %v9218_v52  ;;  %s1618_s23 = smov [#allocation23] }
 0x26b   : >> { %1807 = vadd.xlane.f32.xlu1 %v1806_v16  ;;  %v1822_v38 = vsel %vm1821_vm9, %v1813_v21, 0.0  ;;  %v1638_v29 = vld [vmem:[%s1637_s24] ss:$0 sm:$0xff]  ;;  %v1737_v51 = vmov %v9215_v51  ;;  %v1756_v52 = vmov %v9218_v52  ;;  %vm1949_vm9 = vcmp.eq.s32.totalorder %v1948_v46, %v1944_v51  ;;  %s1634_s24 = smov [#allocation23] }
 0x26c   : >> { %1616 = vadd.xlane.f32.xlu0 %v1615_v32  ;;  %v1829_v63 = vld [vmem:[%s1828_s25] ss:$0 sm:$0xff]  ;;  %v1647_v31 = vsel %vm1646_vm11, %v1638_v29, 0.0  ;;  %vm1742_vm11 = vcmp.eq.s32.totalorder %v1741_v53, %v1737_v51  ;;  %v1964_v54 = vadd.s32 88, %v1963_v52  ;;  %v1757_v15 = vadd.s32 88, %v1756_v52  ;;  %s1650_s25 = smov [#allocation23] }
 0x26d   : >> { %v1838_v45 = vsel %vm1837_vm12, %v1829_v63, 0.0  ;;  %v1654_v36 = vld [vmem:[%s1653_s26] ss:$0 sm:$0xff]  ;;  %v1960_v51 = vmov %v9215_v51  ;;  %v1979_v52 = vmov %v9218_v52  ;;  %s1666_s26 = smov [#allocation23] }
 0x26e   : >> { %v1845_v33 = vld [vmem:[%s1844_s27] ss:$0 sm:$0xff]  ;;  %v1663_v34 = vsel %vm1662_vm13, %v1654_v36, 0.0  ;;  %v1753_v51 = vmov %v9215_v51  ;;  %v1772_v52 = vmov %v9218_v52  ;;  %vm1965_vm12 = vcmp.eq.s32.totalorder %v1964_v54, %v1960_v51  ;;  %s1682_s27 = smov [#allocation23] }
 0x26f   : >> { %1823 = vadd.xlane.f32.xlu1 %v1822_v38  ;;  %v1854_v43 = vsel %vm1853_vm14, %v1845_v33, 0.0  ;;  %v1670_v35 = vld [vmem:[%s1669_s30] ss:$0 sm:$0xff]  ;;  %vm1758_vm13 = vcmp.eq.s32.totalorder %v1757_v15, %v1753_v51  ;;  %v1980_v58 = vadd.s32 96, %v1979_v52  ;;  %v1773_v10 = vadd.s32 96, %v1772_v52  ;;  %s1698_s30 = smov [#allocation23] }
 0x270   : >> { %1632 = vadd.xlane.f32.xlu0 %v1631_v18  ;;  %v1861_v37 = vld [vmem:[%s1860_s10] ss:$0 sm:$0xff]  ;;  %v1679_v2 = vsel %vm1678_vm15, %v1670_v35, 0.0  ;;  %v1976_v51 = vmov %v9215_v51  ;;  %s1714_s10 = smov [#allocation23] }
 0x271   : >> { %v1870_v50 = vsel %vm1869_vm0, %v1861_v37, 0.0  ;;  %v1686_v40 = vld [vmem:[%s1685_s1] ss:$0 sm:$0xff]  ;;  %v1769_v51 = vmov %v9215_v51  ;;  %vm1981_vm14 = vcmp.eq.s32.totalorder %v1980_v58, %v1976_v51  ;;  %s1730_s1 = smov [#allocation23]  ;;  %vm12920_vm0 = vcmp.eq.s32.totalorder %v9218_v52, 0 }
 0x272   : >> { %v1877_v7 = vld [vmem:[%s1876_s11] ss:$0 sm:$0xff]  ;;  %v1695_v13 = vsel %vm1694_vm1, %v1686_v40, 0.0  ;;  %vm1774_vm15 = vcmp.eq.s32.totalorder %v1773_v10, %v1769_v51  ;;  %s1794_s11 = smov [#allocation24]  ;;  %vm12919_vm1 = vcmp.eq.s32.totalorder %v9218_v52, 3  ;;  %v11004_v51 = vmov %v9215_v51 }
 0x273   : >> { %1839 = vadd.xlane.f32.xlu1 %v1838_v45  ;;  %v1886_v1 = vsel %vm1885_vm2, %v1877_v7, 0.0  ;;  %v1702_v11 = vld [vmem:[%s1701_s12] ss:$0 sm:$0xff]  ;;  %s1809_s12 = smov [#allocation24]  ;;  %vm12918_vm2 = vcmp.eq.s32.totalorder %v9218_v52, 7  ;;  %v10961_v52 = vmov %v9218_v52  ;;  %v11007_v51 = vmov %v9215_v51 }
 0x274   : >> { %1648 = vadd.xlane.f32.xlu0 %v1647_v31  ;;  %v1893_v17 = vld [vmem:[%s1892_s13] ss:$0 sm:$0xff]  ;;  %v1711_v28 = vsel %vm1710_vm3, %v1702_v11, 0.0  ;;  %s1825_s13 = smov [#allocation24]  ;;  %v11048_v51 = vmov %v9215_v51  ;;  %vm2800_vm3 = vcmp.eq.s32.totalorder %v10961_v52, %v11004_v51 }
 0x275   : >> { %v1902_v24 = vsel %vm1901_vm4, %v1893_v17, 0.0  ;;  %v1718_v9 = vld [vmem:[%s1717_s3] ss:$0 sm:$0xff]  ;;  %s1841_s3 = smov [#allocation24] }
 0x276   : >> { %v1909_v3 = vld [vmem:[%s1908_s14] ss:$0 sm:$0xff]  ;;  %v1727_v60 = vsel %vm1726_vm6, %v1718_v9, 0.0  ;;  %s1857_s14 = smov [#allocation24] }
 0x277   : >> { %1855 = vadd.xlane.f32.xlu1 %v1854_v43  ;;  %v1918_v39 = vsel %vm1917_vm7, %v1909_v3, 0.0  ;;  %v1925_v62 = vld [vmem:[%s1924_s15] ss:$0 sm:$0xff]  ;;  %s1746_s15 = smov [#allocation23] }
 0x278   : >> { %1664 = vadd.xlane.f32.xlu0 %v1663_v34  ;;  %v1782_v14 = vld [vmem:[%s1781_s16] ss:$0 sm:$0xff]  ;;  %v1934_v0 = vsel %vm1933_vm5, %v1925_v62, 0.0  ;;  %s1873_s16 = smov [#allocation24] }
 0x279   : >> { %v1791_v49 = vsel %vm1790_vm8, %v1782_v14, 0.0  ;;  %v1941_v6 = vld [vmem:[%s1940_s17] ss:$0 sm:$0xff]  ;;  %s1889_s17 = smov [#allocation24] }
 0x27a   : >> { %v1734_v20 = vld [vmem:[%s1733_s18] ss:$0 sm:$0xff]  ;;  %v1950_v19 = vsel %vm1949_vm9, %v1941_v6, 0.0  ;;  %s1905_s18 = smov [#allocation24] }
 0x27b   : >> { %1871 = vadd.xlane.f32.xlu1 %v1870_v50  ;;  %v1743_v8 = vsel %vm1742_vm11, %v1734_v20, 0.0  ;;  %v1957_v4 = vld [vmem:[%s1956_s0] ss:$0 sm:$0xff]  ;;  %s1921_s0 = smov [#allocation24] }
 0x27c   : >> { %1680 = vadd.xlane.f32.xlu0 %v1679_v2  ;;  %v1750_v56 = vld [vmem:[%s1749_s19] ss:$0 sm:$0xff]  ;;  %v1966_v12 = vsel %vm1965_vm12, %v1957_v4, 0.0  ;;  %s1762_s19 = smov [#allocation23] }
 0x27d   : >> { %v1759_v55 = vsel %vm1758_vm13, %v1750_v56, 0.0  ;;  %v1973_v57 = vld [vmem:[%s1972_s20] ss:$0 sm:$0xff]  ;;  %s1937_s20 = smov [#allocation24] }
 0x27e   : >> { %v1766_v32 = vld [vmem:[%s1765_s21] ss:$0 sm:$0xff]  ;;  %v1982_v16 = vsel %vm1981_vm14, %v1973_v57, 0.0  ;;  %s1953_s21 = smov [#allocation24] }
 0x27f   : >> { %1887 = vadd.xlane.f32.xlu1 %v1886_v1  ;;  %v1775_v23 = vsel %vm1774_vm15, %v1766_v32, 0.0 }
 0x280   : >> { %1696 = vadd.xlane.f32.xlu0 %v1695_v13 }
 0x283   : >> { %1903 = vadd.xlane.f32.xlu1 %v1902_v24 }
 0x284   : >> { %1712 = vadd.xlane.f32.xlu0 %v1711_v28 }
 0x287   : >> { %1919 = vadd.xlane.f32.xlu1 %v1918_v39 }
 0x288   : >> { %1728 = vadd.xlane.f32.xlu0 %v1727_v60 }
 0x28b   : >> { %1935 = vadd.xlane.f32.xlu1 %v1934_v0 }
 0x28c   : >> { %1792 = vadd.xlane.f32.xlu0 %v1791_v49 }
 0x28f   : >> { %1951 = vadd.xlane.f32.xlu1 %v1950_v19 }
 0x290   : >> { %1744 = vadd.xlane.f32.xlu0 %v1743_v8 }
 0x293   : >> { %1967 = vadd.xlane.f32.xlu1 %v1966_v12 }
 0x294   : >> { %1760 = vadd.xlane.f32.xlu0 %v1759_v55 }
 0x297   : >> { %1983 = vadd.xlane.f32.xlu1 %v1982_v16 }
 0x298   : >> { %1776 = vadd.xlane.f32.xlu0 %v1775_v23 }
 0x2f0   : >> { %v1601_v21 = vpop.xlane.xlu1 %1600 }
 0x2f1   : >> { %v1586_v27 = vpop.xlane.xlu0 %1585 }
 0x2f2   : >> { %1588 = vst [vmem:[%s1587_s22] sm:$0xff] %v1586_v27  ;;  %s1969_s22 = smov [#allocation24] }
 0x2f3   : >> { %7188 = vst [vmem:[%s1602_s2 + $0x8] sm:$0xff] %v1601_v21  ;;  %s1985_s2 = smov [#allocation24] }
 0x2f4   : >> { %v1808_v18 = vpop.xlane.xlu1 %1807 }
 0x2f5   : >> { %v1617_v22 = vpop.xlane.xlu0 %1616 }
 0x2f6   : >> { %7189 = vst [vmem:[%s1618_s23 + $0x10] sm:$0xff] %v1617_v22  ;;  %s1778_s23 = smov [#allocation23] }
 0x2f8   : >> { %v1824_v29 = vpop.xlane.xlu1 %1823 }
 0x2f9   : >> { %v1633_v38 = vpop.xlane.xlu0 %1632 }
 0x2fa   : >> { %7190 = vst [vmem:[%s1634_s24 + $0x18] sm:$0xff] %v1633_v38  ;;  %s1990_s24 = smov [#allocation24] }
 0x2fc   : >> { %v1840_v25 = vpop.xlane.xlu1 %1839 }
 0x2fd   : >> { %v1649_v63 = vpop.xlane.xlu0 %1648 }
 0x2fe   : >> { %7191 = vst [vmem:[%s1650_s25 + $0x20] sm:$0xff] %v1649_v63  ;;  %s10131_s25 = smov [#allocation12] }
 0x2ff   : >> { %v1996_v41 = vld [vmem:[%s10131_s25] sm:$0xff] }
 0x300   : >> { %v1856_v31 = vpop.xlane.xlu1 %1855 }
 0x301   : >> { %v1665_v26 = vpop.xlane.xlu0 %1664 }
 0x302   : >> { %7192 = vst [vmem:[%s1666_s26 + $0x28] sm:$0xff] %v1665_v26  ;;  %s10133_s26 = smov [#allocation13] }
 0x303   : >> { %v1997_v13 = vld [vmem:[%s10133_s26] sm:$0xff] }
 0x304   : >> { %v1872_v36 = vpop.xlane.xlu1 %1871 }
 0x305   : >> { %v1681_v45 = vpop.xlane.xlu0 %1680 }
 0x306   : >> { %7193 = vst [vmem:[%s1682_s27 + $0x30] sm:$0xff] %v1681_v45  ;;  %s10135_s27 = smov [#allocation14] }
 0x307   : >> { %v1998_v1 = vld [vmem:[%s10135_s27] sm:$0xff] }
 0x308   : >> { %v1888_v48 = vpop.xlane.xlu1 %1887 }
 0x309   : >> { %v1697_v33 = vpop.xlane.xlu0 %1696 }
 0x30a   : >> { %7194 = vst [vmem:[%s1698_s30 + $0x38] sm:$0xff] %v1697_v33  ;;  %s10137_s30 = smov [#allocation15] }
 0x30b   : >> { %v1999_v11 = vld [vmem:[%s10137_s30] sm:$0xff] }
 0x30c   : >> { %v1904_v34 = vpop.xlane.xlu1 %1903 }
 0x30d   : >> { %v1713_v30 = vpop.xlane.xlu0 %1712 }
 0x30e   : >> { %7195 = vst [vmem:[%s1714_s10 + $0x40] sm:$0xff] %v1713_v30  ;;  %s4614_s10 = smov [#allocation24] }
 0x310   : >> { %v1920_v35 = vpop.xlane.xlu1 %1919 }
 0x311   : >> { %v1729_v43 = vpop.xlane.xlu0 %1728 }
 0x312   : >> { %7196 = vst [vmem:[%s1730_s1 + $0x48] sm:$0xff] %v1729_v43  ;;  %s10143_s1 = smov [#allocation8] }
 0x313   : >> { %v4620_v9 = vld [vmem:[%s10143_s1] sm:$0xff] }
 0x314   : >> { %v1936_v37 = vpop.xlane.xlu1 %1935 }
 0x315   : >> { %v1793_v61 = vpop.xlane.xlu0 %1792 }
 0x316   : >> { %1795 = vst [vmem:[%s1794_s11] sm:$0xff] %v1793_v61  ;;  %s10145_s11 = smov [#allocation9] }
 0x317   : >> { %7200 = vst [vmem:[%s1809_s12 + $0x8] sm:$0xff] %v1808_v18  ;;  %s1988_s12 = smov [#allocation23]  ;;  %v4621_v3 = vld [vmem:[%s10145_s11] sm:$0xff] }
 0x318   : >> { %7201 = vst [vmem:[%s1825_s13 + $0x10] sm:$0xff] %v1824_v29  ;;  %v1952_v5 = vpop.xlane.xlu1 %1951  ;;  %s10147_s13 = smov [#allocation10] }
 0x319   : >> { %7202 = vst [vmem:[%s1841_s3 + $0x18] sm:$0xff] %v1840_v25  ;;  %v1745_v2 = vpop.xlane.xlu0 %1744  ;;  %s10149_s3 = smov [#allocation11]  ;;  %v4622_v60 = vld [vmem:[%s10147_s13] sm:$0xff] }
 0x31a   : >> { %7203 = vst [vmem:[%s1857_s14 + $0x20] sm:$0xff] %v1856_v31  ;;  %7197 = vst [vmem:[%s1746_s15 + $0x50] sm:$0xff] %v1745_v2  ;;  %v4623_v39 = vld [vmem:[%s10149_s3] sm:$0xff]  ;;  %s4612_s14 = smov [#allocation23]  ;;  %s2019_s15 = smov [#allocation24] }
 0x31b   : >> { %7204 = vst [vmem:[%s1873_s16 + $0x28] sm:$0xff] %v1872_v36  ;;  %s10159_s16 = smov [#allocation12] }
 0x31c   : >> { %7205 = vst [vmem:[%s1889_s17 + $0x30] sm:$0xff] %v1888_v48  ;;  %v1968_v50 = vpop.xlane.xlu1 %1967  ;;  %s2016_s17 = smov [#allocation23] }
 0x31d   : >> { %7206 = vst [vmem:[%s1905_s18 + $0x38] sm:$0xff] %v1904_v34  ;;  %v1761_v40 = vpop.xlane.xlu0 %1760  ;;  %s10161_s18 = smov [#allocation13] }
 0x31e   : >> { %7207 = vst [vmem:[%s1921_s0 + $0x40] sm:$0xff] %v1920_v35  ;;  %7198 = vst [vmem:[%s1762_s19 + $0x58] sm:$0xff] %v1761_v40  ;;  %s10163_s0 = smov [#allocation14]  ;;  %s10165_s19 = smov [#allocation15] }
 0x31f   : >> { %7208 = vst [vmem:[%s1937_s20 + $0x48] sm:$0xff] %v1936_v37  ;;  %s4643_s20 = smov [#allocation24] }
 0x320   : >> { %7209 = vst [vmem:[%s1953_s21 + $0x50] sm:$0xff] %v1952_v5  ;;  %v1984_v7 = vpop.xlane.xlu1 %1983  ;;  %s4640_s21 = smov [#allocation23] }
 0x321   : >> { %7210 = vst [vmem:[%s1969_s22 + $0x58] sm:$0xff] %v1968_v50  ;;  %v1777_v42 = vpop.xlane.xlu0 %1776  ;;  %s10174_s22 = smov [#allocation8] }
 0x322   : >> { %7211 = vst [vmem:[%s1985_s2 + $0x60] sm:$0xff] %v1984_v7  ;;  %7199 = vst [vmem:[%s1778_s23 + $0x60] sm:$0xff] %v1777_v42  ;;  %s10177_s2 = smov [#allocation9]  ;;  %s10179_s23 = smov [#allocation10] }
 0x329   : >> { %v1991_v17 = vld [vmem:[%s1990_s24] sm:$0xff]  ;;  %v7213_v21 = vld [vmem:[%s2019_s15 + $0x8] sm:$0xff]  ;;  %s10181_s24 = smov [#allocation11]  ;;  %s10213_s15 = smov [#allocation11] }
 0x32a   : >> { %v2001_v47 = vmul.f32 %v1998_v1, %v1991_v17  ;;  %v2004_v44 = vmul.f32 %v1999_v11, %v1991_v17  ;;  %v2006_v28 = vmul.f32 %v1996_v41, %v1991_v17  ;;  %v2009_v24 = vmul.f32 %v1997_v13, %v1991_v17  ;;  %v1989_v59 = vld [vmem:[%s1988_s12] sm:$0xff]  ;;  %v7212_v27 = vld [vmem:[%s2016_s17 + $0x8] sm:$0xff]  ;;  %s4674_s12 = smov [#allocation23]  ;;  %s10223_s17 = smov [#allocation12] }
 0x32b   : >> { %v4615_v62 = vld [vmem:[%s4614_s10] sm:$0xff]  ;;  %v2000_v14 = vmul.f32 %v1996_v41, %v1989_v59  ;;  %v2003_v46 = vmul.f32 %v1997_v13, %v1989_v59  ;;  %v2007_v53 = vmul.f32 %v1998_v1, %v1989_v59  ;;  %v2010_v0 = vmul.f32 %v1999_v11, %v1989_v59  ;;  %v7821_v34 = vld [vmem:[%s4643_s20 + $0x8] sm:$0xff]  ;;  %s10195_s10 = smov [#allocation14]  ;;  %s10229_s20 = smov [#allocation15] }
 0x32c   : >> { %v4625_v15 = vmul.f32 %v4622_v60, %v4615_v62  ;;  %v4628_v19 = vmul.f32 %v4623_v39, %v4615_v62  ;;  %v4630_v8 = vmul.f32 %v4620_v9, %v4615_v62  ;;  %v4633_v4 = vmul.f32 %v4621_v3, %v4615_v62  ;;  %v4613_v56 = vld [vmem:[%s4612_s14] sm:$0xff]  ;;  %v7820_v61 = vld [vmem:[%s4640_s21 + $0x8] sm:$0xff]  ;;  %s10211_s14 = smov [#allocation10]  ;;  %s4711_s21 = smov [#allocation24] }
 0x32d   : >> { %v2002_v49 = vsub.f32 %v2000_v14, %v2001_v47  ;;  %v2005_v6 = vsub.f32 %v2003_v46, %v2004_v44  ;;  %v2008_v20 = vadd.f32 %v2007_v53, %v2006_v28  ;;  %v2011_v54 = vadd.f32 %v2010_v0, %v2009_v24 }
 0x32e   : >> { %v4624_v58 = vmul.f32 %v4620_v9, %v4613_v56  ;;  %v4627_v10 = vmul.f32 %v4621_v3, %v4613_v56  ;;  %v4631_v12 = vmul.f32 %v4622_v60, %v4613_v56  ;;  %v4634_v55 = vmul.f32 %v4623_v39, %v4613_v56 }
 0x32f   : >> { %2012 = vst [vmem:[%s10131_s25] sm:$0xff] %v2002_v49  ;;  %2013 = vst [vmem:[%s10133_s26] sm:$0xff] %v2005_v6  ;;  %s2053_s25 = smov [#allocation24]  ;;  %s10191_s26 = smov [#allocation12] }
 0x330   : >> { %2014 = vst [vmem:[%s10135_s27] sm:$0xff] %v2008_v20  ;;  %2015 = vst [vmem:[%s10137_s30] sm:$0xff] %v2011_v54  ;;  %v4626_v57 = vsub.f32 %v4624_v58, %v4625_v15  ;;  %v4629_v32 = vsub.f32 %v4627_v10, %v4628_v19  ;;  %v4632_v16 = vadd.f32 %v4631_v12, %v4630_v8  ;;  %s10193_s27 = smov [#allocation13]  ;;  %s2050_s30 = smov [#allocation23]  ;;  %v7223_v3 = vld [vmem:[%s2053_s25 + $0x10] sm:$0xff] }
 0x331   : >> { %v4635_v23 = vadd.f32 %v4634_v55, %v4633_v4  ;;  %v7222_v59 = vld [vmem:[%s2050_s30 + $0x10] sm:$0xff]  ;;  %s10245_s25 = smov [#allocation11]  ;;  %s10257_s30 = smov [#allocation13] }
 0x332   : >> { %4636 = vst [vmem:[%s10143_s1] sm:$0xff] %v4626_v57  ;;  %4637 = vst [vmem:[%s10145_s11] sm:$0xff] %v4629_v32  ;;  %s10197_s1 = smov [#allocation15]  ;;  %s4677_s11 = smov [#allocation24]  ;;  %v7830_v10 = vld [vmem:[%s4674_s12 + $0x10] sm:$0xff] }
 0x333   : >> { %4638 = vst [vmem:[%s10147_s13] sm:$0xff] %v4632_v16  ;;  %4639 = vst [vmem:[%s10149_s3] sm:$0xff] %v4635_v23  ;;  %s10207_s13 = smov [#allocation8]  ;;  %s10209_s3 = smov [#allocation9]  ;;  %v7831_v56 = vld [vmem:[%s4677_s11 + $0x10] sm:$0xff] }
 0x334   : >> { %s10261_s11 = smov [#allocation15]  ;;  %s4745_s12 = smov [#allocation24] }
 0x336   : >> { %v7214_v22 = vld [vmem:[%s10159_s16 + $0x8] sm:$0xff] }
 0x337   : >> { %v7215_v18 = vld [vmem:[%s10161_s18 + $0x8] sm:$0xff]  ;;  %v2034_v63 = vmul.f32 %v7214_v22, %v7212_v27  ;;  %v2040_v31 = vmul.f32 %v7214_v22, %v7213_v21 }
 0x338   : >> { %v7216_v38 = vld [vmem:[%s10163_s0 + $0x8] sm:$0xff]  ;;  %v2037_v26 = vmul.f32 %v7215_v18, %v7212_v27  ;;  %v2043_v33 = vmul.f32 %v7215_v18, %v7213_v21 }
 0x339   : >> { %v7217_v29 = vld [vmem:[%s10165_s19 + $0x8] sm:$0xff]  ;;  %v2035_v25 = vmul.f32 %v7216_v38, %v7213_v21  ;;  %v2041_v36 = vmul.f32 %v7216_v38, %v7212_v27 }
 0x33a   : >> { %v2038_v45 = vmul.f32 %v7217_v29, %v7213_v21  ;;  %v2044_v48 = vmul.f32 %v7217_v29, %v7212_v27  ;;  %v7822_v5 = vld [vmem:[%s10174_s22 + $0x8] sm:$0xff] }
 0x33b   : >> { %v2036_v30 = vsub.f32 %v2034_v63, %v2035_v25  ;;  %v2042_v35 = vadd.f32 %v2041_v36, %v2040_v31  ;;  %v7823_v2 = vld [vmem:[%s10177_s2 + $0x8] sm:$0xff]  ;;  %v4658_v7 = vmul.f32 %v7822_v5, %v7820_v61  ;;  %v4664_v13 = vmul.f32 %v7822_v5, %v7821_v34 }
 0x33c   : >> { %v2039_v43 = vsub.f32 %v2037_v26, %v2038_v45  ;;  %v2045_v37 = vadd.f32 %v2044_v48, %v2043_v33  ;;  %v7824_v50 = vld [vmem:[%s10179_s23 + $0x8] sm:$0xff]  ;;  %v4661_v41 = vmul.f32 %v7823_v2, %v7820_v61  ;;  %v4667_v17 = vmul.f32 %v7823_v2, %v7821_v34 }
 0x33d   : >> { %7218 = vst [vmem:[%s10159_s16 + $0x8] sm:$0xff] %v2036_v30  ;;  %7220 = vst [vmem:[%s10163_s0 + $0x8] sm:$0xff] %v2042_v35  ;;  %v7825_v40 = vld [vmem:[%s10181_s24 + $0x8] sm:$0xff]  ;;  %v4659_v42 = vmul.f32 %v7824_v50, %v7821_v34  ;;  %v4665_v11 = vmul.f32 %v7824_v50, %v7820_v61  ;;  %s2087_s16 = smov [#allocation24]  ;;  %s10225_s0 = smov [#allocation13] }
 0x33e   : >> { %7219 = vst [vmem:[%s10161_s18 + $0x8] sm:$0xff] %v2039_v43  ;;  %7221 = vst [vmem:[%s10165_s19 + $0x8] sm:$0xff] %v2045_v37  ;;  %v4662_v1 = vmul.f32 %v7825_v40, %v7821_v34  ;;  %v4668_v47 = vmul.f32 %v7825_v40, %v7820_v61  ;;  %s2084_s18 = smov [#allocation23]  ;;  %s10227_s19 = smov [#allocation14]  ;;  %v7233_v45 = vld [vmem:[%s2087_s16 + $0x18] sm:$0xff] }
 0x33f   : >> { %v4660_v44 = vsub.f32 %v4658_v7, %v4659_v42  ;;  %v4666_v24 = vadd.f32 %v4665_v11, %v4664_v13  ;;  %v7232_v36 = vld [vmem:[%s2084_s18 + $0x18] sm:$0xff]  ;;  %s10277_s16 = smov [#allocation11]  ;;  %s10287_s18 = smov [#allocation12] }
 0x340   : >> { %v4663_v28 = vsub.f32 %v4661_v41, %v4662_v1  ;;  %v4669_v9 = vadd.f32 %v4668_v47, %v4667_v17  ;;  %v7841_v42 = vld [vmem:[%s4711_s21 + $0x18] sm:$0xff]  ;;  %s10293_s21 = smov [#allocation15] }
 0x341   : >> { %7826 = vst [vmem:[%s10174_s22 + $0x8] sm:$0xff] %v4660_v44  ;;  %7828 = vst [vmem:[%s10179_s23 + $0x8] sm:$0xff] %v4666_v24  ;;  %s4708_s22 = smov [#allocation23]  ;;  %s10241_s23 = smov [#allocation9] }
 0x342   : >> { %7827 = vst [vmem:[%s10177_s2 + $0x8] sm:$0xff] %v4663_v28  ;;  %7829 = vst [vmem:[%s10181_s24 + $0x8] sm:$0xff] %v4669_v9  ;;  %s10238_s2 = smov [#allocation8]  ;;  %s10243_s24 = smov [#allocation10]  ;;  %v7840_v11 = vld [vmem:[%s4708_s22 + $0x18] sm:$0xff] }
 0x343   : >> { %s4779_s22 = smov [#allocation24] }
 0x344   : >> { %v7224_v60 = vld [vmem:[%s10191_s26 + $0x10] sm:$0xff] }
 0x345   : >> { %v7225_v39 = vld [vmem:[%s10193_s27 + $0x10] sm:$0xff]  ;;  %v2068_v46 = vmul.f32 %v7224_v60, %v7222_v59  ;;  %v2074_v53 = vmul.f32 %v7224_v60, %v7223_v3 }
 0x346   : >> { %v7226_v62 = vld [vmem:[%s10195_s10 + $0x10] sm:$0xff]  ;;  %v2071_v49 = vmul.f32 %v7225_v39, %v7222_v59  ;;  %v2077_v54 = vmul.f32 %v7225_v39, %v7223_v3 }
 0x347   : >> { %v7227_v14 = vld [vmem:[%s10197_s1 + $0x10] sm:$0xff]  ;;  %v2069_v0 = vmul.f32 %v7226_v62, %v7223_v3  ;;  %v2075_v20 = vmul.f32 %v7226_v62, %v7222_v59 }
 0x348   : >> { %v2072_v6 = vmul.f32 %v7227_v14, %v7223_v3  ;;  %v2078_v15 = vmul.f32 %v7227_v14, %v7222_v59  ;;  %v7832_v12 = vld [vmem:[%s10207_s13 + $0x10] sm:$0xff] }
 0x349   : >> { %v2070_v19 = vsub.f32 %v2068_v46, %v2069_v0  ;;  %v2076_v4 = vadd.f32 %v2075_v20, %v2074_v53  ;;  %v7833_v55 = vld [vmem:[%s10209_s3 + $0x10] sm:$0xff]  ;;  %v4692_v16 = vmul.f32 %v7832_v12, %v7830_v10  ;;  %v4698_v23 = vmul.f32 %v7832_v12, %v7831_v56 }
 0x34a   : >> { %v2073_v8 = vsub.f32 %v2071_v49, %v2072_v6  ;;  %v2079_v58 = vadd.f32 %v2078_v15, %v2077_v54  ;;  %v7834_v57 = vld [vmem:[%s10211_s14 + $0x10] sm:$0xff]  ;;  %v4695_v27 = vmul.f32 %v7833_v55, %v7830_v10  ;;  %v4701_v38 = vmul.f32 %v7833_v55, %v7831_v56 }
 0x34b   : >> { %7228 = vst [vmem:[%s10191_s26 + $0x10] sm:$0xff] %v2070_v19  ;;  %7230 = vst [vmem:[%s10195_s10 + $0x10] sm:$0xff] %v2076_v4  ;;  %v7835_v32 = vld [vmem:[%s10213_s15 + $0x10] sm:$0xff]  ;;  %v4693_v21 = vmul.f32 %v7834_v57, %v7831_v56  ;;  %v4699_v18 = vmul.f32 %v7834_v57, %v7830_v10  ;;  %s2121_s26 = smov [#allocation24]  ;;  %s2118_s10 = smov [#allocation23] }
 0x34c   : >> { %7229 = vst [vmem:[%s10193_s27 + $0x10] sm:$0xff] %v2073_v8  ;;  %7231 = vst [vmem:[%s10197_s1 + $0x10] sm:$0xff] %v2079_v58  ;;  %v4696_v22 = vmul.f32 %v7835_v32, %v7831_v56  ;;  %v4702_v29 = vmul.f32 %v7835_v32, %v7830_v10  ;;  %s10255_s27 = smov [#allocation12]  ;;  %s10259_s1 = smov [#allocation14]  ;;  %v7243_v6 = vld [vmem:[%s2121_s26 + $0x20] sm:$0xff] }
 0x34d   : >> { %v4694_v63 = vsub.f32 %v4692_v16, %v4693_v21  ;;  %v4700_v26 = vadd.f32 %v4699_v18, %v4698_v23  ;;  %v7242_v20 = vld [vmem:[%s2118_s10 + $0x20] sm:$0xff]  ;;  %s10309_s26 = smov [#allocation11]  ;;  %s10321_s10 = smov [#allocation13] }
 0x34e   : >> { %v4697_v25 = vsub.f32 %v4695_v27, %v4696_v22  ;;  %v4703_v31 = vadd.f32 %v4702_v29, %v4701_v38  ;;  %v7851_v27 = vld [vmem:[%s4745_s12 + $0x20] sm:$0xff]  ;;  %s10325_s12 = smov [#allocation15] }
 0x34f   : >> { %7836 = vst [vmem:[%s10207_s13 + $0x10] sm:$0xff] %v4694_v63  ;;  %7838 = vst [vmem:[%s10211_s14 + $0x10] sm:$0xff] %v4700_v26  ;;  %s4742_s13 = smov [#allocation23]  ;;  %s10273_s14 = smov [#allocation9] }
 0x350   : >> { %7837 = vst [vmem:[%s10209_s3 + $0x10] sm:$0xff] %v4697_v25  ;;  %7839 = vst [vmem:[%s10213_s15 + $0x10] sm:$0xff] %v4703_v31  ;;  %s10271_s3 = smov [#allocation8]  ;;  %s10275_s15 = smov [#allocation10]  ;;  %v7850_v18 = vld [vmem:[%s4742_s13 + $0x20] sm:$0xff] }
 0x351   : >> { %s4813_s13 = smov [#allocation24] }
 0x352   : >> { %v7234_v33 = vld [vmem:[%s10223_s17 + $0x18] sm:$0xff] }
 0x353   : >> { %v7235_v48 = vld [vmem:[%s10225_s0 + $0x18] sm:$0xff]  ;;  %v2102_v43 = vmul.f32 %v7234_v33, %v7232_v36  ;;  %v2108_v61 = vmul.f32 %v7234_v33, %v7233_v45 }
 0x354   : >> { %v7236_v30 = vld [vmem:[%s10227_s19 + $0x18] sm:$0xff]  ;;  %v2105_v37 = vmul.f32 %v7235_v48, %v7232_v36  ;;  %v2111_v50 = vmul.f32 %v7235_v48, %v7233_v45 }
 0x355   : >> { %v7237_v34 = vld [vmem:[%s10229_s20 + $0x18] sm:$0xff]  ;;  %v2103_v35 = vmul.f32 %v7236_v30, %v7233_v45  ;;  %v2109_v2 = vmul.f32 %v7236_v30, %v7232_v36 }
 0x356   : >> { %v2106_v5 = vmul.f32 %v7237_v34, %v7233_v45  ;;  %v2112_v40 = vmul.f32 %v7237_v34, %v7232_v36  ;;  %v7842_v17 = vld [vmem:[%s10238_s2 + $0x18] sm:$0xff] }
 0x357   : >> { %v2104_v7 = vsub.f32 %v2102_v43, %v2103_v35  ;;  %v2110_v13 = vadd.f32 %v2109_v2, %v2108_v61  ;;  %v7843_v47 = vld [vmem:[%s10241_s23 + $0x18] sm:$0xff]  ;;  %v4726_v24 = vmul.f32 %v7842_v17, %v7840_v11  ;;  %v4732_v59 = vmul.f32 %v7842_v17, %v7841_v42 }
 0x358   : >> { %v2107_v41 = vsub.f32 %v2105_v37, %v2106_v5  ;;  %v2113_v1 = vadd.f32 %v2112_v40, %v2111_v50  ;;  %v7844_v44 = vld [vmem:[%s10243_s24 + $0x18] sm:$0xff]  ;;  %v4729_v3 = vmul.f32 %v7843_v47, %v7840_v11  ;;  %v4735_v62 = vmul.f32 %v7843_v47, %v7841_v42 }
 0x359   : >> { %7238 = vst [vmem:[%s10223_s17 + $0x18] sm:$0xff] %v2104_v7  ;;  %7240 = vst [vmem:[%s10227_s19 + $0x18] sm:$0xff] %v2110_v13  ;;  %v7845_v28 = vld [vmem:[%s10245_s25 + $0x18] sm:$0xff]  ;;  %v4727_v9 = vmul.f32 %v7844_v44, %v7841_v42  ;;  %v4733_v39 = vmul.f32 %v7844_v44, %v7840_v11  ;;  %s2155_s17 = smov [#allocation24]  ;;  %s10289_s19 = smov [#allocation13] }
 0x35a   : >> { %7239 = vst [vmem:[%s10225_s0 + $0x18] sm:$0xff] %v2107_v41  ;;  %7241 = vst [vmem:[%s10229_s20 + $0x18] sm:$0xff] %v2113_v1  ;;  %v4730_v60 = vmul.f32 %v7845_v28, %v7841_v42  ;;  %v4736_v14 = vmul.f32 %v7845_v28, %v7840_v11  ;;  %s2152_s0 = smov [#allocation23]  ;;  %s10291_s20 = smov [#allocation14]  ;;  %v7253_v5 = vld [vmem:[%s2155_s17 + $0x28] sm:$0xff] }
 0x35b   : >> { %v4728_v46 = vsub.f32 %v4726_v24, %v4727_v9  ;;  %v4734_v0 = vadd.f32 %v4733_v39, %v4732_v59  ;;  %v7252_v2 = vld [vmem:[%s2152_s0 + $0x28] sm:$0xff]  ;;  %s10341_s17 = smov [#allocation11]  ;;  %s10351_s0 = smov [#allocation12] }
 0x35c   : >> { %v4731_v53 = vsub.f32 %v4729_v3, %v4730_v60  ;;  %v4737_v49 = vadd.f32 %v4736_v14, %v4735_v62  ;;  %v7861_v9 = vld [vmem:[%s4779_s22 + $0x28] sm:$0xff]  ;;  %s10357_s22 = smov [#allocation15] }
 0x35d   : >> { %7846 = vst [vmem:[%s10238_s2 + $0x18] sm:$0xff] %v4728_v46  ;;  %7848 = vst [vmem:[%s10243_s24 + $0x18] sm:$0xff] %v4734_v0  ;;  %s4776_s2 = smov [#allocation23]  ;;  %s10305_s24 = smov [#allocation9] }
 0x35e   : >> { %7847 = vst [vmem:[%s10241_s23 + $0x18] sm:$0xff] %v4731_v53  ;;  %7849 = vst [vmem:[%s10245_s25 + $0x18] sm:$0xff] %v4737_v49  ;;  %s10302_s23 = smov [#allocation8]  ;;  %s10307_s25 = smov [#allocation10]  ;;  %v7860_v39 = vld [vmem:[%s4776_s2 + $0x28] sm:$0xff] }
 0x35f   : >> { %s4847_s2 = smov [#allocation24] }
 0x360   : >> { %v7244_v54 = vld [vmem:[%s10255_s27 + $0x20] sm:$0xff] }
 0x361   : >> { %v7245_v15 = vld [vmem:[%s10257_s30 + $0x20] sm:$0xff]  ;;  %v2136_v4 = vmul.f32 %v7244_v54, %v7242_v20  ;;  %v2142_v56 = vmul.f32 %v7244_v54, %v7243_v6 }
 0x362   : >> { %v7246_v19 = vld [vmem:[%s10259_s1 + $0x20] sm:$0xff]  ;;  %v2139_v10 = vmul.f32 %v7245_v15, %v7242_v20  ;;  %v2145_v57 = vmul.f32 %v7245_v15, %v7243_v6 }
 0x363   : >> { %v7247_v8 = vld [vmem:[%s10261_s11 + $0x20] sm:$0xff]  ;;  %v2137_v58 = vmul.f32 %v7246_v19, %v7243_v6  ;;  %v2143_v55 = vmul.f32 %v7246_v19, %v7242_v20 }
 0x364   : >> { %v2140_v12 = vmul.f32 %v7247_v8, %v7243_v6  ;;  %v2146_v32 = vmul.f32 %v7247_v8, %v7242_v20  ;;  %v7852_v38 = vld [vmem:[%s10271_s3 + $0x20] sm:$0xff] }
 0x365   : >> { %v2138_v16 = vsub.f32 %v2136_v4, %v2137_v58  ;;  %v2144_v21 = vadd.f32 %v2143_v55, %v2142_v56  ;;  %v7853_v29 = vld [vmem:[%s10273_s14 + $0x20] sm:$0xff]  ;;  %v4760_v26 = vmul.f32 %v7852_v38, %v7850_v18  ;;  %v4766_v31 = vmul.f32 %v7852_v38, %v7851_v27 }
 0x366   : >> { %v2141_v23 = vsub.f32 %v2139_v10, %v2140_v12  ;;  %v2147_v22 = vadd.f32 %v2146_v32, %v2145_v57  ;;  %v7854_v63 = vld [vmem:[%s10275_s15 + $0x20] sm:$0xff]  ;;  %v4763_v36 = vmul.f32 %v7853_v29, %v7850_v18  ;;  %v4769_v30 = vmul.f32 %v7853_v29, %v7851_v27 }
 0x367   : >> { %7248 = vst [vmem:[%s10255_s27 + $0x20] sm:$0xff] %v2138_v16  ;;  %7250 = vst [vmem:[%s10259_s1 + $0x20] sm:$0xff] %v2144_v21  ;;  %v7855_v25 = vld [vmem:[%s10277_s16 + $0x20] sm:$0xff]  ;;  %v4761_v45 = vmul.f32 %v7854_v63, %v7851_v27  ;;  %v4767_v48 = vmul.f32 %v7854_v63, %v7850_v18  ;;  %s2189_s27 = smov [#allocation24]  ;;  %s2186_s1 = smov [#allocation23] }
 0x368   : >> { %7249 = vst [vmem:[%s10257_s30 + $0x20] sm:$0xff] %v2141_v23  ;;  %7251 = vst [vmem:[%s10261_s11 + $0x20] sm:$0xff] %v2147_v22  ;;  %v4764_v33 = vmul.f32 %v7855_v25, %v7851_v27  ;;  %v4770_v34 = vmul.f32 %v7855_v25, %v7850_v18  ;;  %s10319_s30 = smov [#allocation12]  ;;  %s10323_s11 = smov [#allocation14]  ;;  %v7263_v12 = vld [vmem:[%s2189_s27 + $0x30] sm:$0xff] }
 0x369   : >> { %v4762_v43 = vsub.f32 %v4760_v26, %v4761_v45  ;;  %v4768_v37 = vadd.f32 %v4767_v48, %v4766_v31  ;;  %v7262_v55 = vld [vmem:[%s2186_s1 + $0x30] sm:$0xff]  ;;  %s10373_s27 = smov [#allocation11]  ;;  %s10385_s1 = smov [#allocation13] }
 0x36a   : >> { %v4765_v35 = vsub.f32 %v4763_v36, %v4764_v33  ;;  %v4771_v61 = vadd.f32 %v4770_v34, %v4769_v30  ;;  %v7871_v36 = vld [vmem:[%s4813_s13 + $0x30] sm:$0xff]  ;;  %s10389_s13 = smov [#allocation15] }
 0x36b   : >> { %7856 = vst [vmem:[%s10271_s3 + $0x20] sm:$0xff] %v4762_v43  ;;  %7858 = vst [vmem:[%s10275_s15 + $0x20] sm:$0xff] %v4768_v37  ;;  %s4810_s3 = smov [#allocation23]  ;;  %s10337_s15 = smov [#allocation9] }
 0x36c   : >> { %7857 = vst [vmem:[%s10273_s14 + $0x20] sm:$0xff] %v4765_v35  ;;  %7859 = vst [vmem:[%s10277_s16 + $0x20] sm:$0xff] %v4771_v61  ;;  %s10335_s14 = smov [#allocation8]  ;;  %s10339_s16 = smov [#allocation10]  ;;  %v7870_v48 = vld [vmem:[%s4810_s3 + $0x30] sm:$0xff] }
 0x36d   : >> { %s4881_s3 = smov [#allocation24] }
 0x36e   : >> { %v7254_v50 = vld [vmem:[%s10287_s18 + $0x28] sm:$0xff] }
 0x36f   : >> { %v7255_v40 = vld [vmem:[%s10289_s19 + $0x28] sm:$0xff]  ;;  %v2170_v41 = vmul.f32 %v7254_v50, %v7252_v2  ;;  %v2176_v11 = vmul.f32 %v7254_v50, %v7253_v5 }
 0x370   : >> { %v7256_v7 = vld [vmem:[%s10291_s20 + $0x28] sm:$0xff]  ;;  %v2173_v1 = vmul.f32 %v7255_v40, %v7252_v2  ;;  %v2179_v44 = vmul.f32 %v7255_v40, %v7253_v5 }
 0x371   : >> { %v7257_v42 = vld [vmem:[%s10293_s21 + $0x28] sm:$0xff]  ;;  %v2171_v13 = vmul.f32 %v7256_v7, %v7253_v5  ;;  %v2177_v47 = vmul.f32 %v7256_v7, %v7252_v2 }
 0x372   : >> { %v2174_v17 = vmul.f32 %v7257_v42, %v7253_v5  ;;  %v2180_v28 = vmul.f32 %v7257_v42, %v7252_v2  ;;  %v7862_v62 = vld [vmem:[%s10302_s23 + $0x28] sm:$0xff] }
 0x373   : >> { %v2172_v24 = vsub.f32 %v2170_v41, %v2171_v13  ;;  %v2178_v59 = vadd.f32 %v2177_v47, %v2176_v11  ;;  %v7863_v14 = vld [vmem:[%s10305_s24 + $0x28] sm:$0xff]  ;;  %v4794_v0 = vmul.f32 %v7862_v62, %v7860_v39  ;;  %v4800_v20 = vmul.f32 %v7862_v62, %v7861_v9 }
 0x374   : >> { %v2175_v3 = vsub.f32 %v2173_v1, %v2174_v17  ;;  %v2181_v60 = vadd.f32 %v2180_v28, %v2179_v44  ;;  %v7864_v46 = vld [vmem:[%s10307_s25 + $0x28] sm:$0xff]  ;;  %v4797_v6 = vmul.f32 %v7863_v14, %v7860_v39  ;;  %v4803_v19 = vmul.f32 %v7863_v14, %v7861_v9 }
 0x375   : >> { %7258 = vst [vmem:[%s10287_s18 + $0x28] sm:$0xff] %v2172_v24  ;;  %7260 = vst [vmem:[%s10291_s20 + $0x28] sm:$0xff] %v2178_v59  ;;  %v7865_v53 = vld [vmem:[%s10309_s26 + $0x28] sm:$0xff]  ;;  %v4795_v49 = vmul.f32 %v7864_v46, %v7861_v9  ;;  %v4801_v15 = vmul.f32 %v7864_v46, %v7860_v39  ;;  %s2223_s18 = smov [#allocation24]  ;;  %s10353_s20 = smov [#allocation13] }
 0x376   : >> { %7259 = vst [vmem:[%s10289_s19 + $0x28] sm:$0xff] %v2175_v3  ;;  %7261 = vst [vmem:[%s10293_s21 + $0x28] sm:$0xff] %v2181_v60  ;;  %v4798_v54 = vmul.f32 %v7865_v53, %v7861_v9  ;;  %v4804_v8 = vmul.f32 %v7865_v53, %v7860_v39  ;;  %s2220_s19 = smov [#allocation23]  ;;  %s10355_s21 = smov [#allocation14]  ;;  %v7273_v17 = vld [vmem:[%s2223_s18 + $0x38] sm:$0xff] }
 0x377   : >> { %v4796_v4 = vsub.f32 %v4794_v0, %v4795_v49  ;;  %v4802_v58 = vadd.f32 %v4801_v15, %v4800_v20  ;;  %v7272_v47 = vld [vmem:[%s2220_s19 + $0x38] sm:$0xff]  ;;  %s10405_s18 = smov [#allocation11]  ;;  %s10415_s19 = smov [#allocation12] }
 0x378   : >> { %v4799_v56 = vsub.f32 %v4797_v6, %v4798_v54  ;;  %v4805_v10 = vadd.f32 %v4804_v8, %v4803_v19  ;;  %v7881_v49 = vld [vmem:[%s4847_s2 + $0x38] sm:$0xff]  ;;  %s10421_s2 = smov [#allocation15] }
 0x379   : >> { %7866 = vst [vmem:[%s10302_s23 + $0x28] sm:$0xff] %v4796_v4  ;;  %7868 = vst [vmem:[%s10307_s25 + $0x28] sm:$0xff] %v4802_v58  ;;  %s4844_s23 = smov [#allocation23]  ;;  %s10369_s25 = smov [#allocation9] }
 0x37a   : >> { %7867 = vst [vmem:[%s10305_s24 + $0x28] sm:$0xff] %v4799_v56  ;;  %7869 = vst [vmem:[%s10309_s26 + $0x28] sm:$0xff] %v4805_v10  ;;  %s10366_s24 = smov [#allocation8]  ;;  %s10371_s26 = smov [#allocation10]  ;;  %v7880_v15 = vld [vmem:[%s4844_s23 + $0x38] sm:$0xff] }
 0x37b   : >> { %s4915_s23 = smov [#allocation24] }
 0x37c   : >> { %v7264_v57 = vld [vmem:[%s10319_s30 + $0x30] sm:$0xff] }
 0x37d   : >> { %v7265_v32 = vld [vmem:[%s10321_s10 + $0x30] sm:$0xff]  ;;  %v2204_v21 = vmul.f32 %v7264_v57, %v7262_v55  ;;  %v2210_v27 = vmul.f32 %v7264_v57, %v7263_v12 }
 0x37e   : >> { %v7266_v16 = vld [vmem:[%s10323_s11 + $0x30] sm:$0xff]  ;;  %v2207_v18 = vmul.f32 %v7265_v32, %v7262_v55  ;;  %v2213_v63 = vmul.f32 %v7265_v32, %v7263_v12 }
 0x37f   : >> { %v7267_v23 = vld [vmem:[%s10325_s12 + $0x30] sm:$0xff]  ;;  %v2205_v22 = vmul.f32 %v7266_v16, %v7263_v12  ;;  %v2211_v29 = vmul.f32 %v7266_v16, %v7262_v55 }
 0x380   : >> { %v2208_v38 = vmul.f32 %v7267_v23, %v7263_v12  ;;  %v2214_v25 = vmul.f32 %v7267_v23, %v7262_v55  ;;  %v7872_v30 = vld [vmem:[%s10335_s14 + $0x30] sm:$0xff] }
 0x381   : >> { %v2206_v26 = vsub.f32 %v2204_v21, %v2205_v22  ;;  %v2212_v45 = vadd.f32 %v2211_v29, %v2210_v27  ;;  %v7873_v34 = vld [vmem:[%s10337_s15 + $0x30] sm:$0xff]  ;;  %v4828_v37 = vmul.f32 %v7872_v30, %v7870_v48  ;;  %v4834_v61 = vmul.f32 %v7872_v30, %v7871_v36 }
 0x382   : >> { %v2209_v31 = vsub.f32 %v2207_v18, %v2208_v38  ;;  %v2215_v33 = vadd.f32 %v2214_v25, %v2213_v63  ;;  %v7874_v43 = vld [vmem:[%s10339_s16 + $0x30] sm:$0xff]  ;;  %v4831_v2 = vmul.f32 %v7873_v34, %v7870_v48  ;;  %v4837_v7 = vmul.f32 %v7873_v34, %v7871_v36 }
 0x383   : >> { %7268 = vst [vmem:[%s10319_s30 + $0x30] sm:$0xff] %v2206_v26  ;;  %7270 = vst [vmem:[%s10323_s11 + $0x30] sm:$0xff] %v2212_v45  ;;  %v7875_v35 = vld [vmem:[%s10341_s17 + $0x30] sm:$0xff]  ;;  %v4829_v5 = vmul.f32 %v7874_v43, %v7871_v36  ;;  %v4835_v40 = vmul.f32 %v7874_v43, %v7870_v48  ;;  %s2257_s30 = smov [#allocation24]  ;;  %s2254_s11 = smov [#allocation23] }
 0x384   : >> { %7269 = vst [vmem:[%s10321_s10 + $0x30] sm:$0xff] %v2209_v31  ;;  %7271 = vst [vmem:[%s10325_s12 + $0x30] sm:$0xff] %v2215_v33  ;;  %v4832_v50 = vmul.f32 %v7875_v35, %v7871_v36  ;;  %v4838_v42 = vmul.f32 %v7875_v35, %v7870_v48  ;;  %s10383_s10 = smov [#allocation12]  ;;  %s10387_s12 = smov [#allocation14]  ;;  %v7283_v38 = vld [vmem:[%s2257_s30 + $0x40] sm:$0xff] }
 0x385   : >> { %v4830_v41 = vsub.f32 %v4828_v37, %v4829_v5  ;;  %v4836_v1 = vadd.f32 %v4835_v40, %v4834_v61  ;;  %v7282_v29 = vld [vmem:[%s2254_s11 + $0x40] sm:$0xff]  ;;  %s10437_s30 = smov [#allocation11]  ;;  %s10449_s11 = smov [#allocation13] }
 0x386   : >> { %v4833_v13 = vsub.f32 %v4831_v2, %v4832_v50  ;;  %v4839_v11 = vadd.f32 %v4838_v42, %v4837_v7  ;;  %v7891_v2 = vld [vmem:[%s4881_s3 + $0x40] sm:$0xff]  ;;  %s10453_s3 = smov [#allocation15] }
 0x387   : >> { %7876 = vst [vmem:[%s10335_s14 + $0x30] sm:$0xff] %v4830_v41  ;;  %7878 = vst [vmem:[%s10339_s16 + $0x30] sm:$0xff] %v4836_v1  ;;  %s4878_s14 = smov [#allocation23]  ;;  %s10401_s16 = smov [#allocation9] }
 0x388   : >> { %7877 = vst [vmem:[%s10337_s15 + $0x30] sm:$0xff] %v4833_v13  ;;  %7879 = vst [vmem:[%s10341_s17 + $0x30] sm:$0xff] %v4839_v11  ;;  %s10399_s15 = smov [#allocation8]  ;;  %s10403_s17 = smov [#allocation10]  ;;  %v7890_v40 = vld [vmem:[%s4878_s14 + $0x40] sm:$0xff] }
 0x389   : >> { %s4949_s14 = smov [#allocation24] }
 0x38a   : >> { %v7274_v44 = vld [vmem:[%s10351_s0 + $0x38] sm:$0xff] }
 0x38b   : >> { %v7275_v28 = vld [vmem:[%s10353_s20 + $0x38] sm:$0xff]  ;;  %v2238_v3 = vmul.f32 %v7274_v44, %v7272_v47  ;;  %v2244_v39 = vmul.f32 %v7274_v44, %v7273_v17 }
 0x38c   : >> { %v7276_v24 = vld [vmem:[%s10355_s21 + $0x38] sm:$0xff]  ;;  %v2241_v60 = vmul.f32 %v7275_v28, %v7272_v47  ;;  %v2247_v46 = vmul.f32 %v7275_v28, %v7273_v17 }
 0x38d   : >> { %v7277_v9 = vld [vmem:[%s10357_s22 + $0x38] sm:$0xff]  ;;  %v2239_v59 = vmul.f32 %v7276_v24, %v7273_v17  ;;  %v2245_v14 = vmul.f32 %v7276_v24, %v7272_v47 }
 0x38e   : >> { %v2242_v62 = vmul.f32 %v7277_v9, %v7273_v17  ;;  %v2248_v53 = vmul.f32 %v7277_v9, %v7272_v47  ;;  %v7882_v19 = vld [vmem:[%s10366_s24 + $0x38] sm:$0xff] }
 0x38f   : >> { %v2240_v0 = vsub.f32 %v2238_v3, %v2239_v59  ;;  %v2246_v20 = vadd.f32 %v2245_v14, %v2244_v39  ;;  %v7883_v8 = vld [vmem:[%s10369_s25 + $0x38] sm:$0xff]  ;;  %v4862_v58 = vmul.f32 %v7882_v19, %v7880_v15  ;;  %v4868_v55 = vmul.f32 %v7882_v19, %v7881_v49 }
 0x390   : >> { %v2243_v6 = vsub.f32 %v2241_v60, %v2242_v62  ;;  %v2249_v54 = vadd.f32 %v2248_v53, %v2247_v46  ;;  %v7884_v4 = vld [vmem:[%s10371_s26 + $0x38] sm:$0xff]  ;;  %v4865_v12 = vmul.f32 %v7883_v8, %v7880_v15  ;;  %v4871_v16 = vmul.f32 %v7883_v8, %v7881_v49 }
 0x391   : >> { %7278 = vst [vmem:[%s10351_s0 + $0x38] sm:$0xff] %v2240_v0  ;;  %7280 = vst [vmem:[%s10355_s21 + $0x38] sm:$0xff] %v2246_v20  ;;  %v7885_v56 = vld [vmem:[%s10373_s27 + $0x38] sm:$0xff]  ;;  %v4863_v10 = vmul.f32 %v7884_v4, %v7881_v49  ;;  %v4869_v32 = vmul.f32 %v7884_v4, %v7880_v15  ;;  %s2291_s0 = smov [#allocation24]  ;;  %s10417_s21 = smov [#allocation13] }
 0x392   : >> { %7279 = vst [vmem:[%s10353_s20 + $0x38] sm:$0xff] %v2243_v6  ;;  %7281 = vst [vmem:[%s10357_s22 + $0x38] sm:$0xff] %v2249_v54  ;;  %v4866_v57 = vmul.f32 %v7885_v56, %v7881_v49  ;;  %v4872_v23 = vmul.f32 %v7885_v56, %v7880_v15  ;;  %s2288_s20 = smov [#allocation23]  ;;  %s10419_s22 = smov [#allocation14]  ;;  %v7293_v62 = vld [vmem:[%s2291_s0 + $0x48] sm:$0xff] }
 0x393   : >> { %v4864_v21 = vsub.f32 %v4862_v58, %v4863_v10  ;;  %v4870_v22 = vadd.f32 %v4869_v32, %v4868_v55  ;;  %v7292_v14 = vld [vmem:[%s2288_s20 + $0x48] sm:$0xff]  ;;  %s10469_s0 = smov [#allocation11]  ;;  %s10479_s20 = smov [#allocation12] }
 0x394   : >> { %v4867_v27 = vsub.f32 %v4865_v12, %v4866_v57  ;;  %v4873_v18 = vadd.f32 %v4872_v23, %v4871_v16  ;;  %v7901_v10 = vld [vmem:[%s4915_s23 + $0x48] sm:$0xff]  ;;  %s10485_s23 = smov [#allocation15] }
 0x395   : >> { %7886 = vst [vmem:[%s10366_s24 + $0x38] sm:$0xff] %v4864_v21  ;;  %7888 = vst [vmem:[%s10371_s26 + $0x38] sm:$0xff] %v4870_v22  ;;  %s4912_s24 = smov [#allocation23]  ;;  %s10433_s26 = smov [#allocation9] }
 0x396   : >> { %7887 = vst [vmem:[%s10369_s25 + $0x38] sm:$0xff] %v4867_v27  ;;  %7889 = vst [vmem:[%s10373_s27 + $0x38] sm:$0xff] %v4873_v18  ;;  %s10430_s25 = smov [#allocation8]  ;;  %s10435_s27 = smov [#allocation10]  ;;  %v7900_v32 = vld [vmem:[%s4912_s24 + $0x48] sm:$0xff] }
 0x397   : >> { %s4983_s24 = smov [#allocation24] }
 0x398   : >> { %v7284_v63 = vld [vmem:[%s10383_s10 + $0x40] sm:$0xff] }
 0x399   : >> { %v7285_v25 = vld [vmem:[%s10385_s1 + $0x40] sm:$0xff]  ;;  %v2272_v45 = vmul.f32 %v7284_v63, %v7282_v29  ;;  %v2278_v36 = vmul.f32 %v7284_v63, %v7283_v38 }
 0x39a   : >> { %v7286_v26 = vld [vmem:[%s10387_s12 + $0x40] sm:$0xff]  ;;  %v2275_v48 = vmul.f32 %v7285_v25, %v7282_v29  ;;  %v2281_v43 = vmul.f32 %v7285_v25, %v7283_v38 }
 0x39b   : >> { %v7287_v31 = vld [vmem:[%s10389_s13 + $0x40] sm:$0xff]  ;;  %v2273_v33 = vmul.f32 %v7286_v26, %v7283_v38  ;;  %v2279_v34 = vmul.f32 %v7286_v26, %v7282_v29 }
 0x39c   : >> { %v2276_v30 = vmul.f32 %v7287_v31, %v7283_v38  ;;  %v2282_v35 = vmul.f32 %v7287_v31, %v7282_v29  ;;  %v7892_v7 = vld [vmem:[%s10399_s15 + $0x40] sm:$0xff] }
 0x39d   : >> { %v2274_v37 = vsub.f32 %v2272_v45, %v2273_v33  ;;  %v2280_v5 = vadd.f32 %v2279_v34, %v2278_v36  ;;  %v7893_v42 = vld [vmem:[%s10401_s16 + $0x40] sm:$0xff]  ;;  %v4896_v1 = vmul.f32 %v7892_v7, %v7890_v40  ;;  %v4902_v11 = vmul.f32 %v7892_v7, %v7891_v2 }
 0x39e   : >> { %v2277_v61 = vsub.f32 %v2275_v48, %v2276_v30  ;;  %v2283_v50 = vadd.f32 %v2282_v35, %v2281_v43  ;;  %v7894_v41 = vld [vmem:[%s10403_s17 + $0x40] sm:$0xff]  ;;  %v4899_v47 = vmul.f32 %v7893_v42, %v7890_v40  ;;  %v4905_v24 = vmul.f32 %v7893_v42, %v7891_v2 }
 0x39f   : >> { %7288 = vst [vmem:[%s10383_s10 + $0x40] sm:$0xff] %v2274_v37  ;;  %7290 = vst [vmem:[%s10387_s12 + $0x40] sm:$0xff] %v2280_v5  ;;  %v7895_v13 = vld [vmem:[%s10405_s18 + $0x40] sm:$0xff]  ;;  %v4897_v17 = vmul.f32 %v7894_v41, %v7891_v2  ;;  %v4903_v28 = vmul.f32 %v7894_v41, %v7890_v40  ;;  %s2325_s10 = smov [#allocation24]  ;;  %s2322_s12 = smov [#allocation23] }
 0x3a0   : >> { %7289 = vst [vmem:[%s10385_s1 + $0x40] sm:$0xff] %v2277_v61  ;;  %7291 = vst [vmem:[%s10389_s13 + $0x40] sm:$0xff] %v2283_v50  ;;  %v4900_v44 = vmul.f32 %v7895_v13, %v7891_v2  ;;  %v4906_v9 = vmul.f32 %v7895_v13, %v7890_v40  ;;  %s10447_s1 = smov [#allocation12]  ;;  %s10451_s13 = smov [#allocation14]  ;;  %v7303_v30 = vld [vmem:[%s2325_s10 + $0x50] sm:$0xff] }
 0x3a1   : >> { %v4898_v3 = vsub.f32 %v4896_v1, %v4897_v17  ;;  %v4904_v60 = vadd.f32 %v4903_v28, %v4902_v11  ;;  %v7302_v34 = vld [vmem:[%s2322_s12 + $0x50] sm:$0xff]  ;;  %s10501_s10 = smov [#allocation11]  ;;  %s10513_s12 = smov [#allocation13] }
 0x3a2   : >> { %v4901_v59 = vsub.f32 %v4899_v47, %v4900_v44  ;;  %v4907_v39 = vadd.f32 %v4906_v9, %v4905_v24  ;;  %v7911_v47 = vld [vmem:[%s4949_s14 + $0x50] sm:$0xff]  ;;  %s10517_s14 = smov [#allocation15] }
 0x3a3   : >> { %7896 = vst [vmem:[%s10399_s15 + $0x40] sm:$0xff] %v4898_v3  ;;  %7898 = vst [vmem:[%s10403_s17 + $0x40] sm:$0xff] %v4904_v60  ;;  %s4946_s15 = smov [#allocation23]  ;;  %s10465_s17 = smov [#allocation9] }
 0x3a4   : >> { %7897 = vst [vmem:[%s10401_s16 + $0x40] sm:$0xff] %v4901_v59  ;;  %7899 = vst [vmem:[%s10405_s18 + $0x40] sm:$0xff] %v4907_v39  ;;  %s10463_s16 = smov [#allocation8]  ;;  %s10467_s18 = smov [#allocation10]  ;;  %v7910_v28 = vld [vmem:[%s4946_s15 + $0x50] sm:$0xff] }
 0x3a5   : >> { %s5017_s15 = smov [#allocation24] }
 0x3a6   : >> { %v7294_v46 = vld [vmem:[%s10415_s19 + $0x48] sm:$0xff] }
 0x3a7   : >> { %v7295_v53 = vld [vmem:[%s10417_s21 + $0x48] sm:$0xff]  ;;  %v2306_v6 = vmul.f32 %v7294_v46, %v7292_v14  ;;  %v2312_v15 = vmul.f32 %v7294_v46, %v7293_v62 }
 0x3a8   : >> { %v7296_v0 = vld [vmem:[%s10419_s22 + $0x48] sm:$0xff]  ;;  %v2309_v54 = vmul.f32 %v7295_v53, %v7292_v14  ;;  %v2315_v4 = vmul.f32 %v7295_v53, %v7293_v62 }
 0x3a9   : >> { %v7297_v49 = vld [vmem:[%s10421_s2 + $0x48] sm:$0xff]  ;;  %v2307_v20 = vmul.f32 %v7296_v0, %v7293_v62  ;;  %v2313_v8 = vmul.f32 %v7296_v0, %v7292_v14 }
 0x3aa   : >> { %v2310_v19 = vmul.f32 %v7297_v49, %v7293_v62  ;;  %v2316_v56 = vmul.f32 %v7297_v49, %v7292_v14  ;;  %v7902_v16 = vld [vmem:[%s10430_s25 + $0x48] sm:$0xff] }
 0x3ab   : >> { %v2308_v58 = vsub.f32 %v2306_v6, %v2307_v20  ;;  %v2314_v55 = vadd.f32 %v2313_v8, %v2312_v15  ;;  %v7903_v23 = vld [vmem:[%s10433_s26 + $0x48] sm:$0xff]  ;;  %v4930_v22 = vmul.f32 %v7902_v16, %v7900_v32  ;;  %v4936_v29 = vmul.f32 %v7902_v16, %v7901_v10 }
 0x3ac   : >> { %v2311_v12 = vsub.f32 %v2309_v54, %v2310_v19  ;;  %v2317_v57 = vadd.f32 %v2316_v56, %v2315_v4  ;;  %v7904_v21 = vld [vmem:[%s10435_s27 + $0x48] sm:$0xff]  ;;  %v4933_v38 = vmul.f32 %v7903_v23, %v7900_v32  ;;  %v4939_v26 = vmul.f32 %v7903_v23, %v7901_v10 }
 0x3ad   : >> { %7298 = vst [vmem:[%s10415_s19 + $0x48] sm:$0xff] %v2308_v58  ;;  %7300 = vst [vmem:[%s10419_s22 + $0x48] sm:$0xff] %v2314_v55  ;;  %v7905_v27 = vld [vmem:[%s10437_s30 + $0x48] sm:$0xff]  ;;  %v4931_v18 = vmul.f32 %v7904_v21, %v7901_v10  ;;  %v4937_v25 = vmul.f32 %v7904_v21, %v7900_v32  ;;  %s2359_s19 = smov [#allocation24]  ;;  %s10481_s22 = smov [#allocation13] }
 0x3ae   : >> { %7299 = vst [vmem:[%s10417_s21 + $0x48] sm:$0xff] %v2311_v12  ;;  %7301 = vst [vmem:[%s10421_s2 + $0x48] sm:$0xff] %v2317_v57  ;;  %v4934_v63 = vmul.f32 %v7905_v27, %v7901_v10  ;;  %v4940_v31 = vmul.f32 %v7905_v27, %v7900_v32  ;;  %s2356_s21 = smov [#allocation23]  ;;  %s10483_s2 = smov [#allocation14]  ;;  %v7313_v19 = vld [vmem:[%s2359_s19 + $0x58] sm:$0xff] }
 0x3af   : >> { %v4932_v45 = vsub.f32 %v4930_v22, %v4931_v18  ;;  %v4938_v33 = vadd.f32 %v4937_v25, %v4936_v29  ;;  %v7312_v8 = vld [vmem:[%s2356_s21 + $0x58] sm:$0xff]  ;;  %s10533_s19 = smov [#allocation11]  ;;  %s10545_s21 = smov [#allocation22] }
 0x3b0   : >> { %v4935_v36 = vsub.f32 %v4933_v38, %v4934_v63  ;;  %v4941_v48 = vadd.f32 %v4940_v31, %v4939_v26  ;;  %v7921_v18 = vld [vmem:[%s4983_s24 + $0x58] sm:$0xff]  ;;  %s10562_s24 = smov [#allocation15] }
 0x3b1   : >> { %7906 = vst [vmem:[%s10430_s25 + $0x48] sm:$0xff] %v4932_v45  ;;  %7908 = vst [vmem:[%s10435_s27 + $0x48] sm:$0xff] %v4938_v33  ;;  %s4980_s25 = smov [#allocation23]  ;;  %s10497_s27 = smov [#allocation9] }
 0x3b2   : >> { %7907 = vst [vmem:[%s10433_s26 + $0x48] sm:$0xff] %v4935_v36  ;;  %7909 = vst [vmem:[%s10437_s30 + $0x48] sm:$0xff] %v4941_v48  ;;  %s10494_s26 = smov [#allocation8]  ;;  %s10499_s30 = smov [#allocation10]  ;;  %v7920_v25 = vld [vmem:[%s4980_s25 + $0x58] sm:$0xff] }
 0x3b3   : >> { %s10568_s25 = smov [#allocation8] }
 0x3b4   : >> { %v7304_v43 = vld [vmem:[%s10447_s1 + $0x50] sm:$0xff] }
 0x3b5   : >> { %v7305_v35 = vld [vmem:[%s10449_s11 + $0x50] sm:$0xff]  ;;  %v2340_v5 = vmul.f32 %v7304_v43, %v7302_v34  ;;  %v2346_v2 = vmul.f32 %v7304_v43, %v7303_v30 }
 0x3b6   : >> { %v7306_v37 = vld [vmem:[%s10451_s13 + $0x50] sm:$0xff]  ;;  %v2343_v40 = vmul.f32 %v7305_v35, %v7302_v34  ;;  %v2349_v41 = vmul.f32 %v7305_v35, %v7303_v30 }
 0x3b7   : >> { %v7307_v61 = vld [vmem:[%s10453_s3 + $0x50] sm:$0xff]  ;;  %v2341_v50 = vmul.f32 %v7306_v37, %v7303_v30  ;;  %v2347_v42 = vmul.f32 %v7306_v37, %v7302_v34 }
 0x3b8   : >> { %v2344_v7 = vmul.f32 %v7307_v61, %v7303_v30  ;;  %v2350_v13 = vmul.f32 %v7307_v61, %v7302_v34  ;;  %v7912_v24 = vld [vmem:[%s10463_s16 + $0x50] sm:$0xff] }
 0x3b9   : >> { %v2342_v1 = vsub.f32 %v2340_v5, %v2341_v50  ;;  %v2348_v17 = vadd.f32 %v2347_v42, %v2346_v2  ;;  %v7913_v9 = vld [vmem:[%s10465_s17 + $0x50] sm:$0xff]  ;;  %v4964_v60 = vmul.f32 %v7912_v24, %v7910_v28  ;;  %v4970_v39 = vmul.f32 %v7912_v24, %v7911_v47 }
 0x3ba   : >> { %v2345_v11 = vsub.f32 %v2343_v40, %v2344_v7  ;;  %v2351_v44 = vadd.f32 %v2350_v13, %v2349_v41  ;;  %v7914_v3 = vld [vmem:[%s10467_s18 + $0x50] sm:$0xff]  ;;  %v4967_v14 = vmul.f32 %v7913_v9, %v7910_v28  ;;  %v4973_v0 = vmul.f32 %v7913_v9, %v7911_v47 }
 0x3bb   : >> { %7308 = vst [vmem:[%s10447_s1 + $0x50] sm:$0xff] %v2342_v1  ;;  %7310 = vst [vmem:[%s10451_s13 + $0x50] sm:$0xff] %v2348_v17  ;;  %v7915_v59 = vld [vmem:[%s10469_s0 + $0x50] sm:$0xff]  ;;  %v4965_v62 = vmul.f32 %v7914_v3, %v7911_v47  ;;  %v4971_v53 = vmul.f32 %v7914_v3, %v7910_v28  ;;  %s2393_s1 = smov [#allocation24]  ;;  %s2390_s13 = smov [#allocation23] }
 0x3bc   : >> { %7309 = vst [vmem:[%s10449_s11 + $0x50] sm:$0xff] %v2345_v11  ;;  %7311 = vst [vmem:[%s10453_s3 + $0x50] sm:$0xff] %v2351_v44  ;;  %v4968_v46 = vmul.f32 %v7915_v59, %v7911_v47  ;;  %v4974_v49 = vmul.f32 %v7915_v59, %v7910_v28  ;;  %s10511_s11 = smov [#allocation12]  ;;  %s10515_s3 = smov [#allocation14]  ;;  %v7323_v7 = vld [vmem:[%s2393_s1 + $0x60] sm:$0xff] }
 0x3bd   : >> { %v4966_v6 = vsub.f32 %v4964_v60, %v4965_v62  ;;  %v4972_v54 = vadd.f32 %v4971_v53, %v4970_v39  ;;  %v7322_v42 = vld [vmem:[%s2390_s13 + $0x60] sm:$0xff]  ;;  %s10588_s1 = smov [#allocation13]  ;;  %s2480_s13 = smov [#allocation12] }
 0x3be   : >> { %v4969_v20 = vsub.f32 %v4967_v14, %v4968_v46  ;;  %v4975_v15 = vadd.f32 %v4974_v49, %v4973_v0  ;;  %v7931_v14 = vld [vmem:[%s5017_s15 + $0x60] sm:$0xff]  ;;  %s2486_s15 = smov [#allocation15] }
 0x3bf   : >> { %7916 = vst [vmem:[%s10463_s16 + $0x50] sm:$0xff] %v4966_v6  ;;  %7918 = vst [vmem:[%s10467_s18 + $0x50] sm:$0xff] %v4972_v54  ;;  %s5014_s16 = smov [#allocation23]  ;;  %s10529_s18 = smov [#allocation9] }
 0x3c0   : >> { %7917 = vst [vmem:[%s10465_s17 + $0x50] sm:$0xff] %v4969_v20  ;;  %7919 = vst [vmem:[%s10469_s0 + $0x50] sm:$0xff] %v4975_v15  ;;  %s10527_s17 = smov [#allocation8]  ;;  %s10531_s0 = smov [#allocation10]  ;;  %v7930_v53 = vld [vmem:[%s5014_s16 + $0x60] sm:$0xff] }
 0x3c1   : >> { %s2508_s16 = smov [#allocation12] }
 0x3c2   : >> { %v7314_v4 = vld [vmem:[%s10479_s20 + $0x58] sm:$0xff] }
 0x3c3   : >> { %v7315_v56 = vld [vmem:[%s10481_s22 + $0x58] sm:$0xff]  ;;  %v2374_v12 = vmul.f32 %v7314_v4, %v7312_v8  ;;  %v2380_v32 = vmul.f32 %v7314_v4, %v7313_v19 }
 0x3c4   : >> { %v7316_v58 = vld [vmem:[%s10483_s2 + $0x58] sm:$0xff]  ;;  %v2377_v57 = vmul.f32 %v7315_v56, %v7312_v8  ;;  %v2383_v21 = vmul.f32 %v7315_v56, %v7313_v19 }
 0x3c5   : >> { %v7317_v10 = vld [vmem:[%s10485_s23 + $0x58] sm:$0xff]  ;;  %v2375_v55 = vmul.f32 %v7316_v58, %v7313_v19  ;;  %v2381_v23 = vmul.f32 %v7316_v58, %v7312_v8 }
 0x3c6   : >> { %v2378_v16 = vmul.f32 %v7317_v10, %v7313_v19  ;;  %v2384_v27 = vmul.f32 %v7317_v10, %v7312_v8  ;;  %v7922_v26 = vld [vmem:[%s10494_s26 + $0x58] sm:$0xff] }
 0x3c7   : >> { %v2376_v22 = vsub.f32 %v2374_v12, %v2375_v55  ;;  %v2382_v29 = vadd.f32 %v2381_v23, %v2380_v32  ;;  %v7923_v31 = vld [vmem:[%s10497_s27 + $0x58] sm:$0xff]  ;;  %v4998_v33 = vmul.f32 %v7922_v26, %v7920_v25  ;;  %v5004_v34 = vmul.f32 %v7922_v26, %v7921_v18  ;;  %v10557_v23 = vld [vmem:[%s10545_s21] ss:$0 sm:$0xff] }
 0x3c8   : >> { %v2379_v38 = vsub.f32 %v2377_v57, %v2378_v16  ;;  %v2385_v63 = vadd.f32 %v2384_v27, %v2383_v21  ;;  %v7924_v45 = vld [vmem:[%s10499_s30 + $0x58] sm:$0xff]  ;;  %v5001_v30 = vmul.f32 %v7923_v31, %v7920_v25  ;;  %v5007_v37 = vmul.f32 %v7923_v31, %v7921_v18 }
 0x3c9   : >> { %7318 = vst [vmem:[%s10479_s20 + $0x58] sm:$0xff] %v2376_v22  ;;  %7320 = vst [vmem:[%s10483_s2 + $0x58] sm:$0xff] %v2382_v29  ;;  %v7925_v36 = vld [vmem:[%s10501_s10 + $0x58] sm:$0xff]  ;;  %v4999_v48 = vmul.f32 %v7924_v45, %v7921_v18  ;;  %v5005_v35 = vmul.f32 %v7924_v45, %v7920_v25  ;;  %s10543_s20 = smov [#allocation21]  ;;  %s10549_s2 = smov [#allocation13] }
 0x3ca   : >> { %7319 = vst [vmem:[%s10481_s22 + $0x58] sm:$0xff] %v2379_v38  ;;  %7321 = vst [vmem:[%s10485_s23 + $0x58] sm:$0xff] %v2385_v63  ;;  %v5002_v43 = vmul.f32 %v7925_v36, %v7921_v18  ;;  %v5008_v61 = vmul.f32 %v7925_v36, %v7920_v25  ;;  %s10547_s22 = smov [#allocation12]  ;;  %s10551_s23 = smov [#allocation14]  ;;  %v10554_v16 = vld [vmem:[%s10543_s20] ss:$0 sm:$0xff] }
 0x3cb   : >> { %v5000_v5 = vsub.f32 %v4998_v33, %v4999_v48  ;;  %v5006_v50 = vadd.f32 %v5005_v35, %v5004_v34 }
 0x3cc   : >> { %v5003_v2 = vsub.f32 %v5001_v30, %v5002_v43  ;;  %v5009_v40 = vadd.f32 %v5008_v61, %v5007_v37 }
 0x3cd   : >> { %7926 = vst [vmem:[%s10494_s26 + $0x58] sm:$0xff] %v5000_v5  ;;  %7928 = vst [vmem:[%s10499_s30 + $0x58] sm:$0xff] %v5006_v50  ;;  %s10570_s26 = smov [#allocation10]  ;;  %s10579_s30 = smov [#allocation11] }
 0x3ce   : >> { %7927 = vst [vmem:[%s10497_s27 + $0x58] sm:$0xff] %v5003_v2  ;;  %7929 = vst [vmem:[%s10501_s10 + $0x58] sm:$0xff] %v5009_v40  ;;  %s10577_s27 = smov [#allocation9]  ;;  %s10586_s10 = smov [#allocation12] }
 0x3d0   : >> { %v7324_v41 = vld [vmem:[%s10511_s11 + $0x60] sm:$0xf] }
 0x3d1   : >> { %v7325_v13 = vld [vmem:[%s10513_s12 + $0x60] sm:$0xf]  ;;  %v2408_v17 = vmul.f32 %v7324_v41, %v7322_v42  ;;  %v2414_v47 = vmul.f32 %v7324_v41, %v7323_v7 }
 0x3d2   : >> { %v7326_v1 = vld [vmem:[%s10515_s3 + $0x60] sm:$0xf]  ;;  %v2411_v28 = vmul.f32 %v7325_v13, %v7322_v42  ;;  %v2417_v3 = vmul.f32 %v7325_v13, %v7323_v7 }
 0x3d3   : >> { %v7327_v11 = vld [vmem:[%s10517_s14 + $0x60] sm:$0xf]  ;;  %v2409_v44 = vmul.f32 %v7326_v1, %v7323_v7  ;;  %v2415_v9 = vmul.f32 %v7326_v1, %v7322_v42 }
 0x3d4   : >> { %v2412_v24 = vmul.f32 %v7327_v11, %v7323_v7  ;;  %v2418_v59 = vmul.f32 %v7327_v11, %v7322_v42  ;;  %v7932_v0 = vld [vmem:[%s10527_s17 + $0x60] sm:$0xf] }
 0x3d5   : >> { %v2410_v60 = vsub.f32 %v2408_v17, %v2409_v44  ;;  %v2416_v62 = vadd.f32 %v2415_v9, %v2414_v47  ;;  %v7933_v49 = vld [vmem:[%s10529_s18 + $0x60] sm:$0xf]  ;;  %v5032_v54 = vmul.f32 %v7932_v0, %v7930_v53  ;;  %v5038_v15 = vmul.f32 %v7932_v0, %v7931_v14 }
 0x3d6   : >> { %v2413_v39 = vsub.f32 %v2411_v28, %v2412_v24  ;;  %v2419_v46 = vadd.f32 %v2418_v59, %v2417_v3  ;;  %v7934_v6 = vld [vmem:[%s10531_s0 + $0x60] sm:$0xf]  ;;  %v5035_v8 = vmul.f32 %v7933_v49, %v7930_v53  ;;  %v5041_v58 = vmul.f32 %v7933_v49, %v7931_v14 }
 0x3d7   : >> { %7330 = vst [vmem:[%s10515_s3 + $0x60] sm:$0xf] %v2416_v62  ;;  %v7935_v20 = vld [vmem:[%s10533_s19 + $0x60] sm:$0xf]  ;;  %7328 = vst [vmem:[%s10511_s11 + $0x60] sm:$0xf] %v2410_v60  ;;  %v5033_v19 = vmul.f32 %v7934_v6, %v7931_v14  ;;  %v5039_v56 = vmul.f32 %v7934_v6, %v7930_v53 }
 0x3d8   : >> { %7329 = vst [vmem:[%s10513_s12 + $0x60] sm:$0xf] %v2413_v39  ;;  %v5036_v4 = vmul.f32 %v7935_v20, %v7931_v14  ;;  %7331 = vst [vmem:[%s10517_s14 + $0x60] sm:$0xf] %v2419_v46  ;;  %v5042_v10 = vmul.f32 %v7935_v20, %v7930_v53  ;;  %s10591_s11 = smov [#allocation14]  ;;  %s10593_s12 = smov [#allocation15] }
 0x3d9   : >> { %v5034_v12 = vsub.f32 %v5032_v54, %v5033_v19  ;;  %v5040_v57 = vadd.f32 %v5039_v56, %v5038_v15  ;;  %s2482_s3 = smov [#allocation13]  ;;  %s2484_s14 = smov [#allocation14] }
 0x3da   : >> { %v5037_v55 = vsub.f32 %v5035_v8, %v5036_v4  ;;  %v5043_v32 = vadd.f32 %v5042_v10, %v5041_v58 }
 0x3db   : >> { %7936 = vst [vmem:[%s10527_s17 + $0x60] sm:$0xf] %v5034_v12  ;;  %7938 = vst [vmem:[%s10531_s0 + $0x60] sm:$0xf] %v5040_v57  ;;  %s2510_s17 = smov [#allocation13]  ;;  %s2514_s0 = smov [#allocation15] }
 0x3dc   : >> { %7937 = vst [vmem:[%s10529_s18 + $0x60] sm:$0xf] %v5037_v55  ;;  %7939 = vst [vmem:[%s10533_s19 + $0x60] sm:$0xf] %v5043_v32  ;;  %s2512_s18 = smov [#allocation14]  ;;  %s2536_s19 = smov [#allocation12] }
 0x3de   : >> { %v2432_v21 = vld [vmem:[%s10547_s22] sm:$0xff] }
 0x3df   : >> { %v2433_v27 = vld [vmem:[%s10549_s2] sm:$0xff]  ;;  %v2436_v18 = vmul.f32 %v2432_v21, %v10554_v16  ;;  %v2439_v29 = vmul.f32 %v2432_v21, %v10557_v23 }
 0x3e0   : >> { %v2434_v22 = vld [vmem:[%s10551_s23] sm:$0xff]  ;;  %v2437_v38 = vmul.f32 %v2433_v27, %v10557_v23  ;;  %v2440_v63 = vmul.f32 %v2433_v27, %v10554_v16 }
 0x3e1   : >> { %v2435_v25 = vld [vmem:[%s10562_s24] sm:$0xff]  ;;  %v2442_v26 = vmul.f32 %v2434_v22, %v10554_v16  ;;  %v2445_v45 = vmul.f32 %v2434_v22, %v10557_v23 }
 0x3e2   : >> { %v2443_v31 = vmul.f32 %v2435_v25, %v10557_v23  ;;  %v2446_v36 = vmul.f32 %v2435_v25, %v10554_v16  ;;  %v2438_v33 = vsub.f32 %v2436_v18, %v2437_v38  ;;  %v2441_v48 = vadd.f32 %v2440_v63, %v2439_v29  ;;  %v5050_v43 = vld [vmem:[%s10568_s25] ss:$0 sm:$0xff]  ;;  %v7941_v37 = vld [vmem:[%s10568_s25 + $0x7] ss:$0 sm:$0xff]  ;;  %v7942_v5 = vld [vmem:[%s10568_s25 + $0x7] sm:$0xfe] }
 0x3e3   : >> { %v7940_v35 = vld [vmem:[%s10568_s25 - $0x1] sm:$0xfe]  ;;  %v7943_v2 = vld [vmem:[%s10568_s25 + $0xf] ss:$0 sm:$0xff]  ;;  %v7945_v50 = vld [vmem:[%s10568_s25 + $0xf] sm:$0xfe]  ;;  %v5068_v40 = vsel %vm12920_vm0, %v7941_v37, %v7942_v5 }
 0x3e4   : >> { %v2444_v30 = vsub.f32 %v2442_v26, %v2443_v31  ;;  %v2447_v34 = vadd.f32 %v2446_v36, %v2445_v45  ;;  %2448 = vst [vmem:[%s10547_s22] sm:$0xff] %v2438_v33  ;;  %2449 = vst [vmem:[%s10549_s2] sm:$0xff] %v2441_v48  ;;  %v5057_v61 = vsel %vm12920_vm0, %v5050_v43, %v7940_v35  ;;  %v7946_v42 = vld [vmem:[%s10568_s25 + $0x17] ss:$0 sm:$0xff]  ;;  %v7948_v41 = vld [vmem:[%s10568_s25 + $0x17] sm:$0xfe]  ;;  %s2538_s22 = smov [#allocation13]  ;;  %s2540_s2 = smov [#allocation14] }
 0x3e5   : >> { %5060 = vst [vmem:[%s10568_s25] sm:$0xff] %v5057_v61  ;;  %v5079_v7 = vsel %vm12920_vm0, %v7943_v2, %v7945_v50  ;;  %v7949_v13 = vld [vmem:[%s10568_s25 + $0x1f] ss:$0 sm:$0xff]  ;;  %7944 = vst [vmem:[%s10568_s25 + $0x8] sm:$0xff] %v5068_v40  ;;  %v5090_v1 = vsel %vm12920_vm0, %v7946_v42, %v7948_v41  ;;  %v7951_v11 = vld [vmem:[%s10568_s25 + $0x1f] sm:$0xfe] }
 0x3e6   : >> { %2450 = vst [vmem:[%s10551_s23] sm:$0xff] %v2444_v30  ;;  %2451 = vst [vmem:[%s10562_s24] sm:$0xff] %v2447_v34  ;;  %v7952_v17 = vld [vmem:[%s10568_s25 + $0x27] ss:$0 sm:$0xff]  ;;  %v7954_v47 = vld [vmem:[%s10568_s25 + $0x27] sm:$0xfe]  ;;  %v5101_v44 = vsel %vm12920_vm0, %v7949_v13, %v7951_v11  ;;  %s2542_s23 = smov [#allocation15]  ;;  %s2564_s24 = smov [#allocation12] }
 0x3e7   : >> { %7947 = vst [vmem:[%s10568_s25 + $0x10] sm:$0xff] %v5079_v7  ;;  %7950 = vst [vmem:[%s10568_s25 + $0x18] sm:$0xff] %v5090_v1  ;;  %v5112_v28 = vsel %vm12920_vm0, %v7952_v17, %v7954_v47  ;;  %v7955_v24 = vld [vmem:[%s10568_s25 + $0x2f] ss:$0 sm:$0xff]  ;;  %v7957_v9 = vld [vmem:[%s10568_s25 + $0x2f] sm:$0xfe] }
 0x3e8   : >> { %v7958_v3 = vld [vmem:[%s10568_s25 + $0x37] ss:$0 sm:$0xff]  ;;  %7953 = vst [vmem:[%s10568_s25 + $0x20] sm:$0xff] %v5101_v44  ;;  %7956 = vst [vmem:[%s10568_s25 + $0x28] sm:$0xff] %v5112_v28  ;;  %v5123_v59 = vsel %vm12920_vm0, %v7955_v24, %v7957_v9  ;;  %v7960_v60 = vld [vmem:[%s10568_s25 + $0x37] sm:$0xfe] }
 0x3e9   : >> { %v7961_v39 = vld [vmem:[%s10568_s25 + $0x3f] ss:$0 sm:$0xff]  ;;  %v7963_v62 = vld [vmem:[%s10568_s25 + $0x3f] sm:$0xfe]  ;;  %7959 = vst [vmem:[%s10568_s25 + $0x30] sm:$0xff] %v5123_v59  ;;  %v5134_v14 = vsel %vm12920_vm0, %v7958_v3, %v7960_v60 }
 0x3ea   : >> { %v5145_v46 = vsel %vm12920_vm0, %v7961_v39, %v7963_v62  ;;  %v7964_v53 = vld [vmem:[%s10568_s25 + $0x47] ss:$0 sm:$0xff]  ;;  %v7966_v0 = vld [vmem:[%s10568_s25 + $0x47] sm:$0xfe]  ;;  %v7967_v49 = vld [vmem:[%s10568_s25 + $0x4f] ss:$0 sm:$0xff] }
 0x3eb   : >> { %7962 = vst [vmem:[%s10568_s25 + $0x38] sm:$0xff] %v5134_v14  ;;  %7965 = vst [vmem:[%s10568_s25 + $0x40] sm:$0xff] %v5145_v46  ;;  %v5156_v6 = vsel %vm12920_vm0, %v7964_v53, %v7966_v0  ;;  %v7969_v20 = vld [vmem:[%s10568_s25 + $0x4f] sm:$0xfe]  ;;  %v7970_v54 = vld [vmem:[%s10568_s25 + $0x57] ss:$0 sm:$0xff] }
 0x3ec   : >> { %v7972_v15 = vld [vmem:[%s10568_s25 + $0x57] sm:$0xfe]  ;;  %7968 = vst [vmem:[%s10568_s25 + $0x48] sm:$0xff] %v5156_v6  ;;  %v5167_v19 = vsel %vm12920_vm0, %v7967_v49, %v7969_v20  ;;  %v7973_v4 = vld [vmem:[%s10568_s25 + $0x5f] ss:$0 sm:$0xff] }
 0x3ed   : >> { %v5178_v8 = vsel %vm12920_vm0, %v7970_v54, %v7972_v15  ;;  %v7975_v56 = vld [vmem:[%s10568_s25 + $0x5f] sm:$0xe]  ;;  %v7976_v58 = vld [vmem:[%s10568_s25 + $0x63] ss:$0 sm:$0xff]  ;;  %7971 = vst [vmem:[%s10568_s25 + $0x50] sm:$0xff] %v5167_v19 }
 0x3ee   : >> { %7974 = vst [vmem:[%s10568_s25 + $0x58] sm:$0xff] %v5178_v8  ;;  %v5189_v10 = vsel %vm12920_vm0, %v7973_v4, %v7975_v56  ;;  %v5193_v12 = vld [vmem:[%s10570_s26] ss:$0 sm:$0xff]  ;;  %v7979_v55 = vld [vmem:[%s10570_s26 + $0x61] sm:$0x7] }
 0x3ef   : >> { %v7980_v57 = vld [vmem:[%s10570_s26 + $0x60] ss:$0 sm:$0xff]  ;;  %7977 = vst [vmem:[%s10568_s25 + $0x60] sm:$0xf] %v5189_v10  ;;  %7978 = vst [vmem:[%s10568_s25 + $0x1] sm:$0x1] %v5193_v12  ;;  %v5202_v32 = vsel %vm12919_vm1, %v7976_v58, %v7979_v55 }
 0x3f0   : >> { %v7982_v21 = vld [vmem:[%s10570_s26 + $0x59] sm:$0x7f]  ;;  %v7983_v27 = vld [vmem:[%s10570_s26 + $0x58] ss:$0 sm:$0xff]  ;;  %v7985_v22 = vld [vmem:[%s10570_s26 + $0x51] sm:$0x7f] }
 0x3f1   : >> { %7981 = vst [vmem:[%s10570_s26 + $0x60] sm:$0xf] %v5202_v32  ;;  %v5211_v18 = vsel %vm12918_vm2, %v7980_v57, %v7982_v21  ;;  %v5220_v38 = vsel %vm12918_vm2, %v7983_v27, %v7985_v22  ;;  %v7986_v29 = vld [vmem:[%s10570_s26 + $0x50] ss:$0 sm:$0xff]  ;;  %v7988_v63 = vld [vmem:[%s10570_s26 + $0x49] sm:$0x7f] }
 0x3f2   : >> { %v7989_v25 = vld [vmem:[%s10570_s26 + $0x48] ss:$0 sm:$0xff]  ;;  %7984 = vst [vmem:[%s10570_s26 + $0x58] sm:$0xff] %v5211_v18  ;;  %7987 = vst [vmem:[%s10570_s26 + $0x50] sm:$0xff] %v5220_v38  ;;  %v5229_v26 = vsel %vm12918_vm2, %v7986_v29, %v7988_v63  ;;  %v7991_v31 = vld [vmem:[%s10570_s26 + $0x41] sm:$0x7f] }
 0x3f3   : >> { %v7992_v45 = vld [vmem:[%s10570_s26 + $0x40] ss:$0 sm:$0xff]  ;;  %v7994_v36 = vld [vmem:[%s10570_s26 + $0x39] sm:$0x7f]  ;;  %7990 = vst [vmem:[%s10570_s26 + $0x48] sm:$0xff] %v5229_v26  ;;  %v5238_v33 = vsel %vm12918_vm2, %v7989_v25, %v7991_v31  ;;  %s2566_s25 = smov [#allocation13] }
 0x3f4   : >> { %v5247_v48 = vsel %vm12918_vm2, %v7992_v45, %v7994_v36  ;;  %v7995_v30 = vld [vmem:[%s10570_s26 + $0x38] ss:$0 sm:$0xff]  ;;  %v7997_v34 = vld [vmem:[%s10570_s26 + $0x31] sm:$0x7f]  ;;  %v7998_v43 = vld [vmem:[%s10570_s26 + $0x30] ss:$0 sm:$0xff] }
 0x3f5   : >> { %7993 = vst [vmem:[%s10570_s26 + $0x40] sm:$0xff] %v5238_v33  ;;  %7996 = vst [vmem:[%s10570_s26 + $0x38] sm:$0xff] %v5247_v48  ;;  %v5256_v35 = vsel %vm12918_vm2, %v7995_v30, %v7997_v34  ;;  %v8000_v37 = vld [vmem:[%s10570_s26 + $0x29] sm:$0x7f]  ;;  %v8001_v61 = vld [vmem:[%s10570_s26 + $0x28] ss:$0 sm:$0xff] }
 0x3f6   : >> { %v8003_v5 = vld [vmem:[%s10570_s26 + $0x21] sm:$0x7f]  ;;  %7999 = vst [vmem:[%s10570_s26 + $0x30] sm:$0xff] %v5256_v35  ;;  %v5265_v2 = vsel %vm12918_vm2, %v7998_v43, %v8000_v37  ;;  %v8004_v40 = vld [vmem:[%s10570_s26 + $0x20] ss:$0 sm:$0xff] }
 0x3f7   : >> { %v5274_v50 = vsel %vm12918_vm2, %v8001_v61, %v8003_v5  ;;  %v8006_v7 = vld [vmem:[%s10570_s26 + $0x19] sm:$0x7f]  ;;  %v8007_v42 = vld [vmem:[%s10570_s26 + $0x18] ss:$0 sm:$0xff]  ;;  %8002 = vst [vmem:[%s10570_s26 + $0x28] sm:$0xff] %v5265_v2 }
 0x3f8   : >> { %8005 = vst [vmem:[%s10570_s26 + $0x20] sm:$0xff] %v5274_v50  ;;  %v5283_v41 = vsel %vm12918_vm2, %v8004_v40, %v8006_v7  ;;  %v8009_v13 = vld [vmem:[%s10570_s26 + $0x11] sm:$0x7f]  ;;  %v8010_v1 = vld [vmem:[%s10570_s26 + $0x10] ss:$0 sm:$0xff] }
 0x3f9   : >> { %v8012_v11 = vld [vmem:[%s10570_s26 + $0x9] sm:$0x7f]  ;;  %8008 = vst [vmem:[%s10570_s26 + $0x18] sm:$0xff] %v5283_v41  ;;  %v5292_v17 = vsel %vm12918_vm2, %v8007_v42, %v8009_v13  ;;  %v8013_v44 = vld [vmem:[%s10570_s26 + $0x8] ss:$0 sm:$0xff] }
 0x3fa   : >> { %v5301_v47 = vsel %vm12918_vm2, %v8010_v1, %v8012_v11  ;;  %v8015_v28 = vld [vmem:[%s10570_s26 + $0x1] sm:$0x7f]  ;;  %v5314_v24 = vld [vmem:[%s10577_s27] ss:$0 sm:$0xff]  ;;  %8011 = vst [vmem:[%s10570_s26 + $0x10] sm:$0xff] %v5292_v17 }
 0x3fb   : >> { %8014 = vst [vmem:[%s10570_s26 + $0x8] sm:$0xff] %v5301_v47  ;;  %v5309_v9 = vsel %vm12918_vm2, %v8013_v44, %v8015_v28  ;;  %v8016_v3 = vld [vmem:[%s10577_s27 - $0x1] sm:$0xfe]  ;;  %v8017_v59 = vld [vmem:[%s10577_s27 + $0x7] ss:$0 sm:$0xff] }
 0x3fc   : >> { %v8018_v60 = vld [vmem:[%s10577_s27 + $0x7] sm:$0xfe]  ;;  %5311 = vst [vmem:[%s10570_s26] sm:$0xff] %v5309_v9  ;;  %v5321_v39 = vsel %vm12920_vm0, %v5314_v24, %v8016_v3  ;;  %v8019_v14 = vld [vmem:[%s10577_s27 + $0xf] ss:$0 sm:$0xff]  ;;  %v8021_v46 = vld [vmem:[%s10577_s27 + $0xf] sm:$0xfe] }
 0x3fd   : >> { %v5332_v62 = vsel %vm12920_vm0, %v8017_v59, %v8018_v60  ;;  %v8022_v53 = vld [vmem:[%s10577_s27 + $0x17] ss:$0 sm:$0xff]  ;;  %5324 = vst [vmem:[%s10577_s27] sm:$0xff] %v5321_v39  ;;  %v5343_v0 = vsel %vm12920_vm0, %v8019_v14, %v8021_v46  ;;  %v8024_v49 = vld [vmem:[%s10577_s27 + $0x17] sm:$0xfe]  ;;  %v8025_v6 = vld [vmem:[%s10577_s27 + $0x1f] ss:$0 sm:$0xff] }
 0x3fe   : >> { %8020 = vst [vmem:[%s10577_s27 + $0x8] sm:$0xff] %v5332_v62  ;;  %v8027_v20 = vld [vmem:[%s10577_s27 + $0x1f] sm:$0xfe]  ;;  %8023 = vst [vmem:[%s10577_s27 + $0x10] sm:$0xff] %v5343_v0  ;;  %v5354_v54 = vsel %vm12920_vm0, %v8022_v53, %v8024_v49  ;;  %v8028_v19 = vld [vmem:[%s10577_s27 + $0x27] ss:$0 sm:$0xff] }
 0x3ff   : >> { %v5365_v15 = vsel %vm12920_vm0, %v8025_v6, %v8027_v20  ;;  %v8030_v8 = vld [vmem:[%s10577_s27 + $0x27] sm:$0xfe]  ;;  %v8031_v4 = vld [vmem:[%s10577_s27 + $0x2f] ss:$0 sm:$0xff]  ;;  %8026 = vst [vmem:[%s10577_s27 + $0x18] sm:$0xff] %v5354_v54  ;;  %s2568_s26 = smov [#allocation14] }
 0x400   : >> { %8029 = vst [vmem:[%s10577_s27 + $0x20] sm:$0xff] %v5365_v15  ;;  %v5376_v56 = vsel %vm12920_vm0, %v8028_v19, %v8030_v8  ;;  %v8033_v58 = vld [vmem:[%s10577_s27 + $0x2f] sm:$0xfe]  ;;  %v8034_v10 = vld [vmem:[%s10577_s27 + $0x37] ss:$0 sm:$0xff] }
 0x401   : >> { %v8036_v12 = vld [vmem:[%s10577_s27 + $0x37] sm:$0xfe]  ;;  %8032 = vst [vmem:[%s10577_s27 + $0x28] sm:$0xff] %v5376_v56  ;;  %v5387_v55 = vsel %vm12920_vm0, %v8031_v4, %v8033_v58  ;;  %v8037_v32 = vld [vmem:[%s10577_s27 + $0x3f] ss:$0 sm:$0xff]  ;;  %v7332_v56 = vld [vmem:[%s10586_s10 + $0x8] sm:$0xff] }
 0x402   : >> { %v5398_v57 = vsel %vm12920_vm0, %v8034_v10, %v8036_v12  ;;  %v8039_v21 = vld [vmem:[%s10577_s27 + $0x3f] sm:$0xfe]  ;;  %v8040_v27 = vld [vmem:[%s10577_s27 + $0x47] ss:$0 sm:$0xff]  ;;  %8035 = vst [vmem:[%s10577_s27 + $0x30] sm:$0xff] %v5387_v55  ;;  %v7333_v58 = vld [vmem:[%s10588_s1 + $0x8] sm:$0xff]  ;;  %v2464_v12 = vmul.f32 %v7332_v56, %v10554_v16 }
 0x403   : >> { %8038 = vst [vmem:[%s10577_s27 + $0x38] sm:$0xff] %v5398_v57  ;;  %v5409_v22 = vsel %vm12920_vm0, %v8037_v32, %v8039_v21  ;;  %v8042_v18 = vld [vmem:[%s10577_s27 + $0x47] sm:$0xfe]  ;;  %v8043_v38 = vld [vmem:[%s10577_s27 + $0x4f] ss:$0 sm:$0xff]  ;;  %v2465_v55 = vmul.f32 %v7333_v58, %v10557_v23  ;;  %v2467_v57 = vmul.f32 %v7332_v56, %v10557_v23 }
 0x404   : >> { %v8045_v29 = vld [vmem:[%s10577_s27 + $0x4f] sm:$0xfe]  ;;  %8041 = vst [vmem:[%s10577_s27 + $0x40] sm:$0xff] %v5409_v22  ;;  %v5420_v63 = vsel %vm12920_vm0, %v8040_v27, %v8042_v18  ;;  %v8046_v26 = vld [vmem:[%s10577_s27 + $0x57] ss:$0 sm:$0xff]  ;;  %v7334_v32 = vld [vmem:[%s10591_s11 + $0x8] sm:$0xff]  ;;  %v2468_v27 = vmul.f32 %v7333_v58, %v10554_v16 }
 0x405   : >> { %v5431_v25 = vsel %vm12920_vm0, %v8043_v38, %v8045_v29  ;;  %v8048_v31 = vld [vmem:[%s10577_s27 + $0x57] sm:$0xfe]  ;;  %v8049_v45 = vld [vmem:[%s10577_s27 + $0x5f] ss:$0 sm:$0xff]  ;;  %8044 = vst [vmem:[%s10577_s27 + $0x48] sm:$0xff] %v5420_v63  ;;  %v7335_v21 = vld [vmem:[%s10593_s12 + $0x8] sm:$0xff]  ;;  %v2470_v22 = vmul.f32 %v7334_v32, %v10554_v16  ;;  %v2473_v38 = vmul.f32 %v7334_v32, %v10557_v23  ;;  %v2466_v29 = vsub.f32 %v2464_v12, %v2465_v55 }
 0x406   : >> { %8047 = vst [vmem:[%s10577_s27 + $0x50] sm:$0xff] %v5431_v25  ;;  %v5442_v36 = vsel %vm12920_vm0, %v8046_v26, %v8048_v31  ;;  %v8051_v33 = vld [vmem:[%s10577_s27 + $0x5f] sm:$0xe]  ;;  %v8052_v48 = vld [vmem:[%s10577_s27 + $0x63] ss:$0 sm:$0xff]  ;;  %v2471_v18 = vmul.f32 %v7335_v21, %v10557_v23  ;;  %v2474_v63 = vmul.f32 %v7335_v21, %v10554_v16  ;;  %v2469_v25 = vadd.f32 %v2468_v27, %v2467_v57 }
 0x407   : >> { %v5457_v30 = vld [vmem:[%s10579_s30] ss:$0 sm:$0xff]  ;;  %8050 = vst [vmem:[%s10577_s27 + $0x58] sm:$0xff] %v5442_v36  ;;  %v5453_v34 = vsel %vm12920_vm0, %v8049_v45, %v8051_v33  ;;  %v8055_v43 = vld [vmem:[%s10579_s30 + $0x61] sm:$0x7]  ;;  %7336 = vst [vmem:[%s10586_s10 + $0x8] sm:$0xff] %v2466_v29 }
 0x408   : >> { %8054 = vst [vmem:[%s10577_s27 + $0x1] sm:$0x1] %v5457_v30  ;;  %v8056_v35 = vld [vmem:[%s10579_s30 + $0x60] ss:$0 sm:$0xff]  ;;  %v8058_v37 = vld [vmem:[%s10579_s30 + $0x59] sm:$0x7f]  ;;  %v5466_v61 = vsel %vm12919_vm1, %v8052_v48, %v8055_v43  ;;  %v2472_v26 = vsub.f32 %v2470_v22, %v2471_v18  ;;  %v2475_v31 = vadd.f32 %v2474_v63, %v2473_v38 }
 0x409   : >> { %8053 = vst [vmem:[%s10577_s27 + $0x60] sm:$0xf] %v5453_v34  ;;  %v5475_v5 = vsel %vm12918_vm2, %v8056_v35, %v8058_v37  ;;  %v8059_v2 = vld [vmem:[%s10579_s30 + $0x58] ss:$0 sm:$0xff]  ;;  %v8061_v50 = vld [vmem:[%s10579_s30 + $0x51] sm:$0x7f] }
 0x40a   : >> { %v8062_v40 = vld [vmem:[%s10579_s30 + $0x50] ss:$0 sm:$0xff]  ;;  %8057 = vst [vmem:[%s10579_s30 + $0x60] sm:$0xf] %v5466_v61  ;;  %8060 = vst [vmem:[%s10579_s30 + $0x58] sm:$0xff] %v5475_v5  ;;  %v5484_v7 = vsel %vm12918_vm2, %v8059_v2, %v8061_v50  ;;  %s2570_s27 = smov [#allocation15] }
 0x40b   : >> { %v8064_v42 = vld [vmem:[%s10579_s30 + $0x49] sm:$0x7f]  ;;  %v8065_v41 = vld [vmem:[%s10579_s30 + $0x48] ss:$0 sm:$0xff]  ;;  %v8067_v13 = vld [vmem:[%s10579_s30 + $0x41] sm:$0x7f] }
 0x40c   : >> { %8063 = vst [vmem:[%s10579_s30 + $0x50] sm:$0xff] %v5484_v7  ;;  %v5493_v1 = vsel %vm12918_vm2, %v8062_v40, %v8064_v42  ;;  %v5502_v11 = vsel %vm12918_vm2, %v8065_v41, %v8067_v13  ;;  %v8068_v17 = vld [vmem:[%s10579_s30 + $0x40] ss:$0 sm:$0xff]  ;;  %v8070_v47 = vld [vmem:[%s10579_s30 + $0x39] sm:$0x7f]  ;;  %7337 = vst [vmem:[%s10588_s1 + $0x8] sm:$0xff] %v2469_v25 }
 0x40d   : >> { %v8071_v44 = vld [vmem:[%s10579_s30 + $0x38] ss:$0 sm:$0xff]  ;;  %8066 = vst [vmem:[%s10579_s30 + $0x48] sm:$0xff] %v5493_v1  ;;  %8069 = vst [vmem:[%s10579_s30 + $0x40] sm:$0xff] %v5502_v11  ;;  %v5511_v28 = vsel %vm12918_vm2, %v8068_v17, %v8070_v47  ;;  %v8073_v24 = vld [vmem:[%s10579_s30 + $0x31] sm:$0x7f] }
 0x40e   : >> { %v8074_v9 = vld [vmem:[%s10579_s30 + $0x30] ss:$0 sm:$0xff]  ;;  %v8076_v3 = vld [vmem:[%s10579_s30 + $0x29] sm:$0x7f]  ;;  %8072 = vst [vmem:[%s10579_s30 + $0x38] sm:$0xff] %v5511_v28  ;;  %v5520_v59 = vsel %vm12918_vm2, %v8071_v44, %v8073_v24  ;;  %7338 = vst [vmem:[%s10591_s11 + $0x8] sm:$0xff] %v2472_v26 }
 0x40f   : >> { %v5529_v60 = vsel %vm12918_vm2, %v8074_v9, %v8076_v3  ;;  %v8077_v39 = vld [vmem:[%s10579_s30 + $0x28] ss:$0 sm:$0xff]  ;;  %v8079_v62 = vld [vmem:[%s10579_s30 + $0x21] sm:$0x7f]  ;;  %v8080_v14 = vld [vmem:[%s10579_s30 + $0x20] ss:$0 sm:$0xff] }
 0x410   : >> { %8075 = vst [vmem:[%s10579_s30 + $0x30] sm:$0xff] %v5520_v59  ;;  %8078 = vst [vmem:[%s10579_s30 + $0x28] sm:$0xff] %v5529_v60  ;;  %v5538_v46 = vsel %vm12918_vm2, %v8077_v39, %v8079_v62  ;;  %v8082_v53 = vld [vmem:[%s10579_s30 + $0x19] sm:$0x7f]  ;;  %v8083_v0 = vld [vmem:[%s10579_s30 + $0x18] ss:$0 sm:$0xff] }
 0x411   : >> { %v8085_v49 = vld [vmem:[%s10579_s30 + $0x11] sm:$0x7f]  ;;  %8081 = vst [vmem:[%s10579_s30 + $0x20] sm:$0xff] %v5538_v46  ;;  %v5547_v6 = vsel %vm12918_vm2, %v8080_v14, %v8082_v53  ;;  %v8086_v54 = vld [vmem:[%s10579_s30 + $0x10] ss:$0 sm:$0xff]  ;;  %7339 = vst [vmem:[%s10593_s12 + $0x8] sm:$0xff] %v2475_v31 }
 0x412   : >> { %v5556_v20 = vsel %vm12918_vm2, %v8083_v0, %v8085_v49  ;;  %v8088_v15 = vld [vmem:[%s10579_s30 + $0x9] sm:$0x7f]  ;;  %v8089_v19 = vld [vmem:[%s10579_s30 + $0x8] ss:$0 sm:$0xff]  ;;  %8084 = vst [vmem:[%s10579_s30 + $0x18] sm:$0xff] %v5547_v6  ;;  %v7340_v45 = vld [vmem:[%s2480_s13 + $0x10] sm:$0xff] }
 0x413   : >> { %8087 = vst [vmem:[%s10579_s30 + $0x10] sm:$0xff] %v5556_v20  ;;  %v5565_v8 = vsel %vm12918_vm2, %v8086_v54, %v8088_v15  ;;  %v8091_v4 = vld [vmem:[%s10579_s30 + $0x1] sm:$0x7f]  ;;  %v7341_v36 = vld [vmem:[%s2482_s3 + $0x10] sm:$0xff]  ;;  %v2492_v33 = vmul.f32 %v7340_v45, %v10554_v16  ;;  %v2495_v48 = vmul.f32 %v7340_v45, %v10557_v23  ;;  %s2594_s10 = smov [#allocation13]  ;;  %s2596_s1 = smov [#allocation14] }
 0x414   : >> { %8090 = vst [vmem:[%s10579_s30 + $0x8] sm:$0xff] %v5565_v8  ;;  %v5573_v10 = vsel %vm12918_vm2, %v8089_v19, %v8091_v4  ;;  %v2493_v34 = vmul.f32 %v7341_v36, %v10557_v23  ;;  %v2496_v43 = vmul.f32 %v7341_v36, %v10554_v16  ;;  %s2598_s11 = smov [#allocation15]  ;;  %s2620_s12 = smov [#allocation12] }
 0x415   : >> { %5575 = vst [vmem:[%s10579_s30] sm:$0xff] %v5573_v10  ;;  %v7342_v30 = vld [vmem:[%s2484_s14 + $0x10] sm:$0xff]  ;;  %s2592_s30 = smov [#allocation12] }
 0x416   : >> { %v2498_v37 = vmul.f32 %v7342_v30, %v10554_v16  ;;  %v2501_v61 = vmul.f32 %v7342_v30, %v10557_v23  ;;  %v2494_v50 = vsub.f32 %v2492_v33, %v2493_v34  ;;  %v2497_v40 = vadd.f32 %v2496_v43, %v2495_v48 }
 0x418   : >> { %v7343_v35 = vld [vmem:[%s2486_s15 + $0x10] sm:$0xff]  ;;  %7344 = vst [vmem:[%s2480_s13 + $0x10] sm:$0xff] %v2494_v50  ;;  %7345 = vst [vmem:[%s2482_s3 + $0x10] sm:$0xff] %v2497_v40  ;;  %s2622_s13 = smov [#allocation13]  ;;  %s2624_s3 = smov [#allocation14] }
 0x419   : >> { %v2499_v5 = vmul.f32 %v7343_v35, %v10557_v23  ;;  %v2502_v2 = vmul.f32 %v7343_v35, %v10554_v16 }
 0x41b   : >> { %v2500_v7 = vsub.f32 %v2498_v37, %v2499_v5  ;;  %v2503_v42 = vadd.f32 %v2502_v2, %v2501_v61 }
 0x41d   : >> { %7346 = vst [vmem:[%s2484_s14 + $0x10] sm:$0xff] %v2500_v7  ;;  %7347 = vst [vmem:[%s2486_s15 + $0x10] sm:$0xff] %v2503_v42  ;;  %s2626_s14 = smov [#allocation15]  ;;  %s2648_s15 = smov [#allocation12] }
 0x41f   : >> { %v7348_v41 = vld [vmem:[%s2508_s16 + $0x18] sm:$0xff] }
 0x420   : >> { %v7349_v13 = vld [vmem:[%s2510_s17 + $0x18] sm:$0xff]  ;;  %v2520_v1 = vmul.f32 %v7348_v41, %v10554_v16  ;;  %v2523_v17 = vmul.f32 %v7348_v41, %v10557_v23 }
 0x421   : >> { %v2521_v11 = vmul.f32 %v7349_v13, %v10557_v23  ;;  %v2524_v47 = vmul.f32 %v7349_v13, %v10554_v16 }
 0x423   : >> { %v2522_v59 = vsub.f32 %v2520_v1, %v2521_v11  ;;  %v2525_v60 = vadd.f32 %v2524_v47, %v2523_v17 }
 0x424   : >> { %v7350_v44 = vld [vmem:[%s2512_s18 + $0x18] sm:$0xff] }
 0x425   : >> { %v7351_v28 = vld [vmem:[%s2514_s0 + $0x18] sm:$0xff]  ;;  %v2526_v24 = vmul.f32 %v7350_v44, %v10554_v16  ;;  %v2529_v3 = vmul.f32 %v7350_v44, %v10557_v23  ;;  %7352 = vst [vmem:[%s2508_s16 + $0x18] sm:$0xff] %v2522_v59  ;;  %7353 = vst [vmem:[%s2510_s17 + $0x18] sm:$0xff] %v2525_v60  ;;  %s2650_s16 = smov [#allocation13]  ;;  %s2652_s17 = smov [#allocation14] }
 0x426   : >> { %v2527_v9 = vmul.f32 %v7351_v28, %v10557_v23  ;;  %v2530_v39 = vmul.f32 %v7351_v28, %v10554_v16 }
 0x428   : >> { %v2528_v62 = vsub.f32 %v2526_v24, %v2527_v9  ;;  %v2531_v14 = vadd.f32 %v2530_v39, %v2529_v3 }
 0x42a   : >> { %7354 = vst [vmem:[%s2512_s18 + $0x18] sm:$0xff] %v2528_v62  ;;  %7355 = vst [vmem:[%s2514_s0 + $0x18] sm:$0xff] %v2531_v14  ;;  %s2654_s18 = smov [#allocation15]  ;;  %s2676_s0 = smov [#allocation12] }
 0x42c   : >> { %v7356_v46 = vld [vmem:[%s2536_s19 + $0x20] sm:$0xff] }
 0x42d   : >> { %v7357_v53 = vld [vmem:[%s2538_s22 + $0x20] sm:$0xff]  ;;  %v2548_v0 = vmul.f32 %v7356_v46, %v10554_v16  ;;  %v2551_v6 = vmul.f32 %v7356_v46, %v10557_v23 }
 0x42e   : >> { %v2549_v49 = vmul.f32 %v7357_v53, %v10557_v23  ;;  %v2552_v20 = vmul.f32 %v7357_v53, %v10554_v16 }
 0x430   : >> { %v2550_v4 = vsub.f32 %v2548_v0, %v2549_v49  ;;  %v2553_v56 = vadd.f32 %v2552_v20, %v2551_v6 }
 0x431   : >> { %v7358_v54 = vld [vmem:[%s2540_s2 + $0x20] sm:$0xff] }
 0x432   : >> { %v7359_v15 = vld [vmem:[%s2542_s23 + $0x20] sm:$0xff]  ;;  %v2554_v19 = vmul.f32 %v7358_v54, %v10554_v16  ;;  %v2557_v8 = vmul.f32 %v7358_v54, %v10557_v23  ;;  %7360 = vst [vmem:[%s2536_s19 + $0x20] sm:$0xff] %v2550_v4  ;;  %7361 = vst [vmem:[%s2538_s22 + $0x20] sm:$0xff] %v2553_v56  ;;  %s2678_s19 = smov [#allocation13]  ;;  %s2680_s22 = smov [#allocation14] }
 0x433   : >> { %v2555_v58 = vmul.f32 %v7359_v15, %v10557_v23  ;;  %v2558_v10 = vmul.f32 %v7359_v15, %v10554_v16 }
 0x435   : >> { %v2556_v12 = vsub.f32 %v2554_v19, %v2555_v58  ;;  %v2559_v55 = vadd.f32 %v2558_v10, %v2557_v8 }
 0x437   : >> { %7362 = vst [vmem:[%s2540_s2 + $0x20] sm:$0xff] %v2556_v12  ;;  %7363 = vst [vmem:[%s2542_s23 + $0x20] sm:$0xff] %v2559_v55  ;;  %s2682_s2 = smov [#allocation15]  ;;  %s2704_s23 = smov [#allocation12] }
 0x439   : >> { %v7364_v57 = vld [vmem:[%s2564_s24 + $0x28] sm:$0xff] }
 0x43a   : >> { %v7365_v32 = vld [vmem:[%s2566_s25 + $0x28] sm:$0xff]  ;;  %v2576_v21 = vmul.f32 %v7364_v57, %v10554_v16  ;;  %v2579_v22 = vmul.f32 %v7364_v57, %v10557_v23 }
 0x43b   : >> { %v2577_v27 = vmul.f32 %v7365_v32, %v10557_v23  ;;  %v2580_v18 = vmul.f32 %v7365_v32, %v10554_v16 }
 0x43d   : >> { %v2578_v63 = vsub.f32 %v2576_v21, %v2577_v27  ;;  %v2581_v25 = vadd.f32 %v2580_v18, %v2579_v22 }
 0x43e   : >> { %v7366_v38 = vld [vmem:[%s2568_s26 + $0x28] sm:$0xff] }
 0x43f   : >> { %v7367_v29 = vld [vmem:[%s2570_s27 + $0x28] sm:$0xff]  ;;  %v2582_v26 = vmul.f32 %v7366_v38, %v10554_v16  ;;  %v2585_v45 = vmul.f32 %v7366_v38, %v10557_v23  ;;  %7368 = vst [vmem:[%s2564_s24 + $0x28] sm:$0xff] %v2578_v63  ;;  %7369 = vst [vmem:[%s2566_s25 + $0x28] sm:$0xff] %v2581_v25  ;;  %s2706_s24 = smov [#allocation13]  ;;  %s2708_s25 = smov [#allocation14] }
 0x440   : >> { %v2583_v31 = vmul.f32 %v7367_v29, %v10557_v23  ;;  %v2586_v36 = vmul.f32 %v7367_v29, %v10554_v16 }
 0x442   : >> { %v2584_v33 = vsub.f32 %v2582_v26, %v2583_v31  ;;  %v2587_v48 = vadd.f32 %v2586_v36, %v2585_v45 }
 0x444   : >> { %7370 = vst [vmem:[%s2568_s26 + $0x28] sm:$0xff] %v2584_v33  ;;  %7371 = vst [vmem:[%s2570_s27 + $0x28] sm:$0xff] %v2587_v48  ;;  %s2710_s26 = smov [#allocation15]  ;;  %s2732_s27 = smov [#allocation12] }
 0x446   : >> { %v7372_v30 = vld [vmem:[%s2592_s30 + $0x30] sm:$0xff] }
 0x447   : >> { %v7373_v34 = vld [vmem:[%s2594_s10 + $0x30] sm:$0xff]  ;;  %v2604_v43 = vmul.f32 %v7372_v30, %v10554_v16  ;;  %v2607_v37 = vmul.f32 %v7372_v30, %v10557_v23 }
 0x448   : >> { %v2605_v35 = vmul.f32 %v7373_v34, %v10557_v23  ;;  %v2608_v61 = vmul.f32 %v7373_v34, %v10554_v16 }
 0x44a   : >> { %v2606_v2 = vsub.f32 %v2604_v43, %v2605_v35  ;;  %v2609_v50 = vadd.f32 %v2608_v61, %v2607_v37 }
 0x44b   : >> { %v7374_v5 = vld [vmem:[%s2596_s1 + $0x30] sm:$0xff] }
 0x44c   : >> { %v7375_v40 = vld [vmem:[%s2598_s11 + $0x30] sm:$0xff]  ;;  %v2610_v7 = vmul.f32 %v7374_v5, %v10554_v16  ;;  %v2613_v42 = vmul.f32 %v7374_v5, %v10557_v23  ;;  %7376 = vst [vmem:[%s2592_s30 + $0x30] sm:$0xff] %v2606_v2  ;;  %7377 = vst [vmem:[%s2594_s10 + $0x30] sm:$0xff] %v2609_v50  ;;  %s2734_s30 = smov [#allocation13]  ;;  %s2736_s10 = smov [#allocation14] }
 0x44d   : >> { %v2611_v41 = vmul.f32 %v7375_v40, %v10557_v23  ;;  %v2614_v13 = vmul.f32 %v7375_v40, %v10554_v16 }
 0x44f   : >> { %v2612_v1 = vsub.f32 %v2610_v7, %v2611_v41  ;;  %v2615_v11 = vadd.f32 %v2614_v13, %v2613_v42 }
 0x451   : >> { %7378 = vst [vmem:[%s2596_s1 + $0x30] sm:$0xff] %v2612_v1  ;;  %7379 = vst [vmem:[%s2598_s11 + $0x30] sm:$0xff] %v2615_v11  ;;  %s2738_s1 = smov [#allocation15]  ;;  %s10975_s11 = smov [#allocation12] }
 0x453   : >> { %v7380_v17 = vld [vmem:[%s2620_s12 + $0x38] sm:$0xff] }
 0x454   : >> { %v7381_v47 = vld [vmem:[%s2622_s13 + $0x38] sm:$0xff]  ;;  %v2632_v44 = vmul.f32 %v7380_v17, %v10554_v16  ;;  %v2635_v24 = vmul.f32 %v7380_v17, %v10557_v23 }
 0x455   : >> { %v2633_v28 = vmul.f32 %v7381_v47, %v10557_v23  ;;  %v2636_v9 = vmul.f32 %v7381_v47, %v10554_v16 }
 0x457   : >> { %v2634_v3 = vsub.f32 %v2632_v44, %v2633_v28  ;;  %v2637_v59 = vadd.f32 %v2636_v9, %v2635_v24 }
 0x458   : >> { %v7382_v60 = vld [vmem:[%s2624_s3 + $0x38] sm:$0xff] }
 0x459   : >> { %v7383_v39 = vld [vmem:[%s2626_s14 + $0x38] sm:$0xff]  ;;  %v2638_v62 = vmul.f32 %v7382_v60, %v10554_v16  ;;  %v2641_v46 = vmul.f32 %v7382_v60, %v10557_v23  ;;  %7384 = vst [vmem:[%s2620_s12 + $0x38] sm:$0xff] %v2634_v3  ;;  %7385 = vst [vmem:[%s2622_s13 + $0x38] sm:$0xff] %v2637_v59  ;;  %s10977_s12 = smov [#allocation13]  ;;  %s11011_s13 = smov [#allocation14] }
 0x45a   : >> { %v2639_v14 = vmul.f32 %v7383_v39, %v10557_v23  ;;  %v2642_v53 = vmul.f32 %v7383_v39, %v10554_v16 }
 0x45c   : >> { %v2640_v0 = vsub.f32 %v2638_v62, %v2639_v14  ;;  %v2643_v49 = vadd.f32 %v2642_v53, %v2641_v46 }
 0x45e   : >> { %7386 = vst [vmem:[%s2624_s3 + $0x38] sm:$0xff] %v2640_v0  ;;  %7387 = vst [vmem:[%s2626_s14 + $0x38] sm:$0xff] %v2643_v49  ;;  %s11013_s3 = smov [#allocation15]  ;;  %s11127_s14 = smov [#allocation12] }
 0x460   : >> { %v7388_v6 = vld [vmem:[%s2648_s15 + $0x40] sm:$0xff] }
 0x461   : >> { %v7389_v20 = vld [vmem:[%s2650_s16 + $0x40] sm:$0xff]  ;;  %v2660_v54 = vmul.f32 %v7388_v6, %v10554_v16  ;;  %v2663_v19 = vmul.f32 %v7388_v6, %v10557_v23 }
 0x462   : >> { %v2661_v15 = vmul.f32 %v7389_v20, %v10557_v23  ;;  %v2664_v8 = vmul.f32 %v7389_v20, %v10554_v16 }
 0x464   : >> { %v2662_v4 = vsub.f32 %v2660_v54, %v2661_v15  ;;  %v2665_v56 = vadd.f32 %v2664_v8, %v2663_v19  ;;  %v10964_v19 = vadd.s32 8, %v10961_v52  ;;  %v10967_v8 = vadd.s32 16, %v10961_v52 }
 0x465   : >> { %v7390_v58 = vld [vmem:[%s2652_s17 + $0x40] sm:$0xff] }
 0x466   : >> { %v7391_v10 = vld [vmem:[%s2654_s18 + $0x40] sm:$0xff]  ;;  %v2666_v12 = vmul.f32 %v7390_v58, %v10554_v16  ;;  %v2669_v57 = vmul.f32 %v7390_v58, %v10557_v23  ;;  %7392 = vst [vmem:[%s2648_s15 + $0x40] sm:$0xff] %v2662_v4  ;;  %7393 = vst [vmem:[%s2650_s16 + $0x40] sm:$0xff] %v2665_v56  ;;  %v10970_v4 = vadd.s32 24, %v10961_v52  ;;  %v10973_v52 = vmov %v9218_v52  ;;  %s11131_s15 = smov [#allocation20]  ;;  %s11222_s16 = smov [#allocation15] }
 0x467   : >> { %v2667_v55 = vmul.f32 %v7391_v10, %v10557_v23  ;;  %v2670_v32 = vmul.f32 %v7391_v10, %v10554_v16  ;;  %v10986_v56 = vadd.s32 48, %v10961_v52  ;;  %v10989_v58 = vadd.s32 56, %v10961_v52 }
 0x468   : >> { %v10992_v10 = vadd.s32 64, %v10961_v52  ;;  %vm2808_vm4 = vcmp.eq.s32.totalorder %v10964_v19, %v11004_v51  ;;  %vm2816_vm6 = vcmp.eq.s32.totalorder %v10967_v8, %v11004_v51  ;;  %vm2824_vm7 = vcmp.eq.s32.totalorder %v10970_v4, %v11004_v51 }
 0x469   : >> { %v2668_v21 = vsub.f32 %v2666_v12, %v2667_v55  ;;  %v2671_v27 = vadd.f32 %v2670_v32, %v2669_v57  ;;  %v10995_v12 = vadd.s32 72, %v10961_v52  ;;  %v10998_v55 = vadd.s32 80, %v10961_v52 }
 0x46a   : >> { %v11001_v57 = vadd.s32 88, %v10961_v52 }
 0x46b   : >> { %7394 = vst [vmem:[%s2652_s17 + $0x40] sm:$0xff] %v2668_v21  ;;  %7395 = vst [vmem:[%s2654_s18 + $0x40] sm:$0xff] %v2671_v27  ;;  %v8673_v27 = vld [vmem:[%s10545_s21] ss:$0 sm:$0xff]  ;;  %s11102_s21 = smov [#allocation13]  ;;  %s11305_s17 = smov [#allocation13] }
 0x46c   : >> { %s9084_s18 = smov 1  }
 0x46d   : >> { %v7396_v22 = vld [vmem:[%s2676_s0 + $0x48] sm:$0xff] }
 0x46e   : >> { %v7397_v18 = vld [vmem:[%s2678_s19 + $0x48] sm:$0xff]  ;;  %v2688_v38 = vmul.f32 %v7396_v22, %v10554_v16  ;;  %v2691_v63 = vmul.f32 %v7396_v22, %v10557_v23 }
 0x46f   : >> { %v2689_v29 = vmul.f32 %v7397_v18, %v10557_v23  ;;  %v2692_v25 = vmul.f32 %v7397_v18, %v10554_v16  ;;  %v8674_v18 = vld [vmem:[%s10543_s20] ss:$0 sm:$0xff]  ;;  %s2789_s20 = smov [#allocation19] }
 0x471   : >> { %v2690_v26 = vsub.f32 %v2688_v38, %v2689_v29  ;;  %v2693_v31 = vadd.f32 %v2692_v25, %v2691_v63  ;;  %v11018_v25 = vadd.s32 96, %v10961_v52 }
 0x472   : >> { %v7398_v45 = vld [vmem:[%s2680_s22 + $0x48] sm:$0xff] }
 0x473   : >> { %v7399_v36 = vld [vmem:[%s2682_s2 + $0x48] sm:$0xff]  ;;  %v2694_v33 = vmul.f32 %v7398_v45, %v10554_v16  ;;  %v2697_v30 = vmul.f32 %v7398_v45, %v10557_v23  ;;  %7400 = vst [vmem:[%s2676_s0 + $0x48] sm:$0xff] %v2690_v26  ;;  %7401 = vst [vmem:[%s2678_s19 + $0x48] sm:$0xff] %v2693_v31  ;;  %v11021_v26 = vadd.s32 8, %v10973_v52  ;;  %v11024_v31 = vadd.s32 16, %v10973_v52  ;;  %s11379_s0 = smov [#allocation12] }
 0x474   : >> { %v2695_v48 = vmul.f32 %v7399_v36, %v10557_v23  ;;  %v2698_v34 = vmul.f32 %v7399_v36, %v10554_v16  ;;  %v11027_v45 = vadd.s32 24, %v10973_v52  ;;  %v11030_v36 = vadd.s32 32, %v10973_v52  ;;  %s11384_s19 = smov [#allocation12] }
 0x476   : >> { %v2696_v43 = vsub.f32 %v2694_v33, %v2695_v48  ;;  %v2699_v35 = vadd.f32 %v2698_v34, %v2697_v30 }
 0x478   : >> { %7402 = vst [vmem:[%s2680_s22 + $0x48] sm:$0xff] %v2696_v43  ;;  %7403 = vst [vmem:[%s2682_s2 + $0x48] sm:$0xff] %v2699_v35  ;;  %s11400_s22 = smov [#allocation13]  ;;  %s11402_s2 = smov [#allocation14] }
 0x47a   : >> { %v7404_v37 = vld [vmem:[%s2704_s23 + $0x50] sm:$0xff] }
 0x47b   : >> { %v7405_v61 = vld [vmem:[%s2706_s24 + $0x50] sm:$0xff]  ;;  %v2716_v5 = vmul.f32 %v7404_v37, %v10554_v16  ;;  %v2719_v50 = vmul.f32 %v7404_v37, %v10557_v23 }
 0x47c   : >> { %v2717_v2 = vmul.f32 %v7405_v61, %v10557_v23  ;;  %v2720_v40 = vmul.f32 %v7405_v61, %v10554_v16 }
 0x47e   : >> { %v2718_v7 = vsub.f32 %v2716_v5, %v2717_v2  ;;  %v2721_v42 = vadd.f32 %v2720_v40, %v2719_v50  ;;  %v11038_v5 = vadd.s32 40, %v10973_v52  ;;  %v11041_v2 = vadd.s32 48, %v10973_v52 }
 0x47f   : >> { %v7406_v41 = vld [vmem:[%s2708_s25 + $0x50] sm:$0xff]  ;;  %v11044_v50 = vadd.s32 56, %v10973_v52 }
 0x480   : >> { %v7407_v13 = vld [vmem:[%s2710_s26 + $0x50] sm:$0xff]  ;;  %v2722_v1 = vmul.f32 %v7406_v41, %v10554_v16  ;;  %v2725_v17 = vmul.f32 %v7406_v41, %v10557_v23  ;;  %7408 = vst [vmem:[%s2704_s23 + $0x50] sm:$0xff] %v2718_v7  ;;  %7409 = vst [vmem:[%s2706_s24 + $0x50] sm:$0xff] %v2721_v42  ;;  %s11405_s23 = smov [#allocation13]  ;;  %s12922_s24 = smov 127  }
 0x481   : >> { %v2723_v11 = vmul.f32 %v7407_v13, %v10557_v23  ;;  %v2726_v47 = vmul.f32 %v7407_v13, %v10554_v16 }
 0x483   : >> { %v2724_v44 = vsub.f32 %v2722_v1, %v2723_v11  ;;  %v2727_v28 = vadd.f32 %v2726_v47, %v2725_v17 }
 0x485   : >> { %7410 = vst [vmem:[%s2708_s25 + $0x50] sm:$0xff] %v2724_v44  ;;  %7411 = vst [vmem:[%s2710_s26 + $0x50] sm:$0xff] %v2727_v28  ;;  %s11470_s25 = smov [#allocation12]  ;;  %s11489_s26 = smov [#allocation12] }
 0x487   : >> { %v7412_v24 = vld [vmem:[%s2732_s27 + $0x58] sm:$0xff] }
 0x488   : >> { %v7413_v9 = vld [vmem:[%s2734_s30 + $0x58] sm:$0xff]  ;;  %v2744_v3 = vmul.f32 %v7412_v24, %v10554_v16  ;;  %v2747_v60 = vmul.f32 %v7412_v24, %v10557_v23 }
 0x489   : >> { %v2745_v59 = vmul.f32 %v7413_v9, %v10557_v23  ;;  %v2748_v39 = vmul.f32 %v7413_v9, %v10554_v16  ;;  %v11094_v9 = vadd.s32 64, %v10973_v52 }
 0x48b   : >> { %v2746_v62 = vsub.f32 %v2744_v3, %v2745_v59  ;;  %v2749_v14 = vadd.f32 %v2748_v39, %v2747_v60  ;;  %v11097_v3 = vadd.s32 72, %v10973_v52  ;;  %v11100_v59 = vadd.s32 80, %v10973_v52 }
 0x48c   : >> { %v7414_v46 = vld [vmem:[%s2736_s10 + $0x58] sm:$0xff] }
 0x48d   : >> { %v7415_v53 = vld [vmem:[%s2738_s1 + $0x58] sm:$0xff]  ;;  %v2750_v0 = vmul.f32 %v7414_v46, %v10554_v16  ;;  %v2753_v6 = vmul.f32 %v7414_v46, %v10557_v23  ;;  %7416 = vst [vmem:[%s2732_s27 + $0x58] sm:$0xff] %v2746_v62  ;;  %7417 = vst [vmem:[%s2734_s30 + $0x58] sm:$0xff] %v2749_v14  ;;  %v11129_v62 = vld [vmem:[%s2789_s20] ss:$0 sm:$0xff]  ;;  %s11493_s27 = smov [#allocation13] }
 0x48e   : >> { %v2751_v49 = vmul.f32 %v7415_v53, %v10557_v23  ;;  %v2754_v20 = vmul.f32 %v7415_v53, %v10554_v16  ;;  %v10980_v16 = vadd.s32 32, %v10961_v52  ;;  %v10983_v23 = vadd.s32 40, %v10961_v52  ;;  %s11501_s30 = smov [#allocation13]  ;;  %s11541_s20 = smov [#allocation13] }
 0x48f   : >> { %v11033_v52 = vmov %v9218_v52 }
 0x490   : >> { %v2752_v54 = vsub.f32 %v2750_v0, %v2751_v49  ;;  %v2755_v15 = vadd.f32 %v2754_v20, %v2753_v6  ;;  %v2915_v40 = vadd.s32 8, %v11033_v52  ;;  %v2922_v7 = vadd.s32 16, %v11033_v52 }
 0x491   : >> { %v2929_v13 = vadd.s32 24, %v11033_v52  ;;  %v2936_v1 = vadd.s32 32, %v11033_v52  ;;  %v2943_v11 = vadd.s32 40, %v11033_v52  ;;  %v11065_v17 = vadd.s32 48, %v11033_v52 }
 0x492   : >> { %7418 = vst [vmem:[%s2736_s10 + $0x58] sm:$0xff] %v2752_v54  ;;  %7419 = vst [vmem:[%s2738_s1 + $0x58] sm:$0xff] %v2755_v15  ;;  %v11074_v47 = vadd.s32 56, %v11033_v52  ;;  %v11077_v44 = vadd.s32 64, %v11033_v52  ;;  %v11080_v28 = vadd.s32 72, %v11033_v52  ;;  %v11083_v24 = vadd.s32 80, %v11033_v52 }
 0x493   : >> { %v2985_v60 = vadd.s32 88, %v11033_v52  ;;  %vm2909_vm1 = vcmp.eq.s32.totalorder %v11033_v52, %v11048_v51  ;;  %vm2916_vm0 = vcmp.eq.s32.totalorder %v2915_v40, %v11048_v51  ;;  %vm2923_vm10 = vcmp.eq.s32.totalorder %v2922_v7, %v11048_v51  ;;  %v11203_v7 = vld [vmem:[%s11131_s15] ss:$0 sm:$0xff]  ;;  %s11507_s10 = smov [#allocation12]  ;;  %s11513_s1 = smov [#allocation12] }
 0x494   : >> { %v7420_v32 = vld [vmem:[%s10975_s11 + $0x60] sm:$0xf]  ;;  %v2992_v39 = vadd.s32 96, %v11033_v52  ;;  %vm2930_vm13 = vcmp.eq.s32.totalorder %v2929_v13, %v11048_v51  ;;  %vm2937_vm12 = vcmp.eq.s32.totalorder %v2936_v1, %v11048_v51  ;;  %vm2944_vm11 = vcmp.eq.s32.totalorder %v2943_v11, %v11048_v51  ;;  %s11561_s15 = smov [#allocation12] }
 0x495   : >> { %v7421_v21 = vld [vmem:[%s10977_s12 + $0x60] sm:$0xf]  ;;  %v2775_v22 = vmul.f32 %v8673_v27, %v7420_v32  ;;  %v2772_v29 = vmul.f32 %v8674_v18, %v7420_v32  ;;  %vm2951_vm9 = vcmp.eq.s32.totalorder %v11065_v17, %v11048_v51  ;;  %vm2958_vm15 = vcmp.eq.s32.totalorder %v11074_v47, %v11048_v51 }
 0x496   : >> { %v2776_v38 = vmul.f32 %v8674_v18, %v7421_v21  ;;  %v2773_v63 = vmul.f32 %v8673_v27, %v7421_v21  ;;  %vm2965_vm14 = vcmp.eq.s32.totalorder %v11077_v44, %v11048_v51  ;;  %vm2972_vm8 = vcmp.eq.s32.totalorder %v11080_v28, %v11048_v51 }
 0x497   : >> { %vm2979_vm5 = vcmp.eq.s32.totalorder %v11083_v24, %v11048_v51  ;;  %vm2986_vm2 = vcmp.eq.s32.totalorder %v2985_v60, %v11048_v51 }
 0x498   : >> { %v2777_v33 = vadd.f32 %v2776_v38, %v2775_v22  ;;  %v2774_v48 = vsub.f32 %v2772_v29, %v2773_v63 }
 0x499   : >> { %v7422_v30 = vld [vmem:[%s11011_s13 + $0x60] sm:$0xf] }
 0x49a   : >> { %v7423_v34 = vld [vmem:[%s11013_s3 + $0x60] sm:$0xf]  ;;  %v2781_v43 = vmul.f32 %v8673_v27, %v7422_v30  ;;  %v2778_v37 = vmul.f32 %v8674_v18, %v7422_v30  ;;  %7425 = vst [vmem:[%s10977_s12 + $0x60] sm:$0xf] %v2777_v33  ;;  %7424 = vst [vmem:[%s10975_s11 + $0x60] sm:$0xf] %v2774_v48 }
 0x49b   : >> { %v2782_v35 = vmul.f32 %v8674_v18, %v7423_v34  ;;  %v2779_v61 = vmul.f32 %v8673_v27, %v7423_v34  ;;  %s11517_s11 = smov [#allocation13]  ;;  %s11525_s12 = smov [#allocation13] }
 0x49d   : >> { %v2783_v42 = vadd.f32 %v2782_v35, %v2781_v43  ;;  %v2780_v41 = vsub.f32 %v2778_v37, %v2779_v61 }
 0x49f   : >> { %7427 = vst [vmem:[%s11013_s3 + $0x60] sm:$0xf] %v2783_v42  ;;  %7426 = vst [vmem:[%s11011_s13 + $0x60] sm:$0xf] %v2780_v41  ;;  %v11208_v42 = vadd.s32 88, %v10973_v52  ;;  %s11531_s13 = smov [#allocation12] }
 0x4a0   : >> { %s11537_s3 = smov [#allocation12] }
 0x4a1   : >> { %v2906_v14 = vld [vmem:[%s11102_s21] sm:$0xff]  ;;  %v7452_v46 = vld [vmem:[%s11102_s21 + $0x8] sm:$0xff]  ;;  %v7454_v53 = vld [vmem:[%s11102_s21 + $0x10] sm:$0xff] }
 0x4a2   : >> { %v2910_v0 = vsel %vm2909_vm1, 0.0, %v2906_v14  ;;  %v2917_v49 = vsel %vm2916_vm0, 0.0, %v7452_v46  ;;  %v2924_v6 = vsel %vm2923_vm10, 0.0, %v7454_v53  ;;  %v7456_v20 = vld [vmem:[%s11102_s21 + $0x18] sm:$0xff]  ;;  %v7458_v54 = vld [vmem:[%s11102_s21 + $0x20] sm:$0xff]  ;;  %v7460_v15 = vld [vmem:[%s11102_s21 + $0x28] sm:$0xff]  ;;  %vm2993_vm10 = vcmp.eq.s32.totalorder %v2992_v39, %v11048_v51 }
 0x4a3   : >> { %2911 = vst [vmem:[%s11102_s21] sm:$0xff] %v2910_v0  ;;  %7453 = vst [vmem:[%s11102_s21 + $0x8] sm:$0xff] %v2917_v49  ;;  %v2931_v32 = vsel %vm2930_vm13, 0.0, %v7456_v20  ;;  %v2938_v21 = vsel %vm2937_vm12, 0.0, %v7458_v54  ;;  %v2945_v27 = vsel %vm2944_vm11, 0.0, %v7460_v15  ;;  %v7462_v22 = vld [vmem:[%s11102_s21 + $0x30] sm:$0xff]  ;;  %v7464_v18 = vld [vmem:[%s11102_s21 + $0x38] sm:$0xff]  ;;  %vm3137_vm0 = vcmp.eq.s32.totalorder %v11030_v36, %v11007_v51 }
 0x4a4   : >> { %7455 = vst [vmem:[%s11102_s21 + $0x10] sm:$0xff] %v2924_v6  ;;  %v7466_v38 = vld [vmem:[%s11102_s21 + $0x40] sm:$0xff]  ;;  %7457 = vst [vmem:[%s11102_s21 + $0x18] sm:$0xff] %v2931_v32  ;;  %v2952_v29 = vsel %vm2951_vm9, 0.0, %v7462_v22  ;;  %v2959_v63 = vsel %vm2958_vm15, 0.0, %v7464_v18  ;;  %v7468_v48 = vld [vmem:[%s11102_s21 + $0x48] sm:$0xff]  ;;  %vm3145_vm1 = vcmp.eq.s32.totalorder %v11038_v5, %v11007_v51  ;;  %vm3153_vm9 = vcmp.eq.s32.totalorder %v11041_v2, %v11007_v51 }
 0x4a5   : >> { %7459 = vst [vmem:[%s11102_s21 + $0x20] sm:$0xff] %v2938_v21  ;;  %7461 = vst [vmem:[%s11102_s21 + $0x28] sm:$0xff] %v2945_v27  ;;  %v2966_v33 = vsel %vm2965_vm14, 0.0, %v7466_v38  ;;  %v7470_v30 = vld [vmem:[%s11102_s21 + $0x50] sm:$0xff]  ;;  %v7472_v34 = vld [vmem:[%s11102_s21 + $0x58] sm:$0xff]  ;;  %v2973_v43 = vsel %vm2972_vm8, 0.0, %v7468_v48  ;;  %vm12955_vm8 = vcmp.eq.s32.totalorder %v10989_v58, %v11004_v51  ;;  %vm12956_vm11 = vcmp.eq.s32.totalorder %v10992_v10, %v11004_v51 }
 0x4a6   : >> { %7463 = vst [vmem:[%s11102_s21 + $0x30] sm:$0xff] %v2952_v29  ;;  %7465 = vst [vmem:[%s11102_s21 + $0x38] sm:$0xff] %v2959_v63  ;;  %v2980_v35 = vsel %vm2979_vm5, 0.0, %v7470_v30  ;;  %v2987_v37 = vsel %vm2986_vm2, 0.0, %v7472_v34  ;;  %v7474_v61 = vld [vmem:[%s11102_s21 + $0x60] sm:$0xf]  ;;  %vm3161_vm2 = vcmp.eq.s32.totalorder %v11044_v50, %v11007_v51  ;;  %vm3177_vm5 = vcmp.eq.s32.totalorder %v11097_v3, %v11007_v51 }
 0x4a7   : >> { %7467 = vst [vmem:[%s11102_s21 + $0x40] sm:$0xff] %v2966_v33  ;;  %v2797_v40 = vld [vmem:[%s11127_s14] sm:$0xff]  ;;  %7469 = vst [vmem:[%s11102_s21 + $0x48] sm:$0xff] %v2973_v43  ;;  %v2994_v41 = vsel %vm2993_vm10, 0.0, %v7474_v61  ;;  %v7428_v1 = vld [vmem:[%s11127_s14 + $0x8] sm:$0xff]  ;;  %vm12957_vm12 = vcmp.eq.s32.totalorder %v10995_v12, %v11004_v51  ;;  %vm3185_vm13 = vcmp.eq.s32.totalorder %v11100_v59, %v11007_v51  ;;  %vm12958_vm14 = vcmp.eq.s32.totalorder %v10998_v55, %v11004_v51 }
 0x4a8   : >> { %7471 = vst [vmem:[%s11102_s21 + $0x50] sm:$0xff] %v2980_v35  ;;  %7473 = vst [vmem:[%s11102_s21 + $0x58] sm:$0xff] %v2987_v37  ;;  %v2801_v13 = vsel %vm2800_vm3, %v11129_v62, %v2797_v40  ;;  %v7430_v11 = vld [vmem:[%s11127_s14 + $0x10] sm:$0xff]  ;;  %v7432_v17 = vld [vmem:[%s11127_s14 + $0x18] sm:$0xff]  ;;  %v2809_v47 = vsel %vm2808_vm4, %v11129_v62, %v7428_v1  ;;  %vm3169_vm3 = vcmp.eq.s32.totalorder %v11094_v9, %v11007_v51  ;;  %v3200_v3 = vadd.s32 96, %v10973_v52 }
 0x4a9   : >> { %7475 = vst [vmem:[%s11102_s21 + $0x60] sm:$0xf] %v2994_v41  ;;  %2802 = vst [vmem:[%s11127_s14] sm:$0xff] %v2801_v13  ;;  %v2817_v44 = vsel %vm2816_vm6, %v11129_v62, %v7430_v11  ;;  %v2825_v28 = vsel %vm2824_vm7, %v11129_v62, %v7432_v17  ;;  %v7434_v24 = vld [vmem:[%s11127_s14 + $0x20] sm:$0xff]  ;;  %v7436_v60 = vld [vmem:[%s11127_s14 + $0x28] sm:$0xff]  ;;  %vm12952_vm4 = vcmp.eq.s32.totalorder %v10980_v16, %v11004_v51  ;;  %s11549_s21 = smov [#allocation13] }
 0x4aa   : >> { %v7438_v39 = vld [vmem:[%s11127_s14 + $0x30] sm:$0xff]  ;;  %7429 = vst [vmem:[%s11127_s14 + $0x8] sm:$0xff] %v2809_v47  ;;  %7431 = vst [vmem:[%s11127_s14 + $0x10] sm:$0xff] %v2817_v44  ;;  %v2833_v19 = vsel %vm12952_vm4, %v11129_v62, %v7434_v24  ;;  %vm12953_vm6 = vcmp.eq.s32.totalorder %v10983_v23, %v11004_v51  ;;  %vm12954_vm7 = vcmp.eq.s32.totalorder %v10986_v56, %v11004_v51  ;;  %v7440_v14 = vld [vmem:[%s11127_s14 + $0x38] sm:$0xff] }
 0x4ab   : >> { %7433 = vst [vmem:[%s11127_s14 + $0x18] sm:$0xff] %v2825_v28  ;;  %v2841_v8 = vsel %vm12953_vm6, %v11129_v62, %v7436_v60  ;;  %v2849_v4 = vsel %vm12954_vm7, %v11129_v62, %v7438_v39  ;;  %v7442_v46 = vld [vmem:[%s11127_s14 + $0x40] sm:$0xff]  ;;  %v7444_v53 = vld [vmem:[%s11127_s14 + $0x48] sm:$0xff]  ;;  %7435 = vst [vmem:[%s11127_s14 + $0x20] sm:$0xff] %v2833_v19  ;;  %v2857_v16 = vsel %vm12955_vm8, %v11129_v62, %v7440_v14 }
 0x4ac   : >> { %7437 = vst [vmem:[%s11127_s14 + $0x28] sm:$0xff] %v2841_v8  ;;  %7439 = vst [vmem:[%s11127_s14 + $0x30] sm:$0xff] %v2849_v4  ;;  %v2865_v23 = vsel %vm12956_vm11, %v11129_v62, %v7442_v46  ;;  %v2873_v56 = vsel %vm12957_vm12, %v11129_v62, %v7444_v53  ;;  %v7446_v0 = vld [vmem:[%s11127_s14 + $0x50] sm:$0xff]  ;;  %v7448_v49 = vld [vmem:[%s11127_s14 + $0x58] sm:$0xff]  ;;  %vm12959_vm15 = vcmp.eq.s32.totalorder %v11001_v57, %v11004_v51 }
 0x4ad   : >> { %v7450_v6 = vld [vmem:[%s11127_s14 + $0x60] sm:$0xf]  ;;  %7441 = vst [vmem:[%s11127_s14 + $0x38] sm:$0xff] %v2857_v16  ;;  %7443 = vst [vmem:[%s11127_s14 + $0x40] sm:$0xff] %v2865_v23  ;;  %v2881_v58 = vsel %vm12958_vm14, %v11129_v62, %v7446_v0  ;;  %v2889_v10 = vsel %vm12959_vm15, %v11129_v62, %v7448_v49  ;;  %vm12960_vm10 = vcmp.eq.s32.totalorder %v11018_v25, %v11004_v51  ;;  %v7500_v54 = vld [vmem:[%s11222_s16 + $0x8] sm:$0xff] }
 0x4ae   : >> { %7445 = vst [vmem:[%s11127_s14 + $0x48] sm:$0xff] %v2873_v56  ;;  %v2897_v12 = vsel %vm12960_vm10, %v11129_v62, %v7450_v6  ;;  %v3102_v20 = vld [vmem:[%s11222_s16] sm:$0xff]  ;;  %v7502_v15 = vld [vmem:[%s11222_s16 + $0x10] sm:$0xff]  ;;  %vm3193_vm4 = vcmp.eq.s32.totalorder %v11208_v42, %v11007_v51  ;;  %7447 = vst [vmem:[%s11127_s14 + $0x50] sm:$0xff] %v2881_v58  ;;  %vm12961_vm6 = vcmp.eq.s32.totalorder %v10973_v52, %v11007_v51  ;;  %v3002_v52 = vmov %v9218_v52 }
 0x4af   : >> { %7449 = vst [vmem:[%s11127_s14 + $0x58] sm:$0xff] %v2889_v10  ;;  %7451 = vst [vmem:[%s11127_s14 + $0x60] sm:$0xf] %v2897_v12  ;;  %v3106_v55 = vsel %vm12961_vm6, %v11203_v7, %v3102_v20  ;;  %vm12962_vm7 = vcmp.eq.s32.totalorder %v11021_v26, %v11007_v51  ;;  %vm12963_vm8 = vcmp.eq.s32.totalorder %v11024_v31, %v11007_v51  ;;  %v7504_v62 = vld [vmem:[%s11222_s16 + $0x18] sm:$0xff]  ;;  %v7506_v32 = vld [vmem:[%s11222_s16 + $0x20] sm:$0xff]  ;;  %v3012_v59 = vadd.s32 8, %v3002_v52 }
 0x4b0   : >> { %v3114_v57 = vsel %vm12962_vm7, %v11203_v7, %v7500_v54  ;;  %v3122_v25 = vsel %vm12963_vm8, %v11203_v7, %v7502_v15  ;;  %v7508_v21 = vld [vmem:[%s11222_s16 + $0x28] sm:$0xff]  ;;  %3107 = vst [vmem:[%s11222_s16] sm:$0xff] %v3106_v55  ;;  %vm12964_vm11 = vcmp.eq.s32.totalorder %v11027_v45, %v11007_v51  ;;  %v3138_v31 = vsel %vm3137_vm0, %v11203_v7, %v7506_v32  ;;  %v7510_v22 = vld [vmem:[%s11222_s16 + $0x30] sm:$0xff]  ;;  %v7512_v18 = vld [vmem:[%s11222_s16 + $0x38] sm:$0xff]  ;;  %s11555_s14 = smov [#allocation12] }
 0x4b1   : >> { %7501 = vst [vmem:[%s11222_s16 + $0x8] sm:$0xff] %v3114_v57  ;;  %7503 = vst [vmem:[%s11222_s16 + $0x10] sm:$0xff] %v3122_v25  ;;  %v3130_v26 = vsel %vm12964_vm11, %v11203_v7, %v7504_v62  ;;  %v3146_v27 = vsel %vm3145_vm1, %v11203_v7, %v7508_v21  ;;  %v7514_v38 = vld [vmem:[%s11222_s16 + $0x40] sm:$0xff]  ;;  %v3154_v45 = vsel %vm3153_vm9, %v11203_v7, %v7510_v22  ;;  %v7516_v29 = vld [vmem:[%s11222_s16 + $0x48] sm:$0xff]  ;;  %v11391_v51 = vmov %v9215_v51 }
 0x4b2   : >> { %7505 = vst [vmem:[%s11222_s16 + $0x18] sm:$0xff] %v3130_v26  ;;  %7507 = vst [vmem:[%s11222_s16 + $0x20] sm:$0xff] %v3138_v31  ;;  %v3162_v36 = vsel %vm3161_vm2, %v11203_v7, %v7512_v18  ;;  %v3170_v5 = vsel %vm3169_vm3, %v11203_v7, %v7514_v38  ;;  %v7518_v63 = vld [vmem:[%s11222_s16 + $0x50] sm:$0xff]  ;;  %v7520_v33 = vld [vmem:[%s11222_s16 + $0x58] sm:$0xff]  ;;  %v3178_v2 = vsel %vm3177_vm5, %v11203_v7, %v7516_v29  ;;  %v3019_v34 = vadd.s32 16, %v3002_v52 }
 0x4b3   : >> { %7509 = vst [vmem:[%s11222_s16 + $0x28] sm:$0xff] %v3146_v27  ;;  %v3206_v48 = vld [vmem:[%s11305_s17] sm:$0xff]  ;;  %7511 = vst [vmem:[%s11222_s16 + $0x30] sm:$0xff] %v3154_v45  ;;  %v3186_v50 = vsel %vm3185_vm13, %v11203_v7, %v7518_v63  ;;  %v3194_v9 = vsel %vm3193_vm4, %v11203_v7, %v7520_v33  ;;  %v3026_v43 = vadd.s32 24, %v3002_v52  ;;  %v3033_v35 = vadd.s32 32, %v3002_v52  ;;  %v7528_v47 = vld [vmem:[%s11400_s22 + $0x10] sm:$0xff] }
 0x4b4   : >> { %7513 = vst [vmem:[%s11222_s16 + $0x38] sm:$0xff] %v3162_v36  ;;  %7515 = vst [vmem:[%s11222_s16 + $0x40] sm:$0xff] %v3170_v5  ;;  %3207 = vrot.lane.b32.xlu0 %v3206_v48, %s9084_s18  ;;  %v3040_v61 = vadd.s32 40, %v3002_v52  ;;  %v3047_v40 = vadd.s32 48, %v3002_v52  ;;  %v3054_v42 = vadd.s32 56, %v3002_v52  ;;  %v3061_v41 = vadd.s32 64, %v3002_v52 }
 0x4b5   : >> { %7517 = vst [vmem:[%s11222_s16 + $0x48] sm:$0xff] %v3178_v2  ;;  %7519 = vst [vmem:[%s11222_s16 + $0x50] sm:$0xff] %v3186_v50  ;;  %v3068_v13 = vadd.s32 72, %v3002_v52  ;;  %v3075_v1 = vadd.s32 80, %v3002_v52  ;;  %vm3201_vm0 = vcmp.eq.s32.totalorder %v3200_v3, %v11007_v51  ;;  %vm3006_vm1 = vcmp.eq.s32.totalorder %v3002_v52, %v11391_v51  ;;  %v7522_v44 = vld [vmem:[%s11222_s16 + $0x60] sm:$0xf] }
 0x4b6   : >> { %7521 = vst [vmem:[%s11222_s16 + $0x58] sm:$0xff] %v3194_v9  ;;  %v11388_v30 = vld [vmem:[%s11379_s0] sm:$0xff]  ;;  %v11396_v37 = vld [vmem:[%s11384_s19 + $0x8] sm:$0xff]  ;;  %vm3013_vm9 = vcmp.eq.s32.totalorder %v3012_v59, %v11391_v51  ;;  %v3082_v11 = vadd.s32 88, %v3002_v52  ;;  %vm3020_vm2 = vcmp.eq.s32.totalorder %v3019_v34, %v11391_v51  ;;  %vm3027_vm3 = vcmp.eq.s32.totalorder %v3026_v43, %v11391_v51  ;;  %v7478_v8 = vld [vmem:[%s11402_s2 + $0x10] sm:$0xff] }
 0x4b7   : >> { %3211 = vrot.lane.b32.xlu1 %v11388_v30, %s9084_s18  ;;  %vm3034_vm5 = vcmp.eq.s32.totalorder %v3033_v35, %v11391_v51  ;;  %v3089_v17 = vadd.s32 96, %v3002_v52  ;;  %v3003_v28 = vld [vmem:[%s11402_s2] sm:$0xff]  ;;  %vm3041_vm12 = vcmp.eq.s32.totalorder %v3040_v61, %v11391_v51  ;;  %vm3048_vm13 = vcmp.eq.s32.totalorder %v3047_v40, %v11391_v51  ;;  %v7524_v24 = vld [vmem:[%s11405_s23 + $0x8] sm:$0xff]  ;;  %v7480_v4 = vld [vmem:[%s11402_s2 + $0x18] sm:$0xff] }
 0x4b8   : >> { %3243 = vrot.lane.b32.xlu0 %v11396_v37, %s9084_s18  ;;  %vm3055_vm14 = vcmp.eq.s32.totalorder %v3054_v42, %v11391_v51  ;;  %vm3062_vm15 = vcmp.eq.s32.totalorder %v3061_v41, %v11391_v51  ;;  %v3202_v60 = vsel %vm3201_vm0, %v11203_v7, %v7522_v44  ;;  %v3007_v39 = vsel %vm3006_vm1, 0.0, %v3003_v28  ;;  %v7476_v19 = vld [vmem:[%s11402_s2 + $0x8] sm:$0xff]  ;;  %v7482_v53 = vld [vmem:[%s11402_s2 + $0x20] sm:$0xff]  ;;  %v7486_v23 = vld [vmem:[%s11402_s2 + $0x30] sm:$0xff] }
 0x4b9   : >> { %vm3069_vm10 = vcmp.eq.s32.totalorder %v3068_v13, %v11391_v51  ;;  %vm3076_vm4 = vcmp.eq.s32.totalorder %v3075_v1, %v11391_v51  ;;  %7523 = vst [vmem:[%s11222_s16 + $0x60] sm:$0xf] %v3202_v60  ;;  %3008 = vst [vmem:[%s11402_s2] sm:$0xff] %v3007_v39  ;;  %v3014_v7 = vsel %vm3013_vm9, 0.0, %v7476_v19  ;;  %v3021_v14 = vsel %vm3020_vm2, 0.0, %v7478_v8  ;;  %v7484_v16 = vld [vmem:[%s11402_s2 + $0x28] sm:$0xff]  ;;  %v7488_v6 = vld [vmem:[%s11402_s2 + $0x38] sm:$0xff] }
 0x4ba   : >> { %v3028_v46 = vsel %vm3027_vm3, 0.0, %v7480_v4  ;;  %vm3083_vm6 = vcmp.eq.s32.totalorder %v3082_v11, %v11391_v51  ;;  %7477 = vst [vmem:[%s11402_s2 + $0x8] sm:$0xff] %v3014_v7  ;;  %7479 = vst [vmem:[%s11402_s2 + $0x10] sm:$0xff] %v3021_v14  ;;  %v3035_v56 = vsel %vm3034_vm5, 0.0, %v7482_v53  ;;  %v3042_v0 = vsel %vm3041_vm12, 0.0, %v7484_v16  ;;  %v7490_v58 = vld [vmem:[%s11402_s2 + $0x40] sm:$0xff] }
 0x4bb   : >> { %3228 = vrot.lane.b32.xlu1 %v3206_v48, %s12922_s24  ;;  %7481 = vst [vmem:[%s11402_s2 + $0x18] sm:$0xff] %v3028_v46  ;;  %v3049_v49 = vsel %vm3048_vm13, 0.0, %v7486_v23  ;;  %v7492_v10 = vld [vmem:[%s11402_s2 + $0x48] sm:$0xff]  ;;  %vm3090_vm7 = vcmp.eq.s32.totalorder %v3089_v17, %v11391_v51  ;;  %7483 = vst [vmem:[%s11402_s2 + $0x20] sm:$0xff] %v3035_v56  ;;  %v3056_v12 = vsel %vm3055_vm14, 0.0, %v7488_v6  ;;  %v3063_v20 = vsel %vm3062_vm15, 0.0, %v7490_v58 }
 0x4bc   : >> { %3271 = vrot.lane.b32.xlu0 %v7528_v47, %s9084_s18  ;;  %7485 = vst [vmem:[%s11402_s2 + $0x28] sm:$0xff] %v3042_v0  ;;  %7487 = vst [vmem:[%s11402_s2 + $0x30] sm:$0xff] %v3049_v49  ;;  %v3070_v54 = vsel %vm3069_vm10, 0.0, %v7492_v10  ;;  %v7494_v15 = vld [vmem:[%s11402_s2 + $0x50] sm:$0xff]  ;;  %s11565_s16 = smov [#allocation13]  ;;  %vm3215_vm8 = vcmp.eq.s32.totalorder %v9215_v51, 0 }
 0x4bd   : >> { %v7496_v55 = vld [vmem:[%s11402_s2 + $0x58] sm:$0xff]  ;;  %7489 = vst [vmem:[%s11402_s2 + $0x38] sm:$0xff] %v3056_v12  ;;  %7491 = vst [vmem:[%s11402_s2 + $0x40] sm:$0xff] %v3063_v20  ;;  %v3077_v57 = vsel %vm3076_vm4, 0.0, %v7494_v15  ;;  %v7498_v62 = vld [vmem:[%s11402_s2 + $0x60] sm:$0xf] }
 0x4be   : >> { %7493 = vst [vmem:[%s11402_s2 + $0x48] sm:$0xff] %v3070_v54  ;;  %v3084_v25 = vsel %vm3083_vm6, 0.0, %v7496_v55  ;;  %7495 = vst [vmem:[%s11402_s2 + $0x50] sm:$0xff] %v3077_v57  ;;  %v3091_v32 = vsel %vm3090_vm7, 0.0, %v7498_v62  ;;  %v11487_v21 = vld [vmem:[%s11470_s25 + $0x18] sm:$0xff]  ;;  %v11496_v26 = vld [vmem:[%s11489_s26 + $0x10] sm:$0xff] }
 0x4bf   : >> { %3239 = vrot.lane.b32.xlu1 %v7524_v24, %s9084_s18  ;;  %7497 = vst [vmem:[%s11402_s2 + $0x58] sm:$0xff] %v3084_v25  ;;  %7499 = vst [vmem:[%s11402_s2 + $0x60] sm:$0xf] %v3091_v32  ;;  %v7536_v31 = vld [vmem:[%s11493_s27 + $0x20] sm:$0xff]  ;;  %s11573_s2 = smov [#allocation13]  ;;  %vm3219_vm11 = vcmp.eq.s32.totalorder %v9215_v51, 1 }
 0x4c0   : >> { %3292 = vrot.lane.b32.xlu0 %v7528_v47, %s12922_s24  ;;  %v7532_v27 = vld [vmem:[%s11501_s30 + $0x18] sm:$0xff]  ;;  %v11511_v22 = vld [vmem:[%s11507_s10 + $0x28] sm:$0xff]  ;;  %v11520_v18 = vld [vmem:[%s11513_s1 + $0x20] sm:$0xff]  ;;  %vm3232_vm0 = vcmp.eq.s32.totalorder %v9215_v51, 99  ;;  %vm12982_vm1 = vcmp.lt.s32.totalorder %v9215_v51, 100 }
 0x4c1   : >> { %v7544_v38 = vld [vmem:[%s11517_s11 + $0x30] sm:$0xff]  ;;  %v7540_v45 = vld [vmem:[%s11525_s12 + $0x28] sm:$0xff]  ;;  %v11535_v36 = vld [vmem:[%s11531_s13 + $0x38] sm:$0xff] }
 0x4c2   : >> { %v11544_v5 = vld [vmem:[%s11537_s3 + $0x30] sm:$0xff]  ;;  %v7552_v29 = vld [vmem:[%s11541_s20 + $0x40] sm:$0xff]  ;;  %v7548_v63 = vld [vmem:[%s11549_s21 + $0x38] sm:$0xff] }
 0x4c3   : >> { %3260 = vrot.lane.b32.xlu1 %v7524_v24, %s12922_s24  ;;  %v11559_v33 = vld [vmem:[%s11555_s14 + $0x48] sm:$0xff]  ;;  %v11568_v48 = vld [vmem:[%s11561_s15 + $0x40] sm:$0xff]  ;;  %v7560_v2 = vld [vmem:[%s11565_s16 + $0x50] sm:$0xff] }
 0x4c4   : >> { %3307 = vrot.lane.b32.xlu0 %v11487_v21, %s9084_s18  ;;  %v7556_v50 = vld [vmem:[%s11573_s2 + $0x48] sm:$0xff]  ;;  %v11583_v9 = vld [vmem:[%s11579_s9 + $0x58] sm:$0xff]  ;;  %v11592_v3 = vld [vmem:[%s11585_s8 + $0x50] sm:$0xff] }
 0x4c5   : >> { %v7568_v59 = vld [vmem:[%s11587_s7 + $0x60] sm:$0xf]  ;;  %v7564_v34 = vld [vmem:[%s11597_s6 + $0x58] sm:$0xff]  ;;  %vm12983_vm9 = vmmov %vm12982_vm1 }
 0x4c6   : >> { %v11613_v35 = vld [vmem:[%s11607_s4] sm:$0xff]  ;;  %v11618_v61 = vld [vmem:[%s11610_s28 + $0x10] sm:$0xff]  ;;  %v11627_v40 = vld [vmem:[%s11620_s29 + $0x8] sm:$0xff]  ;;  %s11632_s4 = smov [#allocation15]  ;;  %s11638_s28 = smov [#allocation14] }
 0x4c7   : >> { %3275 = vrot.lane.b32.xlu1 %v11496_v26, %s9084_s18  ;;  %12971 = sst [smem:[#allocation32_spill]] %s11632_s4  ;;  %v7596_v41 = vld [vmem:[%s11632_s4 + $0x8] sm:$0xff]  ;;  %v11642_v13 = vld [vmem:[%s11638_s28 + $0x20] sm:$0xff]  ;;  %s11644_s29 = smov [#allocation14]  ;;  %vm12984_vm2 = vmmov %vm12982_vm1 }
 0x4c8   : >> { %3335 = vrot.lane.b32.xlu0 %v7536_v31, %s9084_s18  ;;  %12972 = sst [smem:[#allocation33_spill]] %s11638_s28  ;;  %v11651_v1 = vld [vmem:[%s11644_s29 + $0x18] sm:$0xff]  ;;  %s11656_s4 = smov [#allocation15]  ;;  %v7571_v0 = vld [vmem:[%s11587_s7 + $0x60] sm:$0xf]  ;;  %vm12985_vm3 = vmmov %vm12982_vm1 }
 0x4c9   : >> { %12973 = sst [smem:[#allocation34_spill]] %s11644_s29  ;;  %v7604_v17 = vld [vmem:[%s11656_s4 + $0x18] sm:$0xff]  ;;  %s11662_s28 = smov [#allocation14]  ;;  %vm12986_vm5 = vmmov %vm12982_vm1 }
 0x4ca   : >> { %12975 = sst [smem:[#allocation36_spill]] %s11656_s4  ;;  %v11666_v47 = vld [vmem:[%s11662_s28 + $0x30] sm:$0xff]  ;;  %s11668_s29 = smov [#allocation14]  ;;  %vm12987_vm12 = vmmov %vm12982_vm1 }
 0x4cb   : >> { %3303 = vrot.lane.b32.xlu1 %v7532_v27, %s9084_s18  ;;  %12976 = sst [smem:[#allocation37_spill]] %s11662_s28  ;;  %v11675_v44 = vld [vmem:[%s11668_s29 + $0x28] sm:$0xff]  ;;  %s11680_s4 = smov [#allocation15]  ;;  %vm12988_vm13 = vmmov %vm12982_vm1 }
 0x4cc   : >> { %3356 = vrot.lane.b32.xlu0 %v7536_v31, %s12922_s24  ;;  %12977 = sst [smem:[#allocation38_spill]] %s11668_s29  ;;  %v7612_v24 = vld [vmem:[%s11680_s4 + $0x28] sm:$0xff]  ;;  %s11686_s28 = smov [#allocation14]  ;;  %vm12989_vm14 = vmmov %vm12982_vm1 }
 0x4cd   : >> { %12979 = sst [smem:[#allocation40_spill]] %s11680_s4  ;;  %v11691_v39 = vld [vmem:[%s11686_s28 + $0x40] sm:$0xff]  ;;  %s11698_s4 = smov [#allocation15]  ;;  %vm12990_vm15 = vmmov %vm12982_vm1 }
 0x4ce   : >> { %12980 = sst [smem:[#allocation41_spill]] %s11686_s28  ;;  %s11700_s29 = smov [#allocation12]  ;;  %v7624_v46 = vld [vmem:[%s11698_s4 + $0x40] sm:$0xff]  ;;  %vm12991_vm10 = vmmov %vm12982_vm1 }
 0x4cf   : >> { %3324 = vrot.lane.b32.xlu1 %v7532_v27, %s12922_s24  ;;  %12981 = sst [smem:[#allocation42_spill]] %s11700_s29  ;;  %s11714_s28 = smov [#allocation15]  ;;  %v11717_v53 = vld [vmem:[%s11700_s29 + $0x60] sm:$0xf]  ;;  %vm12993_vm4 = vmmov %vm12982_vm1 }
 0x4d0   : >> { %3371 = vrot.lane.b32.xlu0 %v11511_v22, %s9084_s18  ;;  %v11720_v16 = vld [vmem:[%s11700_s29 + $0x60] sm:$0xf]  ;;  %v7620_v6 = vld [vmem:[%s11714_s28 + $0x38] sm:$0xff]  ;;  %s11734_s29 = smov [#allocation14]  ;;  %vm12994_vm6 = vmmov %vm12982_vm1 }
 0x4d1   : >> { %v11745_v15 = vld [vmem:[%s11734_s29 + $0x50] sm:$0xff]  ;;  %vm12997_vm7 = vmmov %vm12982_vm1 }
 0x4d3   : >> { %3339 = vrot.lane.b32.xlu1 %v11520_v18, %s9084_s18 }
 0x4d4   : >> { %3399 = vrot.lane.b32.xlu0 %v7544_v38, %s9084_s18 }
 0x4d7   : >> { %3367 = vrot.lane.b32.xlu1 %v7540_v45, %s9084_s18 }
 0x4d8   : >> { %3420 = vrot.lane.b32.xlu0 %v7544_v38, %s12922_s24 }
 0x4db   : >> { %3388 = vrot.lane.b32.xlu1 %v7540_v45, %s12922_s24 }
 0x4dc   : >> { %3435 = vrot.lane.b32.xlu0 %v11535_v36, %s9084_s18 }
 0x4df   : >> { %3403 = vrot.lane.b32.xlu1 %v11544_v5, %s9084_s18 }
 0x4e0   : >> { %3463 = vrot.lane.b32.xlu0 %v7552_v29, %s9084_s18 }
 0x4e3   : >> { %3431 = vrot.lane.b32.xlu1 %v7548_v63, %s9084_s18 }
 0x4e4   : >> { %3484 = vrot.lane.b32.xlu0 %v7552_v29, %s12922_s24 }
 0x4e7   : >> { %3452 = vrot.lane.b32.xlu1 %v7548_v63, %s12922_s24 }
 0x4e8   : >> { %3499 = vrot.lane.b32.xlu0 %v11559_v33, %s9084_s18 }
 0x4eb   : >> { %3467 = vrot.lane.b32.xlu1 %v11568_v48, %s9084_s18 }
 0x4ec   : >> { %3527 = vrot.lane.b32.xlu0 %v7560_v2, %s9084_s18 }
 0x4ef   : >> { %3495 = vrot.lane.b32.xlu1 %v7556_v50, %s9084_s18 }
 0x4f0   : >> { %3548 = vrot.lane.b32.xlu0 %v7560_v2, %s12922_s24 }
 0x4f3   : >> { %3516 = vrot.lane.b32.xlu1 %v7556_v50, %s12922_s24  ;;  %s11600_s24 = smov [#allocation15] }
 0x4f4   : >> { %3563 = vrot.lane.b32.xlu0 %v11583_v9, %s9084_s18  ;;  %12965 = sst [smem:[#allocation27_spill]] %s11600_s24  ;;  %v3646_v43 = vld [vmem:[%s11600_s24] sm:$0xff]  ;;  %s11624_s24 = smov [#allocation15] }
 0x4f5   : >> { %12970 = sst [smem:[#allocation31_spill]] %s11624_s24  ;;  %v7600_v42 = vld [vmem:[%s11624_s24 + $0x10] sm:$0xff]  ;;  %s11648_s24 = smov [#allocation15] }
 0x4f6   : >> { %12974 = sst [smem:[#allocation35_spill]] %s11648_s24  ;;  %v7608_v11 = vld [vmem:[%s11648_s24 + $0x20] sm:$0xff]  ;;  %s11672_s24 = smov [#allocation15] }
 0x4f7   : >> { %3531 = vrot.lane.b32.xlu1 %v11592_v3, %s9084_s18  ;;  %12978 = sst [smem:[#allocation39_spill]] %s11672_s24  ;;  %v7616_v28 = vld [vmem:[%s11672_s24 + $0x30] sm:$0xff]  ;;  %s11693_s24 = smov [#allocation14] }
 0x4f8   : >> { %3591 = vrot.lane.b32.xlu0 %v7568_v59, %s9084_s18  ;;  %v11706_v4 = vld [vmem:[%s11693_s24 + $0x38] sm:$0xff] }
 0x4fb   : >> { %3559 = vrot.lane.b32.xlu1 %v7564_v34, %s9084_s18 }
 0x4fc   : >> { %3647 = vrot.lane.b32.xlu0 %v3646_v43, %s9084_s18 }
 0x4ff   : >> { %3580 = vrot.lane.b32.xlu1 %v7564_v34, %s12966_s5 }
 0x500   : >> { %3668 = vrot.lane.b32.xlu0 %v3646_v43, %s12966_s5 }
 0x503   : >> { %3651 = vrot.lane.b32.xlu1 %v11613_v35, %s9084_s18 }
 0x504   : >> { %3715 = vrot.lane.b32.xlu0 %v11618_v61, %s9084_s18 }
 0x507   : >> { %3683 = vrot.lane.b32.xlu1 %v11627_v40, %s9084_s18 }
 0x508   : >> { %3711 = vrot.lane.b32.xlu0 %v7600_v42, %s9084_s18 }
 0x50b   : >> { %3679 = vrot.lane.b32.xlu1 %v7596_v41, %s9084_s18 }
 0x50c   : >> { %3732 = vrot.lane.b32.xlu0 %v7600_v42, %s12966_s5 }
 0x50f   : >> { %3700 = vrot.lane.b32.xlu1 %v7596_v41, %s12966_s5 }
 0x510   : >> { %3779 = vrot.lane.b32.xlu0 %v11642_v13, %s9084_s18 }
 0x513   : >> { %3747 = vrot.lane.b32.xlu1 %v11651_v1, %s9084_s18 }
 0x514   : >> { %3775 = vrot.lane.b32.xlu0 %v7608_v11, %s9084_s18 }
 0x517   : >> { %3743 = vrot.lane.b32.xlu1 %v7604_v17, %s9084_s18 }
 0x518   : >> { %3796 = vrot.lane.b32.xlu0 %v7608_v11, %s12966_s5 }
 0x51b   : >> { %3764 = vrot.lane.b32.xlu1 %v7604_v17, %s12966_s5 }
 0x51c   : >> { %3843 = vrot.lane.b32.xlu0 %v11666_v47, %s9084_s18 }
 0x51f   : >> { %3811 = vrot.lane.b32.xlu1 %v11675_v44, %s9084_s18 }
 0x520   : >> { %3839 = vrot.lane.b32.xlu0 %v7616_v28, %s9084_s18 }
 0x523   : >> { %3807 = vrot.lane.b32.xlu1 %v7612_v24, %s9084_s18 }
 0x524   : >> { %3860 = vrot.lane.b32.xlu0 %v7616_v28, %s12966_s5 }
 0x526   : >> { %v3208_v60 = vpop.permute.xlu0 %3207 }
 0x527   : >> { %3828 = vrot.lane.b32.xlu1 %v7612_v24, %s12966_s5 }
 0x528   : >> { %3907 = vrot.lane.b32.xlu0 %v11691_v39, %s9084_s18 }
 0x529   : >> { %v3212_v19 = vpop.permute.xlu1 %3211 }
 0x52a   : >> { %v3216_v8 = vsel %vm3215_vm8, %v11388_v30, %v3212_v19  ;;  %v3244_v7 = vpop.permute.xlu0 %3243 }
 0x52b   : >> { %v3220_v14 = vsel %vm3219_vm11, %v3208_v60, %v3216_v8  ;;  %3875 = vrot.lane.b32.xlu1 %v11706_v4, %s9084_s18  ;;  %v3248_v10 = vsel %vm3215_vm8, %v11396_v37, %v3244_v7 }
 0x52c   : >> { %v3226_v23 = vsel %vm12982_vm1, %v3220_v14, 0.0  ;;  %3903 = vrot.lane.b32.xlu0 %v7624_v46, %s9084_s18 }
 0x52d   : >> { %v3229_v56 = vpop.permute.xlu1 %3228  ;;  %3618 = vst [vmem:[%s11379_s0] sm:$0xff] %v3226_v23  ;;  %s11751_s0 = smov [#allocation15] }
 0x52e   : >> { %v3233_v49 = vsel %vm3232_vm0, %v11388_v30, %v3229_v56  ;;  %v3272_v58 = vpop.permute.xlu0 %3271  ;;  %v7631_v31 = vld [vmem:[%s11751_s0 + $0x48] sm:$0xff] }
 0x52f   : >> { %3619 = vst [vmem:[%s11305_s17] sm:$0xff] %v3233_v49  ;;  %3871 = vrot.lane.b32.xlu1 %v7620_v6, %s9084_s18  ;;  %s11747_s17 = smov [#allocation14] }
 0x530   : >> { %3924 = vrot.lane.b32.xlu0 %v7624_v46, %s12966_s5  ;;  %v11761_v62 = vld [vmem:[%s11747_s17 + $0x48] sm:$0xff] }
 0x531   : >> { %v3240_v12 = vpop.permute.xlu1 %3239 }
 0x532   : >> { %v3252_v30 = vsel %vm3219_vm11, %v3240_v12, %v3248_v10  ;;  %v3293_v20 = vpop.permute.xlu0 %3292 }
 0x533   : >> { %v3258_v54 = vsel %vm12983_vm9, %v3252_v30, 0.0  ;;  %3892 = vrot.lane.b32.xlu1 %v7620_v6, %s12966_s5  ;;  %v3297_v55 = vsel %vm3232_vm0, %v11496_v26, %v3293_v20  ;;  %vm13001_vm9 = vmmov %vm12982_vm1 }
 0x534   : >> { %3971 = vrot.lane.b32.xlu0 %v11745_v15, %s9084_s18  ;;  %7572 = vst [vmem:[%s11384_s19 + $0x8] sm:$0xff] %v3258_v54  ;;  %s11769_s19 = smov [#allocation14] }
 0x535   : >> { %v3261_v57 = vpop.permute.xlu1 %3260  ;;  %v11778_v29 = vld [vmem:[%s11769_s19 + $0x58] sm:$0xff] }
 0x536   : >> { %v3265_v25 = vsel %vm3232_vm0, %v11396_v37, %v3261_v57  ;;  %v3308_v32 = vpop.permute.xlu0 %3307 }
 0x537   : >> { %7573 = vst [vmem:[%s11405_s23 + $0x8] sm:$0xff] %v3265_v25  ;;  %3939 = vrot.lane.b32.xlu1 %v11761_v62, %s9084_s18  ;;  %s11797_s23 = smov [#allocation15] }
 0x538   : >> { %7575 = vst [vmem:[%s11400_s22 + $0x10] sm:$0xff] %v3297_v55  ;;  %3956 = vrot.lane.b32.xlu0 %v7631_v31, %s12966_s5  ;;  %s11784_s22 = smov [#allocation15]  ;;  %v7632_v17 = vld [vmem:[%s11797_s23 + $0x50] sm:$0xff] }
 0x539   : >> { %v3276_v27 = vpop.permute.xlu1 %3275  ;;  %v7636_v43 = vld [vmem:[%s11784_s22 + $0x58] sm:$0xff] }
 0x53a   : >> { %v3280_v37 = vsel %vm3215_vm8, %v11496_v26, %v3276_v27  ;;  %v3336_v38 = vpop.permute.xlu0 %3335  ;;  %v3312_v26 = vsel %vm3215_vm8, %v11487_v21, %v3308_v32 }
 0x53b   : >> { %v3284_v45 = vsel %vm3219_vm11, %v3272_v58, %v3280_v37  ;;  %3935 = vrot.lane.b32.xlu1 %v7631_v31, %s9084_s18 }
 0x53c   : >> { %v3290_v63 = vsel %vm12984_vm2, %v3284_v45, 0.0  ;;  %4003 = vrot.lane.b32.xlu0 %v11778_v29, %s9084_s18  ;;  %vm13006_vm2 = vmmov %vm12982_vm1 }
 0x53d   : >> { %v3304_v2 = vpop.permute.xlu1 %3303  ;;  %7574 = vst [vmem:[%s11489_s26 + $0x10] sm:$0xff] %v3290_v63  ;;  %s11810_s26 = smov [#allocation15] }
 0x53e   : >> { %v3316_v50 = vsel %vm3219_vm11, %v3304_v2, %v3312_v26  ;;  %v3357_v59 = vpop.permute.xlu0 %3356  ;;  %v7643_v30 = vld [vmem:[%s11810_s26 + $0x60] sm:$0xf] }
 0x53f   : >> { %v3322_v34 = vsel %vm12985_vm3, %v3316_v50, 0.0  ;;  %3595 = vrot.lane.b32.xlu1 %v11720_v16, %s9084_s18  ;;  %v3361_v42 = vsel %vm3232_vm0, %v11520_v18, %v3357_v59  ;;  %vm13007_vm3 = vmmov %vm12982_vm1 }
 0x540   : >> { %3999 = vrot.lane.b32.xlu0 %v7636_v43, %s9084_s18  ;;  %7576 = vst [vmem:[%s11470_s25 + $0x18] sm:$0xff] %v3322_v34  ;;  %s11818_s25 = smov [#allocation14] }
 0x541   : >> { %v3325_v41 = vpop.permute.xlu1 %3324  ;;  %v11831_v46 = vld [vmem:[%s11818_s25 + $0x60] sm:$0xf] }
 0x542   : >> { %v3329_v11 = vsel %vm3232_vm0, %v11487_v21, %v3325_v41  ;;  %v3372_v28 = vpop.permute.xlu0 %3371  ;;  %v7640_v21 = vld [vmem:[%s11810_s26 + $0x60] sm:$0xf] }
 0x543   : >> { %7577 = vst [vmem:[%s11501_s30 + $0x18] sm:$0xff] %v3329_v11  ;;  %3967 = vrot.lane.b32.xlu1 %v7632_v17, %s9084_s18  ;;  %s13002_s30 = sld [smem:[#allocation34_spill]] }
 0x544   : >> { %7579 = vst [vmem:[%s11493_s27 + $0x20] sm:$0xff] %v3361_v42  ;;  %3612 = vrot.lane.b32.xlu0 %v7571_v0, %s12966_s5  ;;  %s13000_s27 = sld [smem:[#allocation31_spill]] }
 0x545   : >> { %v3340_v24 = vpop.permute.xlu1 %3339 }
 0x546   : >> { %v3344_v60 = vsel %vm3215_vm8, %v11520_v18, %v3340_v24  ;;  %v3400_v19 = vpop.permute.xlu0 %3399  ;;  %v3376_v18 = vsel %vm3215_vm8, %v11511_v22, %v3372_v28 }
 0x547   : >> { %v3348_v8 = vsel %vm3219_vm11, %v3336_v38, %v3344_v60  ;;  %3988 = vrot.lane.b32.xlu1 %v7632_v17, %s12966_s5 }
 0x548   : >> { %v3354_v7 = vsel %vm12986_vm5, %v3348_v8, 0.0  ;;  %4031 = vrot.lane.b32.xlu0 %v7640_v21, %s9084_s18  ;;  %vm13012_vm5 = vmmov %vm12982_vm1 }
 0x549   : >> { %v3368_v14 = vpop.permute.xlu1 %3367  ;;  %7578 = vst [vmem:[%s11513_s1 + $0x20] sm:$0xff] %v3354_v7  ;;  %s13004_s1 = sld [smem:[#allocation36_spill]] }
 0x54a   : >> { %v3380_v23 = vsel %vm3219_vm11, %v3368_v14, %v3376_v18  ;;  %v3421_v56 = vpop.permute.xlu0 %3420 }
 0x54b   : >> { %v3386_v0 = vsel %vm12987_vm12, %v3380_v23, 0.0  ;;  %4035 = vrot.lane.b32.xlu1 %v11831_v46, %s9084_s18  ;;  %v3425_v49 = vsel %vm3232_vm0, %v11544_v5, %v3421_v56  ;;  %s12995_s18 = sld [smem:[#allocation28_spill]]  ;;  %vm13013_vm12 = vmmov %vm12982_vm1 }
 0x54c   : >> { %7580 = vst [vmem:[%s11507_s10 + $0x28] sm:$0xff] %v3386_v0  ;;  %s13003_s10 = sld [smem:[#allocation33_spill]] }
 0x54d   : >> { %v3389_v6 = vpop.permute.xlu1 %3388 }
 0x54e   : >> { %v3393_v58 = vsel %vm3232_vm0, %v11511_v22, %v3389_v6  ;;  %v3436_v10 = vpop.permute.xlu0 %3435 }
 0x54f   : >> { %7581 = vst [vmem:[%s11525_s12 + $0x28] sm:$0xff] %v3393_v58  ;;  %4020 = vrot.lane.b32.xlu1 %v7636_v43, %s12966_s5  ;;  %v3440_v57 = vsel %vm3215_vm8, %v11535_v36, %v3436_v10  ;;  %s13008_s12 = sld [smem:[#allocation38_spill]] }
 0x550   : >> { %7583 = vst [vmem:[%s11517_s11 + $0x30] sm:$0xff] %v3425_v49  ;;  %s13005_s11 = sld [smem:[#allocation35_spill]] }
 0x551   : >> { %v3404_v12 = vpop.permute.xlu1 %3403 }
 0x552   : >> { %v3408_v20 = vsel %vm3215_vm8, %v11544_v5, %v3404_v12  ;;  %v3464_v54 = vpop.permute.xlu0 %3463 }
 0x553   : >> { %v3412_v55 = vsel %vm3219_vm11, %v3400_v19, %v3408_v20  ;;  %4052 = vrot.lane.b32.xlu1 %v7643_v30, %s12966_s5  ;;  %s12992_s5 = sld [smem:[#allocation27_spill]]  ;;  %v11931_v30 = vld [vmem:[%s11818_s25 + $0x60] sm:$0xf] }
 0x554   : >> { %v3418_v22 = vsel %vm12988_vm13, %v3412_v55, 0.0  ;;  %vm13015_vm13 = vmmov %vm12982_vm1 }
 0x555   : >> { %v3432_v25 = vpop.permute.xlu1 %3431  ;;  %7582 = vst [vmem:[%s11537_s3 + $0x30] sm:$0xff] %v3418_v22  ;;  %s13010_s3 = sld [smem:[#allocation40_spill]] }
 0x556   : >> { %v3444_v5 = vsel %vm3219_vm11, %v3432_v25, %v3440_v57  ;;  %v3485_v32 = vpop.permute.xlu0 %3484 }
 0x557   : >> { %v3450_v31 = vsel %vm12989_vm14, %v3444_v5, 0.0  ;;  %v3489_v27 = vsel %vm3232_vm0, %v11568_v48, %v3485_v32  ;;  %vm13016_vm14 = vmmov %vm12982_vm1 }
 0x558   : >> { %7584 = vst [vmem:[%s11531_s13 + $0x38] sm:$0xff] %v3450_v31  ;;  %s13009_s13 = sld [smem:[#allocation37_spill]] }
 0x559   : >> { %v3453_v37 = vpop.permute.xlu1 %3452 }
 0x55a   : >> { %v3457_v38 = vsel %vm3232_vm0, %v11535_v36, %v3453_v37  ;;  %v3500_v45 = vpop.permute.xlu0 %3499 }
 0x55b   : >> { %7585 = vst [vmem:[%s11549_s21 + $0x38] sm:$0xff] %v3457_v38  ;;  %v3504_v36 = vsel %vm3215_vm8, %v11559_v33, %v3500_v45  ;;  %s13014_s21 = sld [smem:[#allocation41_spill]] }
 0x55c   : >> { %7587 = vst [vmem:[%s11541_s20 + $0x40] sm:$0xff] %v3489_v27  ;;  %s13011_s20 = sld [smem:[#allocation39_spill]] }
 0x55d   : >> { %v3468_v63 = vpop.permute.xlu1 %3467 }
 0x55e   : >> { %v3472_v26 = vsel %vm3215_vm8, %v11568_v48, %v3468_v63  ;;  %v3528_v2 = vpop.permute.xlu0 %3527 }
 0x55f   : >> { %v3476_v50 = vsel %vm3219_vm11, %v3464_v54, %v3472_v26 }
 0x560   : >> { %v3482_v59 = vsel %vm12990_vm15, %v3476_v50, 0.0  ;;  %vm13018_vm15 = vmmov %vm12982_vm1 }
 0x561   : >> { %v3496_v34 = vpop.permute.xlu1 %3495  ;;  %7586 = vst [vmem:[%s11561_s15 + $0x40] sm:$0xff] %v3482_v59 }
 0x562   : >> { %v3508_v43 = vsel %vm3219_vm11, %v3496_v34, %v3504_v36  ;;  %v3549_v42 = vpop.permute.xlu0 %3548 }
 0x563   : >> { %v3514_v48 = vsel %vm12991_vm10, %v3508_v43, 0.0  ;;  %v3553_v41 = vsel %vm3232_vm0, %v11592_v3, %v3549_v42  ;;  %vm13019_vm10 = vmmov %vm12982_vm1 }
 0x564   : >> { %7588 = vst [vmem:[%s11555_s14 + $0x48] sm:$0xff] %v3514_v48  ;;  %s13073_s14 = sld [smem:[#allocation26_spill]] }
 0x565   : >> { %v3517_v11 = vpop.permute.xlu1 %3516 }
 0x566   : >> { %v3521_v17 = vsel %vm3232_vm0, %v11559_v33, %v3517_v11  ;;  %v3564_v28 = vpop.permute.xlu0 %3563 }
 0x567   : >> { %7589 = vst [vmem:[%s11573_s2 + $0x48] sm:$0xff] %v3521_v17  ;;  %v3568_v33 = vsel %vm3215_vm8, %v11583_v9, %v3564_v28 }
 0x568   : >> { %7591 = vst [vmem:[%s11565_s16 + $0x50] sm:$0xff] %v3553_v41 }
 0x569   : >> { %v3532_v24 = vpop.permute.xlu1 %3531 }
 0x56a   : >> { %v3536_v60 = vsel %vm3215_vm8, %v11592_v3, %v3532_v24  ;;  %v11902_v19 = vpop.permute.xlu0 %3591 }
 0x56b   : >> { %v3540_v21 = vsel %vm3219_vm11, %v3528_v2, %v3536_v60 }
 0x56c   : >> { %v3546_v8 = vsel %vm12993_vm4, %v3540_v21, 0.0  ;;  %vm13020_vm4 = vmmov %vm12982_vm1 }
 0x56d   : >> { %v3560_v7 = vpop.permute.xlu1 %3559  ;;  %7590 = vst [vmem:[%s11585_s8 + $0x50] sm:$0xff] %v3546_v8  ;;  %s12996_s8 = sld [smem:[#allocation30_spill]] }
 0x56e   : >> { %v3572_v18 = vsel %vm3219_vm11, %v3560_v7, %v3568_v33  ;;  %v3648_v3 = vpop.permute.xlu0 %3647 }
 0x56f   : >> { %v3578_v14 = vsel %vm12994_vm6, %v3572_v18, 0.0  ;;  %vm13021_vm6 = vmmov %vm12982_vm1 }
 0x570   : >> { %7592 = vst [vmem:[%s11579_s9 + $0x58] sm:$0xff] %v3578_v14  ;;  %s12999_s9 = sld [smem:[#allocation32_spill]] }
 0x571   : >> { %v3581_v23 = vpop.permute.xlu1 %3580 }
 0x572   : >> { %v3585_v56 = vsel %vm3232_vm0, %v11583_v9, %v3581_v23  ;;  %v3669_v0 = vpop.permute.xlu0 %3668 }
 0x573   : >> { %7593 = vst [vmem:[%s11597_s6 + $0x58] sm:$0xff] %v3585_v56  ;;  %v3673_v49 = vsel %vm3232_vm0, %v11613_v35, %v3669_v0  ;;  %s12998_s6 = sld [smem:[#allocation29_spill]] }
 0x574   : >> { %4059 = vst [vmem:[%s12992_s5] sm:$0xff] %v3673_v49 }
 0x575   : >> { %v3652_v6 = vpop.permute.xlu1 %3651 }
 0x576   : >> { %v3656_v58 = vsel %vm3215_vm8, %v11613_v35, %v3652_v6  ;;  %v3716_v10 = vpop.permute.xlu0 %3715 }
 0x577   : >> { %v3660_v12 = vsel %vm3219_vm11, %v3648_v3, %v3656_v58  ;;  %v3720_v54 = vsel %vm3215_vm8, %v11618_v61, %v3716_v10 }
 0x578   : >> { %v3666_v9 = vsel %vm12997_vm7, %v3660_v12, 0.0  ;;  %vm13022_vm7 = vcmp.eq.s32.totalorder %v9218_v52, 0 }
 0x579   : >> { %v3684_v20 = vpop.permute.xlu1 %3683  ;;  %4058 = vst [vmem:[%s12995_s18] sm:$0xff] %v3666_v9 }
 0x57a   : >> { %v3712_v35 = vpop.permute.xlu0 %3711  ;;  %v3688_v22 = vsel %vm3215_vm8, %v11627_v40, %v3684_v20 }
 0x57b   : >> { %v3724_v55 = vsel %vm3219_vm11, %v3712_v35, %v3720_v54 }
 0x57c   : >> { %v3730_v25 = vsel %vm12982_vm1, %v3724_v55, 0.0  ;;  %vm13023_vm1 = vmmov %vm13022_vm7 }
 0x57d   : >> { %v3680_v57 = vpop.permute.xlu1 %3679 }
 0x57e   : >> { %v3692_v5 = vsel %vm3219_vm11, %v3680_v57, %v3688_v22  ;;  %v3733_v32 = vpop.permute.xlu0 %3732 }
 0x57f   : >> { %v3698_v31 = vsel %vm13001_vm9, %v3692_v5, 0.0  ;;  %v3737_v27 = vsel %vm3232_vm0, %v11618_v61, %v3733_v32  ;;  %vm13024_vm9 = vmmov %vm13023_vm1 }
 0x580   : >> { %7644 = vst [vmem:[%s12996_s8 + $0x8] sm:$0xff] %v3698_v31 }
 0x581   : >> { %v3701_v37 = vpop.permute.xlu1 %3700  ;;  %7646 = vst [vmem:[%s12998_s6 + $0x10] sm:$0xff] %v3730_v25 }
 0x582   : >> { %v3705_v38 = vsel %vm3232_vm0, %v11627_v40, %v3701_v37  ;;  %v3780_v45 = vpop.permute.xlu0 %3779 }
 0x583   : >> { %7645 = vst [vmem:[%s12999_s9 + $0x8] sm:$0xff] %v3705_v38  ;;  %v3784_v26 = vsel %vm3215_vm8, %v11642_v13, %v3780_v45 }
 0x584   : >> { %7647 = vst [vmem:[%s13000_s27 + $0x10] sm:$0xff] %v3737_v27 }
 0x585   : >> { %v3748_v63 = vpop.permute.xlu1 %3747 }
 0x586   : >> { %v3776_v2 = vpop.permute.xlu0 %3775  ;;  %v3752_v50 = vsel %vm3215_vm8, %v11651_v1, %v3748_v63 }
 0x587   : >> { %v3788_v61 = vsel %vm3219_vm11, %v3776_v2, %v3784_v26 }
 0x588   : >> { %v3794_v59 = vsel %vm13006_vm2, %v3788_v61, 0.0  ;;  %vm13025_vm2 = vmmov %vm13023_vm1 }
 0x589   : >> { %v3744_v40 = vpop.permute.xlu1 %3743 }
 0x58a   : >> { %v3756_v36 = vsel %vm3219_vm11, %v3744_v40, %v3752_v50  ;;  %v3797_v34 = vpop.permute.xlu0 %3796 }
 0x58b   : >> { %v3762_v43 = vsel %vm13007_vm3, %v3756_v36, 0.0  ;;  %v3801_v42 = vsel %vm3232_vm0, %v11642_v13, %v3797_v34  ;;  %vm13026_vm3 = vmmov %vm13023_vm1 }
 0x58c   : >> { %7648 = vst [vmem:[%s13002_s30 + $0x18] sm:$0xff] %v3762_v43 }
 0x58d   : >> { %v3765_v48 = vpop.permute.xlu1 %3764  ;;  %7650 = vst [vmem:[%s13003_s10 + $0x20] sm:$0xff] %v3794_v59 }
 0x58e   : >> { %v3769_v41 = vsel %vm3232_vm0, %v11651_v1, %v3765_v48  ;;  %v3844_v11 = vpop.permute.xlu0 %3843 }
 0x58f   : >> { %7649 = vst [vmem:[%s13004_s1 + $0x18] sm:$0xff] %v3769_v41  ;;  %v3848_v28 = vsel %vm3215_vm8, %v11666_v47, %v3844_v11 }
 0x590   : >> { %7651 = vst [vmem:[%s13005_s11 + $0x20] sm:$0xff] %v3801_v42 }
 0x591   : >> { %v3812_v17 = vpop.permute.xlu1 %3811 }
 0x592   : >> { %v3840_v24 = vpop.permute.xlu0 %3839  ;;  %v3816_v60 = vsel %vm3215_vm8, %v11675_v44, %v3812_v17 }
 0x593   : >> { %v3852_v13 = vsel %vm3219_vm11, %v3840_v24, %v3848_v28 }
 0x594   : >> { %v3858_v21 = vsel %vm13012_vm5, %v3852_v13, 0.0  ;;  %vm13027_vm5 = vmmov %vm13023_vm1 }
 0x595   : >> { %v3808_v1 = vpop.permute.xlu1 %3807 }
 0x596   : >> { %v3820_v8 = vsel %vm3219_vm11, %v3808_v1, %v3816_v60  ;;  %v3861_v33 = vpop.permute.xlu0 %3860 }
 0x597   : >> { %v3826_v7 = vsel %vm13013_vm12, %v3820_v8, 0.0  ;;  %v3865_v18 = vsel %vm3232_vm0, %v11666_v47, %v3861_v33  ;;  %vm13028_vm12 = vmmov %vm13023_vm1 }
 0x598   : >> { %7652 = vst [vmem:[%s13008_s12 + $0x28] sm:$0xff] %v3826_v7 }
 0x599   : >> { %v3829_v3 = vpop.permute.xlu1 %3828  ;;  %7654 = vst [vmem:[%s13009_s13 + $0x30] sm:$0xff] %v3858_v21 }
 0x59a   : >> { %v3833_v14 = vsel %vm3232_vm0, %v11675_v44, %v3829_v3  ;;  %v3908_v23 = vpop.permute.xlu0 %3907 }
 0x59b   : >> { %7653 = vst [vmem:[%s13010_s3 + $0x28] sm:$0xff] %v3833_v14  ;;  %v3912_v0 = vsel %vm3215_vm8, %v11691_v39, %v3908_v23 }
 0x59c   : >> { %7655 = vst [vmem:[%s13011_s20 + $0x30] sm:$0xff] %v3865_v18 }
 0x59d   : >> { %v3876_v56 = vpop.permute.xlu1 %3875 }
 0x59e   : >> { %v3904_v49 = vpop.permute.xlu0 %3903  ;;  %v3880_v6 = vsel %vm3215_vm8, %v11706_v4, %v3876_v56 }
 0x59f   : >> { %v3916_v47 = vsel %vm3219_vm11, %v3904_v49, %v3912_v0 }
 0x5a0   : >> { %v3922_v58 = vsel %vm13015_vm13, %v3916_v47, 0.0  ;;  %vm13029_vm13 = vmmov %vm13023_vm1 }
 0x5a1   : >> { %v3872_v44 = vpop.permute.xlu1 %3871 }
 0x5a2   : >> { %v3884_v10 = vsel %vm3219_vm11, %v3872_v44, %v3880_v6  ;;  %v3925_v12 = vpop.permute.xlu0 %3924 }
 0x5a3   : >> { %v3890_v9 = vsel %vm13016_vm14, %v3884_v10, 0.0  ;;  %v3929_v20 = vsel %vm3232_vm0, %v11691_v39, %v3925_v12  ;;  %vm13030_vm14 = vmmov %vm13023_vm1 }
 0x5a4   : >> { %7656 = vst [vmem:[%s11693_s24 + $0x38] sm:$0xff] %v3890_v9  ;;  %s13017_s24 = sld [smem:[#allocation42_spill]] }
 0x5a5   : >> { %v3893_v54 = vpop.permute.xlu1 %3892  ;;  %7658 = vst [vmem:[%s13014_s21 + $0x40] sm:$0xff] %v3922_v58 }
 0x5a6   : >> { %v3897_v35 = vsel %vm3232_vm0, %v11706_v4, %v3893_v54  ;;  %v3972_v55 = vpop.permute.xlu0 %3971 }
 0x5a7   : >> { %7657 = vst [vmem:[%s11714_s28 + $0x38] sm:$0xff] %v3897_v35  ;;  %v3976_v2 = vsel %vm3215_vm8, %v11745_v15, %v3972_v55  ;;  %s12078_s28 = smov [#allocation13] }
 0x5a8   : >> { %7659 = vst [vmem:[%s11698_s4 + $0x40] sm:$0xff] %v3929_v20  ;;  %s12072_s4 = smov [#allocation12] }
 0x5a9   : >> { %v3940_v22 = vpop.permute.xlu1 %3939 }
 0x5aa   : >> { %v3957_v57 = vpop.permute.xlu0 %3956  ;;  %v3944_v39 = vsel %vm3215_vm8, %v11761_v62, %v3940_v22 }
 0x5ab   : >> { %v3961_v25 = vsel %vm3232_vm0, %v11761_v62, %v3957_v57 }
 0x5ac   : >> { %7661 = vst [vmem:[%s11751_s0 + $0x48] sm:$0xff] %v3961_v25 }
 0x5ad   : >> { %v3936_v5 = vpop.permute.xlu1 %3935 }
 0x5ae   : >> { %v3948_v32 = vsel %vm3219_vm11, %v3936_v5, %v3944_v39  ;;  %v4004_v4 = vpop.permute.xlu0 %4003 }
 0x5af   : >> { %v3954_v31 = vsel %vm13018_vm15, %v3948_v32, 0.0  ;;  %v4008_v37 = vsel %vm3215_vm8, %v11778_v29, %v4004_v4  ;;  %vm13031_vm15 = vmmov %vm13023_vm1 }
 0x5b0   : >> { %7660 = vst [vmem:[%s11747_s17 + $0x48] sm:$0xff] %v3954_v31 }
 0x5b1   : >> { %v3596_v27 = vpop.permute.xlu1 %3595 }
 0x5b2   : >> { %v3600_v62 = vsel %vm3215_vm8, %v11720_v16, %v3596_v27  ;;  %v4000_v38 = vpop.permute.xlu0 %3999 }
 0x5b3   : >> { %v3604_v45 = vsel %vm3219_vm11, %v11902_v19, %v3600_v62  ;;  %v4012_v63 = vsel %vm3219_vm11, %v4000_v38, %v4008_v37 }
 0x5b4   : >> { %v3610_v26 = vsel %vm13019_vm10, %v3604_v45, 0.0  ;;  %v4018_v16 = vsel %vm13020_vm4, %v4012_v63, 0.0  ;;  %vm13032_vm10 = vmmov %vm13023_vm1 }
 0x5b5   : >> { %7594 = vst [vmem:[%s13017_s24 + $0x60] sm:$0xf] %v3610_v26  ;;  %v3968_v61 = vpop.permute.xlu1 %3967  ;;  %vm13033_vm4 = vmmov %vm13023_vm1 }
 0x5b6   : >> { %v3980_v50 = vsel %vm3219_vm11, %v3968_v61, %v3976_v2  ;;  %v3613_v19 = vpop.permute.xlu0 %3612 }
 0x5b7   : >> { %v3986_v40 = vsel %vm13021_vm6, %v3980_v50, 0.0  ;;  %v3617_v59 = vsel %vm3232_vm0, %v11717_v53, %v3613_v19  ;;  %vm13034_vm6 = vmmov %vm13023_vm1 }
 0x5b8   : >> { %7595 = vst [vmem:[%s11587_s7 + $0x60] sm:$0xf] %v3617_v59  ;;  %7662 = vst [vmem:[%s11734_s29 + $0x50] sm:$0xff] %v3986_v40  ;;  %s12081_s7 = smov [#allocation15]  ;;  %s12232_s29 = smov [#allocation14] }
 0x5b9   : >> { %v3989_v36 = vpop.permute.xlu1 %3988  ;;  %7664 = vst [vmem:[%s11769_s19 + $0x58] sm:$0xff] %v4018_v16 }
 0x5ba   : >> { %v3993_v34 = vsel %vm3232_vm0, %v11745_v15, %v3989_v36 }
 0x5bb   : >> { %7663 = vst [vmem:[%s11797_s23 + $0x50] sm:$0xff] %v3993_v34 }
 0x5bc   : >> { %v4086_v53 = vld [vmem:[%s12072_s4] ss:$0 sm:$0xff]  ;;  %v7669_v42 = vld [vmem:[%s12072_s4 + $0x7] ss:$0 sm:$0xff]  ;;  %v7670_v41 = vld [vmem:[%s12072_s4 + $0x7] sm:$0xfe] }
 0x5bd   : >> { %v7668_v43 = vld [vmem:[%s12072_s4 - $0x1] sm:$0xfe]  ;;  %v7671_v15 = vld [vmem:[%s12072_s4 + $0xf] ss:$0 sm:$0xff]  ;;  %v7673_v11 = vld [vmem:[%s12072_s4 + $0xf] sm:$0xfe]  ;;  %v12091_v17 = vpop.permute.xlu1 %4035  ;;  %v4104_v28 = vsel %vm13023_vm1, %v7669_v42, %v7670_v41 }
 0x5be   : >> { %v4093_v48 = vsel %vm13022_vm7, %v4086_v53, %v7668_v43  ;;  %v4115_v24 = vsel %vm13024_vm9, %v7671_v15, %v7673_v11  ;;  %v7674_v13 = vld [vmem:[%s12072_s4 + $0x17] ss:$0 sm:$0xff]  ;;  %v7676_v60 = vld [vmem:[%s12072_s4 + $0x17] sm:$0xfe]  ;;  %v7677_v1 = vld [vmem:[%s12072_s4 + $0x1f] ss:$0 sm:$0xff]  ;;  %v4032_v53 = vpop.permute.xlu0 %4031  ;;  %v4040_v43 = vsel %vm3215_vm8, %v11831_v46, %v12091_v17 }
 0x5bf   : >> { %4096 = vst [vmem:[%s12072_s4] sm:$0xff] %v4093_v48  ;;  %7672 = vst [vmem:[%s12072_s4 + $0x8] sm:$0xff] %v4104_v28  ;;  %v4126_v21 = vsel %vm13025_vm2, %v7674_v13, %v7676_v60  ;;  %v7679_v8 = vld [vmem:[%s12072_s4 + $0x1f] sm:$0xfe]  ;;  %v7680_v33 = vld [vmem:[%s12072_s4 + $0x27] ss:$0 sm:$0xff] }
 0x5c0   : >> { %7675 = vst [vmem:[%s12072_s4 + $0x10] sm:$0xff] %v4115_v24  ;;  %v7682_v7 = vld [vmem:[%s12072_s4 + $0x27] sm:$0xfe]  ;;  %7678 = vst [vmem:[%s12072_s4 + $0x18] sm:$0xff] %v4126_v21  ;;  %v4137_v18 = vsel %vm13026_vm3, %v7677_v1, %v7679_v8  ;;  %v7683_v14 = vld [vmem:[%s12072_s4 + $0x2f] ss:$0 sm:$0xff] }
 0x5c1   : >> { %v4148_v3 = vsel %vm13027_vm5, %v7680_v33, %v7682_v7  ;;  %v7685_v23 = vld [vmem:[%s12072_s4 + $0x2f] sm:$0xfe]  ;;  %v7686_v56 = vld [vmem:[%s12072_s4 + $0x37] ss:$0 sm:$0xff]  ;;  %7681 = vst [vmem:[%s12072_s4 + $0x20] sm:$0xff] %v4137_v18  ;;  %v4021_v44 = vpop.permute.xlu1 %4020  ;;  %vm13035_vm7 = vmmov %vm13023_vm1  ;;  %v4044_v33 = vsel %vm3219_vm11, %v4032_v53, %v4040_v43 }
 0x5c2   : >> { %7684 = vst [vmem:[%s12072_s4 + $0x28] sm:$0xff] %v4148_v3  ;;  %v4159_v0 = vsel %vm13028_vm12, %v7683_v14, %v7685_v23  ;;  %v7688_v49 = vld [vmem:[%s12072_s4 + $0x37] sm:$0xfe]  ;;  %v7689_v47 = vld [vmem:[%s12072_s4 + $0x3f] ss:$0 sm:$0xff]  ;;  %v4025_v54 = vsel %vm3232_vm0, %v11778_v29, %v4021_v44  ;;  %vm13036_vm9 = vmmov %vm13023_vm1 }
 0x5c3   : >> { %v7691_v6 = vld [vmem:[%s12072_s4 + $0x3f] sm:$0xfe]  ;;  %7687 = vst [vmem:[%s12072_s4 + $0x30] sm:$0xff] %v4159_v0  ;;  %v4170_v58 = vsel %vm13029_vm13, %v7686_v56, %v7688_v49  ;;  %v7692_v12 = vld [vmem:[%s12072_s4 + $0x47] ss:$0 sm:$0xff]  ;;  %7665 = vst [vmem:[%s11784_s22 + $0x58] sm:$0xff] %v4025_v54 }
 0x5c4   : >> { %v4181_v10 = vsel %vm13030_vm14, %v7689_v47, %v7691_v6  ;;  %v7694_v9 = vld [vmem:[%s12072_s4 + $0x47] sm:$0xfe]  ;;  %v7695_v20 = vld [vmem:[%s12072_s4 + $0x4f] ss:$0 sm:$0xff]  ;;  %7690 = vst [vmem:[%s12072_s4 + $0x38] sm:$0xff] %v4170_v58 }
 0x5c5   : >> { %7693 = vst [vmem:[%s12072_s4 + $0x40] sm:$0xff] %v4181_v10  ;;  %v4192_v35 = vsel %vm13031_vm15, %v7692_v12, %v7694_v9  ;;  %v7697_v55 = vld [vmem:[%s12072_s4 + $0x4f] sm:$0xfe]  ;;  %v7698_v22 = vld [vmem:[%s12072_s4 + $0x57] ss:$0 sm:$0xff]  ;;  %v4053_v62 = vpop.permute.xlu1 %4052 }
 0x5c6   : >> { %v7700_v57 = vld [vmem:[%s12072_s4 + $0x57] sm:$0xfe]  ;;  %7696 = vst [vmem:[%s12072_s4 + $0x48] sm:$0xff] %v4192_v35  ;;  %v4203_v25 = vsel %vm13032_vm10, %v7695_v20, %v7697_v55  ;;  %v7701_v39 = vld [vmem:[%s12072_s4 + $0x5f] ss:$0 sm:$0xff]  ;;  %v4057_v2 = vsel %vm3232_vm0, %v11931_v30, %v4053_v62  ;;  %vm13037_vm0 = vmmov %vm13023_vm1  ;;  %vm13047_vm10 = vcmp.lt.s32.totalorder %v9215_v51, 100 }
 0x5c7   : >> { %v4214_v29 = vsel %vm13033_vm4, %v7698_v22, %v7700_v57  ;;  %v7703_v5 = vld [vmem:[%s12072_s4 + $0x5f] sm:$0xe]  ;;  %v12150_v32 = vld [vmem:[%s12072_s4 + $0x63] ss:$0 sm:$0xff]  ;;  %7699 = vst [vmem:[%s12072_s4 + $0x50] sm:$0xff] %v4203_v25  ;;  %vm13038_vm2 = vmmov %vm13037_vm0  ;;  %v4050_v44 = vsel %vm13047_vm10, %v4044_v33, 0.0 }
 0x5c8   : >> { %7702 = vst [vmem:[%s12072_s4 + $0x58] sm:$0xff] %v4214_v29  ;;  %v4225_v4 = vsel %vm13034_vm6, %v7701_v39, %v7703_v5  ;;  %v4350_v31 = vld [vmem:[%s12078_s28] ss:$0 sm:$0xff]  ;;  %v7745_v37 = vld [vmem:[%s12078_s28 + $0x7] ss:$0 sm:$0xff]  ;;  %vm13039_vm3 = vmmov %vm13037_vm0  ;;  %vm13048_vm4 = vcmp.eq.s32.totalorder %v9218_v52, 3 }
 0x5c9   : >> { %v7744_v27 = vld [vmem:[%s12078_s28 - $0x1] sm:$0xfe]  ;;  %7705 = vst [vmem:[%s12072_s4 + $0x60] sm:$0xf] %v4225_v4  ;;  %v7746_v45 = vld [vmem:[%s12078_s28 + $0x7] sm:$0xfe]  ;;  %vm13040_vm8 = vmmov %vm13037_vm0 }
 0x5ca   : >> { %v4357_v38 = vsel %vm13035_vm7, %v4350_v31, %v7744_v27  ;;  %v7747_v63 = vld [vmem:[%s12078_s28 + $0xf] ss:$0 sm:$0xff]  ;;  %v7749_v26 = vld [vmem:[%s12078_s28 + $0xf] sm:$0xfe]  ;;  %v4368_v61 = vsel %vm13023_vm1, %v7745_v37, %v7746_v45  ;;  %v7750_v50 = vld [vmem:[%s12078_s28 + $0x17] ss:$0 sm:$0xff] }
 0x5cb   : >> { %4360 = vst [vmem:[%s12078_s28] sm:$0xff] %v4357_v38  ;;  %v4379_v16 = vsel %vm13036_vm9, %v7747_v63, %v7749_v26  ;;  %v7752_v19 = vld [vmem:[%s12078_s28 + $0x17] sm:$0xfe]  ;;  %v7753_v40 = vld [vmem:[%s12078_s28 + $0x1f] ss:$0 sm:$0xff]  ;;  %7667 = vst [vmem:[%s11810_s26 + $0x60] sm:$0xf] %v4057_v2 }
 0x5cc   : >> { %7748 = vst [vmem:[%s12078_s28 + $0x8] sm:$0xff] %v4368_v61  ;;  %7751 = vst [vmem:[%s12078_s28 + $0x10] sm:$0xff] %v4379_v16  ;;  %v4390_v30 = vsel %vm13037_vm0, %v7750_v50, %v7752_v19  ;;  %v7755_v59 = vld [vmem:[%s12078_s28 + $0x1f] sm:$0xfe]  ;;  %v7756_v36 = vld [vmem:[%s12078_s28 + $0x27] ss:$0 sm:$0xff] }
 0x5cd   : >> { %v7758_v34 = vld [vmem:[%s12078_s28 + $0x27] sm:$0xfe]  ;;  %7754 = vst [vmem:[%s12078_s28 + $0x18] sm:$0xff] %v4390_v30  ;;  %v4401_v42 = vsel %vm13038_vm2, %v7753_v40, %v7755_v59  ;;  %v7759_v41 = vld [vmem:[%s12078_s28 + $0x2f] ss:$0 sm:$0xff]  ;;  %vm13041_vm5 = vmmov %vm13037_vm0  ;;  %vm13049_vm6 = vcmp.eq.s32.totalorder %v9218_v52, 7 }
 0x5ce   : >> { %v4412_v48 = vsel %vm13039_vm3, %v7756_v36, %v7758_v34  ;;  %v7761_v15 = vld [vmem:[%s12078_s28 + $0x2f] sm:$0xfe]  ;;  %v7762_v11 = vld [vmem:[%s12078_s28 + $0x37] ss:$0 sm:$0xff]  ;;  %7757 = vst [vmem:[%s12078_s28 + $0x20] sm:$0xff] %v4401_v42  ;;  %vm13042_vm12 = vmmov %vm13037_vm0 }
 0x5cf   : >> { %7760 = vst [vmem:[%s12078_s28 + $0x28] sm:$0xff] %v4412_v48  ;;  %v4423_v46 = vsel %vm13040_vm8, %v7759_v41, %v7761_v15  ;;  %v7764_v17 = vld [vmem:[%s12078_s28 + $0x37] sm:$0xfe]  ;;  %v7765_v28 = vld [vmem:[%s12078_s28 + $0x3f] ss:$0 sm:$0xff]  ;;  %vm13043_vm13 = vmmov %vm13037_vm0 }
 0x5d0   : >> { %v7767_v24 = vld [vmem:[%s12078_s28 + $0x3f] sm:$0xfe]  ;;  %7763 = vst [vmem:[%s12078_s28 + $0x30] sm:$0xff] %v4423_v46  ;;  %v4434_v13 = vsel %vm13041_vm5, %v7762_v11, %v7764_v17  ;;  %v7768_v1 = vld [vmem:[%s12078_s28 + $0x47] ss:$0 sm:$0xff]  ;;  %vm13044_vm14 = vmmov %vm13037_vm0 }
 0x5d1   : >> { %v4445_v60 = vsel %vm13042_vm12, %v7765_v28, %v7767_v24  ;;  %v7770_v21 = vld [vmem:[%s12078_s28 + $0x47] sm:$0xfe]  ;;  %v7771_v8 = vld [vmem:[%s12078_s28 + $0x4f] ss:$0 sm:$0xff]  ;;  %7766 = vst [vmem:[%s12078_s28 + $0x38] sm:$0xff] %v4434_v13  ;;  %vm13045_vm15 = vmmov %vm13037_vm0 }
 0x5d2   : >> { %7769 = vst [vmem:[%s12078_s28 + $0x40] sm:$0xff] %v4445_v60  ;;  %v4456_v7 = vsel %vm13043_vm13, %v7768_v1, %v7770_v21  ;;  %v7773_v18 = vld [vmem:[%s12078_s28 + $0x4f] sm:$0xfe]  ;;  %v7774_v3 = vld [vmem:[%s12078_s28 + $0x57] ss:$0 sm:$0xff]  ;;  %vm13046_vm11 = vmmov %vm13037_vm0 }
 0x5d3   : >> { %v7776_v14 = vld [vmem:[%s12078_s28 + $0x57] sm:$0xfe]  ;;  %7772 = vst [vmem:[%s12078_s28 + $0x48] sm:$0xff] %v4456_v7  ;;  %v4467_v23 = vsel %vm13044_vm14, %v7771_v8, %v7773_v18  ;;  %v7777_v0 = vld [vmem:[%s12078_s28 + $0x5f] ss:$0 sm:$0xff]  ;;  %vm13050_vm7 = vmmov %vm13049_vm6 }
 0x5d4   : >> { %v4478_v56 = vsel %vm13045_vm15, %v7774_v3, %v7776_v14  ;;  %v7779_v49 = vld [vmem:[%s12078_s28 + $0x5f] sm:$0xe]  ;;  %v7780_v47 = vld [vmem:[%s12078_s28 + $0x63] ss:$0 sm:$0xff]  ;;  %7775 = vst [vmem:[%s12078_s28 + $0x50] sm:$0xff] %v4467_v23  ;;  %vm13051_vm1 = vmmov %vm13049_vm6 }
 0x5d5   : >> { %7778 = vst [vmem:[%s12078_s28 + $0x58] sm:$0xff] %v4478_v56  ;;  %v4489_v6 = vsel %vm13046_vm11, %v7777_v0, %v7779_v49  ;;  %v4493_v58 = vld [vmem:[%s12081_s7] ss:$0 sm:$0xff]  ;;  %v7783_v10 = vld [vmem:[%s12081_s7 + $0x61] sm:$0x7]  ;;  %vm13052_vm9 = vmmov %vm13051_vm1 }
 0x5d6   : >> { %7781 = vst [vmem:[%s12078_s28 + $0x60] sm:$0xf] %v4489_v6  ;;  %7666 = vst [vmem:[%s11818_s25 + $0x60] sm:$0xf] %v4050_v44  ;;  %v4502_v12 = vsel %vm13048_vm4, %v7780_v47, %v7783_v10  ;;  %v7784_v9 = vld [vmem:[%s12081_s7 + $0x60] ss:$0 sm:$0xff] }
 0x5d7   : >> { %7782 = vst [vmem:[%s12078_s28 + $0x1] sm:$0x1] %v4493_v58  ;;  %v7786_v20 = vld [vmem:[%s12081_s7 + $0x59] sm:$0x7f]  ;;  %v7787_v54 = vld [vmem:[%s12081_s7 + $0x58] ss:$0 sm:$0xff]  ;;  %vm13053_vm0 = vmmov %vm13051_vm1 }
 0x5d8   : >> { %7785 = vst [vmem:[%s12081_s7 + $0x60] sm:$0xf] %v4502_v12  ;;  %v4511_v35 = vsel %vm13049_vm6, %v7784_v9, %v7786_v20  ;;  %v7789_v55 = vld [vmem:[%s12081_s7 + $0x51] sm:$0x7f]  ;;  %v7790_v22 = vld [vmem:[%s12081_s7 + $0x50] ss:$0 sm:$0xff]  ;;  %vm13054_vm2 = vmmov %vm13053_vm0 }
 0x5d9   : >> { %v7792_v57 = vld [vmem:[%s12081_s7 + $0x49] sm:$0x7f]  ;;  %7788 = vst [vmem:[%s12081_s7 + $0x58] sm:$0xff] %v4511_v35  ;;  %v4520_v25 = vsel %vm13050_vm7, %v7787_v54, %v7789_v55  ;;  %v7793_v39 = vld [vmem:[%s12081_s7 + $0x48] ss:$0 sm:$0xff]  ;;  %vm13055_vm3 = vmmov %vm13053_vm0 }
 0x5da   : >> { %v4529_v29 = vsel %vm13051_vm1, %v7790_v22, %v7792_v57  ;;  %v7795_v5 = vld [vmem:[%s12081_s7 + $0x41] sm:$0x7f]  ;;  %v7796_v4 = vld [vmem:[%s12081_s7 + $0x40] ss:$0 sm:$0xff]  ;;  %7791 = vst [vmem:[%s12081_s7 + $0x50] sm:$0xff] %v4520_v25  ;;  %vm13056_vm8 = vmmov %vm13053_vm0 }
 0x5db   : >> { %7794 = vst [vmem:[%s12081_s7 + $0x48] sm:$0xff] %v4529_v29  ;;  %v4538_v31 = vsel %vm13052_vm9, %v7793_v39, %v7795_v5  ;;  %v7798_v27 = vld [vmem:[%s12081_s7 + $0x39] sm:$0x7f]  ;;  %v7799_v37 = vld [vmem:[%s12081_s7 + $0x38] ss:$0 sm:$0xff]  ;;  %vm13057_vm5 = vmmov %vm13053_vm0 }
 0x5dc   : >> { %v7801_v62 = vld [vmem:[%s12081_s7 + $0x31] sm:$0x7f]  ;;  %7797 = vst [vmem:[%s12081_s7 + $0x40] sm:$0xff] %v4538_v31  ;;  %v4547_v38 = vsel %vm13053_vm0, %v7796_v4, %v7798_v27  ;;  %v7802_v63 = vld [vmem:[%s12081_s7 + $0x30] ss:$0 sm:$0xff]  ;;  %vm13058_vm12 = vmmov %vm13053_vm0 }
 0x5dd   : >> { %v4556_v45 = vsel %vm13054_vm2, %v7799_v37, %v7801_v62  ;;  %v7804_v26 = vld [vmem:[%s12081_s7 + $0x29] sm:$0x7f]  ;;  %v7805_v2 = vld [vmem:[%s12081_s7 + $0x28] ss:$0 sm:$0xff]  ;;  %7800 = vst [vmem:[%s12081_s7 + $0x38] sm:$0xff] %v4547_v38  ;;  %vm13059_vm13 = vmmov %vm13048_vm4 }
 0x5de   : >> { %7803 = vst [vmem:[%s12081_s7 + $0x30] sm:$0xff] %v4556_v45  ;;  %v4565_v61 = vsel %vm13055_vm3, %v7802_v63, %v7804_v26  ;;  %v7807_v16 = vld [vmem:[%s12081_s7 + $0x21] sm:$0x7f]  ;;  %v7808_v50 = vld [vmem:[%s12081_s7 + $0x20] ss:$0 sm:$0xff]  ;;  %vm13060_vm14 = vmmov %vm13053_vm0 }
 0x5df   : >> { %v7810_v19 = vld [vmem:[%s12081_s7 + $0x19] sm:$0x7f]  ;;  %7806 = vst [vmem:[%s12081_s7 + $0x28] sm:$0xff] %v4565_v61  ;;  %v4574_v40 = vsel %vm13056_vm8, %v7805_v2, %v7807_v16  ;;  %v7811_v59 = vld [vmem:[%s12081_s7 + $0x18] ss:$0 sm:$0xff]  ;;  %vm13061_vm15 = vmmov %vm13053_vm0 }
 0x5e0   : >> { %v4583_v30 = vsel %vm13057_vm5, %v7808_v50, %v7810_v19  ;;  %v7813_v36 = vld [vmem:[%s12081_s7 + $0x11] sm:$0x7f]  ;;  %v7814_v34 = vld [vmem:[%s12081_s7 + $0x10] ss:$0 sm:$0xff]  ;;  %v4229_v53 = vld [vmem:[%s12232_s29] ss:$0 sm:$0xff] }
 0x5e1   : >> { %v7707_v43 = vld [vmem:[%s12232_s29 + $0x61] sm:$0x7]  ;;  %v7708_v42 = vld [vmem:[%s12232_s29 + $0x60] ss:$0 sm:$0xff]  ;;  %7809 = vst [vmem:[%s12081_s7 + $0x20] sm:$0xff] %v4574_v40  ;;  %7812 = vst [vmem:[%s12081_s7 + $0x18] sm:$0xff] %v4583_v30  ;;  %v4592_v48 = vsel %vm13058_vm12, %v7811_v59, %v7813_v36 }
 0x5e2   : >> { %7706 = vst [vmem:[%s12072_s4 + $0x1] sm:$0x1] %v4229_v53  ;;  %v4238_v41 = vsel %vm13059_vm13, %v12150_v32, %v7707_v43  ;;  %v7710_v15 = vld [vmem:[%s12232_s29 + $0x59] sm:$0x7f]  ;;  %v7711_v11 = vld [vmem:[%s12232_s29 + $0x58] ss:$0 sm:$0xff]  ;;  %vm13062_vm11 = vmmov %vm13053_vm0 }
 0x5e3   : >> { %v7713_v46 = vld [vmem:[%s12232_s29 + $0x51] sm:$0x7f]  ;;  %7815 = vst [vmem:[%s12081_s7 + $0x10] sm:$0xff] %v4592_v48  ;;  %7709 = vst [vmem:[%s12232_s29 + $0x60] sm:$0xf] %v4238_v41  ;;  %v4247_v17 = vsel %vm13060_vm14, %v7708_v42, %v7710_v15 }
 0x5e4   : >> { %v4256_v28 = vsel %vm13061_vm15, %v7711_v11, %v7713_v46  ;;  %v7714_v24 = vld [vmem:[%s12232_s29 + $0x50] ss:$0 sm:$0xff]  ;;  %v7716_v32 = vld [vmem:[%s12232_s29 + $0x49] sm:$0x7f]  ;;  %v7717_v13 = vld [vmem:[%s12232_s29 + $0x48] ss:$0 sm:$0xff] }
 0x5e5   : >> { %7712 = vst [vmem:[%s12232_s29 + $0x58] sm:$0xff] %v4247_v17  ;;  %7715 = vst [vmem:[%s12232_s29 + $0x50] sm:$0xff] %v4256_v28  ;;  %v4265_v60 = vsel %vm13062_vm11, %v7714_v24, %v7716_v32  ;;  %v7719_v1 = vld [vmem:[%s12232_s29 + $0x41] sm:$0x7f]  ;;  %v7720_v21 = vld [vmem:[%s12232_s29 + $0x40] ss:$0 sm:$0xff] }
 0x5e6   : >> { %v7722_v8 = vld [vmem:[%s12232_s29 + $0x39] sm:$0x7f]  ;;  %7718 = vst [vmem:[%s12232_s29 + $0x48] sm:$0xff] %v4265_v60  ;;  %vm13063_vm10 = vmmov %vm13053_vm0  ;;  %v7723_v18 = vld [vmem:[%s12232_s29 + $0x38] ss:$0 sm:$0xff] }
 0x5e7   : >> { %v4274_v33 = vsel %vm13063_vm10, %v7717_v13, %v7719_v1  ;;  %vm13064_vm4 = vmmov %vm13053_vm0  ;;  %v7725_v3 = vld [vmem:[%s12232_s29 + $0x31] sm:$0x7f]  ;;  %v7726_v14 = vld [vmem:[%s12232_s29 + $0x30] ss:$0 sm:$0xff] }
 0x5e8   : >> { %v4283_v7 = vsel %vm13064_vm4, %v7720_v21, %v7722_v8  ;;  %7721 = vst [vmem:[%s12232_s29 + $0x40] sm:$0xff] %v4274_v33  ;;  %vm13065_vm6 = vmmov %vm13053_vm0  ;;  %v7728_v56 = vld [vmem:[%s12232_s29 + $0x29] sm:$0x7f]  ;;  %v7729_v0 = vld [vmem:[%s12232_s29 + $0x28] ss:$0 sm:$0xff] }
 0x5e9   : >> { %7724 = vst [vmem:[%s12232_s29 + $0x38] sm:$0xff] %v4283_v7  ;;  %v4292_v23 = vsel %vm13065_vm6, %v7723_v18, %v7725_v3  ;;  %v7731_v49 = vld [vmem:[%s12232_s29 + $0x21] sm:$0x7f]  ;;  %vm13066_vm7 = vmmov %vm13053_vm0  ;;  %v7732_v44 = vld [vmem:[%s12232_s29 + $0x20] ss:$0 sm:$0xff] }
 0x5ea   : >> { %7727 = vst [vmem:[%s12232_s29 + $0x30] sm:$0xff] %v4292_v23  ;;  %v4301_v47 = vsel %vm13066_vm7, %v7726_v14, %v7728_v56  ;;  %vm13067_vm1 = vmmov %vm13053_vm0  ;;  %v7734_v58 = vld [vmem:[%s12232_s29 + $0x19] sm:$0x7f]  ;;  %v7735_v10 = vld [vmem:[%s12232_s29 + $0x18] ss:$0 sm:$0xff] }
 0x5eb   : >> { %v4310_v6 = vsel %vm13067_vm1, %v7729_v0, %v7731_v49  ;;  %7730 = vst [vmem:[%s12232_s29 + $0x28] sm:$0xff] %v4301_v47  ;;  %vm13068_vm9 = vmmov %vm13053_vm0  ;;  %v7737_v9 = vld [vmem:[%s12232_s29 + $0x11] sm:$0x7f]  ;;  %v7738_v20 = vld [vmem:[%s12232_s29 + $0x10] ss:$0 sm:$0xff] }
 0x5ec   : >> { %7733 = vst [vmem:[%s12232_s29 + $0x20] sm:$0xff] %v4310_v6  ;;  %v4319_v12 = vsel %vm13068_vm9, %v7732_v44, %v7734_v58  ;;  %v7740_v54 = vld [vmem:[%s12232_s29 + $0x9] sm:$0x7f]  ;;  %v4328_v35 = vsel %vm13053_vm0, %v7735_v10, %v7737_v9  ;;  %vm13069_vm2 = vmmov %vm13053_vm0  ;;  %v7741_v22 = vld [vmem:[%s12232_s29 + $0x8] ss:$0 sm:$0xff] }
 0x5ed   : >> { %7736 = vst [vmem:[%s12232_s29 + $0x18] sm:$0xff] %v4319_v12  ;;  %v4337_v55 = vsel %vm13069_vm2, %v7738_v20, %v7740_v54  ;;  %v7743_v57 = vld [vmem:[%s12232_s29 + $0x1] sm:$0x7f]  ;;  %v7816_v25 = vld [vmem:[%s12081_s7 + $0x9] sm:$0x7f]  ;;  %7739 = vst [vmem:[%s12232_s29 + $0x10] sm:$0xff] %v4328_v35 }
 0x5ee   : >> { %7742 = vst [vmem:[%s12232_s29 + $0x8] sm:$0xff] %v4337_v55  ;;  %vm13070_vm3 = vmmov %vm13053_vm0  ;;  %v7817_v5 = vld [vmem:[%s12081_s7 + $0x8] ss:$0 sm:$0xff]  ;;  %v7819_v4 = vld [vmem:[%s12081_s7 + $0x1] sm:$0x7f] }
 0x5ef   : >> { %v4345_v29 = vsel %vm13070_vm3, %v7741_v22, %v7743_v57  ;;  %vm13071_vm8 = vmmov %vm13053_vm0 }
 0x5f0   : >> { %v4601_v39 = vsel %vm13071_vm8, %v7814_v34, %v7816_v25  ;;  %4347 = vst [vmem:[%s12232_s29] sm:$0xff] %v4345_v29  ;;  %vm13072_vm5 = vmmov %vm13053_vm0  ;;  %s1248_s29 = sadd.s32 1, %s13073_s14  }
 0x5f1   : >> { %7818 = vst [vmem:[%s12081_s7 + $0x8] sm:$0xff] %v4601_v39  ;;  %v4609_v31 = vsel %vm13072_vm5, %v7817_v5, %v7819_v4  ;;  %p1245_p13 = scmp.ge.s32.totalorder %s1248_s29, 199  }
 0x5f2   : >> { %4611 = vst [vmem:[%s12081_s7] sm:$0xff] %v4609_v31  ;;  %s13074_s28 = sld [smem:[#allocation25_spill]] (%p1245_p13)  ;;  %s12375_s16 = smov (%p1245_p13), [#allocation12]  ;;  %v904_v51 = vmov (%p1245_p13), %v9215_v51  ;;  %vm13075_vm12 = vcmp.lt.s32.totalorder (%p1245_p13), %v9215_v51, 100  ;;  %v907_v52 = vmov (%p1245_p13), %v9218_v52 }
 0x5f3   : > { %1247 = sbr.rel (!%p1245_p13) target bundleno = 482 (0x1e2), region = 1263  ;;  %v775_v27 = vld [vmem:[%s12375_s16] sm:$0xff] (%p1245_p13)  ;;  %v8092_v37 = vld [vmem:[%s12375_s16 + $0x8] sm:$0xff] (%p1245_p13)  ;;  %v8093_v62 = vld [vmem:[%s12375_s16 + $0x10] sm:$0xff] (%p1245_p13)  ;;  %s12438_s2 = smov (%p1245_p13), [#allocation13]  ;;  %v12470_v51 = vmov (%p1245_p13), %v9215_v51  ;;  %v12473_v52 = vmov (%p1245_p13), %v9218_v52 }
 0x5f4   : > { %v776_v38 = vsel (%p1245_p13), %vm13075_vm12, %v775_v27, 0.0  ;;  %vm13076_vm13 = vmmov (%p1245_p13), %vm13075_vm12  ;;  %v8094_v26 = vld [vmem:[%s12375_s16 + $0x18] sm:$0xff] (%p1245_p13)  ;;  %v8095_v2 = vld [vmem:[%s12375_s16 + $0x20] sm:$0xff] (%p1245_p13)  ;;  %s12549_s17 = smov (%p1245_p13), [#allocation14]  ;;  %s12650_s0 = smov (%p1245_p13), [#allocation15] }
 0x5f5   : > { %v784_v45 = vsel (%p1245_p13), %vm13076_vm13, %v8092_v37, 0.0  ;;  %vm13077_vm14 = vmmov (%p1245_p13), %vm13075_vm12  ;;  %v12390_v61 = vmul.f32 (%p1245_p13), %v776_v38, %v776_v38  ;;  %v8096_v40 = vld [vmem:[%s12375_s16 + $0x28] sm:$0xff] (%p1245_p13)  ;;  %v8097_v34 = vld [vmem:[%s12375_s16 + $0x30] sm:$0xff] (%p1245_p13)  ;;  %v787_v38 = vadd.s32 (%p1245_p13), 8, %v12473_v52 }
 0x5f6   : > { %v794_v63 = vsel (%p1245_p13), %vm13077_vm14, %v8093_v62, 0.0  ;;  %v12392_v16 = vmul.f32 (%p1245_p13), %v784_v45, %v784_v45  ;;  %vm13078_vm15 = vmmov (%p1245_p13), %vm13075_vm12  ;;  %v8098_v48 = vld [vmem:[%s12375_s16 + $0x38] sm:$0xff] (%p1245_p13)  ;;  %v8099_v46 = vld [vmem:[%s12375_s16 + $0x40] sm:$0xff] (%p1245_p13)  ;;  %vm780_vm14 = vcmp.eq.s32.totalorder (%p1245_p13), %v12473_v52, %v12470_v51 }
 0x5f7   : > { %v12394_v50 = vmul.f32 (%p1245_p13), %v794_v63, %v794_v63  ;;  %v804_v19 = vsel (%p1245_p13), %vm13078_vm15, %v8094_v26, 0.0  ;;  %vm13079_vm11 = vmmov (%p1245_p13), %vm13075_vm12  ;;  %v8100_v32 = vld [vmem:[%s12375_s16 + $0x48] sm:$0xff] (%p1245_p13)  ;;  %v8101_v21 = vld [vmem:[%s12375_s16 + $0x50] sm:$0xff] (%p1245_p13) }
 0x5f8   : > { %s5576_s15 = sadd.s32 1, %s13074_s28   ;;  %v814_v30 = vsel %vm13079_vm11, %v8095_v2, 0.0  ;;  %v791_v59 = vadd.f32 %v12392_v16, %v12390_v61  ;;  %v12403_v36 = vmul.f32 %v804_v19, %v804_v19  ;;  %vm13080_vm10 = vmmov %vm13079_vm11  ;;  %v8102_v18 = vld [vmem:[%s12375_s16 + $0x58] sm:$0xff]  ;;  %v8103_v56 = vld [vmem:[%s12375_s16 + $0x60] sm:$0xf] }
 0x5f9   : > { %v824_v53 = vsel %vm13080_vm10, %v8096_v40, 0.0  ;;  %v12409_v42 = vmul.f32 %v814_v30, %v814_v30  ;;  %vm13081_vm4 = vmmov %vm13080_vm10  ;;  %v914_v6 = vld [vmem:[%s12438_s2] sm:$0xff]  ;;  %v8104_v12 = vld [vmem:[%s12438_s2 + $0x8] sm:$0xff]  ;;  %vm788_vm10 = vcmp.eq.s32.totalorder %v787_v38, %v12470_v51  ;;  %p1241_p0 = scmp.ge.s32.totalorder %s5576_s15, 15  ;;  %s13124_s28 = smov %s5576_s15 }
 0x5fa   : > { %v801_v43 = vadd.f32 %v12394_v50, %v791_v59  ;;  %v834_v41 = vsel %vm13081_vm4, %v8097_v34, 0.0  ;;  %v12415_v11 = vmul.f32 %v824_v53, %v824_v53  ;;  %vm13082_vm6 = vmmov %vm13081_vm4  ;;  %v8105_v35 = vld [vmem:[%s12438_s2 + $0x10] sm:$0xff]  ;;  %v8106_v22 = vld [vmem:[%s12438_s2 + $0x18] sm:$0xff]  ;;  %v781_v59 = vsel %vm780_vm14, 0.0, %v12390_v61 }
 0x5fb   : > { %v844_v17 = vsel %vm13082_vm6, %v8098_v48, 0.0  ;;  %v12421_v24 = vmul.f32 %v834_v41, %v834_v41  ;;  %vm13083_vm7 = vmmov %vm13081_vm4  ;;  %v8107_v57 = vld [vmem:[%s12438_s2 + $0x20] sm:$0xff]  ;;  %v8108_v37 = vld [vmem:[%s12438_s2 + $0x28] sm:$0xff]  ;;  %v797_v34 = vadd.s32 16, %v12473_v52  ;;  %v807_v53 = vadd.s32 24, %v12473_v52 }
 0x5fc   : > { %v811_v15 = vadd.f32 %v12403_v36, %v801_v43  ;;  %v854_v13 = vsel %vm13083_vm7, %v8099_v46, 0.0  ;;  %v12427_v1 = vmul.f32 %v844_v17, %v844_v17  ;;  %vm13084_vm1 = vmmov %vm13081_vm4  ;;  %v8109_v62 = vld [vmem:[%s12438_s2 + $0x30] sm:$0xff]  ;;  %v817_v43 = vadd.s32 32, %v12473_v52  ;;  %v8110_v41 = vld [vmem:[%s12438_s2 + $0x38] sm:$0xff] }
 0x5fd   : > { %v864_v8 = vsel %vm13084_vm1, %v8100_v32, 0.0  ;;  %v12433_v7 = vmul.f32 %v854_v13, %v854_v13  ;;  %vm13085_vm9 = vmmov %vm13084_vm1  ;;  %v827_v46 = vadd.s32 40, %v12473_v52  ;;  %v837_v17 = vadd.s32 48, %v12473_v52  ;;  %v8111_v13 = vld [vmem:[%s12438_s2 + $0x40] sm:$0xff] }
 0x5fe   : > { %v821_v28 = vadd.f32 %v12409_v42, %v811_v15  ;;  %v874_v3 = vsel %vm13085_vm9, %v8101_v21, 0.0  ;;  %v12441_v23 = vmul.f32 %v864_v8, %v864_v8  ;;  %vm13086_vm0 = vmmov %vm13084_vm1  ;;  %v789_v15 = vsel %vm788_vm10, 0.0, %v12392_v16 }
 0x5ff   : > { %v884_v0 = vsel %vm13086_vm0, %v8102_v18, 0.0  ;;  %v12447_v47 = vmul.f32 %v874_v3, %v874_v3  ;;  %vm13087_vm2 = vmmov %vm13086_vm0  ;;  %v790_v61 = vadd.f32 %v789_v15, %v781_v59  ;;  %vm798_vm4 = vcmp.eq.s32.totalorder %v797_v34, %v12470_v51 }
 0x600   : > { %v831_v60 = vadd.f32 %v12415_v11, %v821_v28  ;;  %v894_v44 = vsel %vm13087_vm2, %v8103_v56, 0.0  ;;  %v12453_v10 = vmul.f32 %v884_v0, %v884_v0  ;;  %vm13088_vm3 = vmmov %vm13086_vm0  ;;  %vm808_vm6 = vcmp.eq.s32.totalorder %v807_v53, %v12470_v51 }
 0x601   : > { %v915_v9 = vsel %vm13088_vm3, %v914_v6, 0.0  ;;  %v12459_v54 = vmul.f32 %v894_v44, %v894_v44  ;;  %vm13089_vm8 = vmmov %vm13086_vm0  ;;  %vm818_vm7 = vcmp.eq.s32.totalorder %v817_v43, %v12470_v51  ;;  %v809_v16 = vsel %vm808_vm6, 0.0, %v12403_v36  ;;  %v8113_v44 = vld [vmem:[%s12438_s2 + $0x50] sm:$0xff]  ;;  %v8116_v43 = vld [vmem:[%s12549_s17 + $0x8] sm:$0xff] }
 0x602   : > { %v841_v33 = vadd.f32 %v12421_v24, %v831_v60  ;;  %v921_v55 = vsel %vm13089_vm8, %v8104_v12, 0.0  ;;  %v12467_v29 = vmul.f32 %v915_v9, %v915_v9  ;;  %vm13090_vm5 = vmmov %vm13086_vm0  ;;  %v799_v60 = vsel %vm798_vm4, 0.0, %v12394_v50 }
 0x603   : > { %v927_v39 = vsel %vm13090_vm5, %v8105_v35, 0.0  ;;  %v12478_v4 = vmul.f32 %v921_v55, %v921_v55  ;;  %vm13091_vm12 = vmmov %vm13086_vm0  ;;  %v800_v8 = vadd.f32 %v799_v60, %v790_v61  ;;  %vm828_vm9 = vcmp.eq.s32.totalorder %v827_v46, %v12470_v51  ;;  %v8114_v55 = vld [vmem:[%s12438_s2 + $0x58] sm:$0xff] }
 0x604   : > { %v851_v14 = vadd.f32 %v12427_v1, %v841_v33  ;;  %v933_v31 = vsel %vm13091_vm12, %v8106_v22, 0.0  ;;  %vm13092_vm13 = vmmov %vm13086_vm0  ;;  %v12490_v63 = vmul.f32 %v927_v39, %v927_v39  ;;  %v847_v33 = vadd.s32 56, %v12473_v52 }
 0x605   : > { %v939_v27 = vsel %vm13092_vm13, %v8107_v57, 0.0  ;;  %v12492_v26 = vmul.f32 %v933_v31, %v933_v31  ;;  %vm13093_vm15 = vmmov %vm13086_vm0  ;;  %v819_v56 = vsel %vm818_vm7, 0.0, %v12409_v42  ;;  %v963_v50 = vsel %vm13086_vm0, %v8111_v13, 0.0  ;;  %v8115_v31 = vld [vmem:[%s12438_s2 + $0x60] sm:$0xf] }
 0x606   : > { %v861_v49 = vadd.f32 %v12433_v7, %v851_v14  ;;  %v12494_v2 = vmul.f32 %v939_v27, %v939_v27  ;;  %v945_v40 = vsel %vm13093_vm15, %v8108_v37, 0.0  ;;  %vm13094_vm11 = vmmov %vm13086_vm0  ;;  %v8112_v14 = vld [vmem:[%s12438_s2 + $0x48] sm:$0xff]  ;;  %v810_v36 = vadd.f32 %v809_v16, %v800_v8  ;;  %v8118_v16 = vld [vmem:[%s12549_s17 + $0x18] sm:$0xff] }
 0x607   : > { %v951_v30 = vsel %vm13094_vm11, %v8109_v62, 0.0  ;;  %v12515_v32 = vmul.f32 %v945_v40, %v945_v40  ;;  %vm13095_vm1 = vmmov %vm13086_vm0  ;;  %vm838_vm2 = vcmp.eq.s32.totalorder %v837_v17, %v12470_v51  ;;  %v857_v0 = vadd.s32 64, %v12473_v52  ;;  %v8117_v17 = vld [vmem:[%s12549_s17 + $0x10] sm:$0xff] }
 0x608   : > { %v871_v58 = vadd.f32 %v12441_v23, %v861_v49  ;;  %v957_v21 = vsel %vm13095_vm1, %v8110_v41, 0.0  ;;  %v12525_v3 = vmul.f32 %v951_v30, %v951_v30  ;;  %vm13096_vm3 = vmmov %vm13086_vm0  ;;  %v820_v42 = vadd.f32 %v819_v56, %v810_v36 }
 0x609   : > { %v12534_v6 = vmul.f32 %v957_v21, %v957_v21  ;;  %v969_v12 = vsel %vm13096_vm3, %v8112_v14, 0.0  ;;  %vm848_vm8 = vcmp.eq.s32.totalorder %v847_v33, %v12470_v51  ;;  %v867_v9 = vadd.s32 72, %v12473_v52  ;;  %vm13097_vm5 = vmmov %vm13086_vm0  ;;  %v8119_v14 = vld [vmem:[%s12549_s17 + $0x20] sm:$0xff] }
 0x60a   : > { %v881_v20 = vadd.f32 %v12447_v47, %v871_v58  ;;  %v829_v58 = vsel %vm828_vm9, 0.0, %v12415_v11  ;;  %v12543_v35 = vmul.f32 %v963_v50, %v963_v50  ;;  %v839_v22 = vsel %vm838_vm2, 0.0, %v12421_v24  ;;  %vm13098_vm13 = vmmov %vm13086_vm0 }
 0x60b   : > { %v975_v57 = vsel %vm13097_vm5, %v8113_v44, 0.0  ;;  %v830_v11 = vadd.f32 %v829_v58, %v820_v42  ;;  %vm858_vm12 = vcmp.eq.s32.totalorder %v857_v0, %v12470_v51  ;;  %v849_v27 = vsel %vm848_vm8, 0.0, %v12427_v1  ;;  %vm13099_vm15 = vmmov %vm13086_vm0  ;;  %v8121_v42 = vld [vmem:[%s12549_s17 + $0x30] sm:$0xff] }
 0x60c   : > { %v891_v25 = vadd.f32 %v12453_v10, %v881_v20  ;;  %v981_v24 = vsel %vm13098_vm13, %v8114_v55, 0.0  ;;  %vm868_vm14 = vcmp.eq.s32.totalorder %v867_v9, %v12470_v51  ;;  %v887_v62 = vadd.s32 88, %v12473_v52  ;;  %vm13100_vm10 = vmmov %vm13086_vm0 }
 0x60d   : > { %v840_v37 = vadd.f32 %v839_v22, %v830_v11  ;;  %v859_v40 = vsel %vm858_vm12, 0.0, %v12433_v7  ;;  %v987_v30 = vsel %vm13099_vm15, %v8115_v31, 0.0  ;;  %v897_v59 = vadd.s32 96, %v12473_v52  ;;  %vm13101_vm6 = vmmov %vm13086_vm0 }
 0x60e   : > { %v901_v5 = vadd.f32 %v12459_v54, %v891_v25  ;;  %v877_v25 = vadd.s32 80, %v12473_v52  ;;  %v12572_v53 = vmul.f32 %v981_v24, %v981_v24  ;;  %vm888_vm4 = vcmp.eq.s32.totalorder %v887_v62, %v12470_v51  ;;  %vm13102_vm1 = vmmov %vm13086_vm0 }
 0x60f   : > { %v850_v1 = vadd.f32 %v849_v27, %v840_v37  ;;  %v12580_v46 = vmul.f32 %v987_v30, %v987_v30  ;;  %vm898_vm7 = vcmp.eq.s32.totalorder %v897_v59, %v12470_v51  ;;  %v889_v21 = vsel %vm888_vm4, 0.0, %v12453_v10  ;;  %vm13103_vm9 = vmmov %vm13086_vm0  ;;  %v8123_v27 = vld [vmem:[%s12549_s17 + $0x40] sm:$0xff] }
 0x610   : > { %v918_v45 = vadd.f32 %v12467_v29, %v901_v5  ;;  %v12554_v5 = vmul.f32 %v969_v12, %v969_v12  ;;  %vm878_vm11 = vcmp.eq.s32.totalorder %v877_v25, %v12470_v51  ;;  %v1016_v8 = vsel %vm13102_vm1, %v8117_v17, 0.0  ;;  %vm13104_vm2 = vmmov %vm13086_vm0 }
 0x611   : > { %v860_v7 = vadd.f32 %v859_v40, %v850_v1  ;;  %v879_v61 = vsel %vm878_vm11, 0.0, %v12447_v47  ;;  %v899_v56 = vsel %vm898_vm7, 0.0, %v12459_v54  ;;  %v1022_v50 = vsel %vm13103_vm9, %v8118_v16, 0.0  ;;  %vm13105_vm3 = vmmov %vm13086_vm0  ;;  %v8125_v1 = vld [vmem:[%s12549_s17 + $0x50] sm:$0xff] }
 0x612   : > { %v924_v19 = vadd.f32 %v12478_v4, %v918_v45  ;;  %v12563_v45 = vmul.f32 %v975_v57, %v975_v57  ;;  %v12602_v10 = vmul.f32 %v1016_v8, %v1016_v8  ;;  %v993_v51 = vmov %v9215_v51  ;;  %v8122_v57 = vld [vmem:[%s12549_s17 + $0x38] sm:$0xff]  ;;  %vm13106_vm8 = vmmov %vm13086_vm0 }
 0x613   : > { %v996_v52 = vmov %v9218_v52  ;;  %v1028_v44 = vsel %vm13086_vm0, %v8119_v14, 0.0  ;;  %v12610_v12 = vmul.f32 %v1022_v50, %v1022_v50  ;;  %v1040_v11 = vsel %vm13105_vm3, %v8121_v42, 0.0  ;;  %vm13107_vm5 = vmmov %vm13086_vm0  ;;  %v8129_v50 = vld [vmem:[%s12650_s0 + $0x10] sm:$0xff] }
 0x614   : > { %v930_v48 = vadd.f32 %v12490_v63, %v924_v19  ;;  %v1003_v19 = vld [vmem:[%s12549_s17] sm:$0xff]  ;;  %v12617_v22 = vmul.f32 %v1028_v44, %v1028_v44  ;;  %v12631_v62 = vmul.f32 %v1040_v11, %v1040_v11  ;;  %vm13108_vm12 = vmmov %vm13086_vm0  ;;  %v8130_v44 = vld [vmem:[%s12650_s0 + $0x18] sm:$0xff]  ;;  %v1085_v52 = vmov %v9218_v52 }
 0x615   : > { %v1004_v41 = vsel %vm13100_vm10, %v1003_v19, 0.0  ;;  %vm13109_vm13 = vmmov %vm13086_vm0  ;;  %v8132_v11 = vld [vmem:[%s12650_s0 + $0x28] sm:$0xff]  ;;  %v1082_v51 = vmov %v9215_v51 }
 0x616   : > { %v936_v28 = vadd.f32 %v12492_v26, %v930_v48  ;;  %v869_v48 = vsel %vm868_vm14, 0.0, %v12441_v23  ;;  %v12588_v60 = vmul.f32 %v1004_v41, %v1004_v41  ;;  %v1064_v41 = vsel %vm13109_vm13, %v8125_v1, 0.0  ;;  %vm13110_vm14 = vmmov %vm13086_vm0 }
 0x617   : > { %v870_v13 = vadd.f32 %v869_v48, %v860_v7  ;;  %v8126_v48 = vld [vmem:[%s12549_s17 + $0x58] sm:$0xff]  ;;  %vm13111_vm15 = vmmov %vm13086_vm0  ;;  %vm1097_vm13 = vcmp.eq.s32.totalorder %v1085_v52, %v1082_v51 }
 0x618   : > { %v942_v18 = vadd.f32 %v12494_v2, %v936_v28  ;;  %v1010_v28 = vsel %vm13101_vm6, %v8116_v43, 0.0  ;;  %v1070_v17 = vsel %vm13110_vm14, %v8126_v48, 0.0  ;;  %vm13112_vm11 = vmmov %vm13086_vm0 }
 0x619   : > { %v880_v33 = vadd.f32 %v879_v61, %v870_v13  ;;  %v12661_v13 = vmul.f32 %v1064_v41, %v1064_v41  ;;  %v12668_v8 = vmul.f32 %v1070_v17, %v1070_v17  ;;  %vm13113_vm10 = vmmov %vm13086_vm0  ;;  %v8136_v41 = vld [vmem:[%s12650_s0 + $0x48] sm:$0xff]  ;;  %v8137_v17 = vld [vmem:[%s12650_s0 + $0x50] sm:$0xff] }
 0x61a   : > { %v948_v49 = vadd.f32 %v12515_v32, %v942_v18  ;;  %v12595_v18 = vmul.f32 %v1010_v28, %v1010_v28  ;;  %vm13114_vm4 = vmmov %vm13086_vm0 }
 0x61b   : > { %v890_v36 = vadd.f32 %v889_v21, %v880_v33  ;;  %v8128_v33 = vld [vmem:[%s12650_s0 + $0x8] sm:$0xff]  ;;  %vm13115_vm6 = vmmov %vm13086_vm0 }
 0x61c   : > { %v954_v20 = vadd.f32 %v12525_v3, %v948_v49  ;;  %v8120_v49 = vld [vmem:[%s12549_s17 + $0x28] sm:$0xff]  ;;  %vm13116_vm7 = vmmov %vm13086_vm0 }
 0x61d   : > { %v900_v58 = vadd.f32 %v899_v56, %v890_v36  ;;  %v1034_v9 = vsel %vm13104_vm2, %v8120_v49, 0.0  ;;  %vm13117_vm1 = vmmov %vm13086_vm0 }
 0x61e   : > { %v960_v39 = vadd.f32 %v12534_v6, %v954_v20  ;;  %v12624_v31 = vmul.f32 %v1034_v9, %v1034_v9  ;;  %v8131_v9 = vld [vmem:[%s12650_s0 + $0x20] sm:$0xff]  ;;  %vm13118_vm9 = vmmov %vm13086_vm0 }
 0x61f   : > { %v917_v20 = vadd.f32 %v12467_v29, %v900_v58  ;;  %v1046_v29 = vsel %vm13106_vm8, %v8122_v57, 0.0  ;;  %vm13119_vm2 = vmmov %vm13086_vm0 }
 0x620   : > { %v966_v38 = vadd.f32 %v12543_v35, %v960_v39  ;;  %v12638_v30 = vmul.f32 %v1046_v29, %v1046_v29  ;;  %v8133_v29 = vld [vmem:[%s12650_s0 + $0x30] sm:$0xff]  ;;  %vm13120_vm3 = vmmov %vm13086_vm0 }
 0x621   : > { %v923_v25 = vadd.f32 %v12478_v4, %v917_v20  ;;  %v1052_v4 = vsel %vm13107_vm5, %v8123_v27, 0.0  ;;  %vm13121_vm8 = vmmov %vm13086_vm0 }
 0x622   : > { %v972_v34 = vadd.f32 %v12554_v5, %v966_v38  ;;  %v8124_v38 = vld [vmem:[%s12549_s17 + $0x48] sm:$0xff]  ;;  %v12645_v43 = vmul.f32 %v1052_v4, %v1052_v4  ;;  %v8134_v4 = vld [vmem:[%s12650_s0 + $0x38] sm:$0xff]  ;;  %vm13122_vm5 = vmmov %vm13086_vm0 }
 0x623   : > { %v929_v24 = vadd.f32 %v12490_v63, %v923_v25  ;;  %v1058_v59 = vsel %vm13108_vm12, %v8124_v38, 0.0  ;;  %vm13123_vm12 = vmmov %vm13086_vm0 }
 0x624   : > { %v978_v15 = vadd.f32 %v12563_v45, %v972_v34 }
 0x625   : > { %v935_v19 = vadd.f32 %v12492_v26, %v929_v24 }
 0x626   : > { %v984_v23 = vadd.f32 %v12572_v53, %v978_v15  ;;  %v12654_v15 = vmul.f32 %v1058_v59, %v1058_v59  ;;  %v8135_v59 = vld [vmem:[%s12650_s0 + $0x40] sm:$0xff] }
 0x627   : > { %v941_v63 = vadd.f32 %v12494_v2, %v935_v19  ;;  %v8127_v2 = vld [vmem:[%s12549_s17 + $0x60] sm:$0xf] }
 0x628   : > { %v990_v47 = vadd.f32 %v12580_v46, %v984_v23  ;;  %v1092_v23 = vld [vmem:[%s12650_s0] sm:$0xff] }
 0x629   : > { %v947_v26 = vadd.f32 %v12515_v32, %v941_v63  ;;  %v1076_v32 = vsel %vm13111_vm15, %v8127_v2, 0.0 }
 0x62a   : > { %v1007_v0 = vadd.f32 %v12588_v60, %v990_v47  ;;  %v12675_v56 = vmul.f32 %v1076_v32, %v1076_v32  ;;  %v8138_v32 = vld [vmem:[%s12650_s0 + $0x58] sm:$0xff] }
 0x62b   : > { %v953_v61 = vadd.f32 %v12525_v3, %v947_v26  ;;  %v1093_v3 = vsel %vm13112_vm11, %v1092_v23, 0.0 }
 0x62c   : > { %v1013_v54 = vadd.f32 %v12595_v18, %v1007_v0  ;;  %v12682_v49 = vmul.f32 %v1093_v3, %v1093_v3  ;;  %v8139_v3 = vld [vmem:[%s12650_s0 + $0x60] sm:$0xf] }
 0x62d   : > { %v959_v16 = vadd.f32 %v12534_v6, %v953_v61  ;;  %v1103_v6 = vsel %vm13113_vm10, %v8128_v33, 0.0  ;;  %v1183_v61 = vsel %vm13120_vm3, %v8136_v41, 0.0 }
 0x62e   : > { %v1019_v55 = vadd.f32 %v12602_v10, %v1013_v54  ;;  %v12689_v42 = vmul.f32 %v1103_v6, %v1103_v6  ;;  %v1184_v33 = vmul.f32 %v1183_v61, %v1183_v61  ;;  %v1213_v6 = vsel %vm13123_vm12, %v8139_v3, 0.0 }
 0x62f   : > { %v965_v47 = vadd.f32 %v12543_v35, %v959_v16  ;;  %v1113_v35 = vsel %vm13114_vm4, %v8129_v50, 0.0  ;;  %v1193_v16 = vsel %vm13121_vm8, %v8137_v17, 0.0 }
 0x630   : > { %v1025_v39 = vadd.f32 %v12610_v12, %v1019_v55  ;;  %v12696_v57 = vmul.f32 %v1113_v35, %v1113_v35  ;;  %v1194_v50 = vmul.f32 %v1193_v16, %v1193_v16 }
 0x631   : > { %v971_v36 = vadd.f32 %v12554_v5, %v965_v47  ;;  %v1123_v5 = vsel %vm13115_vm6, %v8130_v44, 0.0  ;;  %v1203_v47 = vsel %vm13122_vm5, %v8138_v32, 0.0 }
 0x632   : > { %v1031_v37 = vadd.f32 %v12617_v22, %v1025_v39  ;;  %v12703_v27 = vmul.f32 %v1123_v5, %v1123_v5  ;;  %v1204_v44 = vmul.f32 %v1203_v47, %v1203_v47 }
 0x633   : > { %v977_v58 = vadd.f32 %v12563_v45, %v971_v36  ;;  %v1133_v45 = vsel %vm13116_vm7, %v8131_v9, 0.0 }
 0x634   : > { %v1037_v40 = vadd.f32 %v12624_v31, %v1031_v37  ;;  %v12710_v38 = vmul.f32 %v1133_v45, %v1133_v45 }
 0x635   : > { %v983_v20 = vadd.f32 %v12572_v53, %v977_v58  ;;  %v1143_v53 = vsel %vm13117_vm1, %v8132_v11, 0.0  ;;  %v1214_v58 = vmul.f32 %v1213_v6, %v1213_v6  ;;  %v1126_v11 = vadd.s32 24, %v1085_v52 }
 0x636   : > { %v1043_v34 = vadd.f32 %v12631_v62, %v1037_v40  ;;  %v12717_v1 = vmul.f32 %v1143_v53, %v1143_v53 }
 0x637   : > { %v989_v25 = vadd.f32 %v12580_v46, %v983_v20  ;;  %v1153_v46 = vsel %vm13118_vm9, %v8133_v29, 0.0  ;;  %v1116_v20 = vadd.s32 16, %v1085_v52  ;;  %vm1127_vm11 = vcmp.eq.s32.totalorder %v1126_v11, %v1082_v51 }
 0x638   : > { %v1049_v7 = vadd.f32 %v12638_v30, %v1043_v34  ;;  %v12724_v48 = vmul.f32 %v1153_v46, %v1153_v46  ;;  %v1146_v29 = vadd.s32 40, %v1085_v52  ;;  %v1176_v46 = vadd.s32 64, %v1085_v52 }
 0x639   : > { %v1006_v24 = vadd.f32 %v12588_v60, %v989_v25  ;;  %v1163_v60 = vsel %vm13086_vm0, %v8134_v4, 0.0  ;;  %vm1117_vm15 = vcmp.eq.s32.totalorder %v1116_v20, %v1082_v51  ;;  %v1136_v25 = vadd.s32 32, %v1085_v52 }
 0x63a   : > { %v1055_v28 = vadd.f32 %v12645_v43, %v1049_v7  ;;  %v12731_v2 = vmul.f32 %v1163_v60, %v1163_v60  ;;  %vm1147_vm4 = vcmp.eq.s32.totalorder %v1146_v29, %v1082_v51  ;;  %v1166_v4 = vadd.s32 56, %v1085_v52 }
 0x63b   : > { %v1012_v19 = vadd.f32 %v12595_v18, %v1006_v24  ;;  %v1173_v18 = vsel %vm13119_vm2, %v8135_v59, 0.0  ;;  %vm1137_vm10 = vcmp.eq.s32.totalorder %v1136_v25, %v1082_v51  ;;  %v1156_v24 = vadd.s32 48, %v1085_v52 }
 0x63c   : > { %v1061_v21 = vadd.f32 %v12654_v15, %v1055_v28  ;;  %v12738_v23 = vmul.f32 %v1173_v18, %v1173_v18  ;;  %vm1167_vm7 = vcmp.eq.s32.totalorder %v1166_v4, %v1082_v51  ;;  %vm1177_vm1 = vcmp.eq.s32.totalorder %v1176_v46, %v1082_v51 }
 0x63d   : > { %v1018_v63 = vadd.f32 %v12602_v10, %v1012_v19  ;;  %vm1157_vm6 = vcmp.eq.s32.totalorder %v1156_v24, %v1082_v51  ;;  %v1196_v60 = vadd.s32 80, %v1085_v52  ;;  %v1216_v18 = vadd.s32 96, %v1085_v52 }
 0x63e   : > { %v1067_v14 = vadd.f32 %v12661_v13, %v1061_v21 }
 0x63f   : > { %v1024_v26 = vadd.f32 %v12610_v12, %v1018_v63  ;;  %vm1197_vm0 = vcmp.eq.s32.totalorder %v1196_v60, %v1082_v51  ;;  %vm1217_vm3 = vcmp.eq.s32.totalorder %v1216_v18, %v1082_v51 }
 0x640   : > { %v1073_v0 = vadd.f32 %v12668_v8, %v1067_v14 }
 0x641   : > { %v1030_v10 = vadd.f32 %v12617_v22, %v1024_v26 }
 0x642   : > { %v1079_v54 = vadd.f32 %v12675_v56, %v1073_v0 }
 0x643   : > { %v1036_v12 = vadd.f32 %v12624_v31, %v1030_v10  ;;  %v1218_v10 = vsel %vm1217_vm3, 0.0, %v1214_v58 }
 0x644   : > { %v1100_v55 = vadd.f32 %v12682_v49, %v1079_v54  ;;  %v1106_v54 = vadd.s32 8, %v1085_v52 }
 0x645   : > { %v1042_v14 = vadd.f32 %v12631_v62, %v1036_v12 }
 0x646   : > { %v1110_v39 = vadd.f32 %v12689_v42, %v1100_v55  ;;  %vm1107_vm14 = vcmp.eq.s32.totalorder %v1106_v54, %v1082_v51 }
 0x647   : > { %v1048_v36 = vadd.f32 %v12638_v30, %v1042_v14 }
 0x648   : > { %v1120_v37 = vadd.f32 %v12696_v57, %v1110_v39 }
 0x649   : > { %v1054_v31 = vadd.f32 %v12645_v43, %v1048_v36  ;;  %v1098_v43 = vsel %vm1097_vm13, 0.0, %v12682_v49  ;;  %v1138_v49 = vsel %vm1137_vm10, 0.0, %v12710_v38 }
 0x64a   : > { %v1130_v40 = vadd.f32 %v12703_v27, %v1120_v37 }
 0x64b   : > { %v1060_v62 = vadd.f32 %v12654_v15, %v1054_v31  ;;  %v1108_v15 = vsel %vm1107_vm14, 0.0, %v12689_v42  ;;  %v1148_v42 = vsel %vm1147_vm4, 0.0, %v12717_v1 }
 0x64c   : > { %v1140_v34 = vadd.f32 %v12710_v38, %v1130_v40  ;;  %v1186_v40 = vadd.s32 72, %v1085_v52  ;;  %v1178_v38 = vsel %vm1177_vm1, 0.0, %v12738_v23 }
 0x64d   : > { %v1066_v5 = vadd.f32 %v12661_v13, %v1060_v62  ;;  %v1118_v13 = vsel %vm1117_vm15, 0.0, %v12696_v57  ;;  %v1158_v57 = vsel %vm1157_vm6, 0.0, %v12724_v48 }
 0x64e   : > { %v1150_v7 = vadd.f32 %v12717_v1, %v1140_v34  ;;  %vm1187_vm9 = vcmp.eq.s32.totalorder %v1186_v40, %v1082_v51  ;;  %v1206_v34 = vadd.s32 88, %v1085_v52 }
 0x64f   : > { %v1072_v30 = vadd.f32 %v12668_v8, %v1066_v5  ;;  %v1128_v8 = vsel %vm1127_vm11, 0.0, %v12703_v27  ;;  %v1168_v27 = vsel %vm1167_vm7, 0.0, %v12731_v2  ;;  %v1188_v26 = vsel %vm1187_vm9, 0.0, %v1184_v33 }
 0x650   : > { %v1160_v28 = vadd.f32 %v12724_v48, %v1150_v7  ;;  %vm1207_vm2 = vcmp.eq.s32.totalorder %v1206_v34, %v1082_v51  ;;  %v1198_v7 = vsel %vm1197_vm0, 0.0, %v1194_v50 }
 0x651   : > { %v1078_v45 = vadd.f32 %v12675_v56, %v1072_v30  ;;  %v1208_v48 = vsel %vm1207_vm2, 0.0, %v1204_v44 }
 0x652   : > { %v1170_v21 = vadd.f32 %v12731_v2, %v1160_v28 }
 0x653   : > { %v1099_v39 = vadd.f32 %v1098_v43, %v1078_v45 }
 0x654   : > { %v1180_v22 = vadd.f32 %v12738_v23, %v1170_v21 }
 0x655   : > { %v1109_v53 = vadd.f32 %v1108_v15, %v1099_v39 }
 0x656   : > { %v1190_v0 = vadd.f32 %v1184_v33, %v1180_v22 }
 0x657   : > { %v1119_v37 = vadd.f32 %v1118_v13, %v1109_v53 }
 0x658   : > { %v1200_v35 = vadd.f32 %v1194_v50, %v1190_v0 }
 0x659   : > { %v1129_v56 = vadd.f32 %v1128_v8, %v1119_v37 }
 0x65a   : > { %v1210_v9 = vadd.f32 %v1204_v44, %v1200_v35 }
 0x65b   : > { %v1139_v19 = vadd.f32 %v1138_v49, %v1129_v56 }
 0x65c   : > { %v1220_v55 = vadd.f32 %v1214_v58, %v1210_v9 }
 0x65d   : > { %v1149_v59 = vadd.f32 %v1148_v42, %v1139_v19 }
 0x65e   : > { %1221 = vadd.xlane.f32.xlu0 %v1220_v55 }
 0x65f   : > { %v1159_v63 = vadd.f32 %v1158_v57, %v1149_v59 }
 0x661   : > { %v1169_v41 = vadd.f32 %v1168_v27, %v1159_v63 }
 0x663   : > { %v1179_v1 = vadd.f32 %v1178_v38, %v1169_v41 }
 0x665   : > { %v1189_v17 = vadd.f32 %v1188_v26, %v1179_v1 }
 0x667   : > { %v1199_v61 = vadd.f32 %v1198_v7, %v1189_v17 }
 0x669   : > { %v1209_v28 = vadd.f32 %v1208_v48, %v1199_v61 }
 0x66b   : > { %v1219_v32 = vadd.f32 %v1218_v10, %v1209_v28 }
 0x66d   : > { %1229 = vadd.xlane.f32.xlu0 %v1219_v32 }
 0x6e7   : > { %v1222_v2 = vpop.xlane.xlu0 %1221 }
 0x6e8   : > { %v1223_v16 = vrot.slane %v1222_v2, 4 }
 0x6ea   : > { %v1224_v12 = vadd.f32 %v1223_v16, %v1222_v2 }
 0x6ec   : > { %v1225_v21 = vrot.slane %v1224_v12, 2 }
 0x6ee   : > { %v1226_v33 = vadd.f32 %v1225_v21, %v1224_v12 }
 0x6f0   : > { %v1227_v50 = vrot.slane %v1226_v33, 1 }
 0x6f2   : > { %v1228_v0 = vadd.f32 %v1227_v50, %v1226_v33 }
 0x6f6   : > { %v1230_v23 = vpop.xlane.xlu0 %1229 }
 0x6f7   : > { %v1231_v3 = vrot.slane %v1230_v23, 4 }
 0x6f9   : > { %v1232_v47 = vadd.f32 %v1231_v3, %v1230_v23 }
 0x6fb   : > { %v1233_v14 = vrot.slane %v1232_v47, 2 }
 0x6fd   : > { %v1234_v22 = vadd.f32 %v1233_v14, %v1232_v47 }
 0x6ff   : > { %v1235_v6 = vrot.slane %v1234_v22, 1 }
 0x701   : > { %v1236_v36 = vadd.f32 %v1235_v6, %v1234_v22 }
 0x703   : > { %8190 = vpush %v1236_v36 }
 0x704   : > { %8192 = vpush %v1228_v0 }
 0x734   : > { %s8191_s19 = spop %8190 }
 0x735   : > { %s8193_s22 = spop %8192 }
 0x736   : > { %s1239_s23 = smul.f32 1e-10, %s8193_s22 }
 0x738   : > { %p1240_p1 = scmp.le.f32.partialorder %s8191_s19, %s1239_s23 }
 0x73a   : > { %p1242_p2 = por %p1241_p0, %p1240_p1 }
 0x73c   :  { %5578 = sbr.rel (!%p1242_p2) target bundleno = 481 (0x1e1), region = 1274 }
 0x741 PF:  { %s12775_s26 = smov [#allocation12]  ;;  %v12778_v51 = vmov %v9215_v51  ;;  %v5586_v52 = vmov %v9218_v52  ;;  %v12787_v44 = vld [vmem:[#allocation8] sm:$0xff]   ;;  %s12799_s25 = smov [#allocation15] }
 0x742   :  { %v12782_v51 = vmov %v9215_v51  ;;  %v12785_v52 = vmov %v9218_v52  ;;  %v5587_v31 = vld [vmem:[%s12775_s26] sm:$0xff]  ;;  %vm5590_vm8 = vcmp.eq.s32.totalorder %v5586_v52, %v12778_v51  ;;  %v8140_v35 = vld [vmem:[%s12775_s26 + $0x8] sm:$0xff]  ;;  %v5595_v58 = vadd.s32 8, %v5586_v52  ;;  %v8141_v5 = vld [vmem:[%s12775_s26 + $0x10] sm:$0xff]  ;;  %s5580_s5 = smov [#allocation4]  ;;  %s5672_s18 = smov [#allocation6] }
 0x743   :  { %v5601_v62 = vadd.s32 16, %v5586_v52  ;;  %v5607_v54 = vadd.s32 24, %v5586_v52  ;;  %v5591_v9 = vsel %vm5590_vm8, %v5587_v31, 0.0  ;;  %v5613_v20 = vadd.s32 32, %v5586_v52  ;;  %v8142_v30 = vld [vmem:[%s12775_s26 + $0x18] sm:$0xff]  ;;  %v8143_v45 = vld [vmem:[%s12775_s26 + $0x20] sm:$0xff] }
 0x744   :  { %v5619_v55 = vadd.s32 40, %v5586_v52  ;;  %vm5682_vm5 = vcmp.eq.s32.totalorder %v12785_v52, %v12782_v51  ;;  %vm5596_vm12 = vcmp.eq.s32.totalorder %v5595_v58, %v12778_v51  ;;  %v5625_v11 = vadd.s32 48, %v5586_v52  ;;  %v8144_v39 = vld [vmem:[%s12775_s26 + $0x28] sm:$0xff]  ;;  %v5679_v53 = vld [vmem:[%s12799_s25] sm:$0xff]  ;;  %v8145_v8 = vld [vmem:[%s12775_s26 + $0x30] sm:$0xff]  ;;  %s13125_s9 = sld [smem:[#allocation43_spill]] }
 0x745   :  { %vm5602_vm13 = vcmp.eq.s32.totalorder %v5601_v62, %v12778_v51  ;;  %vm5608_vm14 = vcmp.eq.s32.totalorder %v5607_v54, %v12778_v51  ;;  %v5597_v43 = vsel %vm5596_vm12, %v8140_v35, %v5591_v9  ;;  %vm5614_vm15 = vcmp.eq.s32.totalorder %v5613_v20, %v12778_v51  ;;  %v8146_v56 = vld [vmem:[%s12775_s26 + $0x38] sm:$0xff]  ;;  %v8147_v19 = vld [vmem:[%s12775_s26 + $0x40] sm:$0xff]  ;;  %v8148_v59 = vld [vmem:[%s12775_s26 + $0x48] sm:$0xff]  ;;  %s13126_s10 = sld [smem:[#allocation44_spill]]  ;;  %s9086_s1 = smov [#allocation8 + $0x60]  }
 0x746   :  { %vm5620_vm11 = vcmp.eq.s32.totalorder %v5619_v55, %v12778_v51  ;;  %v5631_v25 = vadd.s32 56, %v5586_v52  ;;  %v5603_v15 = vsel %vm5602_vm13, %v8141_v5, %v5597_v43  ;;  %vm5626_vm10 = vcmp.eq.s32.totalorder %v5625_v11, %v12778_v51  ;;  %v8152_v60 = vld [vmem:[%s12799_s25 + $0x8] sm:$0xff]  ;;  %v8149_v38 = vld [vmem:[%s12775_s26 + $0x50] sm:$0xff]  ;;  %v8150_v17 = vld [vmem:[%s12775_s26 + $0x58] sm:$0xff]  ;;  %s12883_s11 = sadd.s32 4294967232, %s9086_s1  ;;  %s13127_s3 = sld [smem:[#allocation45_spill]] }
 0x747   :  { %v5637_v29 = vadd.s32 64, %v5586_v52  ;;  %v5643_v13 = vadd.s32 72, %v5586_v52  ;;  %v5609_v24 = vsel %vm5608_vm14, %v8142_v30, %v5603_v15  ;;  %v5649_v37 = vadd.s32 80, %v5586_v52  ;;  %v8153_v41 = vld [vmem:[%s12799_s25 + $0x10] sm:$0xff]  ;;  %v8154_v48 = vld [vmem:[%s12799_s25 + $0x18] sm:$0xff]  ;;  %v8155_v2 = vld [vmem:[%s12799_s25 + $0x20] sm:$0xff] }
 0x748   :  { %vm5632_vm4 = vcmp.eq.s32.totalorder %v5631_v25, %v12778_v51  ;;  %v5655_v4 = vadd.s32 88, %v5586_v52  ;;  %v5615_v49 = vsel %vm5614_vm15, %v8143_v45, %v5609_v24  ;;  %v5661_v46 = vadd.s32 96, %v5586_v52  ;;  %v8151_v28 = vld [vmem:[%s12775_s26 + $0x60] sm:$0xf]  ;;  %v8156_v21 = vld [vmem:[%s12799_s25 + $0x28] sm:$0xff]  ;;  %v8157_v47 = vld [vmem:[%s12799_s25 + $0x30] sm:$0xff] }
 0x749   :  { %vm5638_vm6 = vcmp.eq.s32.totalorder %v5637_v29, %v12778_v51  ;;  %vm5644_vm7 = vcmp.eq.s32.totalorder %v5643_v13, %v12778_v51  ;;  %v5621_v42 = vsel %vm5620_vm11, %v8144_v39, %v5615_v49  ;;  %vm5650_vm1 = vcmp.eq.s32.totalorder %v5649_v37, %v12778_v51  ;;  %v8158_v6 = vld [vmem:[%s12799_s25 + $0x38] sm:$0xff]  ;;  %v8159_v58 = vld [vmem:[%s12799_s25 + $0x40] sm:$0xff]  ;;  %v8160_v54 = vld [vmem:[%s12799_s25 + $0x48] sm:$0xff]  ;;  %s9011_s21 = smov [#allocation8]  }
 0x74a   :  { %vm5656_vm9 = vcmp.eq.s32.totalorder %v5655_v4, %v12778_v51  ;;  %v5683_v40 = vsel %vm5682_vm5, %v5679_v53, 0.0  ;;  %v5627_v57 = vsel %vm5626_vm10, %v8145_v8, %v5621_v42  ;;  %vm5662_vm0 = vcmp.eq.s32.totalorder %v5661_v46, %v12778_v51  ;;  %v8161_v55 = vld [vmem:[%s12799_s25 + $0x50] sm:$0xff]  ;;  %v8162_v43 = vld [vmem:[%s12799_s25 + $0x58] sm:$0xff]  ;;  %v8163_v15 = vld [vmem:[%s12799_s25 + $0x60] sm:$0xf] }
 0x74b   :  { %v5687_v27 = vadd.s32 8, %v12785_v52  ;;  %v5693_v63 = vadd.s32 16, %v12785_v52  ;;  %v5633_v34 = vsel %vm5632_vm4, %v8146_v56, %v5627_v57  ;;  %v5699_v18 = vadd.s32 24, %v12785_v52 }
 0x74c   :  { %v5705_v26 = vadd.s32 32, %v12785_v52  ;;  %v5711_v1 = vadd.s32 40, %v12785_v52  ;;  %v5639_v7 = vsel %vm5638_vm6, %v8147_v19, %v5633_v34  ;;  %v5717_v61 = vadd.s32 48, %v12785_v52  ;;  %s9007_s20 = smov %s13127_s3  }
 0x74d   :  { %vm5688_vm2 = vcmp.eq.s32.totalorder %v5687_v27, %v12782_v51  ;;  %vm5694_vm3 = vcmp.eq.s32.totalorder %v5693_v63, %v12782_v51  ;;  %v5645_v10 = vsel %vm5644_vm7, %v8148_v59, %v5639_v7  ;;  %vm5700_vm8 = vcmp.eq.s32.totalorder %v5699_v18, %v12782_v51 }
 0x74e   :  { %v5689_v32 = vsel %vm5688_vm2, %v8152_v60, %v5683_v40  ;;  %vm5706_vm5 = vcmp.eq.s32.totalorder %v5705_v26, %v12782_v51  ;;  %v5651_v16 = vsel %vm5650_vm1, %v8149_v38, %v5645_v10  ;;  %vm5712_vm12 = vcmp.eq.s32.totalorder %v5711_v1, %v12782_v51 }
 0x74f   :  { %v5695_v12 = vsel %vm5694_vm3, %v8153_v41, %v5689_v32  ;;  %vm5718_vm13 = vcmp.eq.s32.totalorder %v5717_v61, %v12782_v51  ;;  %v5657_v23 = vsel %vm5656_vm9, %v8150_v17, %v5651_v16  ;;  %v5723_v33 = vadd.s32 56, %v12785_v52 }
 0x750   :  { %v5701_v3 = vsel %vm5700_vm8, %v8154_v48, %v5695_v12  ;;  %v5729_v14 = vadd.s32 64, %v12785_v52  ;;  %v5663_v22 = vsel %vm5662_vm0, %v8151_v28, %v5657_v23  ;;  %v5735_v36 = vadd.s32 72, %v12785_v52 }
 0x751   :  { %v5707_v50 = vsel %vm5706_vm5, %v8155_v2, %v5701_v3  ;;  %v5741_v0 = vadd.s32 80, %v12785_v52  ;;  %v5664_v31 = vrot.slane %v5663_v22, 4  ;;  %vm5724_vm14 = vcmp.eq.s32.totalorder %v5723_v33, %v12782_v51 }
 0x752   :  { %v5713_v35 = vsel %vm5712_vm12, %v8156_v21, %v5707_v50  ;;  %vm5730_vm15 = vcmp.eq.s32.totalorder %v5729_v14, %v12782_v51  ;;  %vm5736_vm11 = vcmp.eq.s32.totalorder %v5735_v36, %v12782_v51  ;;  %v5747_v9 = vadd.s32 88, %v12785_v52 }
 0x753   :  { %v5719_v62 = vsel %vm5718_vm13, %v8157_v47, %v5713_v35  ;;  %v5665_v5 = vadd.f32 %v5664_v31, %v5663_v22  ;;  %vm5742_vm10 = vcmp.eq.s32.totalorder %v5741_v0, %v12782_v51  ;;  %v5753_v30 = vadd.s32 96, %v12785_v52 }
 0x754   :  { %v5725_v20 = vsel %vm5724_vm14, %v8158_v6, %v5719_v62  ;;  %vm5748_vm4 = vcmp.eq.s32.totalorder %v5747_v9, %v12782_v51  ;;  %v9003_v57 = vmov %v12787_v44  }
 0x755   :  { %v5731_v11 = vsel %vm5730_vm15, %v8159_v58, %v5725_v20  ;;  %v5666_v45 = vrot.slane %v5665_v5, 2  ;;  %vm5754_vm6 = vcmp.eq.s32.totalorder %v5753_v30, %v12782_v51 }
 0x756   :  { %v5737_v25 = vsel %vm5736_vm11, %v8160_v54, %v5731_v11 }
 0x757   :  { %v5743_v39 = vsel %vm5742_vm10, %v8161_v55, %v5737_v25  ;;  %v5667_v29 = vadd.f32 %v5666_v45, %v5665_v5 }
 0x758   :  { %v5749_v13 = vsel %vm5748_vm4, %v8162_v43, %v5743_v39 }
 0x759   :  { %v5755_v53 = vsel %vm5754_vm6, %v8163_v15, %v5749_v13  ;;  %v5668_v24 = vrot.slane %v5667_v29, 1 }
 0x75a   :  { %v5756_v8 = vrot.slane %v5755_v53, 4 }
 0x75b   :  { %v5669_v37 = vadd.f32 %v5668_v24, %v5667_v29 }
 0x75c   :  { %v5757_v4 = vadd.f32 %v5756_v8, %v5755_v53 }
 0x75d   :  { %5670 = vst [vmem:[%s5580_s5] sm:$0x1] %v5669_v37 }
 0x75e   :  { %v5758_v52 = vrot.slane %v5757_v4, 2 }
 0x760   :  { %v5759_v49 = vadd.f32 %v5758_v52, %v5757_v4 }
 0x762   :  { %v5760_v56 = vrot.slane %v5759_v49, 1 }
 0x764   :  { %v5761_v46 = vadd.f32 %v5760_v56, %v5759_v49  ;;  %v5767_v42 = vld [vmem:[#allocation4] sm:$0x1] }
 0x765   :  { %5770 = vst [vmem:[#allocation5] sm:$0x1] %v5767_v42 }
 0x766   :  { %5762 = vst [vmem:[%s5672_s18] sm:$0x1] %v5761_v46 }
 0x76c   :  { %v5842_v51 = vld [vmem:[#allocation5] sm:$0x1] }
 0x76d   :  { %v5775_v19 = vld [vmem:[#allocation6] sm:$0x1]  ;;  %5843 = vst [vmem:[%s13125_s9] sm:$0x1] %v5842_v51 }
 0x76e   :  { %5778 = vst [vmem:[#allocation7] sm:$0x1] %v5775_v19 }
 0x775   :  { %v5907_v40 = vld [vmem:[#allocation7] sm:$0x1] }
 0x776   :  { %5908 = vst [vmem:[%s13126_s10] sm:$0x1] %v5907_v40 }
 0x777 LB: > { %5931 = vst [vmem:[%s9009_s20] sm:$0xff] %v9005_v57  ;;  %v5932_v59 = vld [vmem:[%s9013_s21 + $0x8] sm:$0xff]  ;;  %v5934_v60 = vld [vmem:[%s9013_s21 + $0x10] sm:$0xff]  ;;  %v5936_v27 = vld [vmem:[%s9013_s21 + $0x18] sm:$0xff]  ;;  %s5946_s24 = scalar_lea.vmem %s9013_s21, 64   ;;  %s5947_s4 = scalar_lea.vmem %s9009_s20, 64   ;;  %s9013_s21 = sphi %s9011_s21, %s9012_s21   ;;  %s9009_s20 = sphi %s9007_s20, %s9008_s20   ;;  %v9005_v57 = vphi %v9003_v57, %v5948_v57  }
 0x778   : > { %5933 = vst [vmem:[%s9009_s20 + $0x8] sm:$0xff] %v5932_v59  ;;  %5935 = vst [vmem:[%s9009_s20 + $0x10] sm:$0xff] %v5934_v60  ;;  %v5938_v63 = vld [vmem:[%s9013_s21 + $0x20] sm:$0xff]  ;;  %v5940_v34 = vld [vmem:[%s9013_s21 + $0x28] sm:$0xff]  ;;  %p5928_p3 = scmp.gt.s32.totalorder %s5946_s24, %s12883_s11 }
 0x779   : > { %5937 = vst [vmem:[%s9009_s20 + $0x18] sm:$0xff] %v5936_v27  ;;  %v5942_v44 = vld [vmem:[%s9013_s21 + $0x30] sm:$0xff]  ;;  %5939 = vst [vmem:[%s9009_s20 + $0x20] sm:$0xff] %v5938_v63  ;;  %v5944_v38 = vld [vmem:[%s9013_s21 + $0x38] sm:$0xff]  ;;  %p6934_p4 = scmp.gt.s32.totalorder (%p5928_p3), %s5946_s24, [#allocation8 + $0x60] }
 0x77a   : > { %5941 = vst [vmem:[%s9009_s20 + $0x28] sm:$0xff] %v5940_v34  ;;  %5943 = vst [vmem:[%s9009_s20 + $0x30] sm:$0xff] %v5942_v44  ;;  %v5948_v57 = vld [vmem:[%s9013_s21 + $0x40] sm:$0xff]   ;;  %s9012_s21 = smov %s5946_s24   ;;  %5930 = sbr.rel (!%p5928_p3) target bundleno = 1911 (0x777), region = 1329 }
 0x77b   : > { %5945 = vst [vmem:[%s9009_s20 + $0x38] sm:$0xff] %v5944_v38  ;;  %s9008_s20 = smov %s5947_s4  }
 0x77f   :  { %6935 = sbr.rel (%p6934_p4) target bundleno = 1932 (0x78c), region = 1334  ;;  %s9015_s28 = smov (!%p6934_p4), %s5947_s4  }
 0x780   :  { %s9019_s7 = smov (!%p6934_p4), %s5946_s24  }
 0x784 LB: > { %v5956_v41 = vld [vmem:[%s9021_s7] sm:$0xff]  ;;  %s5958_s7 = scalar_lea.vmem %s9021_s7, 8   ;;  %s9021_s7 = sphi %s9019_s7, %s5958_s7   ;;  %s9017_s28 = sphi %s9015_s28, %s5959_s28  }
 0x785   : > { %5957 = vst [vmem:[%s9017_s28] sm:$0xff] %v5956_v41  ;;  %s5959_s28 = scalar_lea.vmem %s9017_s28, 8   ;;  %p5953_p5 = scmp.gt.s32.totalorder %s5958_s7, [#allocation8 + $0x60] }
 0x787   :  { %5955 = sbr.rel (!%p5953_p5) target bundleno = 1924 (0x784), region = 1340 }
 0x78c PF:  { %v5986_v18 = vld [vmem:[#allocation9] sm:$0xff]   ;;  %s9087_s29 = smov [#allocation9 + $0x60]   ;;  %s13128_s2 = sld [smem:[#allocation46_spill]] }
 0x78d   :  { %s12890_s14 = sadd.s32 4294967232, %s9087_s29  ;;  %v9023_v26 = vmov %v5986_v18   ;;  %s9031_s0 = smov [#allocation9]  }
 0x792   :  { %s9027_s17 = smov %s13128_s2  }
 0x793 LB: > { %5994 = vst [vmem:[%s9029_s17] sm:$0xff] %v9025_v26  ;;  %v5995_v1 = vld [vmem:[%s9033_s0 + $0x8] sm:$0xff]  ;;  %v5997_v7 = vld [vmem:[%s9033_s0 + $0x10] sm:$0xff]  ;;  %v5999_v17 = vld [vmem:[%s9033_s0 + $0x18] sm:$0xff]  ;;  %s6009_s19 = scalar_lea.vmem %s9033_s0, 64   ;;  %s6010_s22 = scalar_lea.vmem %s9029_s17, 64   ;;  %s9033_s0 = sphi %s9031_s0, %s9032_s0   ;;  %s9029_s17 = sphi %s9027_s17, %s9028_s17   ;;  %v9025_v26 = vphi %v9023_v26, %v6011_v26  }
 0x794   : > { %5996 = vst [vmem:[%s9029_s17 + $0x8] sm:$0xff] %v5995_v1  ;;  %5998 = vst [vmem:[%s9029_s17 + $0x10] sm:$0xff] %v5997_v7  ;;  %v6001_v48 = vld [vmem:[%s9033_s0 + $0x20] sm:$0xff]  ;;  %v6003_v61 = vld [vmem:[%s9033_s0 + $0x28] sm:$0xff]  ;;  %p5991_p6 = scmp.gt.s32.totalorder %s6009_s19, %s12890_s14 }
 0x795   : > { %6000 = vst [vmem:[%s9029_s17 + $0x18] sm:$0xff] %v5999_v17  ;;  %v6005_v10 = vld [vmem:[%s9033_s0 + $0x30] sm:$0xff]  ;;  %6002 = vst [vmem:[%s9029_s17 + $0x20] sm:$0xff] %v6001_v48  ;;  %v6007_v28 = vld [vmem:[%s9033_s0 + $0x38] sm:$0xff]  ;;  %p6954_p7 = scmp.gt.s32.totalorder (%p5991_p6), %s6009_s19, [#allocation9 + $0x60] }
 0x796   : > { %6004 = vst [vmem:[%s9029_s17 + $0x28] sm:$0xff] %v6003_v61  ;;  %6006 = vst [vmem:[%s9029_s17 + $0x30] sm:$0xff] %v6005_v10  ;;  %v6011_v26 = vld [vmem:[%s9033_s0 + $0x40] sm:$0xff]   ;;  %s9032_s0 = smov %s6009_s19   ;;  %5993 = sbr.rel (!%p5991_p6) target bundleno = 1939 (0x793), region = 1351 }
 0x797   : > { %6008 = vst [vmem:[%s9029_s17 + $0x38] sm:$0xff] %v6007_v28  ;;  %s9028_s17 = smov %s6010_s22  }
 0x79b   :  { %6955 = sbr.rel (%p6954_p7) target bundleno = 1960 (0x7a8), region = 1356  ;;  %s9035_s23 = smov (!%p6954_p7), %s6010_s22  }
 0x79c   :  { %s9039_s26 = smov (!%p6954_p7), %s6009_s19  }
 0x7a0 LB: > { %v6019_v32 = vld [vmem:[%s9041_s26] sm:$0xff]  ;;  %s6021_s26 = scalar_lea.vmem %s9041_s26, 8   ;;  %s9041_s26 = sphi %s9039_s26, %s6021_s26   ;;  %s9037_s23 = sphi %s9035_s23, %s6022_s23  }
 0x7a1   : > { %6020 = vst [vmem:[%s9037_s23] sm:$0xff] %v6019_v32  ;;  %s6022_s23 = scalar_lea.vmem %s9037_s23, 8   ;;  %p6016_p8 = scmp.gt.s32.totalorder %s6021_s26, [#allocation9 + $0x60] }
 0x7a3   :  { %6018 = sbr.rel (!%p6016_p8) target bundleno = 1952 (0x7a0), region = 1362 }
 0x7a8 PF:  { %v6049_v2 = vld [vmem:[#allocation10] sm:$0xff]   ;;  %s9088_s25 = smov [#allocation10 + $0x60]   ;;  %s13129_s6 = sld [smem:[#allocation47_spill]] }
 0x7a9   :  { %s12896_s5 = sadd.s32 4294967232, %s9088_s25  ;;  %v9043_v16 = vmov %v6049_v2   ;;  %s9051_s27 = smov [#allocation10]  }
 0x7ae   :  { %s9047_s9 = smov %s13129_s6  }
 0x7af LB: > { %6057 = vst [vmem:[%s9049_s9] sm:$0xff] %v9045_v16  ;;  %v6058_v12 = vld [vmem:[%s9053_s27 + $0x8] sm:$0xff]  ;;  %v6060_v21 = vld [vmem:[%s9053_s27 + $0x10] sm:$0xff]  ;;  %v6062_v23 = vld [vmem:[%s9053_s27 + $0x18] sm:$0xff]  ;;  %s6072_s30 = scalar_lea.vmem %s9053_s27, 64   ;;  %s6073_s10 = scalar_lea.vmem %s9049_s9, 64   ;;  %s9053_s27 = sphi %s9051_s27, %s9052_s27   ;;  %s9049_s9 = sphi %s9047_s9, %s9048_s9   ;;  %v9045_v16 = vphi %v9043_v16, %v6074_v16  }
 0x7b0   : > { %6059 = vst [vmem:[%s9049_s9 + $0x8] sm:$0xff] %v6058_v12  ;;  %6061 = vst [vmem:[%s9049_s9 + $0x10] sm:$0xff] %v6060_v21  ;;  %v6064_v3 = vld [vmem:[%s9053_s27 + $0x20] sm:$0xff]  ;;  %v6066_v47 = vld [vmem:[%s9053_s27 + $0x28] sm:$0xff]  ;;  %p6054_p9 = scmp.gt.s32.totalorder %s6072_s30, %s12896_s5 }
 0x7b1   : > { %6063 = vst [vmem:[%s9049_s9 + $0x18] sm:$0xff] %v6062_v23  ;;  %v6068_v33 = vld [vmem:[%s9053_s27 + $0x30] sm:$0xff]  ;;  %6065 = vst [vmem:[%s9049_s9 + $0x20] sm:$0xff] %v6064_v3  ;;  %v6070_v14 = vld [vmem:[%s9053_s27 + $0x38] sm:$0xff]  ;;  %p6974_p10 = scmp.gt.s32.totalorder (%p6054_p9), %s6072_s30, [#allocation10 + $0x60] }
 0x7b2   : > { %6067 = vst [vmem:[%s9049_s9 + $0x28] sm:$0xff] %v6066_v47  ;;  %6069 = vst [vmem:[%s9049_s9 + $0x30] sm:$0xff] %v6068_v33  ;;  %v6074_v16 = vld [vmem:[%s9053_s27 + $0x40] sm:$0xff]   ;;  %s9052_s27 = smov %s6072_s30   ;;  %6056 = sbr.rel (!%p6054_p9) target bundleno = 1967 (0x7af), region = 1373 }
 0x7b3   : > { %6071 = vst [vmem:[%s9049_s9 + $0x38] sm:$0xff] %v6070_v14  ;;  %s9048_s9 = smov %s6073_s10  }
 0x7b7   :  { %6975 = sbr.rel (%p6974_p10) target bundleno = 1988 (0x7c4), region = 1378  ;;  %s9055_s1 = smov (!%p6974_p10), %s6073_s10  }
 0x7b8   :  { %s9059_s11 = smov (!%p6974_p10), %s6072_s30  }
 0x7bc LB: > { %v6082_v22 = vld [vmem:[%s9061_s11] sm:$0xff]  ;;  %s6084_s11 = scalar_lea.vmem %s9061_s11, 8   ;;  %s9061_s11 = sphi %s9059_s11, %s6084_s11   ;;  %s9057_s1 = sphi %s9055_s1, %s6085_s1  }
 0x7bd   : > { %6083 = vst [vmem:[%s9057_s1] sm:$0xff] %v6082_v22  ;;  %s6085_s1 = scalar_lea.vmem %s9057_s1, 8   ;;  %p6079_p11 = scmp.gt.s32.totalorder %s6084_s11, [#allocation10 + $0x60] }
 0x7bf   :  { %6081 = sbr.rel (!%p6079_p11) target bundleno = 1980 (0x7bc), region = 1384 }
 0x7c4 PF:  { %v6112_v50 = vld [vmem:[#allocation11] sm:$0xff]   ;;  %s9089_s12 = smov [#allocation11 + $0x60]   ;;  %s13130_s21 = sld [smem:[#allocation48_spill]] }
 0x7c5   :  { %s12902_s13 = sadd.s32 4294967232, %s9089_s12  ;;  %v9063_v6 = vmov %v6112_v50   ;;  %s9071_s4 = smov [#allocation11]  }
 0x7ca   :  { %s9067_s24 = smov %s13130_s21  }
 0x7cb LB: > { %6120 = vst [vmem:[%s9069_s24] sm:$0xff] %v9065_v6  ;;  %v6121_v36 = vld [vmem:[%s9073_s4 + $0x8] sm:$0xff]  ;;  %v6123_v0 = vld [vmem:[%s9073_s4 + $0x10] sm:$0xff]  ;;  %v6125_v31 = vld [vmem:[%s9073_s4 + $0x18] sm:$0xff]  ;;  %s6135_s28 = scalar_lea.vmem %s9073_s4, 64   ;;  %s6136_s7 = scalar_lea.vmem %s9069_s24, 64   ;;  %s9073_s4 = sphi %s9071_s4, %s9072_s4   ;;  %s9069_s24 = sphi %s9067_s24, %s9068_s24   ;;  %v9065_v6 = vphi %v9063_v6, %v6137_v6  }
 0x7cc   : > { %6122 = vst [vmem:[%s9069_s24 + $0x8] sm:$0xff] %v6121_v36  ;;  %6124 = vst [vmem:[%s9069_s24 + $0x10] sm:$0xff] %v6123_v0  ;;  %v6127_v35 = vld [vmem:[%s9073_s4 + $0x20] sm:$0xff]  ;;  %v6129_v58 = vld [vmem:[%s9073_s4 + $0x28] sm:$0xff]  ;;  %p6117_p12 = scmp.gt.s32.totalorder %s6135_s28, %s12902_s13 }
 0x7cd   : > { %6126 = vst [vmem:[%s9069_s24 + $0x18] sm:$0xff] %v6125_v31  ;;  %v6131_v62 = vld [vmem:[%s9073_s4 + $0x30] sm:$0xff]  ;;  %6128 = vst [vmem:[%s9069_s24 + $0x20] sm:$0xff] %v6127_v35  ;;  %v6133_v54 = vld [vmem:[%s9073_s4 + $0x38] sm:$0xff]  ;;  %p6994_p13 = scmp.gt.s32.totalorder (%p6117_p12), %s6135_s28, [#allocation11 + $0x60] }
 0x7ce   : > { %6130 = vst [vmem:[%s9069_s24 + $0x28] sm:$0xff] %v6129_v58  ;;  %6132 = vst [vmem:[%s9069_s24 + $0x30] sm:$0xff] %v6131_v62  ;;  %v6137_v6 = vld [vmem:[%s9073_s4 + $0x40] sm:$0xff]   ;;  %s9072_s4 = smov %s6135_s28   ;;  %6119 = sbr.rel (!%p6117_p12) target bundleno = 1995 (0x7cb), region = 1395 }
 0x7cf   : > { %6134 = vst [vmem:[%s9069_s24 + $0x38] sm:$0xff] %v6133_v54  ;;  %s9068_s24 = smov %s6136_s7  }
 0x7d3   :  { %6995 = sbr.rel (%p6994_p13) target bundleno = 2016 (0x7e0), region = 1400  ;;  %s9075_s29 = smov (!%p6994_p13), %s6136_s7  }
 0x7d4   :  { %s9079_s14 = smov (!%p6994_p13), %s6135_s28  }
 0x7d8 LB: > { %v6145_v9 = vld [vmem:[%s9081_s14] sm:$0xff]  ;;  %s6147_s14 = scalar_lea.vmem %s9081_s14, 8   ;;  %s9081_s14 = sphi %s9079_s14, %s6147_s14   ;;  %s9077_s29 = sphi %s9075_s29, %s6148_s29  }
 0x7d9   : > { %6146 = vst [vmem:[%s9077_s29] sm:$0xff] %v6145_v9  ;;  %s6148_s29 = scalar_lea.vmem %s9077_s29, 8   ;;  %p6142_p0 = scmp.gt.s32.totalorder %s6147_s14, [#allocation11 + $0x60] }
 0x7db   :  { %6144 = sbr.rel (!%p6142_p0) target bundleno = 2008 (0x7d8), region = 1406 }
 0x7e0 PF:  {}

// kernel: gaussian_denoiser.1
= control target key start
LH: loop header
LB: loop body
LE: loop exit
PB: predicated region body
PF: predicated region fallthrough
CT: control target
= control target key end

     0   :  { %v427_v4 = vmov 0   ;;  %v34_v14 = vlaneseq  ;;  %s913_s0 = inlined_call_operand.vmem [shape: f32[16,256], index: 0, kind: input, shape index: {}]   ;;  %s914_s1 = inlined_call_operand.vmem [shape: f32[16,1], index: 1, kind: input, shape index: {}]   ;;  %s915_s2 = inlined_call_operand.vmem [shape: f32[1,256], index: 2, kind: input, shape index: {}]   ;;  %s916_s3 = inlined_call_operand.vmem [shape: f32[1,256], index: 3, kind: input, shape index: {}]   ;;  %s917_s4 = inlined_call_operand.vmem [shape: f32[256,256], index: 4, kind: input, shape index: {}]   ;;  %s918_s5 = inlined_call_operand.vmem [shape: f32[256,256], index: 5, kind: input, shape index: {}]   ;;  %s919_s6 = inlined_call_operand.hbm [shape: f32[16,256], index: 6, kind: output, shape index: {}]  }
   0x1   :  { %v79_v0 = vld [vmem:[%s917_s4 + $0xf8] sm:$0xff]  ;;  %v78_v1 = vld [vmem:[%s917_s4 + $0xf0] sm:$0xff]  ;;  %v77_v2 = vld [vmem:[%s917_s4 + $0xe8] sm:$0xff]  ;;  %396 = vset.pattern.permute.xlu0 %v427_v4 }
   0x2   :  { %112 = vmatprep.subr.mxu0 %v79_v0  ;;  %v76_v3 = vld [vmem:[%s917_s4 + $0xe0] sm:$0xff]  ;;  %v75_v5 = vld [vmem:[%s917_s4 + $0xd8] sm:$0xff]  ;;  %v74_v6 = vld [vmem:[%s917_s4 + $0xd0] sm:$0xff]  ;;  %v517_v19 = vshrl.u32 %v34_v14, 7 }
   0x3   :  { %113 = vmatpush1.msra.mxu0 %v78_v1  ;;  %v73_v7 = vld [vmem:[%s917_s4 + $0xc8] sm:$0xff]  ;;  %v72_v8 = vld [vmem:[%s917_s4 + $0xc0] sm:$0xff]  ;;  %v71_v9 = vld [vmem:[%s917_s4 + $0xb8] sm:$0xff] }
   0x4   :  { %114 = vmatprep.subr.mxu0 %v77_v2  ;;  %v70_v10 = vld [vmem:[%s917_s4 + $0xb0] sm:$0xff]  ;;  %v69_v11 = vld [vmem:[%s917_s4 + $0xa8] sm:$0xff]  ;;  %v68_v12 = vld [vmem:[%s917_s4 + $0xa0] sm:$0xff]  ;;  %v40_v24 = vsub.s32 1, %v517_v19 }
   0x5   :  { %115 = vmatpush1.msra.mxu0 %v76_v3  ;;  %v67_v13 = vld [vmem:[%s917_s4 + $0x98] sm:$0xff]  ;;  %v66_v15 = vld [vmem:[%s917_s4 + $0x90] sm:$0xff]  ;;  %v65_v16 = vld [vmem:[%s917_s4 + $0x88] sm:$0xff] }
   0x6   :  { %116 = vmatprep.subr.mxu0 %v75_v5  ;;  %v64_v17 = vld [vmem:[%s917_s4 + $0x80] sm:$0xff]  ;;  %v63_v18 = vld [vmem:[%s917_s4 + $0x78] sm:$0xff]  ;;  %v62_v20 = vld [vmem:[%s917_s4 + $0x70] sm:$0xff] }
   0x7   :  { %117 = vmatpush1.msra.mxu0 %v74_v6  ;;  %v61_v21 = vld [vmem:[%s917_s4 + $0x68] sm:$0xff]  ;;  %v60_v22 = vld [vmem:[%s917_s4 + $0x60] sm:$0xff]  ;;  %v59_v23 = vld [vmem:[%s917_s4 + $0x58] sm:$0xff] }
   0x8   :  { %118 = vmatprep.subr.mxu0 %v73_v7  ;;  %v58_v25 = vld [vmem:[%s917_s4 + $0x50] sm:$0xff]  ;;  %v57_v26 = vld [vmem:[%s917_s4 + $0x48] sm:$0xff]  ;;  %v56_v27 = vld [vmem:[%s917_s4 + $0x40] sm:$0xff] }
   0x9   :  { %119 = vmatpush1.msra.mxu0 %v72_v8  ;;  %v544_v28 = vld [vmem:[%s913_s0 + $0x8] sm:$0xff]  ;;  %v549_v29 = vld [vmem:[%s915_s2] sm:$0x3]  ;;  %v55_v30 = vld [vmem:[%s917_s4 + $0x38] sm:$0xff] }
   0xa   :  { %120 = vmatprep.subr.mxu0 %v71_v9  ;;  %v557_v31 = vrot.slane %v549_v29, %v40_v24  ;;  %v54_v32 = vld [vmem:[%s917_s4 + $0x30] sm:$0xff]  ;;  %v28_v33 = vld [vmem:[%s914_s1] sm:$0xff]  ;;  %v254_v34 = vld [vmem:[%s918_s5 + $0xf8] sm:$0xff] }
   0xb   :  { %121 = vmatpush1.msra.mxu0 %v70_v10  ;;  %v53_v35 = vld [vmem:[%s917_s4 + $0x28] sm:$0xff]  ;;  %v52_v38 = vld [vmem:[%s917_s4 + $0x20] sm:$0xff]  ;;  %v30_v39 = vmul.f32 %v28_v33, %v28_v33  ;;  %287 = vmatprep.subr.mxu1 %v254_v34  ;;  %v253_v40 = vld [vmem:[%s918_s5 + $0xf0] sm:$0xff] }
   0xc   :  { %122 = vmatprep.subr.mxu0 %v69_v11  ;;  %v45_v36 = vsub.f32 %v544_v28, %v557_v31  ;;  %v29_v37 = vld [vmem:[%s914_s1 + $0x8] sm:$0xff]  ;;  %v51_v41 = vld [vmem:[%s917_s4 + $0x18] sm:$0xff]  ;;  %v50_v43 = vld [vmem:[%s917_s4 + $0x10] sm:$0xff]  ;;  %288 = vmatpush1.msra.mxu1 %v253_v40 }
   0xd   :  { %123 = vmatpush1.msra.mxu0 %v68_v12  ;;  %v252_v42 = vld [vmem:[%s918_s5 + $0xe8] sm:$0xff]  ;;  %203 = vperm.xlu0 %396, %v30_v39   ;;  %v31_v44 = vmul.f32 %v29_v37, %v29_v37  ;;  %v251_v45 = vld [vmem:[%s918_s5 + $0xe0] sm:$0xff]  ;;  %v250_v48 = vld [vmem:[%s918_s5 + $0xd8] sm:$0xff] }
   0xe   :  { %124 = vmatprep.subr.mxu0 %v67_v13  ;;  %176 = vmatprep.mubr.f32.mxu0 %v45_v36  ;;  %v49_v46 = vld [vmem:[%s917_s4 + $0x8] sm:$0xff]  ;;  %v48_v47 = vld [vmem:[%s917_s4] sm:$0xff]  ;;  %v111_v49 = vld [vmem:[%s917_s4 + $0x1f8] sm:$0xff] }
   0xf   :  { %125 = vmatpush1.msra.mxu0 %v66_v15  ;;  %289 = vmatprep.subr.mxu1 %v252_v42  ;;  %v249_v50 = vld [vmem:[%s918_s5 + $0xd0] sm:$0xff]  ;;  %v248_v52 = vld [vmem:[%s918_s5 + $0xc8] sm:$0xff]  ;;  %v247_v54 = vld [vmem:[%s918_s5 + $0xc0] sm:$0xff] }
  0x10   :  { %126 = vmatprep.subr.mxu0 %v65_v16  ;;  %290 = vmatpush1.msra.mxu1 %v251_v45  ;;  %v110_v51 = vld [vmem:[%s917_s4 + $0x1f0] sm:$0xff]  ;;  %v109_v53 = vld [vmem:[%s917_s4 + $0x1e8] sm:$0xff]  ;;  %v108_v55 = vld [vmem:[%s917_s4 + $0x1e0] sm:$0xff] }
  0x11   :  { %127 = vmatpush1.msra.mxu0 %v64_v17  ;;  %208 = vperm.xlu0 %396, %v31_v44   ;;  %v246_v56 = vld [vmem:[%s918_s5 + $0xb8] sm:$0xff]  ;;  %v245_v58 = vld [vmem:[%s918_s5 + $0xb0] sm:$0xff]  ;;  %v244_v60 = vld [vmem:[%s918_s5 + $0xa8] sm:$0xff] }
  0x12   :  { %128 = vmatprep.subr.mxu0 %v63_v18  ;;  %291 = vmatprep.subr.mxu1 %v250_v48  ;;  %v107_v57 = vld [vmem:[%s917_s4 + $0x1d8] sm:$0xff]  ;;  %v106_v59 = vld [vmem:[%s917_s4 + $0x1d0] sm:$0xff]  ;;  %v105_v61 = vld [vmem:[%s917_s4 + $0x1c8] sm:$0xff] }
  0x13   :  { %129 = vmatpush1.msra.mxu0 %v62_v20  ;;  %292 = vmatpush1.msra.mxu1 %v249_v50  ;;  %v243_v62 = vld [vmem:[%s918_s5 + $0xa0] sm:$0xff]  ;;  %v242_v0 = vld [vmem:[%s918_s5 + $0x98] sm:$0xff]  ;;  %v241_v2 = vld [vmem:[%s918_s5 + $0x90] sm:$0xff] }
  0x14   :  { %130 = vmatprep.subr.mxu0 %v61_v21  ;;  %293 = vmatprep.subr.mxu1 %v248_v52  ;;  %v104_v63 = vld [vmem:[%s917_s4 + $0x1c0] sm:$0xff]  ;;  %v103_v1 = vld [vmem:[%s917_s4 + $0x1b8] sm:$0xff]  ;;  %v102_v3 = vld [vmem:[%s917_s4 + $0x1b0] sm:$0xff] }
  0x15   :  { %131 = vmatpush1.msra.mxu0 %v60_v22  ;;  %294 = vmatpush1.msra.mxu1 %v247_v54  ;;  %v240_v4 = vld [vmem:[%s918_s5 + $0x88] sm:$0xff]  ;;  %v239_v6 = vld [vmem:[%s918_s5 + $0x80] sm:$0xff]  ;;  %v238_v8 = vld [vmem:[%s918_s5 + $0x78] sm:$0xff] }
  0x16   :  { %132 = vmatprep.subr.mxu0 %v59_v23  ;;  %295 = vmatprep.subr.mxu1 %v246_v56  ;;  %v101_v5 = vld [vmem:[%s917_s4 + $0x1a8] sm:$0xff]  ;;  %v100_v7 = vld [vmem:[%s917_s4 + $0x1a0] sm:$0xff]  ;;  %v99_v9 = vld [vmem:[%s917_s4 + $0x198] sm:$0xff] }
  0x17   :  { %133 = vmatpush1.msra.mxu0 %v58_v25  ;;  %296 = vmatpush1.msra.mxu1 %v245_v58  ;;  %v237_v10 = vld [vmem:[%s918_s5 + $0x70] sm:$0xff]  ;;  %v236_v12 = vld [vmem:[%s918_s5 + $0x68] sm:$0xff] }
  0x18   :  { %134 = vmatprep.subr.mxu0 %v57_v26  ;;  %297 = vmatprep.subr.mxu1 %v244_v60  ;;  %v98_v11 = vld [vmem:[%s917_s4 + $0x190] sm:$0xff] }
  0x19   :  { %135 = vmatpush1.msra.mxu0 %v56_v27  ;;  %298 = vmatpush1.msra.mxu1 %v243_v62 }
  0x1a   :  { %136 = vmatprep.subr.mxu0 %v55_v30  ;;  %299 = vmatprep.subr.mxu1 %v242_v0 }
  0x1b   :  { %137 = vmatpush1.msra.mxu0 %v54_v32  ;;  %300 = vmatpush1.msra.mxu1 %v241_v2 }
  0x1c   :  { %138 = vmatprep.subr.mxu0 %v53_v35  ;;  %301 = vmatprep.subr.mxu1 %v240_v4 }
  0x1d   :  { %139 = vmatpush1.msra.mxu0 %v52_v38  ;;  %302 = vmatpush1.msra.mxu1 %v239_v6 }
  0x1e   :  { %140 = vmatprep.subr.mxu0 %v51_v41 }
  0x1f   :  { %141 = vmatpush1.msra.mxu0 %v50_v43 }
  0x20   :  { %142 = vmatprep.subr.mxu0 %v49_v46 }
  0x21   :  { %143 = vmatpush1.msra.mxu0 %v48_v47 }
  0x22   :  { %144 = vmatprep.subr.mxu0 %v111_v49 }
  0x23   :  { %145 = vmatpush2.msra.mxu0 %v110_v51 }
  0x24   :  { %146 = vmatprep.subr.mxu0 %v109_v53 }
  0x25   :  { %147 = vmatpush2.msra.mxu0 %v108_v55 }
  0x26   :  { %148 = vmatprep.subr.mxu0 %v107_v57 }
  0x27   :  { %149 = vmatpush2.msra.mxu0 %v106_v59 }
  0x28   :  { %150 = vmatprep.subr.mxu0 %v105_v61 }
  0x29   :  { %151 = vmatpush2.msra.mxu0 %v104_v63 }
  0x2a   :  { %152 = vmatprep.subr.mxu0 %v103_v1 }
  0x2b   :  { %153 = vmatpush2.msra.mxu0 %v102_v3 }
  0x2c   :  { %154 = vmatprep.subr.mxu0 %v101_v5 }
  0x2d   :  { %11 = vsyncpa [#allocation3], 0  ;;  %155 = vmatpush2.msra.mxu0 %v100_v7  ;;  %v97_v13 = vld [vmem:[%s917_s4 + $0x188] sm:$0xff]  ;;  %303 = vmatprep.subr.mxu1 %v238_v8  ;;  %v235_v14 = vld [vmem:[%s918_s5 + $0x60] sm:$0xff]  ;;  %v36_v37 = vsub.s32 0, %v517_v19 }
  0x2e   :  { %156 = vmatprep.subr.mxu0 %v99_v9  ;;  %v96_v15 = vld [vmem:[%s917_s4 + $0x180] sm:$0xff]  ;;  %304 = vmatpush1.msra.mxu1 %v237_v10  ;;  %v234_v16 = vld [vmem:[%s918_s5 + $0x58] sm:$0xff]  ;;  %v233_v18 = vld [vmem:[%s918_s5 + $0x50] sm:$0xff] }
  0x2f   :  { %157 = vmatpush2.msra.mxu0 %v98_v11  ;;  %v95_v17 = vld [vmem:[%s917_s4 + $0x178] sm:$0xff]  ;;  %305 = vmatprep.subr.mxu1 %v236_v12  ;;  %v94_v20 = vld [vmem:[%s917_s4 + $0x170] sm:$0xff]  ;;  %v232_v21 = vld [vmem:[%s918_s5 + $0x48] sm:$0xff]  ;;  %v37_v46 = vrot.slane %v549_v29, %v36_v37 }
  0x30   :  { %158 = vmatprep.subr.mxu0 %v97_v13  ;;  %306 = vmatpush1.msra.mxu1 %v235_v14  ;;  %v93_v22 = vld [vmem:[%s917_s4 + $0x168] sm:$0xff]  ;;  %v231_v23 = vld [vmem:[%s918_s5 + $0x40] sm:$0xff]  ;;  %v230_v26 = vld [vmem:[%s918_s5 + $0x38] sm:$0xff] }
  0x31   :  { %159 = vmatpush2.msra.mxu0 %v96_v15  ;;  %307 = vmatprep.subr.mxu1 %v234_v16  ;;  %v92_v25 = vld [vmem:[%s917_s4 + $0x160] sm:$0xff]  ;;  %v91_v27 = vld [vmem:[%s917_s4 + $0x158] sm:$0xff]  ;;  %v229_v30 = vld [vmem:[%s918_s5 + $0x30] sm:$0xff] }
  0x32   :  { %160 = vmatprep.subr.mxu0 %v95_v17  ;;  %308 = vmatpush1.msra.mxu1 %v233_v18  ;;  %v90_v32 = vld [vmem:[%s917_s4 + $0x150] sm:$0xff]  ;;  %v228_v33 = vld [vmem:[%s918_s5 + $0x28] sm:$0xff]  ;;  %v227_v35 = vld [vmem:[%s918_s5 + $0x20] sm:$0xff] }
  0x33   :  { %161 = vmatpush2.msra.mxu0 %v94_v20  ;;  %309 = vmatprep.subr.mxu1 %v232_v21  ;;  %v89_v34 = vld [vmem:[%s917_s4 + $0x148] sm:$0xff]  ;;  %v88_v36 = vld [vmem:[%s917_s4 + $0x140] sm:$0xff]  ;;  %v226_v38 = vld [vmem:[%s918_s5 + $0x18] sm:$0xff] }
  0x34   :  { %162 = vmatprep.subr.mxu0 %v93_v22  ;;  %310 = vmatpush1.msra.mxu1 %v231_v23  ;;  %v87_v39 = vld [vmem:[%s917_s4 + $0x138] sm:$0xff]  ;;  %v225_v40 = vld [vmem:[%s918_s5 + $0x10] sm:$0xff]  ;;  %v224_v42 = vld [vmem:[%s918_s5 + $0x8] sm:$0xff] }
  0x35   :  { %163 = vmatpush2.msra.mxu0 %v92_v25  ;;  %311 = vmatprep.subr.mxu1 %v230_v26  ;;  %v86_v41 = vld [vmem:[%s917_s4 + $0x130] sm:$0xff]  ;;  %v85_v43 = vld [vmem:[%s917_s4 + $0x128] sm:$0xff]  ;;  %v223_v44 = vld [vmem:[%s918_s5] sm:$0xff] }
  0x36   :  { %164 = vmatprep.subr.mxu0 %v91_v27  ;;  %312 = vmatpush1.msra.mxu1 %v229_v30  ;;  %v84_v45 = vld [vmem:[%s917_s4 + $0x120] sm:$0xff]  ;;  %v286_v47 = vld [vmem:[%s918_s5 + $0x1f8] sm:$0xff]  ;;  %v285_v29 = vld [vmem:[%s918_s5 + $0x1f0] sm:$0xff] }
  0x37   :  { %165 = vmatpush2.msra.mxu0 %v90_v32  ;;  %313 = vmatprep.subr.mxu1 %v228_v33  ;;  %v83_v48 = vld [vmem:[%s917_s4 + $0x118] sm:$0xff]  ;;  %v781_v49 = vld [vmem:[%s913_s0] sm:$0xff]  ;;  %v82_v50 = vld [vmem:[%s917_s4 + $0x110] sm:$0xff] }
  0x38   :  { %166 = vmatprep.subr.mxu0 %v89_v34  ;;  %314 = vmatpush1.msra.mxu1 %v227_v35  ;;  %v792_v51 = vld [vmem:[%s913_s0 + $0x18] sm:$0xff]  ;;  %v284_v52 = vld [vmem:[%s918_s5 + $0x1e8] sm:$0xff]  ;;  %v283_v54 = vld [vmem:[%s918_s5 + $0x1e0] sm:$0xff]  ;;  %v44_v56 = vsub.f32 %v781_v49, %v37_v46 }
  0x39   :  { %167 = vmatpush2.msra.mxu0 %v88_v36  ;;  %315 = vmatprep.subr.mxu1 %v226_v38  ;;  %v81_v53 = vld [vmem:[%s917_s4 + $0x108] sm:$0xff]  ;;  %v80_v55 = vld [vmem:[%s917_s4 + $0x100] sm:$0xff]  ;;  %v282_v57 = vld [vmem:[%s918_s5 + $0x1d8] sm:$0xff]  ;;  %v47_v58 = vsub.f32 %v792_v51, %v557_v31 }
  0x3a   :  { %168 = vmatprep.subr.mxu0 %v87_v39  ;;  %316 = vmatpush1.msra.mxu1 %v225_v40  ;;  %v815_v59 = vld [vmem:[%s913_s0 + $0x10] sm:$0xff]  ;;  %v280_v61 = vld [vmem:[%s918_s5 + $0x1c8] sm:$0xff]  ;;  %v279_v31 = vld [vmem:[%s918_s5 + $0x1c0] sm:$0xff] }
  0x3b   :  { %169 = vmatpush2.msra.mxu0 %v86_v41  ;;  %317 = vmatprep.subr.mxu1 %v224_v42  ;;  %v281_v60 = vld [vmem:[%s918_s5 + $0x1d0] sm:$0xff]  ;;  %v46_v62 = vsub.f32 %v815_v59, %v37_v46  ;;  %v278_v63 = vld [vmem:[%s918_s5 + $0x1b8] sm:$0xff]  ;;  %v276_v1 = vld [vmem:[%s918_s5 + $0x1a8] sm:$0xff] }
  0x3c   :  { %170 = vmatprep.subr.mxu0 %v85_v43  ;;  %318 = vmatpush1.msra.mxu1 %v223_v44  ;;  %v277_v0 = vld [vmem:[%s918_s5 + $0x1b0] sm:$0xff]  ;;  %v275_v2 = vld [vmem:[%s918_s5 + $0x1a0] sm:$0xff]  ;;  %v274_v3 = vld [vmem:[%s918_s5 + $0x198] sm:$0xff] }
  0x3d   :  { %171 = vmatpush2.msra.mxu0 %v84_v45  ;;  %319 = vmatprep.subr.mxu1 %v286_v47  ;;  %v273_v4 = vld [vmem:[%s918_s5 + $0x190] sm:$0xff]  ;;  %v272_v5 = vld [vmem:[%s918_s5 + $0x188] sm:$0xff]  ;;  %v271_v6 = vld [vmem:[%s918_s5 + $0x180] sm:$0xff] }
  0x3e   :  { %172 = vmatprep.subr.mxu0 %v83_v48  ;;  %320 = vmatpush2.msra.mxu1 %v285_v29  ;;  %v270_v7 = vld [vmem:[%s918_s5 + $0x178] sm:$0xff]  ;;  %v269_v8 = vld [vmem:[%s918_s5 + $0x170] sm:$0xff]  ;;  %v268_v9 = vld [vmem:[%s918_s5 + $0x168] sm:$0xff] }
  0x3f   :  { %173 = vmatpush2.msra.mxu0 %v82_v50  ;;  %321 = vmatprep.subr.mxu1 %v284_v52  ;;  %v267_v10 = vld [vmem:[%s918_s5 + $0x160] sm:$0xff]  ;;  %v266_v11 = vld [vmem:[%s918_s5 + $0x158] sm:$0xff]  ;;  %v265_v12 = vld [vmem:[%s918_s5 + $0x150] sm:$0xff] }
  0x40   :  { %174 = vmatprep.subr.mxu0 %v81_v53  ;;  %322 = vmatpush2.msra.mxu1 %v283_v54  ;;  %v264_v13 = vld [vmem:[%s918_s5 + $0x148] sm:$0xff]  ;;  %v263_v14 = vld [vmem:[%s918_s5 + $0x140] sm:$0xff]  ;;  %v262_v15 = vld [vmem:[%s918_s5 + $0x138] sm:$0xff] }
  0x41   :  { %175 = vmatpush2.msra.mxu0 %v80_v55  ;;  %323 = vmatprep.subr.mxu1 %v282_v57  ;;  %v261_v16 = vld [vmem:[%s918_s5 + $0x130] sm:$0xff]  ;;  %v260_v17 = vld [vmem:[%s918_s5 + $0x128] sm:$0xff]  ;;  %v259_v18 = vld [vmem:[%s918_s5 + $0x120] sm:$0xff] }
  0x42   :  { %177 = vmatmul.mubr.f32.vlgmr.msra.gmra.mxu0 %v44_v56  ;;  %324 = vmatpush2.msra.mxu1 %v281_v60  ;;  %v258_v20 = vld [vmem:[%s918_s5 + $0x118] sm:$0xff]  ;;  %v257_v21 = vld [vmem:[%s918_s5 + $0x110] sm:$0xff]  ;;  %v256_v22 = vld [vmem:[%s918_s5 + $0x108] sm:$0xff] }
  0x43   :  { %182 = vmatprep.mubr.f32.mxu0 %v47_v58  ;;  %325 = vmatprep.subr.mxu1 %v280_v61  ;;  %v255_v23 = vld [vmem:[%s918_s5 + $0x100] sm:$0xff] }
  0x44   :  { %326 = vmatpush2.msra.mxu1 %v279_v31  ;;  %v189_v25 = vld [vmem:[%s916_s3] sm:$0x3]  ;;  %s428_s3 = smov [#allocation2]  }
  0x45   :  { %327 = vmatprep.subr.mxu1 %v278_v63  ;;  %v198_v26 = vrot.slane %v189_v25, %v40_v24  ;;  %v194_v30 = vrot.slane %v189_v25, %v36_v37  ;;  %s381_s5 = sshll.u32 %s428_s3, 4  ;;  %s382_s5 = int_to_ptr.vmem [resolvable:$true] %s381_s5 }
  0x46   :  { %183 = vmatmul.mubr.f32.gmra.mxu0 %v46_v62  ;;  %328 = vmatpush2.msra.mxu1 %v277_v0  ;;  %s405_s8 = scalar_lea.vmem %s382_s5, 512  ;;  %p410_p1 = scmp.lt.s32.totalorder %s382_s5, %s382_s5 }
  0x47   :  { %329 = vmatprep.subr.mxu1 %v276_v1  ;;  %p406_p0 = scmp.ne.s32.totalorder %s382_s5, %s405_s8  ;;  %p411_p2 = scmp.lt.s32.totalorder %s405_s8, %s405_s8 }
  0x48   :  { %330 = vmatpush2.msra.mxu1 %v275_v2 }
  0x49   :  { %331 = vmatprep.subr.mxu1 %v274_v3  ;;  %p412_p3 = por %p411_p2, %p410_p1 }
  0x4a   :  { %332 = vmatpush2.msra.mxu1 %v273_v4 }
  0x4b   :  { %333 = vmatprep.subr.mxu1 %v272_v5  ;;  %p413_p4 = pnand %p412_p3, %p406_p0 }
  0x4c   :  { %334 = vmatpush2.msra.mxu1 %v271_v6 }
  0x4d   :  { %335 = vmatprep.subr.mxu1 %v270_v7 }
  0x4e   :  { %336 = vmatpush2.msra.mxu1 %v269_v8 }
  0x4f   :  { %337 = vmatprep.subr.mxu1 %v268_v9 }
  0x50   :  { %338 = vmatpush2.msra.mxu1 %v267_v10 }
  0x51   :  { %339 = vmatprep.subr.mxu1 %v266_v11 }
  0x52   :  { %340 = vmatpush2.msra.mxu1 %v265_v12 }
  0x53   :  { %341 = vmatprep.subr.mxu1 %v264_v13 }
  0x54   :  { %342 = vmatpush2.msra.mxu1 %v263_v14 }
  0x55   :  { %343 = vmatprep.subr.mxu1 %v262_v15 }
  0x56   :  { %344 = vmatpush2.msra.mxu1 %v261_v16 }
  0x57   :  { %345 = vmatprep.subr.mxu1 %v260_v17 }
  0x58   :  { %346 = vmatpush2.msra.mxu1 %v259_v18 }
  0x59   :  { %347 = vmatprep.subr.mxu1 %v258_v20 }
  0x5a   :  { %348 = vmatpush2.msra.mxu1 %v257_v21 }
  0x5b   :  { %349 = vmatprep.subr.mxu1 %v256_v22 }
  0x5c   :  { %350 = vmatpush2.msra.mxu1 %v255_v23 }
  0x88   :  { %v204_v27 = vpop.permute.xlu0 %203 }
  0x89   :  { %v212_v32 = vadd.f32 %v204_v27, %v198_v26  ;;  %v211_v33 = vadd.f32 %v204_v27, %v194_v30 }
  0x8b   :  { %397 = vrcp.f32 %v212_v32 }
  0x8c   :  { %v209_v34 = vpop.permute.xlu0 %208  ;;  %399 = vrcp.f32 %v211_v33 }
  0x8d   :  { %v214_v35 = vadd.f32 %v209_v34, %v198_v26  ;;  %v213_v36 = vadd.f32 %v209_v34, %v194_v30 }
  0x8f   :  { %401 = vrcp.f32 %v214_v35 }
  0x90   :  { %403 = vrcp.f32 %v213_v36 }
  0x98   :  { %v398_v38 = vpop.eup %397 }
  0x99   :  { %v400_v40 = vpop.eup %399 }
  0x9c   :  { %v402_v44 = vpop.eup %401 }
  0x9d   :  { %v404_v37 = vpop.eup %403 }
 0x102   :  { %v178_v39 = vpop.f32.mrf.mxu0 }
 0x103   :  { %v219_v43 = vmul.f32 %v400_v40, %v178_v39 }
 0x104   :  { %v180_v41 = vpop.f32.mrf.mxu0 }
 0x105   :  { %v220_v42 = vmul.f32 %v398_v38, %v180_v41 }
 0x106   :  { %v184_v24 = vpop.f32.mrf.mxu0 }
 0x107   :  { %351 = vmatprep.mubr.f32.mxu1 %v220_v42  ;;  %v221_v46 = vmul.f32 %v404_v37, %v184_v24 }
 0x108   :  { %v186_v19 = vpop.f32.mrf.mxu0  ;;  %352 = vmatmul.mubr.f32.vlgmr.msra.gmra.mxu1 %v219_v43 }
 0x109   :  { %v222_v45 = vmul.f32 %v402_v44, %v186_v19 }
 0x10b   :  { %357 = vmatprep.mubr.f32.mxu1 %v222_v45 }
 0x10c   :  { %358 = vmatmul.mubr.f32.gmra.mxu1 %v221_v46 }
 0x1c8   :  { %v353_v47 = vpop.f32.mrf.mxu1 }
 0x1c9   :  { %v364_v48 = vmul.f32 %v353_v47, %v204_v27 }
 0x1ca   :  { %v355_v29 = vpop.f32.mrf.mxu1 }
 0x1cb   :  { %v368_v50 = vsub.f32 %v781_v49, %v364_v48  ;;  %v365_v52 = vmul.f32 %v355_v29, %v204_v27 }
 0x1cc   :  { %v359_v53 = vpop.f32.mrf.mxu1 }
 0x1cd   :  { %372 = vst [vmem:[#allocation2] sm:$0xff] %v368_v50  ;;  %v369_v54 = vsub.f32 %v544_v28, %v365_v52  ;;  %v366_v55 = vmul.f32 %v359_v53, %v209_v34 }
 0x1ce   :  { %v361_v56 = vpop.f32.mrf.mxu1 }
 0x1cf   :  { %373 = vst [vmem:[#allocation2 + $0x8] sm:$0xff] %v369_v54  ;;  %v370_v57 = vsub.f32 %v815_v59, %v366_v55  ;;  %v367_v58 = vmul.f32 %v361_v56, %v209_v34 }
 0x1d1   :  { %374 = vst [vmem:[#allocation2 + $0x10] sm:$0xff] %v370_v57  ;;  %v371_v60 = vsub.f32 %v792_v51, %v367_v58 }
 0x1d3   :  { %375 = vst [vmem:[#allocation2 + $0x18] sm:$0xff] %v371_v60 }
 0x1d4   :  { %416 = shalt.err (!%p413_p4)
}
 0x1d5   :  { %s429_s9 = smov 256   ;;  %s430_s4 = smov 16  }
 0x1d6   :  { %387 = dma.vmem_to_hbm [thread:$0]  %s382_s5, 512, %s919_s6, [#allocation3], %s429_s9, %s429_s9, %s430_s4  }
 0x1d7   :  { %425 = dma.done.wait [#allocation3], 512  }
 0x1d8   :  { %426 = vsyncadd [#allocation3], 4294966784 }
 0x1d9   :  { %391 = vsyncpa [#allocation3], 1 }

</bundles_post_ra>
